<compile_context>
chip_gen: v5e
topology: v5e:2x2
jax: 0.10.0
libtpu: 0.0.40
codegen_flags: <defaults>
</compile_context>

<pallas_src>
import functools

import numpy as np
import jax
import jax.numpy as jnp
from jax.experimental import pallas as pl
from jax.experimental.pallas import tpu as pltpu

MSSSIM_WEIGHTS = np.array([0.0448, 0.2856, 0.3001, 0.2363, 0.1333], np.float32)
WINDOW_SIZE = 11
SIGMA = 1.5
NUM_CATS = 10
LEVELS = 5
KRON_MAX = 32          # scales with side <= KRON_MAX use the flattened/Kronecker path


# ----------------------------- host-side operator construction -------------------
def _gaussian_1d(k, sigma=SIGMA):
    x = np.arange(k, dtype=np.float64)
    g = np.exp(-((x - k // 2) ** 2) / (2.0 * sigma ** 2))
    return (g / g.sum()).astype(np.float32)


def _gauss_toeplitz(size, k):
    # 'valid' 1-D gaussian cross-correlation (matches F.conv2d) as a matrix.
    g = _gaussian_1d(k)
    out = size - k + 1
    m = np.zeros((out, size), np.float32)
    for i in range(out):
        m[i, i:i + k] = g
    return m


def _pool_matrix(size):
    # F.avg_pool2d(x, (2,2)) row/col operator (drops trailing odd row/col).
    outp = size // 2
    m = np.zeros((outp, size), np.float32)
    for i in range(outp):
        m[i, 2 * i] = 0.5
        m[i, 2 * i + 1] = 0.5
    return m


def _pad_rows_to_8(m):
    pad = (-m.shape[0]) % 8
    if pad:
        m = np.concatenate([m, np.zeros((pad, m.shape[1]), np.float32)], axis=0)
    return m


def _build_plan(s0, levels):
    """Static per-level schedule + blur/pool operator matrices.

    Per level: 'win'  (go==1)        -> flattened window outer(g,g), VPU sum;
               'kron' (side<=32)     -> (S^2, go^2) Kronecker operator, 1 matmul;
               'sep'  (large scales) -> padded Toeplitz, separable 2-matmul path.
    """
    plan, ops = [], []
    s = s0
    flat = s <= KRON_MAX
    for lvl in range(levels):
        k = min(WINDOW_SIZE, s)                  # real_size = min(window, H, W)
        go = s - k + 1
        if go == 1:
            g = _gaussian_1d(k)
            ops.append(jnp.asarray(np.outer(g, g).reshape(1, s * s).astype(np.float32)))
            blur = "win"
        elif flat:
            g2 = _gauss_toeplitz(s, k)                                     # (go, S)
            ops.append(jnp.asarray(np.ascontiguousarray(np.kron(g2, g2).T)))  # (S^2, go^2)
            blur = "kron"
        else:
            ops.append(jnp.asarray(_pad_rows_to_8(_gauss_toeplitz(s, k))))
            blur = "sep"
        e = dict(s=s, go=go, flat=flat, blur=blur, pool=None, next_flat=None)
        if lvl + 1 < levels:
            ns = s // 2
            p = _pool_matrix(s)                                            # (ns, S)
            if flat:
                ops.append(jnp.asarray(np.ascontiguousarray(np.kron(p, p).T)))  # (S^2, ns^2)
                e["pool"] = "kron"
            else:
                ops.append(jnp.asarray(_pad_rows_to_8(p)))
                e["pool"] = "sep"
            e["next_flat"] = ns <= KRON_MAX
            flat = e["next_flat"]
            s = ns
        plan.append(e)
    return plan, ops


# ----------------------------- in-kernel helpers ---------------------------------
def _fast_recip(v):
    # EUP approximate reciprocal (frees the busiest VALU slot) + one Newton step
    # so the loss stays at ~f32 accuracy vs. the exact-division reference.
    r = pl.reciprocal(v, approx=True)
    return r * (2.0 - v * r)


def _reduce_keep(a, fn):
    for ax in range(a.ndim - 1, 0, -1):
        a = fn(a, axis=ax, keepdims=True)
    return a                                          # (n, 1[, 1])


def _map_mean(m, n, inv_cnt):
    s = m
    for ax in range(m.ndim - 1, 0, -1):
        s = jnp.sum(s, axis=ax, keepdims=True)
    return s.reshape(n, 1) * inv_cnt                  # (n, 1)


def _sep_apply(z, op, valid_out):
    """Large-scale path: op @ z_m @ op^T per leading slice ('valid' separable conv
    or 2x2 pool as a matrix); `op` may carry zero padding rows.  The fast path
    returns the per-image TRANSPOSE of the true result; every consumer (SSIM
    elementwise maps, means, max/min, the next blur/pool stage, the Kronecker
    operators at later levels) is invariant under a consistent transpose."""
    m, s, _ = z.shape
    o = op.shape[0]
    if s % 8 == 0:
        op_t = op.T                                               # (s, o)
        t = jnp.dot(z.reshape(m * s, s), op_t, preferred_element_type=jnp.float32)
        t = jnp.transpose(t.reshape(m, s, o), (0, 2, 1))          # (m, o, s)
        u = jnp.dot(t.reshape(m * o, s), op_t, preferred_element_type=jnp.float32)
        out = u.reshape(m, o, o)
    else:
        # Unusual non-8-multiple large scales only; compute is negligible there.
        opb = jnp.broadcast_to(op, (m,) + op.shape)
        t = jnp.einsum('nos,nsw->now', opb, z, preferred_element_type=jnp.float32)
        out = jnp.einsum('now,npw->nop', t, opb, preferred_element_type=jnp.float32)
    if valid_out != o:
        out = out[:, :valid_out, :valid_out]
    return out


# ----------------------------- Pallas kernel: all 5 MS-SSIM scales ---------------
def _msssim_kernel(x_ref, y_ref, *refs, plan):
    n_ops = sum(1 + (e["pool"] is not None) for e in plan)
    op_refs = refs[:n_ops]
    ssim_ref, cs_ref = refs[n_ops], refs[n_ops + 1]

    if plan[0]["flat"]:
        x = x_ref[0].astype(jnp.float32)              # (n, S*S)  lane-dense
        y = y_ref[0].astype(jnp.float32)
    else:
        x = x_ref[...].astype(jnp.float32)            # (n, S, S)
        y = y_ref[...].astype(jnp.float32)
    n = x.shape[0]

    ss_means, cs_means = [], []
    op_i = 0
    for e in plan:
        go = e["go"]

        # Dynamic value range L per category from img1 (= y_pred), recomputed at
        # every scale, as in pytorch_msssim.ssim(val_range=None).
        x_max = _reduce_keep(x, jnp.max)
        x_min = _reduce_keep(x, jnp.min)
        big_l = (jnp.where(x_max > 128.0, 255.0, 1.0)
                 - jnp.where(x_min < -0.5, -1.0, 0.0))
        c1 = (0.01 * big_l) ** 2
        c2 = (0.03 * big_l) ** 2

        # All five blur operands of all categories in one fused stack.
        stk = jnp.concatenate([x, y, x * x, y * y, x * y], axis=0)        # (5n, ...)

        blur_op = op_refs[op_i][...]
        op_i += 1
        if e["blur"] == "win":
            # window covers the whole image: VPU weighted sum, no MXU/transpose
            bl = jnp.sum(stk * blur_op, axis=1, keepdims=True)            # (5n, 1)
        elif e["blur"] == "kron":
            # single lane-dense MXU matmul against the (S^2, go^2) G (x) G operator
            bl = jnp.dot(stk, blur_op, preferred_element_type=jnp.float32)  # (5n, go^2)
        else:
            bl = _sep_apply(stk, blur_op, go)                             # (5n, go, go)

        mu1, mu2, ex2, ey2, exy = (bl[i * n:(i + 1) * n] for i in range(5))
        mu1_sq = mu1 * mu1
        mu2_sq = mu2 * mu2
        mu1_mu2 = mu1 * mu2
        v1 = 2.0 * (exy - mu1_mu2) + c2               # 2*sigma12 + C2
        v2 = (ex2 - mu1_sq) + (ey2 - mu2_sq) + c2     # sigma1^2 + sigma2^2 + C2
        cs_map = v1 * _fast_recip(v2)
        ssim_map = (2.0 * mu1_mu2 + c1) * _fast_recip(mu1_sq + mu2_sq + c1) * cs_map

        inv_cnt = 1.0 / float(go * go)
        cs_means.append(_map_mean(cs_map, n, inv_cnt))
        ss_means.append(_map_mean(ssim_map, n, inv_cnt))

        if e["pool"] is not None:
            pool_op = op_refs[op_i][...]
            op_i += 1
            xy = stk[:2 * n]                          # reuse: exactly [x, y]
            if e["pool"] == "kron":
                pooled = jnp.dot(xy, pool_op, preferred_element_type=jnp.float32)
            else:
                ns = e["s"] // 2
                pooled = _sep_apply(xy, pool_op, ns)  # (2n, ns, ns)
                if e["next_flat"]:
                    pooled = pooled.reshape(2 * n, ns * ns)
            x = pooled[:n]
            y = pooled[n:]

    # Two lane-dense stores instead of 2*levels masked single-column stores.
    levels = len(plan)
    ssim_ref[...] = jnp.concatenate(ss_means, axis=1).reshape(1, n, levels)
    cs_ref[...] = jnp.concatenate(cs_means, axis=1).reshape(1, n, levels)


# ----------------------------- wrapper --------------------------------------------
def _vmem_capacity_bytes():
    try:
        return int(pltpu.get_tpu_info().vmem_capacity_bytes)
    except Exception:
        return 64 * 1024 * 1024       # conservative: one v7x TensorCore


def _img_bytes(side):
    return 4 * max(side * side, 8 * 128)


def _op_bytes(op):
    r, c = op.shape
    return 4 * (-(-r // 8) * 8) * (-(-c // 128) * 128)


def _vmem_estimate(cb, plan, ops):
    total = 2 << 20                                    # scalars + slack
    total += 2 * 2 * cb * _img_bytes(plan[0]["s"])     # double-buffered x/y blocks
    total += sum(2 * _op_bytes(op) for op in ops)      # operators (2 pipeline bufs)
    for e in plan:
        total += 7 * cb * _img_bytes(e["s"])           # x, y + 5-way stack
        total += 12 * cb * _img_bytes(e["go"])         # blurred maps + temporaries
        if e["pool"] is not None:
            total += 2 * cb * _img_bytes(e["s"] // 2)
    return total


def _choose_cat_block(n, plan, ops):
    budget = int(0.70 * _vmem_capacity_bytes())
    divisors = sorted((d for d in range(1, n + 1) if n % d == 0), reverse=True)
    fitting = [d for d in divisors if _vmem_estimate(d, plan, ops) <= budget]
    if not fitting:
        # TODO(synk): spatial row-block tiling (11-row halo) for images so large
        # that a single category's level-0 working set busts VMEM (v7x, S>=~768).
        return 1
    for d in fitting:                 # prefer >= 2 grid steps: both v7x TCs busy;
        if d < n or n == 1:           # costs one extra ~0.35us step on 1-TC chips
            return d
    return fitting[-1]


def _msssim_pallas(x, y, levels=LEVELS):
    """MS-SSIM per-scale map means for a batch of single-channel square images.

    x, y: (N, H, W) float32 with H == W.  Returns (ssim, cs), each (N, levels).
    """
    n, s0, w0 = x.shape
    assert s0 == w0, "square images expected (matches the torch code path)"

    plan, ops = _build_plan(s0, levels)
    cb = _choose_cat_block(n, plan, ops)
    nb = n // cb
    vmem_limit = min(int(0.92 * _vmem_capacity_bytes()),
                     max(32 * 1024 * 1024, int(1.3 * _vmem_estimate(cb, plan, ops))))

    if plan[0]["flat"]:
        # Flatten spatial dims host-side (free, contiguous): the kernel sees
        # lane-dense (cb, S*S) images and never relayouts them.
        xin = x.reshape(nb, cb, s0 * s0)
        yin = y.reshape(nb, cb, s0 * s0)
        img_block = (1, cb, s0 * s0)
    else:
        xin, yin = x, y
        img_block = (cb, s0, s0)
    img_map = lambda i: (i, 0, 0)

    # TODO(synk): operator inputs keep the default double-buffering (pl.Buffered(1)
    # not adopted to keep the compile path conservative); their 2x footprint is
    # accounted for in _vmem_estimate instead.
    in_specs = [pl.BlockSpec(img_block, img_map),
                pl.BlockSpec(img_block, img_map)]
    in_specs += [pl.BlockSpec(tuple(op.shape), (lambda i, _nd=op.ndim: (0,) * _nd))
                 for op in ops]
    out_specs = (pl.BlockSpec((1, cb, levels), lambda i: (i, 0, 0)),
                 pl.BlockSpec((1, cb, levels), lambda i: (i, 0, 0)))
    out_shape = (jax.ShapeDtypeStruct((nb, cb, levels), jnp.float32),
                 jax.ShapeDtypeStruct((nb, cb, levels), jnp.float32))

    kernel = functools.partial(_msssim_kernel, plan=plan)
    ssim_b, cs_b = pl.pallas_call(
        kernel,
        grid=(nb,),
        in_specs=in_specs,
        out_specs=out_specs,
        out_shape=out_shape,
        compiler_params=pltpu.CompilerParams(
            dimension_semantics=("parallel",),
            vmem_limit_bytes=vmem_limit),
    )(xin, yin, *ops)
    return ssim_b.reshape(n, levels), cs_b.reshape(n, levels)


# ----------------------------- loss ------------------------------------------------
def mss_loss(y_pred, y_true, smooth=1e-05):
    """Matches MSSLoss.forward (the `smooth` argument is unused there as well)."""
    yp = jnp.squeeze(y_pred).astype(jnp.float32)[:NUM_CATS]   # (10, H, W)
    yt = jnp.squeeze(y_true).astype(jnp.float32)[:NUM_CATS]
    # TODO(synk): the per-iteration `print(loss)` side effect of the torch loop
    # is omitted (no clean Pallas equivalent).
    mssim, mcs = _msssim_pallas(yp, yt)                        # (N, levels) each
    w = jnp.asarray(MSSSIM_WEIGHTS)                            # (levels,)
    pow1 = mcs ** w
    pow2 = mssim ** w
    # Reference quirk kept: torch.prod(pow1[:-1] * pow2[-1]) per category.
    per_cat = jnp.prod(pow1[:, :-1] * pow2[:, -1:], axis=1)    # (N,)
    loss = jnp.sum(per_cat)
    return 1.0 - loss                  # torch.mean of a 0-d tensor is itself


# ----------------------------- demo -------------------------------------------------
if __name__ == "__main__":
    key = jax.random.PRNGKey(0)
    k1, k2 = jax.random.split(key)
    H = W = 32
    base = jax.random.uniform(k1, (NUM_CATS, 1, H, W), dtype=jnp.float32)
    noise = jax.random.uniform(k2, (NUM_CATS, 1, H, W), dtype=jnp.float32)
    y_true = base
    y_pred = jnp.clip(base + 0.1 * (noise - 0.5), 0.0, 1.0)

    out = jax.jit(mss_loss)(y_pred, y_true)
    out = jax.block_until_ready(out)
    assert out.shape == () and bool(jnp.isfinite(out))
    print("KERNEL_OK")
</pallas_src>

<mosaic_0001>
module attributes {stable_mosaic.version = 11 : i64} {
  func.func @_msssim_kernel(%arg0: i32, %arg1: memref<1x5x1024xf32, #tpu.memory_space<vmem>>, %arg2: memref<1x5x1024xf32, #tpu.memory_space<vmem>>, %arg3: memref<1024x484xf32, #tpu.memory_space<vmem>>, %arg4: memref<1024x256xf32, #tpu.memory_space<vmem>>, %arg5: memref<256x36xf32, #tpu.memory_space<vmem>>, %arg6: memref<256x64xf32, #tpu.memory_space<vmem>>, %arg7: memref<1x64xf32, #tpu.memory_space<vmem>>, %arg8: memref<64x16xf32, #tpu.memory_space<vmem>>, %arg9: memref<1x16xf32, #tpu.memory_space<vmem>>, %arg10: memref<16x4xf32, #tpu.memory_space<vmem>>, %arg11: memref<1x4xf32, #tpu.memory_space<vmem>>, %arg12: memref<1x5x5xf32, #tpu.memory_space<vmem>>, %arg13: memref<1x5x5xf32, #tpu.memory_space<vmem>>) attributes {dimension_semantics = [#tpu.dimension_semantics<parallel>], iteration_bounds = array<i64: 2>, scalar_prefetch = 0 : i64, scratch_operands = 0 : i64, tpu.core_type = #tpu.core_type<tc>, window_params = [{transform_indices = @transform_0, window_bounds = array<i64: 1, 5, 1024>}, {transform_indices = @transform_1, window_bounds = array<i64: 1, 5, 1024>}, {pipeline_mode = #tpu.pipeline_mode<synchronous>, transform_indices = @transform_2, window_bounds = array<i64: 1024, 484>}, {pipeline_mode = #tpu.pipeline_mode<synchronous>, transform_indices = @transform_3, window_bounds = array<i64: 1024, 256>}, {pipeline_mode = #tpu.pipeline_mode<synchronous>, transform_indices = @transform_4, window_bounds = array<i64: 256, 36>}, {pipeline_mode = #tpu.pipeline_mode<synchronous>, transform_indices = @transform_5, window_bounds = array<i64: 256, 64>}, {pipeline_mode = #tpu.pipeline_mode<synchronous>, transform_indices = @transform_6, window_bounds = array<i64: 1, 64>}, {pipeline_mode = #tpu.pipeline_mode<synchronous>, transform_indices = @transform_7, window_bounds = array<i64: 64, 16>}, {pipeline_mode = #tpu.pipeline_mode<synchronous>, transform_indices = @transform_8, window_bounds = array<i64: 1, 16>}, {pipeline_mode = #tpu.pipeline_mode<synchronous>, transform_indices = @transform_9, window_bounds = array<i64: 16, 4>}, {pipeline_mode = #tpu.pipeline_mode<synchronous>, transform_indices = @transform_10, window_bounds = array<i64: 1, 4>}, {transform_indices = @transform_11, window_bounds = array<i64: 1, 5, 5>}, {transform_indices = @transform_12, window_bounds = array<i64: 1, 5, 5>}]} {
    %c0 = arith.constant 0 : index
    %c0_0 = arith.constant 0 : index
    %c0_1 = arith.constant 0 : index
    %0 = vector.load %arg1[%c0, %c0_0, %c0_1] : memref<1x5x1024xf32, #tpu.memory_space<vmem>>, vector<1x5x1024xf32>
    %1 = vector.shape_cast %0 : vector<1x5x1024xf32> to vector<5x1024xf32>
    %c0_2 = arith.constant 0 : index
    %c0_3 = arith.constant 0 : index
    %c0_4 = arith.constant 0 : index
    %2 = vector.load %arg2[%c0_2, %c0_3, %c0_4] : memref<1x5x1024xf32, #tpu.memory_space<vmem>>, vector<1x5x1024xf32>
    %3 = vector.shape_cast %2 : vector<1x5x1024xf32> to vector<5x1024xf32>
    %cst = arith.constant dense<0xFF800000> : vector<5xf32>
    %4 = vector.multi_reduction <maximumf>, %1, %cst [1] : vector<5x1024xf32> to vector<5xf32>
    %5 = vector.shape_cast %4 : vector<5xf32> to vector<5x1xf32>
    %cst_5 = arith.constant dense<0x7F800000> : vector<5xf32>
    %6 = vector.multi_reduction <minimumf>, %1, %cst_5 [1] : vector<5x1024xf32> to vector<5xf32>
    %7 = vector.shape_cast %6 : vector<5xf32> to vector<5x1xf32>
    %cst_6 = arith.constant 1.280000e+02 : f32
    %8 = vector.broadcast %cst_6 : f32 to vector<5x1xf32>
    %9 = arith.cmpf ogt, %5, %8 : vector<5x1xf32>
    %cst_7 = arith.constant 2.550000e+02 : f32
    %cst_8 = arith.constant 1.000000e+00 : f32
    %10 = vector.broadcast %cst_7 : f32 to vector<5x1xf32>
    %11 = vector.broadcast %cst_8 : f32 to vector<5x1xf32>
    %12 = arith.select %9, %10, %11 : vector<5x1xi1>, vector<5x1xf32>
    %cst_9 = arith.constant -5.000000e-01 : f32
    %13 = vector.broadcast %cst_9 : f32 to vector<5x1xf32>
    %14 = arith.cmpf olt, %7, %13 : vector<5x1xf32>
    %cst_10 = arith.constant -1.000000e+00 : f32
    %cst_11 = arith.constant 0.000000e+00 : f32
    %15 = vector.broadcast %cst_10 : f32 to vector<5x1xf32>
    %16 = vector.broadcast %cst_11 : f32 to vector<5x1xf32>
    %17 = arith.select %14, %15, %16 : vector<5x1xi1>, vector<5x1xf32>
    %18 = arith.subf %12, %17 : vector<5x1xf32>
    %cst_12 = arith.constant 0.00999999977 : f32
    %19 = vector.broadcast %cst_12 : f32 to vector<5x1xf32>
    %20 = arith.mulf %19, %18 : vector<5x1xf32>
    %21 = arith.mulf %20, %20 : vector<5x1xf32>
    %cst_13 = arith.constant 3.000000e-02 : f32
    %22 = vector.broadcast %cst_13 : f32 to vector<5x1xf32>
    %23 = arith.mulf %22, %18 : vector<5x1xf32>
    %24 = arith.mulf %23, %23 : vector<5x1xf32>
    %25 = arith.mulf %1, %1 : vector<5x1024xf32>
    %26 = arith.mulf %3, %3 : vector<5x1024xf32>
    %27 = arith.mulf %1, %3 : vector<5x1024xf32>
    %28 = tpu.concatenate %1, %3, %25, %26, %27 in 0 : vector<5x1024xf32>, vector<5x1024xf32>, vector<5x1024xf32>, vector<5x1024xf32>, vector<5x1024xf32> -> vector<25x1024xf32>
    %c0_14 = arith.constant 0 : index
    %c0_15 = arith.constant 0 : index
    %29 = vector.load %arg3[%c0_14, %c0_15] : memref<1024x484xf32, #tpu.memory_space<vmem>>, vector<1024x484xf32>
    %cst_16 = arith.constant dense<0.000000e+00> : vector<25x484xf32>
    %30 = tpu.matmul %28, %29, %cst_16 {dimension_numbers = #tpu.dot_dimension_numbers<[1], [0], [0], [1], [0, 0, 1, 1], [], []>} : vector<25x1024xf32>, vector<1024x484xf32>, vector<25x484xf32> -> vector<25x484xf32>
    %31 = vector.extract_strided_slice %30 {offsets = [0, 0], sizes = [5, 484], strides = [1, 1]} : vector<25x484xf32> to vector<5x484xf32>
    %32 = vector.extract_strided_slice %30 {offsets = [5, 0], sizes = [5, 484], strides = [1, 1]} : vector<25x484xf32> to vector<5x484xf32>
    %33 = vector.extract_strided_slice %30 {offsets = [10, 0], sizes = [5, 484], strides = [1, 1]} : vector<25x484xf32> to vector<5x484xf32>
    %34 = vector.extract_strided_slice %30 {offsets = [15, 0], sizes = [5, 484], strides = [1, 1]} : vector<25x484xf32> to vector<5x484xf32>
    %35 = vector.extract_strided_slice %30 {offsets = [20, 0], sizes = [5, 484], strides = [1, 1]} : vector<25x484xf32> to vector<5x484xf32>
    %36 = arith.mulf %31, %31 : vector<5x484xf32>
    %37 = arith.mulf %32, %32 : vector<5x484xf32>
    %38 = arith.mulf %31, %32 : vector<5x484xf32>
    %39 = arith.subf %35, %38 : vector<5x484xf32>
    %cst_17 = arith.constant 2.000000e+00 : f32
    %40 = vector.broadcast %cst_17 : f32 to vector<5x484xf32>
    %41 = arith.mulf %40, %39 : vector<5x484xf32>
    %42 = vector.broadcast %24 : vector<5x1xf32> to vector<5x484xf32>
    %43 = arith.addf %41, %42 : vector<5x484xf32>
    %44 = arith.subf %33, %36 : vector<5x484xf32>
    %45 = arith.subf %34, %37 : vector<5x484xf32>
    %46 = arith.addf %44, %45 : vector<5x484xf32>
    %47 = vector.broadcast %24 : vector<5x1xf32> to vector<5x484xf32>
    %48 = arith.addf %46, %47 : vector<5x484xf32>
    %49 = tpu.reciprocal %48 {approx = true} : vector<5x484xf32> -> vector<5x484xf32>
    %50 = arith.mulf %48, %49 : vector<5x484xf32>
    %cst_18 = arith.constant 2.000000e+00 : f32
    %51 = vector.broadcast %cst_18 : f32 to vector<5x484xf32>
    %52 = arith.subf %51, %50 : vector<5x484xf32>
    %53 = arith.mulf %49, %52 : vector<5x484xf32>
    %54 = arith.mulf %43, %53 : vector<5x484xf32>
    %cst_19 = arith.constant 2.000000e+00 : f32
    %55 = vector.broadcast %cst_19 : f32 to vector<5x484xf32>
    %56 = arith.mulf %55, %38 : vector<5x484xf32>
    %57 = vector.broadcast %21 : vector<5x1xf32> to vector<5x484xf32>
    %58 = arith.addf %56, %57 : vector<5x484xf32>
    %59 = arith.addf %36, %37 : vector<5x484xf32>
    %60 = vector.broadcast %21 : vector<5x1xf32> to vector<5x484xf32>
    %61 = arith.addf %59, %60 : vector<5x484xf32>
    %62 = tpu.reciprocal %61 {approx = true} : vector<5x484xf32> -> vector<5x484xf32>
    %63 = arith.mulf %61, %62 : vector<5x484xf32>
    %cst_20 = arith.constant 2.000000e+00 : f32
    %64 = vector.broadcast %cst_20 : f32 to vector<5x484xf32>
    %65 = arith.subf %64, %63 : vector<5x484xf32>
    %66 = arith.mulf %62, %65 : vector<5x484xf32>
    %67 = arith.mulf %58, %66 : vector<5x484xf32>
    %68 = arith.mulf %67, %54 : vector<5x484xf32>
    %cst_21 = arith.constant dense<0.000000e+00> : vector<5xf32>
    %69 = vector.multi_reduction <add>, %54, %cst_21 [1] : vector<5x484xf32> to vector<5xf32>
    %70 = vector.shape_cast %69 : vector<5xf32> to vector<5x1xf32>
    %cst_22 = arith.constant 0.00206611562 : f32
    %71 = vector.broadcast %cst_22 : f32 to vector<5x1xf32>
    %72 = arith.mulf %70, %71 : vector<5x1xf32>
    %cst_23 = arith.constant dense<0.000000e+00> : vector<5xf32>
    %73 = vector.multi_reduction <add>, %68, %cst_23 [1] : vector<5x484xf32> to vector<5xf32>
    %74 = vector.shape_cast %73 : vector<5xf32> to vector<5x1xf32>
    %cst_24 = arith.constant 0.00206611562 : f32
    %75 = vector.broadcast %cst_24 : f32 to vector<5x1xf32>
    %76 = arith.mulf %74, %75 : vector<5x1xf32>
    %c0_25 = arith.constant 0 : index
    %c0_26 = arith.constant 0 : index
    %77 = vector.load %arg4[%c0_25, %c0_26] : memref<1024x256xf32, #tpu.memory_space<vmem>>, vector<1024x256xf32>
    %78 = vector.extract_strided_slice %28 {offsets = [0, 0], sizes = [10, 1024], strides = [1, 1]} : vector<25x1024xf32> to vector<10x1024xf32>
    %cst_27 = arith.constant dense<0.000000e+00> : vector<10x256xf32>
    %79 = tpu.matmul %78, %77, %cst_27 {dimension_numbers = #tpu.dot_dimension_numbers<[1], [0], [0], [1], [0, 0, 1, 1], [], []>} : vector<10x1024xf32>, vector<1024x256xf32>, vector<10x256xf32> -> vector<10x256xf32>
    %80 = vector.extract_strided_slice %79 {offsets = [0, 0], sizes = [5, 256], strides = [1, 1]} : vector<10x256xf32> to vector<5x256xf32>
    %81 = vector.extract_strided_slice %79 {offsets = [5, 0], sizes = [5, 256], strides = [1, 1]} : vector<10x256xf32> to vector<5x256xf32>
    %cst_28 = arith.constant dense<0xFF800000> : vector<5xf32>
    %82 = vector.multi_reduction <maximumf>, %80, %cst_28 [1] : vector<5x256xf32> to vector<5xf32>
    %83 = vector.shape_cast %82 : vector<5xf32> to vector<5x1xf32>
    %cst_29 = arith.constant dense<0x7F800000> : vector<5xf32>
    %84 = vector.multi_reduction <minimumf>, %80, %cst_29 [1] : vector<5x256xf32> to vector<5xf32>
    %85 = vector.shape_cast %84 : vector<5xf32> to vector<5x1xf32>
    %cst_30 = arith.constant 1.280000e+02 : f32
    %86 = vector.broadcast %cst_30 : f32 to vector<5x1xf32>
    %87 = arith.cmpf ogt, %83, %86 : vector<5x1xf32>
    %cst_31 = arith.constant 2.550000e+02 : f32
    %cst_32 = arith.constant 1.000000e+00 : f32
    %88 = vector.broadcast %cst_31 : f32 to vector<5x1xf32>
    %89 = vector.broadcast %cst_32 : f32 to vector<5x1xf32>
    %90 = arith.select %87, %88, %89 : vector<5x1xi1>, vector<5x1xf32>
    %cst_33 = arith.constant -5.000000e-01 : f32
    %91 = vector.broadcast %cst_33 : f32 to vector<5x1xf32>
    %92 = arith.cmpf olt, %85, %91 : vector<5x1xf32>
    %cst_34 = arith.constant -1.000000e+00 : f32
    %cst_35 = arith.constant 0.000000e+00 : f32
    %93 = vector.broadcast %cst_34 : f32 to vector<5x1xf32>
    %94 = vector.broadcast %cst_35 : f32 to vector<5x1xf32>
    %95 = arith.select %92, %93, %94 : vector<5x1xi1>, vector<5x1xf32>
    %96 = arith.subf %90, %95 : vector<5x1xf32>
    %cst_36 = arith.constant 0.00999999977 : f32
    %97 = vector.broadcast %cst_36 : f32 to vector<5x1xf32>
    %98 = arith.mulf %97, %96 : vector<5x1xf32>
    %99 = arith.mulf %98, %98 : vector<5x1xf32>
    %cst_37 = arith.constant 3.000000e-02 : f32
    %100 = vector.broadcast %cst_37 : f32 to vector<5x1xf32>
    %101 = arith.mulf %100, %96 : vector<5x1xf32>
    %102 = arith.mulf %101, %101 : vector<5x1xf32>
    %103 = arith.mulf %80, %80 : vector<5x256xf32>
    %104 = arith.mulf %81, %81 : vector<5x256xf32>
    %105 = arith.mulf %80, %81 : vector<5x256xf32>
    %106 = tpu.concatenate %80, %81, %103, %104, %105 in 0 : vector<5x256xf32>, vector<5x256xf32>, vector<5x256xf32>, vector<5x256xf32>, vector<5x256xf32> -> vector<25x256xf32>
    %c0_38 = arith.constant 0 : index
    %c0_39 = arith.constant 0 : index
    %107 = vector.load %arg5[%c0_38, %c0_39] : memref<256x36xf32, #tpu.memory_space<vmem>>, vector<256x36xf32>
    %cst_40 = arith.constant dense<0.000000e+00> : vector<25x36xf32>
    %108 = tpu.matmul %106, %107, %cst_40 {dimension_numbers = #tpu.dot_dimension_numbers<[1], [0], [0], [1], [0, 0, 1, 1], [], []>} : vector<25x256xf32>, vector<256x36xf32>, vector<25x36xf32> -> vector<25x36xf32>
    %109 = vector.extract_strided_slice %108 {offsets = [0, 0], sizes = [5, 36], strides = [1, 1]} : vector<25x36xf32> to vector<5x36xf32>
    %110 = vector.extract_strided_slice %108 {offsets = [5, 0], sizes = [5, 36], strides = [1, 1]} : vector<25x36xf32> to vector<5x36xf32>
    %111 = vector.extract_strided_slice %108 {offsets = [10, 0], sizes = [5, 36], strides = [1, 1]} : vector<25x36xf32> to vector<5x36xf32>
    %112 = vector.extract_strided_slice %108 {offsets = [15, 0], sizes = [5, 36], strides = [1, 1]} : vector<25x36xf32> to vector<5x36xf32>
    %113 = vector.extract_strided_slice %108 {offsets = [20, 0], sizes = [5, 36], strides = [1, 1]} : vector<25x36xf32> to vector<5x36xf32>
    %114 = arith.mulf %109, %109 : vector<5x36xf32>
    %115 = arith.mulf %110, %110 : vector<5x36xf32>
    %116 = arith.mulf %109, %110 : vector<5x36xf32>
    %117 = arith.subf %113, %116 : vector<5x36xf32>
    %cst_41 = arith.constant 2.000000e+00 : f32
    %118 = vector.broadcast %cst_41 : f32 to vector<5x36xf32>
    %119 = arith.mulf %118, %117 : vector<5x36xf32>
    %120 = vector.broadcast %102 : vector<5x1xf32> to vector<5x36xf32>
    %121 = arith.addf %119, %120 : vector<5x36xf32>
    %122 = arith.subf %111, %114 : vector<5x36xf32>
    %123 = arith.subf %112, %115 : vector<5x36xf32>
    %124 = arith.addf %122, %123 : vector<5x36xf32>
    %125 = vector.broadcast %102 : vector<5x1xf32> to vector<5x36xf32>
    %126 = arith.addf %124, %125 : vector<5x36xf32>
    %127 = tpu.reciprocal %126 {approx = true} : vector<5x36xf32> -> vector<5x36xf32>
    %128 = arith.mulf %126, %127 : vector<5x36xf32>
    %cst_42 = arith.constant 2.000000e+00 : f32
    %129 = vector.broadcast %cst_42 : f32 to vector<5x36xf32>
    %130 = arith.subf %129, %128 : vector<5x36xf32>
    %131 = arith.mulf %127, %130 : vector<5x36xf32>
    %132 = arith.mulf %121, %131 : vector<5x36xf32>
    %cst_43 = arith.constant 2.000000e+00 : f32
    %133 = vector.broadcast %cst_43 : f32 to vector<5x36xf32>
    %134 = arith.mulf %133, %116 : vector<5x36xf32>
    %135 = vector.broadcast %99 : vector<5x1xf32> to vector<5x36xf32>
    %136 = arith.addf %134, %135 : vector<5x36xf32>
    %137 = arith.addf %114, %115 : vector<5x36xf32>
    %138 = vector.broadcast %99 : vector<5x1xf32> to vector<5x36xf32>
    %139 = arith.addf %137, %138 : vector<5x36xf32>
    %140 = tpu.reciprocal %139 {approx = true} : vector<5x36xf32> -> vector<5x36xf32>
    %141 = arith.mulf %139, %140 : vector<5x36xf32>
    %cst_44 = arith.constant 2.000000e+00 : f32
    %142 = vector.broadcast %cst_44 : f32 to vector<5x36xf32>
    %143 = arith.subf %142, %141 : vector<5x36xf32>
    %144 = arith.mulf %140, %143 : vector<5x36xf32>
    %145 = arith.mulf %136, %144 : vector<5x36xf32>
    %146 = arith.mulf %145, %132 : vector<5x36xf32>
    %cst_45 = arith.constant dense<0.000000e+00> : vector<5xf32>
    %147 = vector.multi_reduction <add>, %132, %cst_45 [1] : vector<5x36xf32> to vector<5xf32>
    %148 = vector.shape_cast %147 : vector<5xf32> to vector<5x1xf32>
    %cst_46 = arith.constant 0.027777778 : f32
    %149 = vector.broadcast %cst_46 : f32 to vector<5x1xf32>
    %150 = arith.mulf %148, %149 : vector<5x1xf32>
    %cst_47 = arith.constant dense<0.000000e+00> : vector<5xf32>
    %151 = vector.multi_reduction <add>, %146, %cst_47 [1] : vector<5x36xf32> to vector<5xf32>
    %152 = vector.shape_cast %151 : vector<5xf32> to vector<5x1xf32>
    %cst_48 = arith.constant 0.027777778 : f32
    %153 = vector.broadcast %cst_48 : f32 to vector<5x1xf32>
    %154 = arith.mulf %152, %153 : vector<5x1xf32>
    %c0_49 = arith.constant 0 : index
    %c0_50 = arith.constant 0 : index
    %155 = vector.load %arg6[%c0_49, %c0_50] : memref<256x64xf32, #tpu.memory_space<vmem>>, vector<256x64xf32>
    %156 = vector.extract_strided_slice %106 {offsets = [0, 0], sizes = [10, 256], strides = [1, 1]} : vector<25x256xf32> to vector<10x256xf32>
    %cst_51 = arith.constant dense<0.000000e+00> : vector<10x64xf32>
    %157 = tpu.matmul %156, %155, %cst_51 {dimension_numbers = #tpu.dot_dimension_numbers<[1], [0], [0], [1], [0, 0, 1, 1], [], []>} : vector<10x256xf32>, vector<256x64xf32>, vector<10x64xf32> -> vector<10x64xf32>
    %158 = vector.extract_strided_slice %157 {offsets = [0, 0], sizes = [5, 64], strides = [1, 1]} : vector<10x64xf32> to vector<5x64xf32>
    %159 = vector.extract_strided_slice %157 {offsets = [5, 0], sizes = [5, 64], strides = [1, 1]} : vector<10x64xf32> to vector<5x64xf32>
    %cst_52 = arith.constant dense<0xFF800000> : vector<5xf32>
    %160 = vector.multi_reduction <maximumf>, %158, %cst_52 [1] : vector<5x64xf32> to vector<5xf32>
    %161 = vector.shape_cast %160 : vector<5xf32> to vector<5x1xf32>
    %cst_53 = arith.constant dense<0x7F800000> : vector<5xf32>
    %162 = vector.multi_reduction <minimumf>, %158, %cst_53 [1] : vector<5x64xf32> to vector<5xf32>
    %163 = vector.shape_cast %162 : vector<5xf32> to vector<5x1xf32>
    %cst_54 = arith.constant 1.280000e+02 : f32
    %164 = vector.broadcast %cst_54 : f32 to vector<5x1xf32>
    %165 = arith.cmpf ogt, %161, %164 : vector<5x1xf32>
    %cst_55 = arith.constant 2.550000e+02 : f32
    %cst_56 = arith.constant 1.000000e+00 : f32
    %166 = vector.broadcast %cst_55 : f32 to vector<5x1xf32>
    %167 = vector.broadcast %cst_56 : f32 to vector<5x1xf32>
    %168 = arith.select %165, %166, %167 : vector<5x1xi1>, vector<5x1xf32>
    %cst_57 = arith.constant -5.000000e-01 : f32
    %169 = vector.broadcast %cst_57 : f32 to vector<5x1xf32>
    %170 = arith.cmpf olt, %163, %169 : vector<5x1xf32>
    %cst_58 = arith.constant -1.000000e+00 : f32
    %cst_59 = arith.constant 0.000000e+00 : f32
    %171 = vector.broadcast %cst_58 : f32 to vector<5x1xf32>
    %172 = vector.broadcast %cst_59 : f32 to vector<5x1xf32>
    %173 = arith.select %170, %171, %172 : vector<5x1xi1>, vector<5x1xf32>
    %174 = arith.subf %168, %173 : vector<5x1xf32>
    %cst_60 = arith.constant 0.00999999977 : f32
    %175 = vector.broadcast %cst_60 : f32 to vector<5x1xf32>
    %176 = arith.mulf %175, %174 : vector<5x1xf32>
    %177 = arith.mulf %176, %176 : vector<5x1xf32>
    %cst_61 = arith.constant 3.000000e-02 : f32
    %178 = vector.broadcast %cst_61 : f32 to vector<5x1xf32>
    %179 = arith.mulf %178, %174 : vector<5x1xf32>
    %180 = arith.mulf %179, %179 : vector<5x1xf32>
    %181 = arith.mulf %158, %158 : vector<5x64xf32>
    %182 = arith.mulf %159, %159 : vector<5x64xf32>
    %183 = arith.mulf %158, %159 : vector<5x64xf32>
    %184 = tpu.concatenate %158, %159, %181, %182, %183 in 0 : vector<5x64xf32>, vector<5x64xf32>, vector<5x64xf32>, vector<5x64xf32>, vector<5x64xf32> -> vector<25x64xf32>
    %c0_62 = arith.constant 0 : index
    %c0_63 = arith.constant 0 : index
    %185 = vector.load %arg7[%c0_62, %c0_63] : memref<1x64xf32, #tpu.memory_space<vmem>>, vector<1x64xf32>
    %186 = vector.broadcast %185 : vector<1x64xf32> to vector<25x64xf32>
    %187 = arith.mulf %184, %186 : vector<25x64xf32>
    %cst_64 = arith.constant dense<0.000000e+00> : vector<25xf32>
    %188 = vector.multi_reduction <add>, %187, %cst_64 [1] : vector<25x64xf32> to vector<25xf32>
    %189 = vector.shape_cast %188 : vector<25xf32> to vector<25x1xf32>
    %190 = vector.extract_strided_slice %189 {offsets = [0, 0], sizes = [5, 1], strides = [1, 1]} : vector<25x1xf32> to vector<5x1xf32>
    %191 = vector.extract_strided_slice %189 {offsets = [5, 0], sizes = [5, 1], strides = [1, 1]} : vector<25x1xf32> to vector<5x1xf32>
    %192 = vector.extract_strided_slice %189 {offsets = [10, 0], sizes = [5, 1], strides = [1, 1]} : vector<25x1xf32> to vector<5x1xf32>
    %193 = vector.extract_strided_slice %189 {offsets = [15, 0], sizes = [5, 1], strides = [1, 1]} : vector<25x1xf32> to vector<5x1xf32>
    %194 = vector.extract_strided_slice %189 {offsets = [20, 0], sizes = [5, 1], strides = [1, 1]} : vector<25x1xf32> to vector<5x1xf32>
    %195 = arith.mulf %190, %190 : vector<5x1xf32>
    %196 = arith.mulf %191, %191 : vector<5x1xf32>
    %197 = arith.mulf %190, %191 : vector<5x1xf32>
    %198 = arith.subf %194, %197 : vector<5x1xf32>
    %cst_65 = arith.constant 2.000000e+00 : f32
    %199 = vector.broadcast %cst_65 : f32 to vector<5x1xf32>
    %200 = arith.mulf %199, %198 : vector<5x1xf32>
    %201 = arith.addf %200, %180 : vector<5x1xf32>
    %202 = arith.subf %192, %195 : vector<5x1xf32>
    %203 = arith.subf %193, %196 : vector<5x1xf32>
    %204 = arith.addf %202, %203 : vector<5x1xf32>
    %205 = arith.addf %204, %180 : vector<5x1xf32>
    %206 = tpu.reciprocal %205 {approx = true} : vector<5x1xf32> -> vector<5x1xf32>
    %207 = arith.mulf %205, %206 : vector<5x1xf32>
    %cst_66 = arith.constant 2.000000e+00 : f32
    %208 = vector.broadcast %cst_66 : f32 to vector<5x1xf32>
    %209 = arith.subf %208, %207 : vector<5x1xf32>
    %210 = arith.mulf %206, %209 : vector<5x1xf32>
    %211 = arith.mulf %201, %210 : vector<5x1xf32>
    %cst_67 = arith.constant 2.000000e+00 : f32
    %212 = vector.broadcast %cst_67 : f32 to vector<5x1xf32>
    %213 = arith.mulf %212, %197 : vector<5x1xf32>
    %214 = arith.addf %213, %177 : vector<5x1xf32>
    %215 = arith.addf %195, %196 : vector<5x1xf32>
    %216 = arith.addf %215, %177 : vector<5x1xf32>
    %217 = tpu.reciprocal %216 {approx = true} : vector<5x1xf32> -> vector<5x1xf32>
    %218 = arith.mulf %216, %217 : vector<5x1xf32>
    %cst_68 = arith.constant 2.000000e+00 : f32
    %219 = vector.broadcast %cst_68 : f32 to vector<5x1xf32>
    %220 = arith.subf %219, %218 : vector<5x1xf32>
    %221 = arith.mulf %217, %220 : vector<5x1xf32>
    %222 = arith.mulf %214, %221 : vector<5x1xf32>
    %223 = arith.mulf %222, %211 : vector<5x1xf32>
    %cst_69 = arith.constant dense<0.000000e+00> : vector<5xf32>
    %224 = vector.multi_reduction <add>, %211, %cst_69 [1] : vector<5x1xf32> to vector<5xf32>
    %225 = vector.shape_cast %224 : vector<5xf32> to vector<5x1xf32>
    %cst_70 = arith.constant 1.000000e+00 : f32
    %226 = vector.broadcast %cst_70 : f32 to vector<5x1xf32>
    %227 = arith.mulf %225, %226 : vector<5x1xf32>
    %cst_71 = arith.constant dense<0.000000e+00> : vector<5xf32>
    %228 = vector.multi_reduction <add>, %223, %cst_71 [1] : vector<5x1xf32> to vector<5xf32>
    %229 = vector.shape_cast %228 : vector<5xf32> to vector<5x1xf32>
    %cst_72 = arith.constant 1.000000e+00 : f32
    %230 = vector.broadcast %cst_72 : f32 to vector<5x1xf32>
    %231 = arith.mulf %229, %230 : vector<5x1xf32>
    %c0_73 = arith.constant 0 : index
    %c0_74 = arith.constant 0 : index
    %232 = vector.load %arg8[%c0_73, %c0_74] : memref<64x16xf32, #tpu.memory_space<vmem>>, vector<64x16xf32>
    %233 = vector.extract_strided_slice %184 {offsets = [0, 0], sizes = [10, 64], strides = [1, 1]} : vector<25x64xf32> to vector<10x64xf32>
    %cst_75 = arith.constant dense<0.000000e+00> : vector<10x16xf32>
    %234 = tpu.matmul %233, %232, %cst_75 {dimension_numbers = #tpu.dot_dimension_numbers<[1], [0], [0], [1], [0, 0, 1, 1], [], []>} : vector<10x64xf32>, vector<64x16xf32>, vector<10x16xf32> -> vector<10x16xf32>
    %235 = vector.extract_strided_slice %234 {offsets = [0, 0], sizes = [5, 16], strides = [1, 1]} : vector<10x16xf32> to vector<5x16xf32>
    %236 = vector.extract_strided_slice %234 {offsets = [5, 0], sizes = [5, 16], strides = [1, 1]} : vector<10x16xf32> to vector<5x16xf32>
    %cst_76 = arith.constant dense<0xFF800000> : vector<5xf32>
    %237 = vector.multi_reduction <maximumf>, %235, %cst_76 [1] : vector<5x16xf32> to vector<5xf32>
    %238 = vector.shape_cast %237 : vector<5xf32> to vector<5x1xf32>
    %cst_77 = arith.constant dense<0x7F800000> : vector<5xf32>
    %239 = vector.multi_reduction <minimumf>, %235, %cst_77 [1] : vector<5x16xf32> to vector<5xf32>
    %240 = vector.shape_cast %239 : vector<5xf32> to vector<5x1xf32>
    %cst_78 = arith.constant 1.280000e+02 : f32
    %241 = vector.broadcast %cst_78 : f32 to vector<5x1xf32>
    %242 = arith.cmpf ogt, %238, %241 : vector<5x1xf32>
    %cst_79 = arith.constant 2.550000e+02 : f32
    %cst_80 = arith.constant 1.000000e+00 : f32
    %243 = vector.broadcast %cst_79 : f32 to vector<5x1xf32>
    %244 = vector.broadcast %cst_80 : f32 to vector<5x1xf32>
    %245 = arith.select %242, %243, %244 : vector<5x1xi1>, vector<5x1xf32>
    %cst_81 = arith.constant -5.000000e-01 : f32
    %246 = vector.broadcast %cst_81 : f32 to vector<5x1xf32>
    %247 = arith.cmpf olt, %240, %246 : vector<5x1xf32>
    %cst_82 = arith.constant -1.000000e+00 : f32
    %cst_83 = arith.constant 0.000000e+00 : f32
    %248 = vector.broadcast %cst_82 : f32 to vector<5x1xf32>
    %249 = vector.broadcast %cst_83 : f32 to vector<5x1xf32>
    %250 = arith.select %247, %248, %249 : vector<5x1xi1>, vector<5x1xf32>
    %251 = arith.subf %245, %250 : vector<5x1xf32>
    %cst_84 = arith.constant 0.00999999977 : f32
    %252 = vector.broadcast %cst_84 : f32 to vector<5x1xf32>
    %253 = arith.mulf %252, %251 : vector<5x1xf32>
    %254 = arith.mulf %253, %253 : vector<5x1xf32>
    %cst_85 = arith.constant 3.000000e-02 : f32
    %255 = vector.broadcast %cst_85 : f32 to vector<5x1xf32>
    %256 = arith.mulf %255, %251 : vector<5x1xf32>
    %257 = arith.mulf %256, %256 : vector<5x1xf32>
    %258 = arith.mulf %235, %235 : vector<5x16xf32>
    %259 = arith.mulf %236, %236 : vector<5x16xf32>
    %260 = arith.mulf %235, %236 : vector<5x16xf32>
    %261 = tpu.concatenate %235, %236, %258, %259, %260 in 0 : vector<5x16xf32>, vector<5x16xf32>, vector<5x16xf32>, vector<5x16xf32>, vector<5x16xf32> -> vector<25x16xf32>
    %c0_86 = arith.constant 0 : index
    %c0_87 = arith.constant 0 : index
    %262 = vector.load %arg9[%c0_86, %c0_87] : memref<1x16xf32, #tpu.memory_space<vmem>>, vector<1x16xf32>
    %263 = vector.broadcast %262 : vector<1x16xf32> to vector<25x16xf32>
    %264 = arith.mulf %261, %263 : vector<25x16xf32>
    %cst_88 = arith.constant dense<0.000000e+00> : vector<25xf32>
    %265 = vector.multi_reduction <add>, %264, %cst_88 [1] : vector<25x16xf32> to vector<25xf32>
    %266 = vector.shape_cast %265 : vector<25xf32> to vector<25x1xf32>
    %267 = vector.extract_strided_slice %266 {offsets = [0, 0], sizes = [5, 1], strides = [1, 1]} : vector<25x1xf32> to vector<5x1xf32>
    %268 = vector.extract_strided_slice %266 {offsets = [5, 0], sizes = [5, 1], strides = [1, 1]} : vector<25x1xf32> to vector<5x1xf32>
    %269 = vector.extract_strided_slice %266 {offsets = [10, 0], sizes = [5, 1], strides = [1, 1]} : vector<25x1xf32> to vector<5x1xf32>
    %270 = vector.extract_strided_slice %266 {offsets = [15, 0], sizes = [5, 1], strides = [1, 1]} : vector<25x1xf32> to vector<5x1xf32>
    %271 = vector.extract_strided_slice %266 {offsets = [20, 0], sizes = [5, 1], strides = [1, 1]} : vector<25x1xf32> to vector<5x1xf32>
    %272 = arith.mulf %267, %267 : vector<5x1xf32>
    %273 = arith.mulf %268, %268 : vector<5x1xf32>
    %274 = arith.mulf %267, %268 : vector<5x1xf32>
    %275 = arith.subf %271, %274 : vector<5x1xf32>
    %cst_89 = arith.constant 2.000000e+00 : f32
    %276 = vector.broadcast %cst_89 : f32 to vector<5x1xf32>
    %277 = arith.mulf %276, %275 : vector<5x1xf32>
    %278 = arith.addf %277, %257 : vector<5x1xf32>
    %279 = arith.subf %269, %272 : vector<5x1xf32>
    %280 = arith.subf %270, %273 : vector<5x1xf32>
    %281 = arith.addf %279, %280 : vector<5x1xf32>
    %282 = arith.addf %281, %257 : vector<5x1xf32>
    %283 = tpu.reciprocal %282 {approx = true} : vector<5x1xf32> -> vector<5x1xf32>
    %284 = arith.mulf %282, %283 : vector<5x1xf32>
    %cst_90 = arith.constant 2.000000e+00 : f32
    %285 = vector.broadcast %cst_90 : f32 to vector<5x1xf32>
    %286 = arith.subf %285, %284 : vector<5x1xf32>
    %287 = arith.mulf %283, %286 : vector<5x1xf32>
    %288 = arith.mulf %278, %287 : vector<5x1xf32>
    %cst_91 = arith.constant 2.000000e+00 : f32
    %289 = vector.broadcast %cst_91 : f32 to vector<5x1xf32>
    %290 = arith.mulf %289, %274 : vector<5x1xf32>
    %291 = arith.addf %290, %254 : vector<5x1xf32>
    %292 = arith.addf %272, %273 : vector<5x1xf32>
    %293 = arith.addf %292, %254 : vector<5x1xf32>
    %294 = tpu.reciprocal %293 {approx = true} : vector<5x1xf32> -> vector<5x1xf32>
    %295 = arith.mulf %293, %294 : vector<5x1xf32>
    %cst_92 = arith.constant 2.000000e+00 : f32
    %296 = vector.broadcast %cst_92 : f32 to vector<5x1xf32>
    %297 = arith.subf %296, %295 : vector<5x1xf32>
    %298 = arith.mulf %294, %297 : vector<5x1xf32>
    %299 = arith.mulf %291, %298 : vector<5x1xf32>
    %300 = arith.mulf %299, %288 : vector<5x1xf32>
    %cst_93 = arith.constant dense<0.000000e+00> : vector<5xf32>
    %301 = vector.multi_reduction <add>, %288, %cst_93 [1] : vector<5x1xf32> to vector<5xf32>
    %302 = vector.shape_cast %301 : vector<5xf32> to vector<5x1xf32>
    %cst_94 = arith.constant 1.000000e+00 : f32
    %303 = vector.broadcast %cst_94 : f32 to vector<5x1xf32>
    %304 = arith.mulf %302, %303 : vector<5x1xf32>
    %cst_95 = arith.constant dense<0.000000e+00> : vector<5xf32>
    %305 = vector.multi_reduction <add>, %300, %cst_95 [1] : vector<5x1xf32> to vector<5xf32>
    %306 = vector.shape_cast %305 : vector<5xf32> to vector<5x1xf32>
    %cst_96 = arith.constant 1.000000e+00 : f32
    %307 = vector.broadcast %cst_96 : f32 to vector<5x1xf32>
    %308 = arith.mulf %306, %307 : vector<5x1xf32>
    %c0_97 = arith.constant 0 : index
    %c0_98 = arith.constant 0 : index
    %309 = vector.load %arg10[%c0_97, %c0_98] : memref<16x4xf32, #tpu.memory_space<vmem>>, vector<16x4xf32>
    %310 = vector.extract_strided_slice %261 {offsets = [0, 0], sizes = [10, 16], strides = [1, 1]} : vector<25x16xf32> to vector<10x16xf32>
    %cst_99 = arith.constant dense<0.000000e+00> : vector<10x4xf32>
    %311 = tpu.matmul %310, %309, %cst_99 {dimension_numbers = #tpu.dot_dimension_numbers<[1], [0], [0], [1], [0, 0, 1, 1], [], []>} : vector<10x16xf32>, vector<16x4xf32>, vector<10x4xf32> -> vector<10x4xf32>
    %312 = vector.extract_strided_slice %311 {offsets = [0, 0], sizes = [5, 4], strides = [1, 1]} : vector<10x4xf32> to vector<5x4xf32>
    %313 = vector.extract_strided_slice %311 {offsets = [5, 0], sizes = [5, 4], strides = [1, 1]} : vector<10x4xf32> to vector<5x4xf32>
    %cst_100 = arith.constant dense<0xFF800000> : vector<5xf32>
    %314 = vector.multi_reduction <maximumf>, %312, %cst_100 [1] : vector<5x4xf32> to vector<5xf32>
    %315 = vector.shape_cast %314 : vector<5xf32> to vector<5x1xf32>
    %cst_101 = arith.constant dense<0x7F800000> : vector<5xf32>
    %316 = vector.multi_reduction <minimumf>, %312, %cst_101 [1] : vector<5x4xf32> to vector<5xf32>
    %317 = vector.shape_cast %316 : vector<5xf32> to vector<5x1xf32>
    %cst_102 = arith.constant 1.280000e+02 : f32
    %318 = vector.broadcast %cst_102 : f32 to vector<5x1xf32>
    %319 = arith.cmpf ogt, %315, %318 : vector<5x1xf32>
    %cst_103 = arith.constant 2.550000e+02 : f32
    %cst_104 = arith.constant 1.000000e+00 : f32
    %320 = vector.broadcast %cst_103 : f32 to vector<5x1xf32>
    %321 = vector.broadcast %cst_104 : f32 to vector<5x1xf32>
    %322 = arith.select %319, %320, %321 : vector<5x1xi1>, vector<5x1xf32>
    %cst_105 = arith.constant -5.000000e-01 : f32
    %323 = vector.broadcast %cst_105 : f32 to vector<5x1xf32>
    %324 = arith.cmpf olt, %317, %323 : vector<5x1xf32>
    %cst_106 = arith.constant -1.000000e+00 : f32
    %cst_107 = arith.constant 0.000000e+00 : f32
    %325 = vector.broadcast %cst_106 : f32 to vector<5x1xf32>
    %326 = vector.broadcast %cst_107 : f32 to vector<5x1xf32>
    %327 = arith.select %324, %325, %326 : vector<5x1xi1>, vector<5x1xf32>
    %328 = arith.subf %322, %327 : vector<5x1xf32>
    %cst_108 = arith.constant 0.00999999977 : f32
    %329 = vector.broadcast %cst_108 : f32 to vector<5x1xf32>
    %330 = arith.mulf %329, %328 : vector<5x1xf32>
    %331 = arith.mulf %330, %330 : vector<5x1xf32>
    %cst_109 = arith.constant 3.000000e-02 : f32
    %332 = vector.broadcast %cst_109 : f32 to vector<5x1xf32>
    %333 = arith.mulf %332, %328 : vector<5x1xf32>
    %334 = arith.mulf %333, %333 : vector<5x1xf32>
    %335 = arith.mulf %312, %312 : vector<5x4xf32>
    %336 = arith.mulf %313, %313 : vector<5x4xf32>
    %337 = arith.mulf %312, %313 : vector<5x4xf32>
    %338 = tpu.concatenate %312, %313, %335, %336, %337 in 0 : vector<5x4xf32>, vector<5x4xf32>, vector<5x4xf32>, vector<5x4xf32>, vector<5x4xf32> -> vector<25x4xf32>
    %c0_110 = arith.constant 0 : index
    %c0_111 = arith.constant 0 : index
    %339 = vector.load %arg11[%c0_110, %c0_111] : memref<1x4xf32, #tpu.memory_space<vmem>>, vector<1x4xf32>
    %340 = vector.broadcast %339 : vector<1x4xf32> to vector<25x4xf32>
    %341 = arith.mulf %338, %340 : vector<25x4xf32>
    %cst_112 = arith.constant dense<0.000000e+00> : vector<25xf32>
    %342 = vector.multi_reduction <add>, %341, %cst_112 [1] : vector<25x4xf32> to vector<25xf32>
    %343 = vector.shape_cast %342 : vector<25xf32> to vector<25x1xf32>
    %344 = vector.extract_strided_slice %343 {offsets = [0, 0], sizes = [5, 1], strides = [1, 1]} : vector<25x1xf32> to vector<5x1xf32>
    %345 = vector.extract_strided_slice %343 {offsets = [5, 0], sizes = [5, 1], strides = [1, 1]} : vector<25x1xf32> to vector<5x1xf32>
    %346 = vector.extract_strided_slice %343 {offsets = [10, 0], sizes = [5, 1], strides = [1, 1]} : vector<25x1xf32> to vector<5x1xf32>
    %347 = vector.extract_strided_slice %343 {offsets = [15, 0], sizes = [5, 1], strides = [1, 1]} : vector<25x1xf32> to vector<5x1xf32>
    %348 = vector.extract_strided_slice %343 {offsets = [20, 0], sizes = [5, 1], strides = [1, 1]} : vector<25x1xf32> to vector<5x1xf32>
    %349 = arith.mulf %344, %344 : vector<5x1xf32>
    %350 = arith.mulf %345, %345 : vector<5x1xf32>
    %351 = arith.mulf %344, %345 : vector<5x1xf32>
    %352 = arith.subf %348, %351 : vector<5x1xf32>
    %cst_113 = arith.constant 2.000000e+00 : f32
    %353 = vector.broadcast %cst_113 : f32 to vector<5x1xf32>
    %354 = arith.mulf %353, %352 : vector<5x1xf32>
    %355 = arith.addf %354, %334 : vector<5x1xf32>
    %356 = arith.subf %346, %349 : vector<5x1xf32>
    %357 = arith.subf %347, %350 : vector<5x1xf32>
    %358 = arith.addf %356, %357 : vector<5x1xf32>
    %359 = arith.addf %358, %334 : vector<5x1xf32>
    %360 = tpu.reciprocal %359 {approx = true} : vector<5x1xf32> -> vector<5x1xf32>
    %361 = arith.mulf %359, %360 : vector<5x1xf32>
    %cst_114 = arith.constant 2.000000e+00 : f32
    %362 = vector.broadcast %cst_114 : f32 to vector<5x1xf32>
    %363 = arith.subf %362, %361 : vector<5x1xf32>
    %364 = arith.mulf %360, %363 : vector<5x1xf32>
    %365 = arith.mulf %355, %364 : vector<5x1xf32>
    %cst_115 = arith.constant 2.000000e+00 : f32
    %366 = vector.broadcast %cst_115 : f32 to vector<5x1xf32>
    %367 = arith.mulf %366, %351 : vector<5x1xf32>
    %368 = arith.addf %367, %331 : vector<5x1xf32>
    %369 = arith.addf %349, %350 : vector<5x1xf32>
    %370 = arith.addf %369, %331 : vector<5x1xf32>
    %371 = tpu.reciprocal %370 {approx = true} : vector<5x1xf32> -> vector<5x1xf32>
    %372 = arith.mulf %370, %371 : vector<5x1xf32>
    %cst_116 = arith.constant 2.000000e+00 : f32
    %373 = vector.broadcast %cst_116 : f32 to vector<5x1xf32>
    %374 = arith.subf %373, %372 : vector<5x1xf32>
    %375 = arith.mulf %371, %374 : vector<5x1xf32>
    %376 = arith.mulf %368, %375 : vector<5x1xf32>
    %377 = arith.mulf %376, %365 : vector<5x1xf32>
    %cst_117 = arith.constant dense<0.000000e+00> : vector<5xf32>
    %378 = vector.multi_reduction <add>, %365, %cst_117 [1] : vector<5x1xf32> to vector<5xf32>
    %379 = vector.shape_cast %378 : vector<5xf32> to vector<5x1xf32>
    %cst_118 = arith.constant 1.000000e+00 : f32
    %380 = vector.broadcast %cst_118 : f32 to vector<5x1xf32>
    %381 = arith.mulf %379, %380 : vector<5x1xf32>
    %cst_119 = arith.constant dense<0.000000e+00> : vector<5xf32>
    %382 = vector.multi_reduction <add>, %377, %cst_119 [1] : vector<5x1xf32> to vector<5xf32>
    %383 = vector.shape_cast %382 : vector<5xf32> to vector<5x1xf32>
    %cst_120 = arith.constant 1.000000e+00 : f32
    %384 = vector.broadcast %cst_120 : f32 to vector<5x1xf32>
    %385 = arith.mulf %383, %384 : vector<5x1xf32>
    %386 = tpu.concatenate %76, %154, %231, %308, %385 in 1 : vector<5x1xf32>, vector<5x1xf32>, vector<5x1xf32>, vector<5x1xf32>, vector<5x1xf32> -> vector<5x5xf32>
    %387 = vector.shape_cast %386 : vector<5x5xf32> to vector<1x5x5xf32>
    %c0_121 = arith.constant 0 : index
    %c0_122 = arith.constant 0 : index
    %c0_123 = arith.constant 0 : index
    %388 = vector.load %arg12[%c0_121, %c0_122, %c0_123] : memref<1x5x5xf32, #tpu.memory_space<vmem>>, vector<1x5x5xf32>
    tpu.vector_store %arg12[%c0_121, %c0_122, %c0_123], %387 {strides = array<i32>} : memref<1x5x5xf32, #tpu.memory_space<vmem>>, vector<1x5x5xf32>,
    %389 = tpu.concatenate %72, %150, %227, %304, %381 in 1 : vector<5x1xf32>, vector<5x1xf32>, vector<5x1xf32>, vector<5x1xf32>, vector<5x1xf32> -> vector<5x5xf32>
    %390 = vector.shape_cast %389 : vector<5x5xf32> to vector<1x5x5xf32>
    %c0_124 = arith.constant 0 : index
    %c0_125 = arith.constant 0 : index
    %c0_126 = arith.constant 0 : index
    %391 = vector.load %arg13[%c0_124, %c0_125, %c0_126] : memref<1x5x5xf32, #tpu.memory_space<vmem>>, vector<1x5x5xf32>
    tpu.vector_store %arg13[%c0_124, %c0_125, %c0_126], %390 {strides = array<i32>} : memref<1x5x5xf32, #tpu.memory_space<vmem>>, vector<1x5x5xf32>,
    return
  }
  func.func @transform_0(%arg0: i32) -> (i32, i32, i32) {
    %c0_i32 = arith.constant 0 : i32
    %c0_i32_0 = arith.constant 0 : i32
    %c0_i32_1 = arith.constant 0 : i32
    return %arg0, %c0_i32, %c0_i32_0 : i32, i32, i32
  }
  func.func @transform_1(%arg0: i32) -> (i32, i32, i32) {
    %c0_i32 = arith.constant 0 : i32
    %c0_i32_0 = arith.constant 0 : i32
    %c0_i32_1 = arith.constant 0 : i32
    return %arg0, %c0_i32, %c0_i32_0 : i32, i32, i32
  }
  func.func @transform_2(%arg0: i32) -> (i32, i32) {
    %c0_i32 = arith.constant 0 : i32
    %c0_i32_0 = arith.constant 0 : i32
    %c0_i32_1 = arith.constant 0 : i32
    return %c0_i32, %c0_i32_0 : i32, i32
  }
  func.func @transform_3(%arg0: i32) -> (i32, i32) {
    %c0_i32 = arith.constant 0 : i32
    %c0_i32_0 = arith.constant 0 : i32
    %c0_i32_1 = arith.constant 0 : i32
    return %c0_i32, %c0_i32_0 : i32, i32
  }
  func.func @transform_4(%arg0: i32) -> (i32, i32) {
    %c0_i32 = arith.constant 0 : i32
    %c0_i32_0 = arith.constant 0 : i32
    %c0_i32_1 = arith.constant 0 : i32
    return %c0_i32, %c0_i32_0 : i32, i32
  }
  func.func @transform_5(%arg0: i32) -> (i32, i32) {
    %c0_i32 = arith.constant 0 : i32
    %c0_i32_0 = arith.constant 0 : i32
    %c0_i32_1 = arith.constant 0 : i32
    return %c0_i32, %c0_i32_0 : i32, i32
  }
  func.func @transform_6(%arg0: i32) -> (i32, i32) {
    %c0_i32 = arith.constant 0 : i32
    %c0_i32_0 = arith.constant 0 : i32
    %c0_i32_1 = arith.constant 0 : i32
    return %c0_i32, %c0_i32_0 : i32, i32
  }
  func.func @transform_7(%arg0: i32) -> (i32, i32) {
    %c0_i32 = arith.constant 0 : i32
    %c0_i32_0 = arith.constant 0 : i32
    %c0_i32_1 = arith.constant 0 : i32
    return %c0_i32, %c0_i32_0 : i32, i32
  }
  func.func @transform_8(%arg0: i32) -> (i32, i32) {
    %c0_i32 = arith.constant 0 : i32
    %c0_i32_0 = arith.constant 0 : i32
    %c0_i32_1 = arith.constant 0 : i32
    return %c0_i32, %c0_i32_0 : i32, i32
  }
  func.func @transform_9(%arg0: i32) -> (i32, i32) {
    %c0_i32 = arith.constant 0 : i32
    %c0_i32_0 = arith.constant 0 : i32
    %c0_i32_1 = arith.constant 0 : i32
    return %c0_i32, %c0_i32_0 : i32, i32
  }
  func.func @transform_10(%arg0: i32) -> (i32, i32) {
    %c0_i32 = arith.constant 0 : i32
    %c0_i32_0 = arith.constant 0 : i32
    %c0_i32_1 = arith.constant 0 : i32
    return %c0_i32, %c0_i32_0 : i32, i32
  }
  func.func @transform_11(%arg0: i32) -> (i32, i32, i32) {
    %c0_i32 = arith.constant 0 : i32
    %c0_i32_0 = arith.constant 0 : i32
    %c0_i32_1 = arith.constant 0 : i32
    return %arg0, %c0_i32, %c0_i32_0 : i32, i32, i32
  }
  func.func @transform_12(%arg0: i32) -> (i32, i32, i32) {
    %c0_i32 = arith.constant 0 : i32
    %c0_i32_0 = arith.constant 0 : i32
    %c0_i32_1 = arith.constant 0 : i32
    return %arg0, %c0_i32, %c0_i32_0 : i32, i32, i32
  }
}

</mosaic_0001>

<bundles_post_ra>
// kernel: squeeze.2
= control target key start
LH: loop header
LB: loop body
LE: loop exit
PB: predicated region body
PF: predicated region fallthrough
CT: control target
= control target key end

     0   :  { %2 = vsyncpa [#allocation1], 0  ;;  %s1204_s8 = smov [#allocation0]   ;;  %s1811_s0 = inlined_call_operand.hbm [shape: f32[10,1,32,32], index: 0, kind: input, shape index: {}]   ;;  %s1812_s1 = inlined_call_operand.vmem [shape: f32[2,5,1024], index: 1, kind: output, shape index: {}]  }
   0x1   :  { %s6_s0 = sshll.u32 %s1811_s0, 4  ;;  %s8_s9 = sshll.u32 %s1204_s8, 4  ;;  %s7_s0 = int_to_ptr.hbm [resolvable:$true] %s6_s0  ;;  %s9_s9 = int_to_ptr.vmem [resolvable:$true] %s8_s9 }
   0x2   :  { %11 = dma.hbm_to_vmem [thread:$0]  %s7_s0, 5120, %s9_s9, [#allocation1]  }
   0x3   :  { %1202 = dma.done.wait [#allocation1], 5120  }
   0x4   :  { %1203 = vsyncadd [#allocation1], 4294962176  ;;  %s163_s10 = smov 48  ;;  %vm85_vm0 = vcmask 1041409   ;;  %vm89_vm1 = vcmask 1042434   ;;  %vm93_vm2 = vcmask 1043459  }
   0x5   :  { %s96_s11 = smov 48  ;;  %s1221_s12 = smov 48  ;;  %vm98_vm3 = vcmask 1045508   ;;  %vm102_vm4 = vcmask 1046534   ;;  %vm106_vm5 = vcmask 1047559   ;;  %vm221_vm6 = vcmask 1042433  }
   0x6   :  { %s1223_s13 = smov 48  ;;  %s1225_s14 = smov 6  ;;  %v149_v0 = vld [vmem:[#allocation0 + $0xa3] sm:$0x1]   ;;  %v168_v6 = vld [vmem:[#allocation0 + $0xc1] sm:$0x40]  }
   0x7   :  { %v151_v1 = vld [vmem:[#allocation0 + $0xc2] sm:$0x2]   ;;  %v172_v8 = vld [vmem:[#allocation0 + $0xe0] sm:$0x80]   ;;  %vm229_vm7 = vcmask 1044484   ;;  %vm233_vm8 = vcmask 1045509  }
   0x8   :  { %v155_v2 = vld [vmem:[#allocation0 + $0xe1] sm:$0x4]   ;;  %v153_v3 = vsel %vm85_vm0, %v151_v1, %v149_v0  ;;  %v101_v18 = vld [vmem:[#allocation0 + $0x21] sm:$0x40]   ;;  %v183_v20 = vld [vmem:[#allocation0 + $0xb3] sm:$0x1]  }
   0x9   :  { %v159_v4 = vld [vmem:[#allocation0 + $0x100] sm:$0x8]   ;;  %v157_v7 = vsel %vm89_vm1, %v155_v2, %v153_v3  ;;  %v105_v19 = vld [vmem:[#allocation0 + $0x40] sm:$0x80]   ;;  %v185_v23 = vld [vmem:[#allocation0 + $0xd2] sm:$0x2]  }
   0xa   :  { %v164_v5 = vld [vmem:[#allocation0 + $0x313] ss:$-124 sm:%s163_s10]   ;;  %v161_v11 = vsel %vm93_vm2, %v159_v4, %v157_v7  ;;  %v187_v28 = vsel %vm85_vm0, %v185_v23, %v183_v20  ;;  %s1239_s15 = smov 192  ;;  %s1241_s16 = smov 6  ;;  %vm238_vm9 = vcmask 1047558   ;;  %vm361_vm10 = vcmask 1044483  }
   0xb   :  { %v82_v9 = vld [vmem:[#allocation0 + $0x3] sm:$0x1]   ;;  %v166_v16 = vsel %vm98_vm3, %v164_v5, %v161_v11  ;;  %v189_v24 = vld [vmem:[#allocation0 + $0xf1] sm:$0x4]   ;;  %v202_v30 = vld [vmem:[#allocation0 + $0xd1] sm:$0x40]  }
   0xc   :  { %v84_v10 = vld [vmem:[#allocation0 + $0x22] sm:$0x2]   ;;  %v170_v21 = vsel %vm102_vm4, %v168_v6, %v166_v16  ;;  %v193_v25 = vld [vmem:[#allocation0 + $0x110] sm:$0x8]   ;;  %s1205_s17 = smov 96   ;;  %v191_v32 = vsel %vm89_vm1, %v189_v24, %v187_v28  ;;  %s1257_s18 = smov 192 }
   0xd   :  { %v86_v12 = vsel %vm85_vm0, %v84_v10, %v82_v9  ;;  %v88_v13 = vld [vmem:[#allocation0 + $0x41] sm:$0x4]   ;;  %v174_v26 = vsel %vm106_vm5, %v172_v8, %v170_v21  ;;  %v115_v33 = vld [vmem:[#allocation0 + $0x13] sm:$0x1]   ;;  %v195_v37 = vsel %vm93_vm2, %v193_v25, %v191_v32  ;;  %v206_v38 = vld [vmem:[#allocation0 + $0xf0] sm:$0x80]  }
   0xe   :  { %v92_v14 = vld [vmem:[#allocation0 + $0x60] sm:$0x8]   ;;  %v90_v17 = vsel %vm89_vm1, %v88_v13, %v86_v12  ;;  %175 = vrot.lane.b32.xlu1 %v174_v26, %s1205_s17  ;;  %v117_v34 = vld [vmem:[#allocation0 + $0x32] sm:$0x2]   ;;  %v134_v44 = vld [vmem:[#allocation0 + $0x31] sm:$0x40]  }
   0xf   :  { %v97_v15 = vld [vmem:[#allocation0 + $0x273] ss:$-124 sm:%s96_s11]   ;;  %v94_v22 = vsel %vm93_vm2, %v92_v14, %v90_v17  ;;  %v119_v39 = vsel %vm85_vm0, %v117_v34, %v115_v33  ;;  %s219_s19 = smov 6  ;;  %s236_s20 = smov 192  ;;  %v417_v10 = vld [vmem:[#allocation0 + $0x2] sm:$0x1]  }
  0x10   :  { %v99_v27 = vsel %vm98_vm3, %v97_v15, %v94_v22  ;;  %v198_v29 = vld [vmem:[#allocation0 + $0x323] ss:$-124 sm:%s1221_s12]   ;;  %s1265_s21 = smov 48  ;;  %v419_v11 = vld [vmem:[#allocation0 + $0x21] sm:$0x2]   ;;  %s393_s22 = smov 24 }
  0x11   :  { %v103_v31 = vsel %vm102_vm4, %v101_v18, %v99_v27  ;;  %v121_v35 = vld [vmem:[#allocation0 + $0x51] sm:$0x4]   ;;  %v200_v42 = vsel %vm98_vm3, %v198_v29, %v195_v37  ;;  %v316_v45 = vld [vmem:[#allocation0 + $0x117] sm:$0x1]   ;;  %v323_v51 = vld [vmem:[#allocation0 + $0xd8] sm:$0x8]   ;;  %v421_v15 = vsel %vm85_vm0, %v419_v11, %v417_v10 }
  0x12   :  { %v107_v36 = vsel %vm106_vm5, %v105_v19, %v103_v31  ;;  %v125_v40 = vld [vmem:[#allocation0 + $0x70] sm:$0x8]   ;;  %v123_v43 = vsel %vm89_vm1, %v121_v35, %v119_v39  ;;  %v204_v47 = vsel %vm102_vm4, %v202_v30, %v200_v42  ;;  %v138_v49 = vld [vmem:[#allocation0 + $0x50] sm:$0x80]   ;;  %v327_v54 = vld [vmem:[#allocation0 + $0xf7] sm:$0x10]  }
  0x13   :  { %v130_v41 = vld [vmem:[#allocation0 + $0x283] ss:$-124 sm:%s1223_s13]   ;;  %108 = vrot.lane.b32.xlu0 %v107_v36, %s1205_s17  ;;  %v127_v48 = vsel %vm93_vm2, %v125_v40, %v123_v43  ;;  %v208_v57 = vsel %vm106_vm5, %v206_v38, %v204_v47  ;;  %v423_v16 = vld [vmem:[#allocation0 + $0x40] sm:$0x4]   ;;  %s252_s23 = smov 6  ;;  %s269_s24 = smov 192 }
  0x14   :  { %v319_v46 = vld [vmem:[#allocation0 + $0x1b3] ss:$-124 sm:%s1225_s14]   ;;  %v132_v52 = vsel %vm98_vm3, %v130_v41, %v127_v48  ;;  %v427_v17 = vld [vmem:[#allocation0 + $0x5f] sm:$0x8]   ;;  %v425_v21 = vsel %vm89_vm1, %v423_v16, %v421_v15  ;;  %v436_v42 = vld [vmem:[#allocation0 + $0x20] sm:$0x40]  }
  0x15   :  { %v321_v50 = vsel %vm221_vm6, %v319_v46, %v316_v45  ;;  %v283_v55 = vld [vmem:[#allocation0 + $0x107] sm:$0x1]   ;;  %v136_v58 = vsel %vm102_vm4, %v134_v44, %v132_v52  ;;  %v331_v59 = vld [vmem:[#allocation0 + $0x116] sm:$0x20]   ;;  %v290_v61 = vld [vmem:[#allocation0 + $0xc8] sm:$0x8]   ;;  %v429_v28 = vsel %vm93_vm2, %v427_v17, %v425_v21 }
  0x16   :  { %v325_v53 = vsel %vm93_vm2, %v323_v51, %v321_v50  ;;  %v286_v56 = vld [vmem:[#allocation0 + $0x1a3] ss:$-124 sm:%s1241_s16]   ;;  %v140_v2 = vsel %vm106_vm5, %v138_v49, %v136_v58  ;;  %209 = vrot.lane.b32.xlu1 %v208_v57, %s1205_s17  ;;  %v432_v29 = vld [vmem:[#allocation0 + $0x272] ss:$-124 sm:%s1265_s21]   ;;  %s532_s25 = smov 48  ;;  %s498_s26 = smov 48 }
  0x17   :  { %v288_v60 = vsel %vm221_vm6, %v286_v56, %v283_v55  ;;  %v294_v63 = vld [vmem:[#allocation0 + $0xe7] sm:$0x10]   ;;  %v217_v0 = vld [vmem:[#allocation0 + $0x67] sm:$0x1]   ;;  %v329_v3 = vsel %vm229_vm7, %v327_v54, %v325_v53  ;;  %v383_v23 = vld [vmem:[#allocation0 + $0xcf] sm:$0x1]   ;;  %v434_v41 = vsel %vm98_vm3, %v432_v29, %v429_v28 }
  0x18   :  { %v292_v62 = vsel %vm93_vm2, %v290_v61, %v288_v60  ;;  %v220_v1 = vld [vmem:[#allocation0 + $0x103] ss:$-124 sm:%s219_s19]   ;;  %v333_v18 = vsel %vm233_vm8, %v331_v59, %v329_v3  ;;  %v518_v45 = vld [vmem:[#allocation0 + $0xb2] sm:$0x1]   ;;  %v438_v55 = vsel %vm102_vm4, %v436_v42, %v434_v41  ;;  %v440_v56 = vld [vmem:[#allocation0 + $0x3f] sm:$0x80]  }
  0x19   :  { %v222_v4 = vsel %vm221_vm6, %v220_v1, %v217_v0  ;;  %v224_v5 = vld [vmem:[#allocation0 + $0x28] sm:$0x8]   ;;  %v296_v12 = vsel %vm229_vm7, %v294_v63, %v292_v62  ;;  %v385_v24 = vld [vmem:[#allocation0 + $0xee] sm:$0x2]   ;;  %v398_v34 = vld [vmem:[#allocation0 + $0xfa] sm:$0x20]  }
  0x1a   :  { %v228_v6 = vld [vmem:[#allocation0 + $0x47] sm:$0x10]   ;;  %v226_v8 = vsel %vm93_vm2, %v224_v5, %v222_v4  ;;  %v389_v25 = vld [vmem:[#allocation0 + $0x10d] sm:$0x4]   ;;  %v387_v30 = vsel %vm85_vm0, %v385_v24, %v383_v23  ;;  %v250_v35 = vld [vmem:[#allocation0 + $0x77] sm:$0x1]  }
  0x1b   :  { %v232_v7 = vld [vmem:[#allocation0 + $0x66] sm:$0x20]   ;;  %v230_v14 = vsel %vm229_vm7, %v228_v6, %v226_v8  ;;  %141 = vrot.lane.b32.xlu0 %v140_v2, %s1205_s17  ;;  %v394_v31 = vld [vmem:[#allocation0 + $0x21f] ss:$-80 sm:%s393_s22]   ;;  %v391_v33 = vsel %vm89_vm1, %v389_v25, %v387_v30  ;;  %v257_v38 = vld [vmem:[#allocation0 + $0x38] sm:$0x8]  }
  0x1c   :  { %v237_v9 = vld [vmem:[#allocation0 + $0x373] ss:$-124 sm:%s236_s20]   ;;  %v234_v20 = vsel %vm233_vm8, %v232_v7, %v230_v14  ;;  %v396_v36 = vsel %vm361_vm10, %v394_v31, %v391_v33  ;;  %v520_v48 = vld [vmem:[#allocation0 + $0xd1] sm:$0x2]   ;;  %v484_v59 = vld [vmem:[#allocation0 + $0xa2] sm:$0x1]   ;;  %v442_v7 = vsel %vm106_vm5, %v440_v56, %v438_v55 }
  0x1d   :  { %v298_v13 = vld [vmem:[#allocation0 + $0x106] sm:$0x20]   ;;  %v239_v22 = vsel %vm238_vm9, %v237_v9, %v234_v20  ;;  %v261_v39 = vld [vmem:[#allocation0 + $0x57] sm:$0x10]   ;;  %v524_v49 = vld [vmem:[#allocation0 + $0xf0] sm:$0x4]   ;;  %v400_v50 = vsel %vm233_vm8, %v398_v34, %v396_v36  ;;  %v522_v53 = vsel %vm85_vm0, %v520_v48, %v518_v45 }
  0x1e   :  { %v336_v19 = vld [vmem:[#allocation0 + $0x423] ss:$-124 sm:%s1239_s15]   ;;  %v300_v26 = vsel %vm233_vm8, %v298_v13, %v296_v12  ;;  %240 = vrot.lane.b32.xlu2 %v239_v22, %s1205_s17  ;;  %v528_v54 = vld [vmem:[#allocation0 + $0x10f] sm:$0x8]   ;;  %v526_v58 = vsel %vm89_vm1, %v524_v49, %v522_v53  ;;  %v486_v60 = vld [vmem:[#allocation0 + $0xc1] sm:$0x2]  }
  0x1f   :  { %v303_v27 = vld [vmem:[#allocation0 + $0x413] ss:$-124 sm:%s1257_s18]   ;;  %v338_v32 = vsel %vm238_vm9, %v336_v19, %v333_v18  ;;  %v488_v62 = vsel %vm85_vm0, %v486_v60, %v484_v59  ;;  %v490_v63 = vld [vmem:[#allocation0 + $0xe0] sm:$0x4]   ;;  %v530_v3 = vsel %vm93_vm2, %v528_v54, %v526_v58  ;;  %v537_v8 = vld [vmem:[#allocation0 + $0xd0] sm:$0x40]  }
  0x20   :  { %v253_v37 = vld [vmem:[#allocation0 + $0x113] ss:$-124 sm:%s252_s23]   ;;  %v305_v40 = vsel %vm238_vm9, %v303_v27, %v300_v26  ;;  %339 = vrot.lane.b32.xlu1 %v338_v32, %s1205_s17  ;;  %v494_v0 = vld [vmem:[#allocation0 + $0xff] sm:$0x8]   ;;  %v492_v5 = vsel %vm89_vm1, %v490_v63, %v488_v62  ;;  %s359_s27 = smov 24  ;;  %s620_s28 = smov 6 }
  0x21   :  { %v255_v43 = vsel %vm221_vm6, %v253_v37, %v250_v35  ;;  %v265_v44 = vld [vmem:[#allocation0 + $0x76] sm:$0x20]   ;;  %v402_v51 = vld [vmem:[#allocation0 + $0x119] sm:$0x40]   ;;  %v533_v4 = vld [vmem:[#allocation0 + $0x322] ss:$-124 sm:%s532_s25]   ;;  %v496_v11 = vsel %vm93_vm2, %v494_v0, %v492_v5 }
  0x22   :  { %v259_v46 = vsel %vm93_vm2, %v257_v38, %v255_v43  ;;  %v270_v47 = vld [vmem:[#allocation0 + $0x383] ss:$-124 sm:%s269_s24]   ;;  %v404_v1 = vsel %vm102_vm4, %v402_v51, %v400_v50  ;;  %v499_v12 = vld [vmem:[#allocation0 + $0x312] ss:$-124 sm:%s498_s26]   ;;  %v535_v17 = vsel %vm98_vm3, %v533_v4, %v530_v3  ;;  %s1206_s29 = smov 64   ;;  %s587_s30 = smov 6 }
  0x23   :  { %v263_v52 = vsel %vm229_vm7, %v261_v39, %v259_v46  ;;  %306 = vrot.lane.b32.xlu0 %v305_v40, %s1205_s17  ;;  %v406_v2 = vld [vmem:[#allocation0 + $0x138] sm:$0x80]   ;;  %v349_v6 = vld [vmem:[#allocation0 + $0x2f] sm:$0x1]   ;;  %v618_v20 = vld [vmem:[#allocation0 + $0x106] sm:$0x1]   ;;  %v501_v26 = vsel %vm98_vm3, %v499_v12, %v496_v11  ;;  %v539_v31 = vsel %vm102_vm4, %v537_v8, %v535_v17 }
  0x24   :  { %v267_v57 = vsel %vm233_vm8, %v265_v44, %v263_v52  ;;  %v351_v9 = vld [vmem:[#allocation0 + $0x4e] sm:$0x2]   ;;  %v364_v15 = vld [vmem:[#allocation0 + $0x5a] sm:$0x20]   ;;  %v408_v16 = vsel %vm106_vm5, %v406_v2, %v404_v1  ;;  %v621_v21 = vld [vmem:[#allocation0 + $0x1a2] ss:$-124 sm:%s620_s28]  }
  0x25   :  { %v272_v61 = vsel %vm238_vm9, %v270_v47, %v267_v57  ;;  %v355_v10 = vld [vmem:[#allocation0 + $0x6d] sm:$0x4]   ;;  %v353_v13 = vsel %vm85_vm0, %v351_v9, %v349_v6  ;;  %v368_v19 = vld [vmem:[#allocation0 + $0x79] sm:$0x40]   ;;  %v541_v22 = vld [vmem:[#allocation0 + $0xef] sm:$0x80]   ;;  %v623_v28 = vsel %vm221_vm6, %v621_v21, %v618_v20 }
  0x26   :  { %273 = vrot.lane.b32.xlu2 %v272_v61, %s1205_s17  ;;  %v360_v14 = vld [vmem:[#allocation0 + $0x17f] ss:$-80 sm:%s359_s27]   ;;  %v357_v18 = vsel %vm89_vm1, %v355_v10, %v353_v13  ;;  %v503_v23 = vld [vmem:[#allocation0 + $0xc0] sm:$0x40]   ;;  %v625_v29 = vld [vmem:[#allocation0 + $0xc7] sm:$0x8]   ;;  %v543_v44 = vsel %vm106_vm5, %v541_v22, %v539_v31 }
  0x27   :  { %v362_v24 = vsel %vm361_vm10, %v360_v14, %v357_v18  ;;  %v372_v25 = vld [vmem:[#allocation0 + $0x98] sm:$0x80]   ;;  %v585_v30 = vld [vmem:[#allocation0 + $0x76] sm:$0x1]   ;;  %v507_v32 = vld [vmem:[#allocation0 + $0xdf] sm:$0x80]   ;;  %v505_v40 = vsel %vm102_vm4, %v503_v23, %v501_v26  ;;  %v627_v41 = vsel %vm93_vm2, %v625_v29, %v623_v28 }
  0x28   :  { %443 = vrot.lane.b32.xlu1 %v442_v7, %s1206_s29  ;;  %v366_v27 = vsel %vm233_vm8, %v364_v15, %v362_v24  ;;  %v629_v34 = vld [vmem:[#allocation0 + $0xe6] sm:$0x10]   ;;  %v592_v38 = vld [vmem:[#allocation0 + $0x37] sm:$0x8]   ;;  %v450_v39 = vld [vmem:[#allocation0 + $0x12] sm:$0x1]   ;;  %v509_v55 = vsel %vm106_vm5, %v507_v32, %v505_v40 }
  0x29   :  { %v370_v33 = vsel %vm102_vm4, %v368_v19, %v366_v27  ;;  %v588_v35 = vld [vmem:[#allocation0 + $0x112] ss:$-124 sm:%s587_s30]   ;;  %s464_s2 = smov 48  ;;  %s1328_s3 = smov 192  ;;  %v631_v56 = vsel %vm229_vm7, %v629_v34, %v627_v41  ;;  %v819_v27 = vld [vmem:[#allocation0 + $0xa1] sm:$0x1]  }
  0x2a   :  { %v374_v36 = vsel %vm106_vm5, %v372_v25, %v370_v33  ;;  %v590_v37 = vsel %vm221_vm6, %v588_v35, %v585_v30  ;;  %v452_v42 = vld [vmem:[#allocation0 + $0x31] sm:$0x2]   ;;  %v633_v45 = vld [vmem:[#allocation0 + $0x105] sm:$0x20]   ;;  %v596_v46 = vld [vmem:[#allocation0 + $0x56] sm:$0x10]  }
  0x2b   :  { %409 = vrot.lane.b32.xlu0 %v408_v16, %s1205_s17  ;;  %v456_v43 = vld [vmem:[#allocation0 + $0x50] sm:$0x4]   ;;  %v454_v47 = vsel %vm85_vm0, %v452_v42, %v450_v39  ;;  %v594_v50 = vsel %vm93_vm2, %v592_v38, %v590_v37  ;;  %v469_v52 = vld [vmem:[#allocation0 + $0x30] sm:$0x40]   ;;  %v718_v53 = vld [vmem:[#allocation0 + $0xce] sm:$0x1]   ;;  %v635_v6 = vsel %vm233_vm8, %v633_v45, %v631_v56 }
  0x2c   :  { %v460_v48 = vld [vmem:[#allocation0 + $0x6f] sm:$0x8]   ;;  %v458_v51 = vsel %vm89_vm1, %v456_v43, %v454_v47  ;;  %v720_v54 = vld [vmem:[#allocation0 + $0xed] sm:$0x2]   ;;  %s604_s4 = smov 192  ;;  %s728_s5 = smov 24  ;;  %v598_v0 = vsel %vm229_vm7, %v596_v46, %v594_v50 }
  0x2d   :  { %v465_v49 = vld [vmem:[#allocation0 + $0x282] ss:$-124 sm:%s464_s2]   ;;  %v462_v57 = vsel %vm93_vm2, %v460_v48, %v458_v51  ;;  %v722_v59 = vsel %vm85_vm0, %v720_v54, %v718_v53  ;;  %s694_s6 = smov 24  ;;  %s554_s7 = smov 6  ;;  %v821_v28 = vld [vmem:[#allocation0 + $0xc0] sm:$0x2]  }
  0x2e   :  { %375 = vrot.lane.b32.xlu2 %v374_v36, %s1205_s17  ;;  %v473_v58 = vld [vmem:[#allocation0 + $0x4f] sm:$0x80]   ;;  %v724_v60 = vld [vmem:[#allocation0 + $0x10c] sm:$0x4]   ;;  %v600_v61 = vld [vmem:[#allocation0 + $0x75] sm:$0x20]   ;;  %v467_v62 = vsel %vm98_vm3, %v465_v49, %v462_v57  ;;  %v823_v34 = vsel %vm85_vm0, %v821_v28, %v819_v27 }
  0x2f   :  { %v729_v63 = vld [vmem:[#allocation0 + $0x21e] ss:$-80 sm:%s728_s5]   ;;  %v471_v1 = vsel %vm102_vm4, %v469_v52, %v467_v62  ;;  %v726_v2 = vsel %vm89_vm1, %v724_v60, %v722_v59  ;;  %v552_v14 = vld [vmem:[#allocation0 + $0x66] sm:$0x1]   ;;  %s571_s0 = smov 192  ;;  %v602_v15 = vsel %vm233_vm8, %v600_v61, %v598_v0  ;;  %s833_s8 = smov 48 }
  0x30   :  { %544 = vrot.lane.b32.xlu1 %v543_v44, %s1206_s29  ;;  %v684_v3 = vld [vmem:[#allocation0 + $0x2e] sm:$0x1]   ;;  %v475_v9 = vsel %vm106_vm5, %v473_v58, %v471_v1  ;;  %v733_v10 = vld [vmem:[#allocation0 + $0xf9] sm:$0x20]   ;;  %v731_v16 = vsel %vm361_vm10, %v729_v63, %v726_v2  ;;  %v559_v18 = vld [vmem:[#allocation0 + $0x27] sm:$0x8]  }
  0x31   :  { %v686_v4 = vld [vmem:[#allocation0 + $0x4d] sm:$0x2]   ;;  %v563_v19 = vld [vmem:[#allocation0 + $0x46] sm:$0x10]   ;;  %v699_v21 = vld [vmem:[#allocation0 + $0x59] sm:$0x20]   ;;  %v735_v31 = vsel %vm233_vm8, %v733_v10, %v731_v16 }
  0x32   :  { %v690_v5 = vld [vmem:[#allocation0 + $0x6c] sm:$0x4]   ;;  %v688_v11 = vsel %vm85_vm0, %v686_v4, %v684_v3  ;;  %v567_v23 = vld [vmem:[#allocation0 + $0x65] sm:$0x20]   ;;  %v825_v29 = vld [vmem:[#allocation0 + $0xdf] sm:$0x4]  }
  0x33   :  { %510 = vrot.lane.b32.xlu0 %v509_v55, %s1206_s29  ;;  %v638_v7 = vld [vmem:[#allocation0 + $0x412] ss:$-124 sm:%s1328_s3]   ;;  %v692_v12 = vsel %vm89_vm1, %v690_v5, %v688_v11  ;;  %v785_v38 = vld [vmem:[#allocation0 + $0x11] sm:$0x1]   ;;  %v827_v42 = vsel %vm89_vm1, %v825_v29, %v823_v34  ;;  %v829_v43 = vld [vmem:[#allocation0 + $0xfe] sm:$0x8]  }
  0x34   :  { %v605_v8 = vld [vmem:[#allocation0 + $0x382] ss:$-124 sm:%s604_s4]   ;;  %v640_v20 = vsel %vm238_vm9, %v638_v7, %v635_v6  ;;  %v787_v39 = vld [vmem:[#allocation0 + $0x30] sm:$0x2]   ;;  %s653_s9 = smov 6  ;;  %s799_s10 = smov 48  ;;  %v831_v55 = vsel %vm93_vm2, %v829_v43, %v827_v42 }
  0x35   :  { %v695_v13 = vld [vmem:[#allocation0 + $0x17e] ss:$-80 sm:%s694_s6]   ;;  %v607_v30 = vsel %vm238_vm9, %v605_v8, %v602_v15  ;;  %v789_v44 = vsel %vm85_vm0, %v787_v39, %v785_v38  ;;  %v791_v45 = vld [vmem:[#allocation0 + $0x4f] sm:$0x4]   ;;  %v651_v51 = vld [vmem:[#allocation0 + $0x116] sm:$0x1]  }
  0x36   :  { %476 = vrot.lane.b32.xlu2 %v475_v9, %s1206_s29  ;;  %v555_v17 = vld [vmem:[#allocation0 + $0x102] ss:$-124 sm:%s554_s7]   ;;  %v697_v25 = vsel %vm361_vm10, %v695_v13, %v692_v12  ;;  %v834_v48 = vld [vmem:[#allocation0 + $0x311] ss:$-124 sm:%s833_s8]   ;;  %v793_v50 = vsel %vm89_vm1, %v791_v45, %v789_v44  ;;  %s670_s11 = smov 192  ;;  %s922_s12 = smov 6 }
  0x37   :  { %v557_v22 = vsel %vm221_vm6, %v555_v17, %v552_v14  ;;  %v572_v24 = vld [vmem:[#allocation0 + $0x372] ss:$-124 sm:%s571_s0]   ;;  %v701_v40 = vsel %vm233_vm8, %v699_v21, %v697_v25  ;;  %v795_v49 = vld [vmem:[#allocation0 + $0x6e] sm:$0x8]   ;;  %v920_v1 = vld [vmem:[#allocation0 + $0x75] sm:$0x1]   ;;  %v836_v4 = vsel %vm98_vm3, %v834_v48, %v831_v55 }
  0x38   :  { %v561_v26 = vsel %vm93_vm2, %v559_v18, %v557_v22  ;;  %v737_v32 = vld [vmem:[#allocation0 + $0x118] sm:$0x40]   ;;  %641 = vrot.lane.b32.xlu1 %v640_v20, %s1206_s29  ;;  %v658_v53 = vld [vmem:[#allocation0 + $0xd7] sm:$0x8]   ;;  %v800_v60 = vld [vmem:[#allocation0 + $0x281] ss:$-124 sm:%s799_s10]   ;;  %v797_v62 = vsel %vm93_vm2, %v795_v49, %v793_v50 }
  0x39   :  { %v565_v33 = vsel %vm229_vm7, %v563_v19, %v561_v26  ;;  %v741_v35 = vld [vmem:[#allocation0 + $0x137] sm:$0x80]   ;;  %v739_v46 = vsel %vm102_vm4, %v737_v32, %v735_v31  ;;  %v662_v57 = vld [vmem:[#allocation0 + $0xf6] sm:$0x10]   ;;  %v923_v2 = vld [vmem:[#allocation0 + $0x111] ss:$-124 sm:%s922_s12]   ;;  %v802_v11 = vsel %vm98_vm3, %v800_v60, %v797_v62 }
  0x3a   :  { %v703_v36 = vld [vmem:[#allocation0 + $0x78] sm:$0x40]   ;;  %v569_v37 = vsel %vm233_vm8, %v567_v23, %v565_v33  ;;  %v666_v58 = vld [vmem:[#allocation0 + $0x115] sm:$0x20]   ;;  %v743_v59 = vsel %vm106_vm5, %v741_v35, %v739_v46  ;;  %v838_v5 = vld [vmem:[#allocation0 + $0xbf] sm:$0x40]   ;;  %v925_v13 = vsel %vm221_vm6, %v923_v2, %v920_v1 }
  0x3b   :  { %v574_v41 = vsel %vm238_vm9, %v572_v24, %v569_v37  ;;  %608 = vrot.lane.b32.xlu0 %v607_v30, %s1206_s29  ;;  %v707_v47 = vld [vmem:[#allocation0 + $0x97] sm:$0x80]   ;;  %v705_v54 = vsel %vm102_vm4, %v703_v36, %v701_v40  ;;  %s889_s13 = smov 6  ;;  %v842_v7 = vld [vmem:[#allocation0 + $0xde] sm:$0x80]   ;;  %s766_s14 = smov 48  ;;  %v840_v16 = vsel %vm102_vm4, %v838_v5, %v836_v4 }
  0x3c   :  { %v654_v52 = vld [vmem:[#allocation0 + $0x1b2] ss:$-124 sm:%s653_s9]   ;;  %v709_v3 = vsel %vm106_vm5, %v707_v47, %v705_v54  ;;  %v804_v8 = vld [vmem:[#allocation0 + $0x2f] sm:$0x40]   ;;  %v887_v9 = vld [vmem:[#allocation0 + $0x65] sm:$0x1]   ;;  %v844_v32 = vsel %vm106_vm5, %v842_v7, %v840_v16 }
  0x3d   :  { %v656_v56 = vsel %vm221_vm6, %v654_v52, %v651_v51  ;;  %v671_v0 = vld [vmem:[#allocation0 + $0x422] ss:$-124 sm:%s670_s11]   ;;  %v890_v10 = vld [vmem:[#allocation0 + $0x101] ss:$-124 sm:%s889_s13]   ;;  %v806_v26 = vsel %vm102_vm4, %v804_v8, %v802_v11  ;;  %s939_s15 = smov 192  ;;  %s988_s16 = smov 6 }
  0x3e   :  { %575 = vrot.lane.b32.xlu2 %v574_v41, %s1206_s29  ;;  %v660_v61 = vsel %vm93_vm2, %v658_v53, %v656_v56  ;;  %v927_v14 = vld [vmem:[#allocation0 + $0x36] sm:$0x8]   ;;  %v752_v15 = vld [vmem:[#allocation0 + $0x1] sm:$0x1]   ;;  %v808_v17 = vld [vmem:[#allocation0 + $0x4e] sm:$0x80]   ;;  %v892_v21 = vsel %vm221_vm6, %v890_v10, %v887_v9 }
  0x3f   :  { %v664_v63 = vsel %vm229_vm7, %v662_v57, %v660_v61  ;;  %v931_v18 = vld [vmem:[#allocation0 + $0x55] sm:$0x10]   ;;  %v754_v19 = vld [vmem:[#allocation0 + $0x20] sm:$0x2]   ;;  %v894_v22 = vld [vmem:[#allocation0 + $0x26] sm:$0x8]   ;;  %v929_v27 = vsel %vm93_vm2, %v927_v14, %v925_v13  ;;  %v810_v40 = vsel %vm106_vm5, %v808_v17, %v806_v26 }
  0x40   :  { %v668_v6 = vsel %vm233_vm8, %v666_v58, %v664_v63  ;;  %744 = vrot.lane.b32.xlu1 %v743_v59, %s1206_s29  ;;  %v758_v20 = vld [vmem:[#allocation0 + $0x3f] sm:$0x4]   ;;  %v756_v23 = vsel %vm85_vm0, %v754_v19, %v752_v15  ;;  %v771_v29 = vld [vmem:[#allocation0 + $0x1f] sm:$0x40]   ;;  %v1019_v30 = vld [vmem:[#allocation0 + $0x2d] sm:$0x1]   ;;  %v896_v35 = vsel %vm93_vm2, %v894_v22, %v892_v21  ;;  %v933_v41 = vsel %vm229_vm7, %v931_v18, %v929_v27 }
  0x41   :  { %v673_v12 = vsel %vm238_vm9, %v671_v0, %v668_v6  ;;  %v762_v24 = vld [vmem:[#allocation0 + $0x5e] sm:$0x8]   ;;  %v760_v28 = vsel %vm89_vm1, %v758_v20, %v756_v23  ;;  %v1021_v31 = vld [vmem:[#allocation0 + $0x4c] sm:$0x2]   ;;  %v898_v33 = vld [vmem:[#allocation0 + $0x45] sm:$0x10]  }
  0x42   :  { %v767_v25 = vld [vmem:[#allocation0 + $0x271] ss:$-124 sm:%s766_s14]   ;;  %v764_v34 = vsel %vm93_vm2, %v762_v24, %v760_v28  ;;  %v1023_v38 = vsel %vm85_vm0, %v1021_v31, %v1019_v30  ;;  %s1029_s17 = smov 24  ;;  %s906_s18 = smov 192  ;;  %v900_v48 = vsel %vm229_vm7, %v898_v33, %v896_v35  ;;  %vm15_vm11 = vcmask 261120  }
  0x43   :  { %710 = vrot.lane.b32.xlu0 %v709_v3, %s1206_s29  ;;  %v769_v36 = vsel %vm98_vm3, %v767_v25, %v764_v34  ;;  %v775_v37 = vld [vmem:[#allocation0 + $0x3e] sm:$0x80]   ;;  %v1025_v39 = vld [vmem:[#allocation0 + $0x6b] sm:$0x4]   ;;  %v935_v42 = vld [vmem:[#allocation0 + $0x74] sm:$0x20]  }
  0x44   :  { %v902_v43 = vld [vmem:[#allocation0 + $0x64] sm:$0x20]   ;;  %v773_v44 = vsel %vm102_vm4, %v771_v29, %v769_v36  ;;  %s1207_s19 = smov 32   ;;  %v986_v46 = vld [vmem:[#allocation0 + $0x115] sm:$0x1]   ;;  %s867_s20 = smov 48  ;;  %v1027_v50 = vsel %vm89_vm1, %v1025_v39, %v1023_v38  ;;  %v937_v54 = vsel %vm233_vm8, %v935_v42, %v933_v41 }
  0x45   :  { %v940_v45 = vld [vmem:[#allocation0 + $0x381] ss:$-124 sm:%s939_s15]   ;;  %v777_v49 = vsel %vm106_vm5, %v775_v37, %v773_v44  ;;  %v904_v1 = vsel %vm233_vm8, %v902_v43, %v900_v48  ;;  %s955_s21 = smov 6  ;;  %s972_s22 = smov 192  ;;  %v14_v38 = vld [vmem:[#allocation0] ss:$4 sm:$0xff]  }
  0x46   :  { %674 = vrot.lane.b32.xlu2 %v673_v12, %s1206_s29  ;;  %v989_v47 = vld [vmem:[#allocation0 + $0x1b1] ss:$-124 sm:%s988_s16]   ;;  %v942_v6 = vsel %vm238_vm9, %v940_v45, %v937_v54  ;;  %s1005_s23 = smov 192  ;;  %s1063_s24 = smov 24  ;;  %v33_v39 = vld [vmem:[#allocation0 + $0x60] ss:$4 sm:$0xff]  }
  0x47   :  { %v1030_v51 = vld [vmem:[#allocation0 + $0x17d] ss:$-80 sm:%s1029_s17]   ;;  %v853_v52 = vld [vmem:[#allocation0 + $0xb1] sm:$0x1]   ;;  %v991_v60 = vsel %vm221_vm6, %v989_v47, %v986_v46  ;;  %v993_v61 = vld [vmem:[#allocation0 + $0xd6] sm:$0x8]  }
  0x48   :  { %845 = vrot.lane.b32.xlu1 %v844_v32, %s1207_s19  ;;  %v855_v53 = vld [vmem:[#allocation0 + $0xd0] sm:$0x2]   ;;  %v872_v63 = vld [vmem:[#allocation0 + $0xcf] sm:$0x40]   ;;  %v953_v0 = vld [vmem:[#allocation0 + $0x105] sm:$0x1]   ;;  %v1032_v2 = vsel %vm361_vm10, %v1030_v51, %v1027_v50  ;;  %v995_v11 = vsel %vm93_vm2, %v993_v61, %v991_v60 }
  0x49   :  { %v907_v55 = vld [vmem:[#allocation0 + $0x371] ss:$-124 sm:%s906_s18]   ;;  %v857_v56 = vsel %vm85_vm0, %v855_v53, %v853_v52  ;;  %16 = vst.msk [vmem:[%s1812_s1] ss:$8 sm:$0xf] %vm15_vm11, %v14_v38   ;;  %vm110_vm12 = vcmask 1048320  }
  0x4a   :  { %v859_v57 = vld [vmem:[#allocation0 + $0xef] sm:$0x4]   ;;  %v1034_v3 = vld [vmem:[#allocation0 + $0x58] sm:$0x20]   ;;  %v960_v5 = vld [vmem:[#allocation0 + $0xc6] sm:$0x8]   ;;  %v909_v17 = vsel %vm238_vm9, %v907_v55, %v904_v1 }
  0x4b   :  { %811 = vrot.lane.b32.xlu0 %v810_v40, %s1207_s19  ;;  %v863_v58 = vld [vmem:[#allocation0 + $0x10e] sm:$0x8]   ;;  %v861_v62 = vsel %vm89_vm1, %v859_v57, %v857_v56  ;;  %v1038_v7 = vld [vmem:[#allocation0 + $0x77] sm:$0x40]   ;;  %v964_v10 = vld [vmem:[#allocation0 + $0xe5] sm:$0x10]   ;;  %v1036_v18 = vsel %vm233_vm8, %v1034_v3, %v1032_v2 }
  0x4c   :  { %v868_v59 = vld [vmem:[#allocation0 + $0x321] ss:$-124 sm:%s867_s20]   ;;  %v865_v4 = vsel %vm93_vm2, %v863_v58, %v861_v62  ;;  %v1040_v28 = vsel %vm102_vm4, %v1038_v7, %v1036_v18  ;;  %v40_v40 = vld [vmem:[#allocation0 + $0x80] ss:$4 sm:$0xff]   ;;  %vm445_vm13 = vcmask 785920   ;;  %vm780_vm14 = vcmask 523520  }
  0x4d   :  { %v870_v8 = vsel %vm98_vm3, %v868_v59, %v865_v4  ;;  %v956_v9 = vld [vmem:[#allocation0 + $0x1a1] ss:$-124 sm:%s955_s21]   ;;  %1091 = vst.msk [vmem:[%s1812_s1 + $0x3] ss:$8 sm:$0xf] %vm15_vm11, %v33_v39  }
  0x4e   :  { %778 = vrot.lane.b32.xlu2 %v777_v49, %s1207_s19  ;;  %v997_v12 = vld [vmem:[#allocation0 + $0xf5] sm:$0x10]   ;;  %v874_v13 = vsel %vm102_vm4, %v872_v63, %v870_v8  ;;  %v876_v14 = vld [vmem:[#allocation0 + $0xee] sm:$0x80]   ;;  %v958_v15 = vsel %vm221_vm6, %v956_v9, %v953_v0  ;;  %v968_v16 = vld [vmem:[#allocation0 + $0x104] sm:$0x20]  }
  0x4f   :  { %v962_v19 = vsel %vm93_vm2, %v960_v5, %v958_v15  ;;  %v973_v20 = vld [vmem:[#allocation0 + $0x411] ss:$-124 sm:%s972_s22]   ;;  %v999_v24 = vsel %vm229_vm7, %v997_v12, %v995_v11  ;;  %v878_v26 = vsel %vm106_vm5, %v876_v14, %v874_v13  ;;  %1093 = vst.msk [vmem:[%s1812_s1 + $0x4] ss:$8 sm:$0xf] %vm15_vm11, %v40_v40  }
  0x50   :  { %v1053_v21 = vld [vmem:[#allocation0 + $0xcd] sm:$0x1]   ;;  %943 = vrot.lane.b32.xlu1 %v942_v6, %s1207_s19  ;;  %v966_v23 = vsel %vm229_vm7, %v964_v10, %v962_v19  ;;  %v1001_v25 = vld [vmem:[#allocation0 + $0x114] sm:$0x20]   ;;  %v1042_v29 = vld [vmem:[#allocation0 + $0x96] sm:$0x80]  }
  0x51   :  { %v1055_v22 = vld [vmem:[#allocation0 + $0xec] sm:$0x2]   ;;  %v970_v27 = vsel %vm233_vm8, %v968_v16, %v966_v23  ;;  %v1003_v33 = vsel %vm233_vm8, %v1001_v25, %v999_v24  ;;  %v1044_v35 = vsel %vm106_vm5, %v1042_v29, %v1040_v28  ;;  %v1068_v43 = vld [vmem:[#allocation0 + $0xf8] sm:$0x20]   ;;  %v47_v49 = vld [vmem:[#allocation0 + $0xa0] ss:$4 sm:$0xff]  }
  0x52   :  { %v975_v30 = vsel %vm238_vm9, %v973_v20, %v970_v27  ;;  %v1057_v31 = vsel %vm85_vm0, %v1055_v22, %v1053_v21  ;;  %v1059_v32 = vld [vmem:[#allocation0 + $0x10b] sm:$0x4]   ;;  %17 = vst.msk [vmem:[%s1812_s1] ss:$8 sm:$0xf0] %vm15_vm11, %v14_v38  }
  0x53   :  { %910 = vrot.lane.b32.xlu0 %v909_v17, %s1207_s19  ;;  %v1006_v34 = vld [vmem:[#allocation0 + $0x421] ss:$-124 sm:%s1005_s23]   ;;  %v1061_v36 = vsel %vm89_vm1, %v1059_v32, %v1057_v31  ;;  %1092 = vst.msk [vmem:[%s1812_s1 + $0x3] ss:$8 sm:$0xf0] %vm15_vm11, %v33_v39  }
  0x54   :  { %v1064_v37 = vld [vmem:[#allocation0 + $0x21d] ss:$-80 sm:%s1063_s24]   ;;  %v1008_v41 = vsel %vm238_vm9, %v1006_v34, %v1003_v33  ;;  %1094 = vst.msk [vmem:[%s1812_s1 + $0x4] ss:$8 sm:$0xf0] %vm15_vm11, %v40_v40  }
  0x55   :  { %v1066_v42 = vsel %vm361_vm10, %v1064_v37, %v1061_v36  ;;  %v1072_v45 = vld [vmem:[#allocation0 + $0x117] sm:$0x40]   ;;  %1096 = vst.msk [vmem:[%s1812_s1 + $0x40] ss:$8 sm:$0xf0] %vm15_vm11, %v47_v49  }
  0x56   :  { %879 = vrot.lane.b32.xlu2 %v878_v26, %s1207_s19  ;;  %v1070_v44 = vsel %vm233_vm8, %v1068_v43, %v1066_v42  ;;  %v1076_v47 = vld [vmem:[#allocation0 + $0x136] sm:$0x80]   ;;  %v68_v50 = vld [vmem:[#allocation0 + $0x100] ss:$4 sm:$0xff]  }
  0x57   :  { %v1074_v46 = vsel %vm102_vm4, %v1072_v45, %v1070_v44  ;;  %1102 = vst.msk [vmem:[%s1812_s1 + $0x43] ss:$8 sm:$0xf0] %vm15_vm11, %v68_v50   ;;  %v75_v51 = vld [vmem:[#allocation0 + $0x120] ss:$4 sm:$0xff]  }
  0x58   :  { %1045 = vrot.lane.b32.xlu1 %v1044_v35, %s1207_s19  ;;  %v1078_v48 = vsel %vm106_vm5, %v1076_v47, %v1074_v46  ;;  %1104 = vst.msk [vmem:[%s1812_s1 + $0x44] ss:$8 sm:$0xf0] %vm15_vm11, %v75_v51   ;;  %v19_v52 = vld [vmem:[#allocation0 + $0x20] ss:$4 sm:$0xff]  }
  0x59   :  { %1095 = vst.msk [vmem:[%s1812_s1 + $0x40] ss:$8 sm:$0xf] %vm15_vm11, %v47_v49   ;;  %v26_v53 = vld [vmem:[#allocation0 + $0x40] ss:$4 sm:$0xff]  }
  0x5a   :  { %1101 = vst.msk [vmem:[%s1812_s1 + $0x43] ss:$8 sm:$0xf] %vm15_vm11, %v68_v50   ;;  %v54_v54 = vld [vmem:[#allocation0 + $0xc0] ss:$4 sm:$0xff]  }
  0x5b   :  { %1009 = vrot.lane.b32.xlu0 %v1008_v41, %s1207_s19  ;;  %1103 = vst.msk [vmem:[%s1812_s1 + $0x44] ss:$8 sm:$0xf] %vm15_vm11, %v75_v51   ;;  %v61_v55 = vld [vmem:[#allocation0 + $0xe0] ss:$4 sm:$0xff]  }
  0x5c   :  { %1088 = vst.msk [vmem:[%s1812_s1 + $0x1] ss:$8 sm:$0xf0] %vm15_vm11, %v19_v52  }
  0x5d   :  { %1090 = vst.msk [vmem:[%s1812_s1 + $0x2] ss:$8 sm:$0xf0] %vm15_vm11, %v26_v53  }
  0x5e   :  { %976 = vrot.lane.b32.xlu2 %v975_v30, %s1207_s19  ;;  %1087 = vst.msk [vmem:[%s1812_s1 + $0x1] ss:$8 sm:$0xf] %vm15_vm11, %v19_v52  }
  0x5f   :  { %1089 = vst.msk [vmem:[%s1812_s1 + $0x2] ss:$8 sm:$0xf] %vm15_vm11, %v26_v53  }
  0x60   :  { %1098 = vst.msk [vmem:[%s1812_s1 + $0x41] ss:$8 sm:$0xf0] %vm15_vm11, %v54_v54  }
  0x61   :  { %1100 = vst.msk [vmem:[%s1812_s1 + $0x42] ss:$8 sm:$0xf0] %vm15_vm11, %v61_v55  }
  0x62   :  { %1097 = vst.msk [vmem:[%s1812_s1 + $0x41] ss:$8 sm:$0xf] %vm15_vm11, %v54_v54  }
  0x63   :  { %1099 = vst.msk [vmem:[%s1812_s1 + $0x42] ss:$8 sm:$0xf] %vm15_vm11, %v61_v55  }
  0x66   :  { %1079 = vrot.lane.b32.xlu2 %v1078_v48, %s1207_s19 }
  0x78   :  { %v241_v56 = vpop.permute.xlu2 %240  }
  0x79   :  { %1112 = vst.msk [vmem:[%s1812_s1 + $0xb] sm:$0x3] %vm110_vm12, %v241_v56  }
  0x7a   :  { %1114 = vst.msk [vmem:[%s1812_s1 + $0x11] sm:$0x80] %vm110_vm12, %v241_v56  }
  0x7b   :  { %1113 = vst.msk [vmem:[%s1812_s1 + $0xe] sm:$0x7c] %vm110_vm12, %v241_v56  }
  0x80   :  { %v274_v57 = vpop.permute.xlu2 %273   ;;  %v176_v58 = vpop.permute.xlu1 %175  }
  0x81   :  { %1115 = vst.msk [vmem:[%s1812_s1 + $0x2b] sm:$0x3] %vm110_vm12, %v274_v57  }
  0x82   :  { %1117 = vst.msk [vmem:[%s1812_s1 + $0x31] sm:$0x80] %vm110_vm12, %v274_v57  }
  0x83   :  { %1116 = vst.msk [vmem:[%s1812_s1 + $0x2e] sm:$0x7c] %vm110_vm12, %v274_v57  }
  0x84   :  { %1108 = vst.msk [vmem:[%s1812_s1 + $0x40] sm:$0x1f] %vm110_vm12, %v176_v58  }
  0x85   :  { %v109_v59 = vpop.permute.xlu0 %108   ;;  %1109 = vst.msk [vmem:[%s1812_s1 + $0x43] sm:$0xe0] %vm110_vm12, %v176_v58  }
  0x86   :  { %111 = vst.msk [vmem:[%s1812_s1] sm:$0x1f] %vm110_vm12, %v109_v59  }
  0x87   :  { %1105 = vst.msk [vmem:[%s1812_s1 + $0x3] sm:$0xe0] %vm110_vm12, %v109_v59  }
  0x88   :  { %v376_v60 = vpop.permute.xlu2 %375   ;;  %v210_v61 = vpop.permute.xlu1 %209  }
  0x89   :  { %1125 = vst.msk [vmem:[%s1812_s1 + $0x35] sm:$0xf0] %vm110_vm12, %v376_v60  }
  0x8a   :  { %1124 = vst.msk [vmem:[%s1812_s1 + $0x19] sm:$0xf] %vm110_vm12, %v376_v60  }
  0x8b   :  { %1110 = vst.msk [vmem:[%s1812_s1 + $0x60] sm:$0x1f] %vm110_vm12, %v210_v61  }
  0x8c   :  { %1111 = vst.msk [vmem:[%s1812_s1 + $0x63] sm:$0xe0] %vm110_vm12, %v210_v61  }
  0x8d   :  { %v142_v62 = vpop.permute.xlu0 %141  }
  0x8e   :  { %1106 = vst.msk [vmem:[%s1812_s1 + $0x20] sm:$0x1f] %vm110_vm12, %v142_v62  }
  0x8f   :  { %1107 = vst.msk [vmem:[%s1812_s1 + $0x23] sm:$0xe0] %vm110_vm12, %v142_v62  }
  0x90   :  { %v477_v63 = vpop.permute.xlu2 %476  }
  0x91   :  { %1129 = vst.msk [vmem:[%s1812_s1 + $0x20] sm:$0x1f] %vm445_vm13, %v477_v63  }
  0x92   :  { %1130 = vst.msk [vmem:[%s1812_s1 + $0x23] sm:$0xe0] %vm445_vm13, %v477_v63   ;;  %v340_v0 = vpop.permute.xlu1 %339  }
  0x93   :  { %1121 = vst.msk [vmem:[%s1812_s1 + $0x6b] sm:$0x3] %vm110_vm12, %v340_v0  }
  0x94   :  { %1123 = vst.msk [vmem:[%s1812_s1 + $0x71] sm:$0x80] %vm110_vm12, %v340_v0  }
  0x95   :  { %v307_v1 = vpop.permute.xlu0 %306   ;;  %1122 = vst.msk [vmem:[%s1812_s1 + $0x6e] sm:$0x7c] %vm110_vm12, %v340_v0  }
  0x96   :  { %1118 = vst.msk [vmem:[%s1812_s1 + $0x4b] sm:$0x3] %vm110_vm12, %v307_v1  }
  0x97   :  { %1120 = vst.msk [vmem:[%s1812_s1 + $0x51] sm:$0x80] %vm110_vm12, %v307_v1  }
  0x98   :  { %v576_v2 = vpop.permute.xlu2 %575   ;;  %1119 = vst.msk [vmem:[%s1812_s1 + $0x4e] sm:$0x7c] %vm110_vm12, %v307_v1  }
  0x99   :  { %1135 = vst.msk [vmem:[%s1812_s1 + $0xb] sm:$0x3] %vm445_vm13, %v576_v2  }
  0x9a   :  { %1136 = vst.msk [vmem:[%s1812_s1 + $0xe] sm:$0x7c] %vm445_vm13, %v576_v2   ;;  %v444_v3 = vpop.permute.xlu1 %443  }
  0x9b   :  { %1137 = vst.msk [vmem:[%s1812_s1 + $0x11] sm:$0x80] %vm445_vm13, %v576_v2  }
  0x9c   :  { %446 = vst.msk [vmem:[%s1812_s1] sm:$0x1f] %vm445_vm13, %v444_v3  }
  0x9d   :  { %1128 = vst.msk [vmem:[%s1812_s1 + $0x3] sm:$0xe0] %vm445_vm13, %v444_v3   ;;  %v410_v4 = vpop.permute.xlu0 %409  }
  0x9e   :  { %1127 = vst.msk [vmem:[%s1812_s1 + $0x75] sm:$0xf0] %vm110_vm12, %v410_v4  }
  0x9f   :  { %1126 = vst.msk [vmem:[%s1812_s1 + $0x59] sm:$0xf] %vm110_vm12, %v410_v4  }
  0xa0   :  { %v675_v5 = vpop.permute.xlu2 %674  }
  0xa1   :  { %1144 = vst.msk [vmem:[%s1812_s1 + $0x6b] sm:$0x3] %vm445_vm13, %v675_v5  }
  0xa2   :  { %1145 = vst.msk [vmem:[%s1812_s1 + $0x6e] sm:$0x7c] %vm445_vm13, %v675_v5   ;;  %v545_v6 = vpop.permute.xlu1 %544  }
  0xa3   :  { %1146 = vst.msk [vmem:[%s1812_s1 + $0x71] sm:$0x80] %vm445_vm13, %v675_v5  }
  0xa4   :  { %1133 = vst.msk [vmem:[%s1812_s1 + $0x60] sm:$0x1f] %vm445_vm13, %v545_v6  }
  0xa5   :  { %1134 = vst.msk [vmem:[%s1812_s1 + $0x63] sm:$0xe0] %vm445_vm13, %v545_v6   ;;  %v511_v7 = vpop.permute.xlu0 %510  }
  0xa6   :  { %1131 = vst.msk [vmem:[%s1812_s1 + $0x40] sm:$0x1f] %vm445_vm13, %v511_v7  }
  0xa7   :  { %1132 = vst.msk [vmem:[%s1812_s1 + $0x43] sm:$0xe0] %vm445_vm13, %v511_v7  }
  0xa8   :  { %v779_v8 = vpop.permute.xlu2 %778  }
  0xa9   :  { %781 = vst.msk [vmem:[%s1812_s1] sm:$0x1f] %vm780_vm14, %v779_v8  }
  0xaa   :  { %1151 = vst.msk [vmem:[%s1812_s1 + $0x3] sm:$0xe0] %vm780_vm14, %v779_v8   ;;  %v642_v9 = vpop.permute.xlu1 %641  }
  0xab   :  { %1141 = vst.msk [vmem:[%s1812_s1 + $0x4b] sm:$0x3] %vm445_vm13, %v642_v9  }
  0xac   :  { %1142 = vst.msk [vmem:[%s1812_s1 + $0x4e] sm:$0x7c] %vm445_vm13, %v642_v9  }
  0xad   :  { %v609_v10 = vpop.permute.xlu0 %608   ;;  %1143 = vst.msk [vmem:[%s1812_s1 + $0x51] sm:$0x80] %vm445_vm13, %v642_v9  }
  0xae   :  { %1138 = vst.msk [vmem:[%s1812_s1 + $0x2b] sm:$0x3] %vm445_vm13, %v609_v10  }
  0xaf   :  { %1139 = vst.msk [vmem:[%s1812_s1 + $0x2e] sm:$0x7c] %vm445_vm13, %v609_v10  }
  0xb0   :  { %v880_v11 = vpop.permute.xlu2 %879   ;;  %1140 = vst.msk [vmem:[%s1812_s1 + $0x31] sm:$0x80] %vm445_vm13, %v609_v10  }
  0xb1   :  { %1156 = vst.msk [vmem:[%s1812_s1 + $0x60] sm:$0x1f] %vm780_vm14, %v880_v11  }
  0xb2   :  { %v745_v12 = vpop.permute.xlu1 %744   ;;  %1157 = vst.msk [vmem:[%s1812_s1 + $0x63] sm:$0xe0] %vm780_vm14, %v880_v11  }
  0xb3   :  { %1149 = vst.msk [vmem:[%s1812_s1 + $0x59] sm:$0xf] %vm445_vm13, %v745_v12  }
  0xb4   :  { %1150 = vst.msk [vmem:[%s1812_s1 + $0x75] sm:$0xf0] %vm445_vm13, %v745_v12  }
  0xb5   :  { %v711_v13 = vpop.permute.xlu0 %710  }
  0xb6   :  { %1147 = vst.msk [vmem:[%s1812_s1 + $0x19] sm:$0xf] %vm445_vm13, %v711_v13  }
  0xb7   :  { %1148 = vst.msk [vmem:[%s1812_s1 + $0x35] sm:$0xf0] %vm445_vm13, %v711_v13  }
  0xb8   :  { %v977_v14 = vpop.permute.xlu2 %976  }
  0xb9   :  { %1164 = vst.msk [vmem:[%s1812_s1 + $0x4b] sm:$0x3] %vm780_vm14, %v977_v14  }
  0xba   :  { %1165 = vst.msk [vmem:[%s1812_s1 + $0x4e] sm:$0x7c] %vm780_vm14, %v977_v14   ;;  %v846_v15 = vpop.permute.xlu1 %845  }
  0xbb   :  { %1166 = vst.msk [vmem:[%s1812_s1 + $0x51] sm:$0x80] %vm780_vm14, %v977_v14  }
  0xbc   :  { %1154 = vst.msk [vmem:[%s1812_s1 + $0x40] sm:$0x1f] %vm780_vm14, %v846_v15  }
  0xbd   :  { %1155 = vst.msk [vmem:[%s1812_s1 + $0x43] sm:$0xe0] %vm780_vm14, %v846_v15   ;;  %v812_v16 = vpop.permute.xlu0 %811  }
  0xbe   :  { %1152 = vst.msk [vmem:[%s1812_s1 + $0x20] sm:$0x1f] %vm780_vm14, %v812_v16  }
  0xbf   :  { %1153 = vst.msk [vmem:[%s1812_s1 + $0x23] sm:$0xe0] %vm780_vm14, %v812_v16  }
  0xc0   :  { %v1080_v17 = vpop.permute.xlu2 %1079  }
  0xc1   :  { %1172 = vst.msk [vmem:[%s1812_s1 + $0x59] sm:$0xf] %vm780_vm14, %v1080_v17  }
  0xc2   :  { %1173 = vst.msk [vmem:[%s1812_s1 + $0x75] sm:$0xf0] %vm780_vm14, %v1080_v17   ;;  %v944_v18 = vpop.permute.xlu1 %943  }
  0xc3   :  { %1161 = vst.msk [vmem:[%s1812_s1 + $0x2b] sm:$0x3] %vm780_vm14, %v944_v18  }
  0xc4   :  { %1162 = vst.msk [vmem:[%s1812_s1 + $0x2e] sm:$0x7c] %vm780_vm14, %v944_v18  }
  0xc5   :  { %v911_v19 = vpop.permute.xlu0 %910   ;;  %1163 = vst.msk [vmem:[%s1812_s1 + $0x31] sm:$0x80] %vm780_vm14, %v944_v18  }
  0xc6   :  { %1158 = vst.msk [vmem:[%s1812_s1 + $0xb] sm:$0x3] %vm780_vm14, %v911_v19  }
  0xc7   :  { %1159 = vst.msk [vmem:[%s1812_s1 + $0xe] sm:$0x7c] %vm780_vm14, %v911_v19  }
  0xc8   :  { %1160 = vst.msk [vmem:[%s1812_s1 + $0x11] sm:$0x80] %vm780_vm14, %v911_v19  }
  0xca   :  { %v1046_v20 = vpop.permute.xlu1 %1045  }
  0xcb   :  { %1170 = vst.msk [vmem:[%s1812_s1 + $0x19] sm:$0xf] %vm780_vm14, %v1046_v20  }
  0xcc   :  { %1171 = vst.msk [vmem:[%s1812_s1 + $0x35] sm:$0xf0] %vm780_vm14, %v1046_v20  }
  0xcd   :  { %v1010_v21 = vpop.permute.xlu0 %1009  }
  0xce   :  { %1167 = vst.msk [vmem:[%s1812_s1 + $0x6b] sm:$0x3] %vm780_vm14, %v1010_v21  }
  0xcf   :  { %1168 = vst.msk [vmem:[%s1812_s1 + $0x6e] sm:$0x7c] %vm780_vm14, %v1010_v21  }
  0xd0   :  { %1169 = vst.msk [vmem:[%s1812_s1 + $0x71] sm:$0x80] %vm780_vm14, %v1010_v21  }
  0xd1   :  { %1086 = vsyncpa [#allocation1], 1 }

// kernel: mss_loss.1
= control target key start
LH: loop header
LB: loop body
LE: loop exit
PB: predicated region body
PF: predicated region fallthrough
CT: control target
= control target key end

     0   :  { %s6075_s0 = inlined_call_operand.vmem [shape: f32[2,5,1024], index: 0, kind: input, shape index: {}]   ;;  %s6076_s1 = inlined_call_operand.vmem [shape: f32[2,5,1024], index: 1, kind: input, shape index: {}]   ;;  %s6077_s2 = inlined_call_operand.hbm [shape: f32[1024,484], index: 2, kind: input, shape index: {}]   ;;  %s6078_s3 = inlined_call_operand.hbm [shape: f32[1024,256], index: 3, kind: input, shape index: {}]   ;;  %s6079_s4 = inlined_call_operand.hbm [shape: f32[256,36], index: 4, kind: input, shape index: {}]   ;;  %s6080_s5 = inlined_call_operand.hbm [shape: f32[256,64], index: 5, kind: input, shape index: {}]   ;;  %s6081_s6 = inlined_call_operand.hbm [shape: f32[1,64], index: 6, kind: input, shape index: {}]   ;;  %s6082_s7 = inlined_call_operand.hbm [shape: f32[64,16], index: 7, kind: input, shape index: {}]   ;;  %s6083_s8 = inlined_call_operand.hbm [shape: f32[1,16], index: 8, kind: input, shape index: {}]   ;;  %s6084_s9 = inlined_call_operand.hbm [shape: f32[16,4], index: 9, kind: input, shape index: {}]   ;;  %s6085_s10 = inlined_call_operand.hbm [shape: f32[1,4], index: 10, kind: input, shape index: {}]   ;;  %s6086_s11 = inlined_call_operand.vmem [shape: f32[2,5,5], index: 11, kind: output, shape index: {0}]   ;;  %s6087_s12 = inlined_call_operand.vmem [shape: f32[2,5,5], index: 12, kind: output, shape index: {1}]  }
   0x1   :  { %6090 = sst [smem:[#allocation66_spill]] %s6077_s2 }
   0x2   :  { %6091 = sst [smem:[#allocation67_spill]] %s6078_s3 }
   0x3   :  { %18 = vsyncpa [#allocation3], 0 }
   0x4   :  { %19 = vsyncpa [#allocation5], 0 }
   0x5   :  { %20 = vsyncpa [#allocation8], 0 }
   0x6   :  { %21 = vsyncpa [#allocation11], 0 }
   0x7   :  { %22 = vsyncpa [#allocation14], 0  ;;  %s4745_s21 = smov 0  }
   0x8 LB: > { %s6092_s3 = sld [smem:[#allocation67_spill]]  ;;  %s4754_s25 = sadd.s32 4294967295, %s4658_s21   ;;  %s4658_s21 = sphi %s4745_s21, %s28_s21  }
   0x9   : > { %p4182_p0 = scmp.ge.s32.totalorder %s4658_s21, 1  ;;  %p326_p1 = scmp.lt.s32.totalorder %s4658_s21, 3 }
   0xa   : > { %p4281_p2 = scmp.eq.s32.totalorder %s4754_s25, 0  ;;  %s4660_s27 = smov [#allocation4]  }
   0xb   : > { %p4759_p3 = pnand %p4182_p0, %p326_p1  ;;  %s353_s28 = sshll.u32 %s4660_s27, 4  ;;  %s354_s28 = int_to_ptr.vmem [resolvable:$true] %s353_s28 }
   0xc   : > { %s379_s14 = sshll.u32 %s6080_s5, 4  ;;  %s4661_s15 = smov [#allocation7]   ;;  %s380_s14 = int_to_ptr.hbm [resolvable:$true] %s379_s14 }
   0xd   : > { %p4253_p4 = pneg %p4759_p3  ;;  %s381_s16 = sshll.u32 %s4661_s15, 4  ;;  %s382_s16 = int_to_ptr.vmem [resolvable:$true] %s381_s16 }
   0xe   : > { %s351_s24 = sshll.u32 %s6092_s3, 4  ;;  %s4662_s17 = smov 256   ;;  %s352_s24 = int_to_ptr.hbm [resolvable:$true] %s351_s24 }
   0xf   : > { %p4767_p5 = pnand %p4281_p2, %p4253_p4  ;;  %s4663_s18 = smov 16  }
  0x10   : > { %s405_s22 = sshll.u32 %s6082_s7, 4  ;;  %s4664_s23 = smov 128   ;;  %s406_s22 = int_to_ptr.hbm [resolvable:$true] %s405_s22 }
  0x11   : > { %4259 = dma.hbm_to_vmem [thread:$0]  (!%p4767_p5), %s352_s24, 32768, %s354_s28, [#allocation5], %s4662_s17, %s4662_s17, %s4663_s18  }
  0x12   : > { %s4665_s27 = smov 8   ;;  %s4666_s30 = smov [#allocation10]  }
  0x13   : > { %4265 = dma.hbm_to_vmem [thread:$0]  (!%p4767_p5), %s380_s14, 4096, %s382_s16, [#allocation8], %s4664_s23, %s4664_s23, %s4665_s27  }
  0x14   : > { %s407_s13 = sshll.u32 %s4666_s30, 4  ;;  %s431_s24 = sshll.u32 %s6084_s9, 4  ;;  %s408_s13 = int_to_ptr.vmem [resolvable:$true] %s407_s13  ;;  %s432_s24 = int_to_ptr.hbm [resolvable:$true] %s431_s24 }
  0x15   : > { %4271 = dma.hbm_to_vmem [thread:$0]  (!%p4767_p5), %s406_s22, 1024, %s408_s13, [#allocation11], %s4664_s23, %s4664_s23, %s4665_s27  }
  0x16   : > { %s6095_s2 = sld [smem:[#allocation66_spill]]  ;;  %s4667_s14 = smov [#allocation13]  }
  0x17   : > { %s433_s16 = sshll.u32 %s4667_s14, 4  ;;  %s4668_s3 = smov [#allocation2]   ;;  %s434_s16 = int_to_ptr.vmem [resolvable:$true] %s433_s16 }
  0x18   : > { %4277 = dma.hbm_to_vmem [thread:$0]  (!%p4767_p5), %s432_s24, 256, %s434_s16, [#allocation14], %s4664_s23, %s4664_s23, %s4665_s27  }
  0x19   : > { %s339_s19 = sshll.u32 %s4668_s3, 4  ;;  %s4669_s20 = smov 512   ;;  %s340_s19 = int_to_ptr.vmem [resolvable:$true] %s339_s19 }
  0x1a   : > { %s4670_s22 = smov 32   ;;  %s365_s15 = sshll.u32 %s6079_s4, 4  ;;  %s366_s15 = int_to_ptr.hbm [resolvable:$true] %s365_s15 }
  0x1b   : > { %s4671_s28 = smov [#allocation6]   ;;  %s394_s24 = sshll.u32 %s6081_s6, 4  ;;  %s395_s24 = int_to_ptr.hbm [resolvable:$true] %s394_s24 }
  0x1c   : > { %s337_s18 = sshll.u32 %s6095_s2, 4  ;;  %s367_s17 = sshll.u32 %s4671_s28, 4  ;;  %s338_s18 = int_to_ptr.hbm [resolvable:$true] %s337_s18  ;;  %s368_s17 = int_to_ptr.vmem [resolvable:$true] %s367_s17 }
  0x1d   : > { %4256 = dma.hbm_to_vmem [thread:$0]  (!%p4767_p5), %s338_s18, 65536, %s340_s19, [#allocation3], %s4669_s20, %s4669_s20, %s4670_s22  }
  0x1e   : > { %4262 = dma.hbm_to_vmem [thread:$0]  (!%p4767_p5), %s366_s15, 4096, %s368_s17, [#allocation5], %s4664_s23, %s4664_s23, %s4665_s27  }
  0x1f   : > { %s4672_s18 = smov [#allocation9]   ;;  %s420_s20 = sshll.u32 %s6083_s8, 4  ;;  %s421_s20 = int_to_ptr.hbm [resolvable:$true] %s420_s20 }
  0x20   : > { %s396_s16 = sshll.u32 %s4672_s18, 4  ;;  %s446_s30 = sshll.u32 %s6085_s10, 4  ;;  %s397_s16 = int_to_ptr.vmem [resolvable:$true] %s396_s16  ;;  %s447_s30 = int_to_ptr.hbm [resolvable:$true] %s446_s30 }
  0x21   : > { %4268 = dma.hbm_to_vmem [thread:$0]  (!%p4767_p5), %s395_s24, 16, %s397_s16, [#allocation8]  }
  0x22   : > { %s4673_s13 = smov [#allocation12]   ;;  %s4674_s23 = smov [#allocation15]  }
  0x23   : > { %s422_s28 = sshll.u32 %s4673_s13, 4  ;;  %s448_s27 = sshll.u32 %s4674_s23, 4  ;;  %s423_s28 = int_to_ptr.vmem [resolvable:$true] %s422_s28  ;;  %s449_s27 = int_to_ptr.vmem [resolvable:$true] %s448_s27 }
  0x24   : > { %4274 = dma.hbm_to_vmem [thread:$0]  (!%p4767_p5), %s421_s20, 16, %s423_s28, [#allocation11]  }
  0x25   : > { %4280 = dma.hbm_to_vmem [thread:$0]  (!%p4767_p5), %s447_s30, 16, %s449_s27, [#allocation14]  }
  0x26   : > { %477 = sbr.rel (%p4759_p3) target bundleno = 1486 (0x5ce), region = 64 }
  0x2b   : > { %4637 = dma.done.wait (%p4281_p2), [#allocation3], 65536  }
  0x2c   : > { %4639 = vsyncadd (%p4281_p2), [#allocation3], 4294901760 }
  0x2d   : > { %4641 = dma.done.wait (%p4281_p2), [#allocation5], 36864  }
  0x2e   : > { %4643 = vsyncadd (%p4281_p2), [#allocation5], 4294930432 }
  0x2f   : > { %4645 = dma.done.wait (%p4281_p2), [#allocation8], 4112  }
  0x30   : > { %4647 = vsyncadd (%p4281_p2), [#allocation8], 4294963184 }
  0x31   : > { %4649 = dma.done.wait (%p4281_p2), [#allocation11], 1040  }
  0x32   : > { %4651 = vsyncadd (%p4281_p2), [#allocation11], 4294966256 }
  0x33   : > { %4653 = dma.done.wait (%p4281_p2), [#allocation14], 272  }
  0x34   : > { %4655 = vsyncadd (%p4281_p2), [#allocation14], 4294967024  ;;  %v861_v0 = vld [vmem:[#allocation2 + $0x1e0] sm:$0xff]  ;;  %p568_p6 = scmp.lt.s32.totalorder %s4754_s25, 1  ;;  %vm602_vm0 = vcmask 1044480   ;;  %vm774_vm1 = vcmask 1041408  }
  0x35   : > { %v989_v1 = vld [vmem:[#allocation2 + $0x5e0] sm:$0xff]  ;;  %1313 = vmatpush.msra.mxu0 %v861_v0  ;;  %vm783_vm2 = vcmask 1046528   ;;  %vm792_vm3 = vcmask 1043456   ;;  %vm2257_vm6 = vcmask 1042432   ;;  %vm2503_vm7 = vcmask 1047556   ;;  %s4677_s16 = smov 2  }
  0x36   : > { %v857_v2 = vld [vmem:[#allocation2 + $0x1c0] sm:$0xff]  ;;  %1371 = vmatpush.msra.mxu2 %v989_v1  ;;  %s6189_s25 = smov (!%p568_p6, %s4754_s25), 1  ;;  %vm2514_vm8 = vcmask 1040384   ;;  %vm2509_vm9 = vcmask 818180   ;;  %vm2520_vm10 = vcmask 811008   ;;  %vm2532_vm11 = vcmask 815104  }
  0x37   : > { %v925_v3 = vld [vmem:[#allocation2 + $0x3e0] sm:$0xff]  ;;  %1314 = vmatpush.msra.mxu0 %v857_v2  ;;  %s4215_s26 = sshll.u32 %s6189_s25, 6  ;;  %vm3523_vm12 = vcmask 523264   ;;  %vm3477_vm13 = vcmask 520192   ;;  %s4678_s3 = smov 3  }
  0x38   : > { %v985_v4 = vld [vmem:[#allocation2 + $0x5c0] sm:$0xff]  ;;  %1342 = vmatpush.msra.mxu1 %v925_v3  ;;  %s4859_s17 = scalar_lea.vmem %s6076_s1, %s4215_s26  ;;  %s4872_s18 = scalar_lea.vmem %s6075_s0, %s4215_s26 }
  0x39   : > { %v1053_v5 = vld [vmem:[#allocation2 + $0x7e0] sm:$0xff]  ;;  %1372 = vmatpush.msra.mxu2 %v985_v4  ;;  %v4865_v52 = vld [vmem:[%s4859_s17 + $0x10] sm:$0x1f]  ;;  %v4877_v61 = vld [vmem:[%s4859_s17 + $0x8] sm:$0x1f]  ;;  %s4679_s19 = smov 4  }
  0x3a   : > { %1400 = vmatpush.msra.mxu3 %v1053_v5  ;;  %v853_v6 = vld [vmem:[#allocation2 + $0x1a0] sm:$0xff]  ;;  %v680_v60 = vrot.slane %v4865_v52, 3  ;;  %v4880_v62 = vld [vmem:[%s4859_s17 + $0x18] sm:$0x1f]  ;;  %v4886_v1 = vld [vmem:[%s4872_s18 + $0x10] sm:$0x1f] }
  0x3b   : > { %v921_v7 = vld [vmem:[#allocation2 + $0x3c0] sm:$0xff]  ;;  %1315 = vmatpush.msra.mxu0 %v853_v6  ;;  %s4207_s20 = sshll.u32 %s6189_s25, 3 }
  0x3c   : > { %v981_v8 = vld [vmem:[#allocation2 + $0x5a0] sm:$0xff]  ;;  %1343 = vmatpush.msra.mxu1 %v921_v7  ;;  %v679_v7 = vrot.slane %v4877_v61, 3  ;;  %s581_s30 = scalar_lea.vmem %s6086_s11, %s4207_s20  ;;  %s585_s28 = scalar_lea.vmem %s6087_s12, %s4207_s20 }
  0x3d   : > { %v1049_v9 = vld [vmem:[#allocation2 + $0x7c0] sm:$0xff]  ;;  %1373 = vmatpush.msra.mxu2 %v981_v8  ;;  %v681_v8 = vrot.slane %v4880_v62, 3 }
  0x3e   : > { %v917_v10 = vld [vmem:[#allocation2 + $0x3a0] sm:$0xff]  ;;  %1401 = vmatpush.msra.mxu3 %v1049_v9  ;;  %v648_v9 = vmul.f32 %v4886_v1, %v4886_v1 }
  0x3f   : > { %v849_v11 = vld [vmem:[#allocation2 + $0x180] sm:$0xff]  ;;  %1344 = vmatpush.msra.mxu1 %v917_v10 }
  0x40   : > { %v977_v12 = vld [vmem:[#allocation2 + $0x580] sm:$0xff]  ;;  %1316 = vmatpush.msra.mxu0 %v849_v11  ;;  %v4904_v11 = vsel %vm602_vm0, %v4886_v1, %v680_v60 }
  0x41   : > { %v1045_v13 = vld [vmem:[#allocation2 + $0x7a0] sm:$0xff]  ;;  %1374 = vmatpush.msra.mxu2 %v977_v12  ;;  %v4907_v12 = vld [vmem:[%s4872_s18 + $0x8] sm:$0x1f] }
  0x42   : > { %v913_v14 = vld [vmem:[#allocation2 + $0x380] sm:$0xff]  ;;  %1402 = vmatpush.msra.mxu3 %v1045_v13  ;;  %v4910_v13 = vld [vmem:[%s4872_s18 + $0x18] sm:$0x1f] }
  0x43   : > { %v1041_v15 = vld [vmem:[#allocation2 + $0x780] sm:$0xff]  ;;  %1345 = vmatpush.msra.mxu1 %v913_v14 }
  0x44   : > { %v845_v16 = vld [vmem:[#allocation2 + $0x160] sm:$0xff]  ;;  %1403 = vmatpush.msra.mxu3 %v1041_v15 }
  0x45   : > { %v973_v17 = vld [vmem:[#allocation2 + $0x560] sm:$0xff]  ;;  %1317 = vmatpush.msra.mxu0 %v845_v16 }
  0x46   : > { %v909_v18 = vld [vmem:[#allocation2 + $0x360] sm:$0xff]  ;;  %1375 = vmatpush.msra.mxu2 %v973_v17 }
  0x47   : > { %v1037_v19 = vld [vmem:[#allocation2 + $0x760] sm:$0xff]  ;;  %1346 = vmatpush.msra.mxu1 %v909_v18 }
  0x48   : > { %v841_v20 = vld [vmem:[#allocation2 + $0x140] sm:$0xff]  ;;  %1404 = vmatpush.msra.mxu3 %v1037_v19 }
  0x49   : > { %v969_v21 = vld [vmem:[#allocation2 + $0x540] sm:$0xff]  ;;  %1318 = vmatpush.msra.mxu0 %v841_v20  ;;  %v4918_v20 = vmul.f32 %v4865_v52, %v4865_v52 }
  0x4a   : > { %v905_v22 = vld [vmem:[#allocation2 + $0x340] sm:$0xff]  ;;  %1376 = vmatpush.msra.mxu2 %v969_v21  ;;  %v647_v21 = vmul.f32 %v4907_v12, %v4907_v12 }
  0x4b   : > { %v1033_v23 = vld [vmem:[#allocation2 + $0x740] sm:$0xff]  ;;  %1347 = vmatpush.msra.mxu1 %v905_v22  ;;  %v649_v22 = vmul.f32 %v4910_v13, %v4910_v13 }
  0x4c   : > { %v837_v24 = vld [vmem:[#allocation2 + $0x120] sm:$0xff]  ;;  %1405 = vmatpush.msra.mxu3 %v1033_v23  ;;  %v4930_v23 = vsel %vm602_vm0, %v4907_v12, %v679_v7 }
  0x4d   : > { %v965_v25 = vld [vmem:[#allocation2 + $0x520] sm:$0xff]  ;;  %1319 = vmatpush.msra.mxu0 %v837_v24  ;;  %v4936_v24 = vsel %vm602_vm0, %v4910_v13, %v681_v8 }
  0x4e   : > { %v901_v26 = vld [vmem:[#allocation2 + $0x320] sm:$0xff]  ;;  %1377 = vmatpush.msra.mxu2 %v965_v25  ;;  %v704_v25 = vrot.slane %v648_v9, 6 }
  0x4f   : > { %v1029_v27 = vld [vmem:[#allocation2 + $0x720] sm:$0xff]  ;;  %1348 = vmatpush.msra.mxu1 %v901_v26 }
  0x50   : > { %v833_v28 = vld [vmem:[#allocation2 + $0x100] sm:$0xff]  ;;  %1406 = vmatpush.msra.mxu3 %v1029_v27 }
  0x51   : > { %v961_v29 = vld [vmem:[#allocation2 + $0x500] sm:$0xff]  ;;  %1320 = vmatpush.msra.mxu0 %v833_v28 }
  0x52   : > { %v897_v30 = vld [vmem:[#allocation2 + $0x300] sm:$0xff]  ;;  %1378 = vmatpush.msra.mxu2 %v961_v29 }
  0x53   : > { %v1025_v31 = vld [vmem:[#allocation2 + $0x700] sm:$0xff]  ;;  %1349 = vmatpush.msra.mxu1 %v897_v30 }
  0x54   : > { %v829_v32 = vld [vmem:[#allocation2 + $0xe0] sm:$0xff]  ;;  %1407 = vmatpush.msra.mxu3 %v1025_v31  ;;  %v4941_v31 = vmul.f32 %v4877_v61, %v4877_v61 }
  0x55   : > { %v957_v33 = vld [vmem:[#allocation2 + $0x4e0] sm:$0xff]  ;;  %1321 = vmatpush.msra.mxu0 %v829_v32  ;;  %v4945_v32 = vmul.f32 %v4880_v62, %v4880_v62 }
  0x56   : > { %v893_v34 = vld [vmem:[#allocation2 + $0x2e0] sm:$0xff]  ;;  %1379 = vmatpush.msra.mxu2 %v957_v33 }
  0x57   : > { %v1021_v35 = vld [vmem:[#allocation2 + $0x6e0] sm:$0xff]  ;;  %1350 = vmatpush.msra.mxu1 %v893_v34 }
  0x58   : > { %v825_v36 = vld [vmem:[#allocation2 + $0xc0] sm:$0xff]  ;;  %1408 = vmatpush.msra.mxu3 %v1021_v35 }
  0x59   : > { %v953_v37 = vld [vmem:[#allocation2 + $0x4c0] sm:$0xff]  ;;  %1322 = vmatpush.msra.mxu0 %v825_v36  ;;  %v728_v36 = vrot.slane %v4918_v20, 1 }
  0x5a   : > { %v889_v38 = vld [vmem:[#allocation2 + $0x2c0] sm:$0xff]  ;;  %1380 = vmatpush.msra.mxu2 %v953_v37  ;;  %v703_v37 = vrot.slane %v647_v21, 6 }
  0x5b   : > { %v1017_v39 = vld [vmem:[#allocation2 + $0x6c0] sm:$0xff]  ;;  %1351 = vmatpush.msra.mxu1 %v889_v38  ;;  %v705_v38 = vrot.slane %v649_v22, 6 }
  0x5c   : > { %v821_v40 = vld [vmem:[#allocation2 + $0xa0] sm:$0xff]  ;;  %1409 = vmatpush.msra.mxu3 %v1017_v39 }
  0x5d   : > { %v949_v41 = vld [vmem:[#allocation2 + $0x4a0] sm:$0xff]  ;;  %1323 = vmatpush.msra.mxu0 %v821_v40 }
  0x5e   : > { %v885_v42 = vld [vmem:[#allocation2 + $0x2a0] sm:$0xff]  ;;  %1381 = vmatpush.msra.mxu2 %v949_v41  ;;  %v777_v41 = vsel %vm774_vm1, %v680_v60, %v704_v25 }
  0x5f   : > { %v1013_v43 = vld [vmem:[#allocation2 + $0x6a0] sm:$0xff]  ;;  %1352 = vmatpush.msra.mxu1 %v885_v42 }
  0x60   : > { %v817_v44 = vld [vmem:[#allocation2 + $0x80] sm:$0xff]  ;;  %1410 = vmatpush.msra.mxu3 %v1013_v43 }
  0x61   : > { %v945_v45 = vld [vmem:[#allocation2 + $0x480] sm:$0xff]  ;;  %1324 = vmatpush.msra.mxu0 %v817_v44 }
  0x62   : > { %v813_v46 = vld [vmem:[#allocation2 + $0x60] sm:$0xff]  ;;  %1382 = vmatpush.msra.mxu2 %v945_v45 }
  0x63   : > { %v881_v47 = vld [vmem:[#allocation2 + $0x280] sm:$0xff]  ;;  %1325 = vmatpush.msra.mxu0 %v813_v46 }
  0x64   : > { %v941_v48 = vld [vmem:[#allocation2 + $0x460] sm:$0xff]  ;;  %1353 = vmatpush.msra.mxu1 %v881_v47  ;;  %v727_v47 = vrot.slane %v4941_v31, 1 }
  0x65   : > { %v1009_v49 = vld [vmem:[#allocation2 + $0x680] sm:$0xff]  ;;  %1383 = vmatpush.msra.mxu2 %v941_v48  ;;  %v729_v48 = vrot.slane %v4945_v32, 1 }
  0x66   : > { %v809_v50 = vld [vmem:[#allocation2 + $0x40] sm:$0xff]  ;;  %1411 = vmatpush.msra.mxu3 %v1009_v49  ;;  %v4966_v49 = vsel %vm783_vm2, %v777_v41, %v728_v36 }
  0x67   : > { %v4862_v51 = vld [vmem:[%s4859_s17] sm:$0x1f]  ;;  %1326 = vmatpush.msra.mxu0 %v809_v50  ;;  %v776_v50 = vsel %vm774_vm1, %v679_v7, %v703_v37 }
  0x68   : > { %v877_v53 = vld [vmem:[#allocation2 + $0x260] sm:$0xff]  ;;  %v678_v59 = vrot.slane %v4862_v51, 3  ;;  %v4914_v16 = vmul.f32 %v4862_v51, %v4862_v51  ;;  %v4983_v60 = vsel %vm783_vm2, %v776_v50, %v727_v47 }
  0x69   : > { %v937_v54 = vld [vmem:[#allocation2 + $0x440] sm:$0xff]  ;;  %1354 = vmatpush.msra.mxu1 %v877_v53  ;;  %v778_v53 = vsel %vm774_vm1, %v681_v8, %v705_v38 }
  0x6a   : > { %v1005_v55 = vld [vmem:[#allocation2 + $0x660] sm:$0xff]  ;;  %1384 = vmatpush.msra.mxu2 %v937_v54  ;;  %v726_v30 = vrot.slane %v4914_v16, 1 }
  0x6b   : > { %v805_v56 = vld [vmem:[#allocation2 + $0x20] sm:$0xff]  ;;  %1412 = vmatpush.msra.mxu3 %v1005_v55 }
  0x6c   : > { %v873_v57 = vld [vmem:[#allocation2 + $0x240] sm:$0xff]  ;;  %1327 = vmatpush.msra.mxu0 %v805_v56 }
  0x6d   : > { %v1001_v58 = vld [vmem:[#allocation2 + $0x640] sm:$0xff]  ;;  %1355 = vmatpush.msra.mxu1 %v873_v57 }
  0x6e   : > { %v933_v63 = vld [vmem:[#allocation2 + $0x420] sm:$0xff]  ;;  %1413 = vmatpush.msra.mxu3 %v1001_v58 }
  0x6f   : > { %v4883_v0 = vld [vmem:[%s4872_s18] sm:$0x1f]  ;;  %1385 = vmatpush.msra.mxu2 %v933_v63  ;;  %v4988_v63 = vsel %vm783_vm2, %v778_v53, %v729_v48 }
  0x70   : > { %v869_v2 = vld [vmem:[#allocation2 + $0x220] sm:$0xff]  ;;  %v646_v4 = vmul.f32 %v4883_v0, %v4883_v0  ;;  %v4898_v10 = vsel %vm602_vm0, %v4883_v0, %v678_v59  ;;  %v662_v58 = vmul.f32 %v4862_v51, %v4883_v0 }
  0x71   : > { %v997_v3 = vld [vmem:[#allocation2 + $0x620] sm:$0xff]  ;;  %1356 = vmatpush.msra.mxu1 %v869_v2 }
  0x72   : > { %v801_v5 = vld [vmem:[#allocation2] sm:$0xff]  ;;  %1414 = vmatpush.msra.mxu3 %v997_v3  ;;  %v702_v19 = vrot.slane %v646_v4, 6  ;;  %v663_v4 = vmul.f32 %v4877_v61, %v4907_v12  ;;  %v4996_v8 = vrot.slane %v662_v58, 4 }
  0x73   : > { %v929_v6 = vld [vmem:[#allocation2 + $0x400] sm:$0xff]  ;;  %1328 = vmatpush.msra.mxu0 %v801_v5  ;;  %v665_v5 = vmul.f32 %v4880_v62, %v4910_v13 }
  0x74   : > { %v1117_v14 = vld [vmem:[#allocation2 + $0x9e0] sm:$0xff]  ;;  %1386 = vmatpush.msra.mxu2 %v929_v6  ;;  %1329 = vmatmul.f32.vlgmr.msra.gmra.mxu0 %v4898_v10  ;;  %v775_v35 = vsel %vm774_vm1, %v678_v59, %v702_v19  ;;  %v664_v59 = vmul.f32 %v4865_v52, %v4886_v1  ;;  %v5000_v19 = vrot.slane %v663_v4, 4  ;;  %v5008_v22 = vsel %vm792_vm3, %v726_v30, %v4996_v8  ;;  %v5048_v4 = vld [vmem:[%s4872_s18 + $0x30] sm:$0x1f] }
  0x75   : > { %v1245_v15 = vld [vmem:[#allocation2 + $0xde0] sm:$0xff]  ;;  %1387 = vmatmul.f32.vlgmr.msra.gmra.mxu2 %v4904_v11  ;;  %1429 = vmatpush.msrb.mxu0 %v1117_v14  ;;  %v4959_v46 = vsel %vm783_vm2, %v775_v35, %v726_v30  ;;  %v5002_v21 = vrot.slane %v665_v5, 4 }
  0x76   : > { %v865_v17 = vld [vmem:[#allocation2 + $0x200] sm:$0xff]  ;;  %1487 = vmatpush.msrb.mxu2 %v1245_v15  ;;  %v4998_v9 = vrot.slane %v664_v59, 4  ;;  %v5022_v16 = vsel %vm792_vm3, %v727_v47, %v5000_v19 }
  0x77   : > { %v993_v18 = vld [vmem:[#allocation2 + $0x600] sm:$0xff]  ;;  %1357 = vmatpush.msra.mxu1 %v865_v17  ;;  %v5028_v20 = vsel %vm792_vm3, %v729_v48, %v5002_v21  ;;  %v5038_v48 = vld [vmem:[%s4859_s17 + $0x30] sm:$0x1f] }
  0x78   : > { %v1113_v26 = vld [vmem:[#allocation2 + $0x9c0] sm:$0xff]  ;;  %1415 = vmatpush.msra.mxu3 %v993_v18  ;;  %1358 = vmatmul.f32.vlgmr.msra.gmra.mxu1 %v4930_v23  ;;  %v5014_v25 = vsel %vm792_vm3, %v728_v36, %v4998_v9 }
  0x79   : > { %v1181_v27 = vld [vmem:[#allocation2 + $0xbe0] sm:$0xff]  ;;  %1416 = vmatmul.f32.vlgmr.msra.gmra.mxu3 %v4936_v24  ;;  %1430 = vmatpush.msrb.mxu0 %v1113_v26 }
  0x7a   : > { %v1241_v28 = vld [vmem:[#allocation2 + $0xdc0] sm:$0xff]  ;;  %1458 = vmatpush.msrb.mxu1 %v1181_v27 }
  0x7b   : > { %v1309_v29 = vld [vmem:[#allocation2 + $0xfe0] sm:$0xff]  ;;  %1488 = vmatpush.msrb.mxu2 %v1241_v28 }
  0x7c   : > { %v1109_v33 = vld [vmem:[#allocation2 + $0x9a0] sm:$0xff]  ;;  %1516 = vmatpush.msrb.mxu3 %v1309_v29  ;;  %1332 = vmatmul.f32.gmra.mxu0 %v4959_v46 }
  0x7d   : > { %v1177_v34 = vld [vmem:[#allocation2 + $0xbc0] sm:$0xff]  ;;  %1431 = vmatpush.msrb.mxu0 %v1109_v33  ;;  %1390 = vmatmul.f32.gmra.mxu2 %v4966_v49 }
  0x7e   : > { %v1237_v39 = vld [vmem:[#allocation2 + $0xda0] sm:$0xff]  ;;  %1459 = vmatpush.msrb.mxu1 %v1177_v34 }
  0x7f   : > { %v1305_v40 = vld [vmem:[#allocation2 + $0xfc0] sm:$0xff]  ;;  %1489 = vmatpush.msrb.mxu2 %v1237_v39 }
  0x80   : > { %v1105_v42 = vld [vmem:[#allocation2 + $0x980] sm:$0xff]  ;;  %1517 = vmatpush.msrb.mxu3 %v1305_v40  ;;  %1361 = vmatmul.f32.gmra.mxu1 %v4983_v60 }
  0x81   : > { %v1173_v43 = vld [vmem:[#allocation2 + $0xba0] sm:$0xff]  ;;  %1432 = vmatpush.msrb.mxu0 %v1105_v42  ;;  %1419 = vmatmul.f32.gmra.mxu3 %v4988_v63 }
  0x82   : > { %v1233_v44 = vld [vmem:[#allocation2 + $0xd80] sm:$0xff]  ;;  %1460 = vmatpush.msrb.mxu1 %v1173_v43 }
  0x83   : > { %v1301_v45 = vld [vmem:[#allocation2 + $0xfa0] sm:$0xff]  ;;  %1490 = vmatpush.msrb.mxu2 %v1233_v44 }
  0x84   : > { %v1101_v54 = vld [vmem:[#allocation2 + $0x960] sm:$0xff]  ;;  %1518 = vmatpush.msrb.mxu3 %v1301_v45  ;;  %1335 = vmatmul.f32.gmra.mxu0 %v5008_v22 }
  0x85   : > { %v1169_v55 = vld [vmem:[#allocation2 + $0xb80] sm:$0xff]  ;;  %1433 = vmatpush.msrb.mxu0 %v1101_v54  ;;  %1393 = vmatmul.f32.gmra.mxu2 %v5014_v25 }
  0x86   : > { %v1229_v56 = vld [vmem:[#allocation2 + $0xd60] sm:$0xff]  ;;  %1461 = vmatpush.msrb.mxu1 %v1169_v55 }
  0x87   : > { %v1297_v57 = vld [vmem:[#allocation2 + $0xf80] sm:$0xff]  ;;  %1491 = vmatpush.msrb.mxu2 %v1229_v56 }
  0x88   : > { %v1097_v51 = vld [vmem:[#allocation2 + $0x940] sm:$0xff]  ;;  %1519 = vmatpush.msrb.mxu3 %v1297_v57  ;;  %1364 = vmatmul.f32.gmra.mxu1 %v5022_v16 }
  0x89   : > { %v1165_v2 = vld [vmem:[#allocation2 + $0xb60] sm:$0xff]  ;;  %1434 = vmatpush.msrb.mxu0 %v1097_v51  ;;  %1422 = vmatmul.f32.gmra.mxu3 %v5028_v20 }
  0x8a   : > { %v1225_v52 = vld [vmem:[#allocation2 + $0xd40] sm:$0xff]  ;;  %1462 = vmatpush.msrb.mxu1 %v1165_v2  ;;  %v684_v2 = vrot.slane %v5038_v48, 3 }
  0x8b   : > { %v1293_v3 = vld [vmem:[#allocation2 + $0xf60] sm:$0xff]  ;;  %1492 = vmatpush.msrb.mxu2 %v1225_v52 }
  0x8c   : > { %v1093_v6 = vld [vmem:[#allocation2 + $0x920] sm:$0xff]  ;;  %1520 = vmatpush.msrb.mxu3 %v1293_v3  ;;  %1338 = vmatmul.f32.gmra.mxu0 %v4996_v8 }
  0x8d   : > { %v1161_v7 = vld [vmem:[#allocation2 + $0xb40] sm:$0xff]  ;;  %1435 = vmatpush.msrb.mxu0 %v1093_v6  ;;  %1396 = vmatmul.f32.gmra.mxu2 %v4998_v9  ;;  %v5051_v6 = vld [vmem:[%s4859_s17 + $0x28] sm:$0x1f] }
  0x8e   : > { %v1221_v14 = vld [vmem:[#allocation2 + $0xd20] sm:$0xff]  ;;  %1463 = vmatpush.msrb.mxu1 %v1161_v7  ;;  %v5054_v7 = vld [vmem:[%s4859_s17 + $0x38] sm:$0x1f] }
  0x8f   : > { %v1289_v15 = vld [vmem:[#allocation2 + $0xf40] sm:$0xff]  ;;  %1493 = vmatpush.msrb.mxu2 %v1221_v14 }
  0x90   : > { %v1089_v61 = vld [vmem:[#allocation2 + $0x900] sm:$0xff]  ;;  %1521 = vmatpush.msrb.mxu3 %v1289_v15  ;;  %1367 = vmatmul.f32.gmra.mxu1 %v5000_v19 }
  0x91   : > { %v1157_v17 = vld [vmem:[#allocation2 + $0xb20] sm:$0xff]  ;;  %1436 = vmatpush.msrb.mxu0 %v1089_v61  ;;  %1425 = vmatmul.f32.gmra.mxu3 %v5002_v21 }
  0x92   : > { %v1217_v62 = vld [vmem:[#allocation2 + $0xd00] sm:$0xff]  ;;  %1464 = vmatpush.msrb.mxu1 %v1157_v17  ;;  %v5061_v17 = vld [vmem:[%s4872_s18 + $0x28] sm:$0x1f] }
  0x93   : > { %v1285_v18 = vld [vmem:[#allocation2 + $0xf20] sm:$0xff]  ;;  %1494 = vmatpush.msrb.mxu2 %v1217_v62 }
  0x94   : > { %v1085_v26 = vld [vmem:[#allocation2 + $0x8e0] sm:$0xff]  ;;  %1522 = vmatpush.msrb.mxu3 %v1285_v18  ;;  %v5069_v18 = vmul.f32 %v5048_v4, %v5048_v4 }
  0x95   : > { %v1153_v27 = vld [vmem:[#allocation2 + $0xb00] sm:$0xff]  ;;  %1437 = vmatpush.msrb.mxu0 %v1085_v26  ;;  %v5073_v26 = vmul.f32 %v5038_v48, %v5038_v48 }
  0x96   : > { %v1213_v28 = vld [vmem:[#allocation2 + $0xce0] sm:$0xff]  ;;  %1465 = vmatpush.msrb.mxu1 %v1153_v27  ;;  %v862_v27 = vld [vmem:[#allocation2 + $0x1e8] sm:$0xff] }
  0x97   : > { %v1281_v29 = vld [vmem:[#allocation2 + $0xf00] sm:$0xff]  ;;  %1495 = vmatpush.msrb.mxu2 %v1213_v28  ;;  %v990_v28 = vld [vmem:[#allocation2 + $0x5e8] sm:$0xff] }
  0x98   : > { %v1081_v30 = vld [vmem:[#allocation2 + $0x8c0] sm:$0xff]  ;;  %1523 = vmatpush.msrb.mxu3 %v1281_v29 }
  0x99   : > { %v1149_v33 = vld [vmem:[#allocation2 + $0xae0] sm:$0xff]  ;;  %1438 = vmatpush.msrb.mxu0 %v1081_v30  ;;  %v5085_v30 = vsel %vm602_vm0, %v5048_v4, %v684_v2 }
  0x9a   : > { %v1209_v34 = vld [vmem:[#allocation2 + $0xcc0] sm:$0xff]  ;;  %1466 = vmatpush.msrb.mxu1 %v1149_v33  ;;  %v5088_v33 = vld [vmem:[%s4872_s18 + $0x38] sm:$0x1f] }
  0x9b   : > { %v1277_v35 = vld [vmem:[#allocation2 + $0xee0] sm:$0xff]  ;;  %1496 = vmatpush.msrb.mxu2 %v1209_v34  ;;  %v5092_v34 = vmul.f32 %v5061_v17, %v5061_v17 }
  0x9c   : > { %v1077_v31 = vld [vmem:[#allocation2 + $0x8a0] sm:$0xff]  ;;  %1524 = vmatpush.msrb.mxu3 %v1277_v35 }
  0x9d   : > { %v1145_v36 = vld [vmem:[#allocation2 + $0xac0] sm:$0xff]  ;;  %1439 = vmatpush.msrb.mxu0 %v1077_v31  ;;  %v683_v31 = vrot.slane %v5051_v6, 3 }
  0x9e   : > { %v1205_v37 = vld [vmem:[#allocation2 + $0xca0] sm:$0xff]  ;;  %1467 = vmatpush.msrb.mxu1 %v1145_v36  ;;  %v685_v36 = vrot.slane %v5054_v7, 3 }
  0x9f   : > { %v1273_v32 = vld [vmem:[#allocation2 + $0xec0] sm:$0xff]  ;;  %1497 = vmatpush.msrb.mxu2 %v1205_v37  ;;  %v5098_v37 = vmul.f32 %v5051_v6, %v5051_v6 }
  0xa0   : > { %v1073_v38 = vld [vmem:[#allocation2 + $0x880] sm:$0xff]  ;;  %1525 = vmatpush.msrb.mxu3 %v1273_v32  ;;  %v5102_v32 = vmul.f32 %v5088_v33, %v5088_v33 }
  0xa1   : > { %v1141_v39 = vld [vmem:[#allocation2 + $0xaa0] sm:$0xff]  ;;  %1440 = vmatpush.msrb.mxu0 %v1073_v38 }
  0xa2   : > { %v1201_v40 = vld [vmem:[#allocation2 + $0xc80] sm:$0xff]  ;;  %1468 = vmatpush.msrb.mxu1 %v1141_v39  ;;  %v620_v39 = vsel %vm602_vm0, %v4883_v0, inf }
  0xa3   : > { %v1269_v41 = vld [vmem:[#allocation2 + $0xea0] sm:$0xff]  ;;  %1498 = vmatpush.msrb.mxu2 %v1201_v40  ;;  %v621_v40 = vsel %vm602_vm0, %v4907_v12, inf }
  0xa4   : > { %v1069_v42 = vld [vmem:[#allocation2 + $0x860] sm:$0xff]  ;;  %1526 = vmatpush.msrb.mxu3 %v1269_v41  ;;  %v622_v41 = vsel %vm602_vm0, %v4886_v1, inf }
  0xa5   : > { %v1137_v43 = vld [vmem:[#allocation2 + $0xa80] sm:$0xff]  ;;  %1441 = vmatpush.msrb.mxu0 %v1069_v42  ;;  %v623_v42 = vsel %vm602_vm0, %v4910_v13, inf }
  0xa6   : > { %v1197_v44 = vld [vmem:[#allocation2 + $0xc60] sm:$0xff]  ;;  %1469 = vmatpush.msrb.mxu1 %v1137_v43  ;;  %v858_v43 = vld [vmem:[#allocation2 + $0x1c8] sm:$0xff] }
  0xa7   : > { %v1265_v45 = vld [vmem:[#allocation2 + $0xe80] sm:$0xff]  ;;  %1499 = vmatpush.msrb.mxu2 %v1197_v44  ;;  %v926_v44 = vld [vmem:[#allocation2 + $0x3e8] sm:$0xff] }
  0xa8   : > { %v5035_v47 = vld [vmem:[%s4859_s17 + $0x20] sm:$0x1f]  ;;  %1527 = vmatpush.msrb.mxu3 %v1265_v45 }
  0xa9   : > { %v1065_v50 = vld [vmem:[#allocation2 + $0x840] sm:$0xff]  ;;  %v682_v51 = vrot.slane %v5035_v47, 3  ;;  %v5065_v62 = vmul.f32 %v5035_v47, %v5035_v47 }
  0xaa   : > { %v1133_v53 = vld [vmem:[#allocation2 + $0xa60] sm:$0xff]  ;;  %1442 = vmatpush.msrb.mxu0 %v1065_v50  ;;  %v626_v50 = vsel %vm602_vm0, %v5061_v17, inf }
  0xab   : > { %v1193_v54 = vld [vmem:[#allocation2 + $0xc40] sm:$0xff]  ;;  %1470 = vmatpush.msrb.mxu1 %v1133_v53  ;;  %v628_v53 = vsel %vm602_vm0, %v5048_v4, inf }
  0xac   : > { %v1261_v55 = vld [vmem:[#allocation2 + $0xe60] sm:$0xff]  ;;  %1500 = vmatpush.msrb.mxu2 %v1193_v54  ;;  %v630_v54 = vsel %vm602_vm0, %v5088_v33, inf }
  0xad   : > { %v1061_v56 = vld [vmem:[#allocation2 + $0x820] sm:$0xff]  ;;  %1528 = vmatpush.msrb.mxu3 %v1261_v55  ;;  %v986_v55 = vld [vmem:[#allocation2 + $0x5c8] sm:$0xff] }
  0xae   : > { %v1129_v57 = vld [vmem:[#allocation2 + $0xa40] sm:$0xff]  ;;  %1443 = vmatpush.msrb.mxu0 %v1061_v56  ;;  %v1054_v56 = vld [vmem:[#allocation2 + $0x7e8] sm:$0xff] }
  0xaf   : > { %v1189_v58 = vld [vmem:[#allocation2 + $0xc20] sm:$0xff]  ;;  %1471 = vmatpush.msrb.mxu1 %v1129_v57 }
  0xb0   : > { %v1257_v59 = vld [vmem:[#allocation2 + $0xe40] sm:$0xff]  ;;  %1501 = vmatpush.msrb.mxu2 %v1189_v58 }
  0xb1   : > { %v1057_v52 = vld [vmem:[#allocation2 + $0x800] sm:$0xff]  ;;  %1529 = vmatpush.msrb.mxu3 %v1257_v59  ;;  %v627_v59 = vmin.f32 %v621_v40, %v626_v50  ;;  %v982_v40 = vld [vmem:[#allocation2 + $0x5a8] sm:$0xff] }
  0xb2   : > { %v5045_v3 = vld [vmem:[%s4872_s18 + $0x20] sm:$0x1f]  ;;  %1444 = vmatpush.msrb.mxu0 %v1057_v52  ;;  %v629_v52 = vmin.f32 %v622_v41, %v628_v53  ;;  %v1050_v41 = vld [vmem:[#allocation2 + $0x7c8] sm:$0xff] }
  0xb3   : > { %v1125_v5 = vld [vmem:[#allocation2 + $0xa20] sm:$0xff]  ;;  %v5058_v14 = vmul.f32 %v5045_v3, %v5045_v3  ;;  %v5079_v29 = vsel %vm602_vm0, %v5045_v3, %v682_v51  ;;  %v624_v45 = vsel %vm602_vm0, %v5045_v3, inf  ;;  %v978_v50 = vld [vmem:[#allocation2 + $0x588] sm:$0xff] }
  0xb4   : > { %v1185_v15 = vld [vmem:[#allocation2 + $0xc00] sm:$0xff]  ;;  %1472 = vmatpush.msrb.mxu1 %v1125_v5  ;;  %1545 = vmatpush.msra.mxu0 %v862_v27  ;;  %v625_v58 = vmin.f32 %v620_v39, %v624_v45  ;;  %v5127_v5 = vsel %vm602_vm0, %v5061_v17, %v683_v31  ;;  %v854_v27 = vld [vmem:[#allocation2 + $0x1a8] sm:$0xff]  ;;  %v709_v45 = vrot.slane %v5102_v32, 6 }
  0xb5   : > { %v1253_v61 = vld [vmem:[#allocation2 + $0xe20] sm:$0xff]  ;;  %1502 = vmatpush.msrb.mxu2 %v1185_v15  ;;  %1445 = vmatmul.f32.vlgmr.msrb.gmra.mxu0 %v5079_v29  ;;  %v706_v57 = vrot.slane %v5058_v14, 6  ;;  %v5133_v15 = vsel %vm602_vm0, %v5088_v33, %v685_v36  ;;  %v708_v14 = vrot.slane %v5069_v18, 6  ;;  %v1046_v53 = vld [vmem:[#allocation2 + $0x7a8] sm:$0xff] }
  0xb6   : > { %v1121_v35 = vld [vmem:[#allocation2 + $0xa00] sm:$0xff]  ;;  %1530 = vmatpush.msrb.mxu3 %v1253_v61  ;;  %1503 = vmatmul.f32.vlgmr.msrb.gmra.mxu2 %v5085_v30  ;;  %v631_v61 = vmin.f32 %v623_v42, %v630_v54  ;;  %v5141_v39 = vmin.f32 %v625_v58, %v627_v59  ;;  %v850_v42 = vld [vmem:[#allocation2 + $0x188] sm:$0xff] }
  0xb7   : > { %v1249_v38 = vld [vmem:[#allocation2 + $0xe00] sm:$0xff]  ;;  %1603 = vmatpush.msra.mxu2 %v990_v28  ;;  %1473 = vmatpush.msrb.mxu1 %v1121_v35  ;;  %v922_v28 = vld [vmem:[#allocation2 + $0x3c8] sm:$0xff]  ;;  %v707_v35 = vrot.slane %v5092_v34, 6  ;;  %v779_v32 = vsel %vm774_vm1, %v682_v51, %v706_v57  ;;  %v781_v54 = vsel %vm774_vm1, %v684_v2, %v708_v14  ;;  %v782_v2 = vsel %vm774_vm1, %v685_v36, %v709_v45 }
  0xb8   : > { %1531 = vmatpush.msrb.mxu3 %v1249_v38  ;;  %1546 = vmatpush.msra.mxu0 %v858_v43  ;;  %v5139_v38 = vmul.f32 %v5054_v7, %v5054_v7  ;;  %v5144_v18 = vmin.f32 %v629_v52, %v631_v61  ;;  %v918_v34 = vld [vmem:[#allocation2 + $0x3a8] sm:$0xff]  ;;  %v730_v43 = vrot.slane %v5065_v62, 1  ;;  %v666_v45 = vmul.f32 %v5035_v47, %v5045_v3 }
  0xb9   : > { %1574 = vmatpush.msra.mxu1 %v926_v44  ;;  %1604 = vmatpush.msra.mxu2 %v986_v55  ;;  %v732_v44 = vrot.slane %v5073_v26, 1  ;;  %v731_v55 = vrot.slane %v5098_v37, 1  ;;  %v846_v58 = vld [vmem:[#allocation2 + $0x168] sm:$0xff]  ;;  %v780_v52 = vsel %vm774_vm1, %v683_v31, %v707_v35 }
  0xba   : > { %1632 = vmatpush.msra.mxu3 %v1054_v56  ;;  %1474 = vmatmul.f32.vlgmr.msrb.gmra.mxu1 %v5127_v5  ;;  %v914_v59 = vld [vmem:[#allocation2 + $0x388] sm:$0xff]  ;;  %v733_v61 = vrot.slane %v5139_v38, 1  ;;  %v5169_v14 = vsel %vm783_vm2, %v779_v32, %v730_v43  ;;  %v607_v32 = vsel %vm602_vm0, %v5045_v3, -inf }
  0xbb   : > { %1532 = vmatmul.f32.vlgmr.msrb.gmra.mxu3 %v5133_v15  ;;  %1547 = vmatpush.msra.mxu0 %v854_v27  ;;  %v974_v51 = vld [vmem:[#allocation2 + $0x568] sm:$0xff]  ;;  %v5174_v31 = vsel %vm783_vm2, %v781_v54, %v732_v44  ;;  %v5179_v36 = vsel %vm783_vm2, %v780_v52, %v731_v55  ;;  %v606_v54 = vsel %vm602_vm0, %v4910_v13, -inf  ;;  %v669_v52 = vmul.f32 %v5054_v7, %v5088_v33 }
  0xbc   : > { %1575 = vmatpush.msra.mxu1 %v922_v28  ;;  %1605 = vmatpush.msra.mxu2 %v982_v40  ;;  %v1042_v57 = vld [vmem:[#allocation2 + $0x788] sm:$0xff] }
  0xbd   : > { %1633 = vmatpush.msra.mxu3 %v1050_v41  ;;  %1548 = vmatpush.msra.mxu0 %v850_v42  ;;  %v842_v27 = vld [vmem:[#allocation2 + $0x148] sm:$0xff]  ;;  %v5184_v41 = vsel %vm783_vm2, %v782_v2, %v733_v61  ;;  %v668_v42 = vmul.f32 %v5038_v48, %v5048_v4 }
  0xbe   : > { %1576 = vmatpush.msra.mxu1 %v918_v34  ;;  %1606 = vmatpush.msra.mxu2 %v978_v50  ;;  %v910_v28 = vld [vmem:[#allocation2 + $0x368] sm:$0xff]  ;;  %v603_v34 = vsel %vm602_vm0, %v4883_v0, -inf  ;;  %v604_v50 = vsel %vm602_vm0, %v4907_v12, -inf  ;;  %v611_v0 = vsel %vm602_vm0, %v5048_v4, -inf  ;;  %v613_v12 = vsel %vm602_vm0, %v5088_v33, -inf }
  0xbf   : > { %1634 = vmatpush.msra.mxu3 %v1046_v53  ;;  %1549 = vmatpush.msra.mxu0 %v846_v58  ;;  %v970_v35 = vld [vmem:[#allocation2 + $0x548] sm:$0xff]  ;;  %v605_v53 = vsel %vm602_vm0, %v4886_v1, -inf  ;;  %v609_v58 = vsel %vm602_vm0, %v5061_v17, -inf  ;;  %v5214_v4 = vrot.slane %v666_v45, 4  ;;  %v608_v2 = vmax.f32 %v603_v34, %v607_v32 }
  0xc0   : > { %1577 = vmatpush.msra.mxu1 %v914_v59  ;;  %1607 = vmatpush.msra.mxu2 %v974_v51  ;;  %v1038_v40 = vld [vmem:[#allocation2 + $0x768] sm:$0xff]  ;;  %v667_v59 = vmul.f32 %v5051_v6, %v5061_v17  ;;  %v612_v6 = vmax.f32 %v605_v53, %v611_v0  ;;  %v614_v17 = vmax.f32 %v606_v54, %v613_v12 }
  0xc1   : > { %1635 = vmatpush.msra.mxu3 %v1042_v57  ;;  %1448 = vmatmul.f32.gmra.mxu0 %v5169_v14  ;;  %v838_v47 = vld [vmem:[#allocation2 + $0x128] sm:$0xff]  ;;  %v5216_v57 = vrot.slane %v668_v42, 4  ;;  %v5220_v42 = vrot.slane %v669_v52, 4  ;;  %v5226_v34 = vsel %vm792_vm3, %v730_v43, %v5214_v4 }
  0xc2   : > { %1506 = vmatmul.f32.gmra.mxu2 %v5174_v31  ;;  %1550 = vmatpush.msra.mxu0 %v842_v27  ;;  %v906_v48 = vld [vmem:[#allocation2 + $0x348] sm:$0xff]  ;;  %v5218_v45 = vrot.slane %v667_v59, 4 }
  0xc3   : > { %1578 = vmatpush.msra.mxu1 %v910_v28  ;;  %1608 = vmatpush.msra.mxu2 %v970_v35  ;;  %v966_v1 = vld [vmem:[#allocation2 + $0x528] sm:$0xff]  ;;  %v610_v35 = vmax.f32 %v604_v50, %v609_v58  ;;  %v5232_v50 = vsel %vm792_vm3, %v732_v44, %v5216_v57  ;;  %v5246_v26 = vsel %vm792_vm3, %v733_v61, %v5220_v42 }
  0xc4   : > { %1636 = vmatpush.msra.mxu3 %v1038_v40  ;;  %v1034_v3 = vld [vmem:[#allocation2 + $0x748] sm:$0xff]  ;;  %1477 = vmatmul.f32.gmra.mxu1 %v5179_v36  ;;  %v5240_v62 = vsel %vm792_vm3, %v731_v55, %v5218_v45 }
  0xc5   : > { %1535 = vmatmul.f32.gmra.mxu3 %v5184_v41  ;;  %v834_v13 = vld [vmem:[#allocation2 + $0x108] sm:$0xff]  ;;  %1551 = vmatpush.msra.mxu0 %v838_v47  ;;  %v615_v47 = vmax.f32 %v608_v2, %v610_v35 }
  0xc6   : > { %v902_v51 = vld [vmem:[#allocation2 + $0x328] sm:$0xff]  ;;  %1579 = vmatpush.msra.mxu1 %v906_v48  ;;  %1609 = vmatpush.msra.mxu2 %v966_v1  ;;  %v616_v48 = vmax.f32 %v612_v6, %v614_v17 }
  0xc7   : > { %v962_v27 = vld [vmem:[#allocation2 + $0x508] sm:$0xff]  ;;  %1637 = vmatpush.msra.mxu3 %v1034_v3  ;;  %1552 = vmatpush.msra.mxu0 %v834_v13 }
  0xc8   : > { %v1030_v28 = vld [vmem:[#allocation2 + $0x728] sm:$0xff]  ;;  %1580 = vmatpush.msra.mxu1 %v902_v51  ;;  %1610 = vmatpush.msra.mxu2 %v962_v27  ;;  %v617_v12 = vmax.f32 %v615_v47, %v616_v48 }
  0xc9   : > { %v830_v7 = vld [vmem:[#allocation2 + $0xe8] sm:$0xff]  ;;  %1638 = vmatpush.msra.mxu3 %v1030_v28  ;;  %1451 = vmatmul.f32.gmra.mxu0 %v5226_v34 }
  0xca   : > { %v898_v33 = vld [vmem:[#allocation2 + $0x308] sm:$0xff]  ;;  %1553 = vmatpush.msra.mxu0 %v830_v7  ;;  %1509 = vmatmul.f32.gmra.mxu2 %v5232_v50 }
  0xcb   : > { %v958_v40 = vld [vmem:[#allocation2 + $0x4e8] sm:$0xff]  ;;  %1581 = vmatpush.msra.mxu1 %v898_v33  ;;  %618 = vmax.xlane.f32.xlu0 %v617_v12 }
  0xcc   : > { %v1026_v56 = vld [vmem:[#allocation2 + $0x708] sm:$0xff]  ;;  %1611 = vmatpush.msra.mxu2 %v958_v40  ;;  %1480 = vmatmul.f32.gmra.mxu1 %v5240_v62 }
  0xcd   : > { %v826_v53 = vld [vmem:[#allocation2 + $0xc8] sm:$0xff]  ;;  %1639 = vmatpush.msra.mxu3 %v1026_v56 }
  0xce   : > { %v894_v32 = vld [vmem:[#allocation2 + $0x2e8] sm:$0xff]  ;;  %1554 = vmatpush.msra.mxu0 %v826_v53  ;;  %1538 = vmatmul.f32.gmra.mxu3 %v5246_v26 }
  0xcf   : > { %v954_v54 = vld [vmem:[#allocation2 + $0x4c8] sm:$0xff]  ;;  %1582 = vmatpush.msra.mxu1 %v894_v32  ;;  %v6096_v32 = vmin.f32 %v5141_v39, %v5144_v18 }
  0xd0   : > { %v1022_v58 = vld [vmem:[#allocation2 + $0x6e8] sm:$0xff]  ;;  %1612 = vmatpush.msra.mxu2 %v954_v54 }
  0xd1   : > { %v822_v43 = vld [vmem:[#allocation2 + $0xa8] sm:$0xff]  ;;  %1640 = vmatpush.msra.mxu3 %v1022_v58  ;;  %1454 = vmatmul.f32.gmra.mxu0 %v5214_v4 }
  0xd2   : > { %v890_v44 = vld [vmem:[#allocation2 + $0x2c8] sm:$0xff]  ;;  %1555 = vmatpush.msra.mxu0 %v822_v43  ;;  %1512 = vmatmul.f32.gmra.mxu2 %v5216_v57 }
  0xd3   : > { %v950_v56 = vld [vmem:[#allocation2 + $0x4a8] sm:$0xff]  ;;  %1583 = vmatpush.msra.mxu1 %v890_v44  ;;  %635 = vmin.xlane.f32.xlu0 %v6096_v32 }
  0xd4   : > { %v1018_v0 = vld [vmem:[#allocation2 + $0x6c8] sm:$0xff]  ;;  %1613 = vmatpush.msra.mxu2 %v950_v56  ;;  %1483 = vmatmul.f32.gmra.mxu1 %v5218_v45 }
  0xd5   : > { %v818_v37 = vld [vmem:[#allocation2 + $0x88] sm:$0xff]  ;;  %1641 = vmatpush.msra.mxu3 %v1018_v0 }
  0xd6   : > { %v886_v38 = vld [vmem:[#allocation2 + $0x2a8] sm:$0xff]  ;;  %1556 = vmatpush.msra.mxu0 %v818_v37  ;;  %1541 = vmatmul.f32.gmra.mxu3 %v5220_v42 }
  0xd7   : > { %v946_v55 = vld [vmem:[#allocation2 + $0x488] sm:$0xff]  ;;  %1584 = vmatpush.msra.mxu1 %v886_v38 }
  0xd8   : > { %v1014_v61 = vld [vmem:[#allocation2 + $0x6a8] sm:$0xff]  ;;  %1614 = vmatpush.msra.mxu2 %v946_v55 }
  0xd9   : > { %v814_v1 = vld [vmem:[#allocation2 + $0x68] sm:$0xff]  ;;  %1642 = vmatpush.msra.mxu3 %v1014_v61 }
  0xda   : > { %v882_v3 = vld [vmem:[#allocation2 + $0x288] sm:$0xff]  ;;  %1557 = vmatpush.msra.mxu0 %v814_v1 }
  0xdb   : > { %v942_v59 = vld [vmem:[#allocation2 + $0x468] sm:$0xff]  ;;  %1585 = vmatpush.msra.mxu1 %v882_v3 }
  0xdc   : > { %v1010_v52 = vld [vmem:[#allocation2 + $0x688] sm:$0xff]  ;;  %1615 = vmatpush.msra.mxu2 %v942_v59 }
  0xdd   : > { %v810_v13 = vld [vmem:[#allocation2 + $0x48] sm:$0xff]  ;;  %1643 = vmatpush.msra.mxu3 %v1010_v52 }
  0xde   : > { %v878_v51 = vld [vmem:[#allocation2 + $0x268] sm:$0xff]  ;;  %1558 = vmatpush.msra.mxu0 %v810_v13 }
  0xdf   : > { %v938_v2 = vld [vmem:[#allocation2 + $0x448] sm:$0xff]  ;;  %1586 = vmatpush.msra.mxu1 %v878_v51 }
  0xe0   : > { %v1006_v27 = vld [vmem:[#allocation2 + $0x668] sm:$0xff]  ;;  %1616 = vmatpush.msra.mxu2 %v938_v2 }
  0xe1   : > { %v806_v28 = vld [vmem:[#allocation2 + $0x28] sm:$0xff]  ;;  %1644 = vmatpush.msra.mxu3 %v1006_v27 }
  0xe2   : > { %v874_v35 = vld [vmem:[#allocation2 + $0x248] sm:$0xff]  ;;  %1559 = vmatpush.msra.mxu0 %v806_v28 }
  0xe3   : > { %v934_v6 = vld [vmem:[#allocation2 + $0x428] sm:$0xff]  ;;  %1587 = vmatpush.msra.mxu1 %v874_v35 }
  0xe4   : > { %v1002_v17 = vld [vmem:[#allocation2 + $0x648] sm:$0xff]  ;;  %1617 = vmatpush.msra.mxu2 %v934_v6 }
  0xe5   : > { %v802_v7 = vld [vmem:[#allocation2 + $0x8] sm:$0xff]  ;;  %1645 = vmatpush.msra.mxu3 %v1002_v17 }
  0xe6   : > { %v870_v33 = vld [vmem:[#allocation2 + $0x228] sm:$0xff]  ;;  %1560 = vmatpush.msra.mxu0 %v802_v7 }
  0xe7   : > { %v930_v40 = vld [vmem:[#allocation2 + $0x408] sm:$0xff]  ;;  %1588 = vmatpush.msra.mxu1 %v870_v33  ;;  %1561 = vmatmul.f32.vlgmr.msra.gmra.mxu0 %v4898_v10 }
  0xe8   : > { %v998_v53 = vld [vmem:[#allocation2 + $0x628] sm:$0xff]  ;;  %1618 = vmatpush.msra.mxu2 %v930_v40 }
  0xe9   : > { %v1118_v47 = vld [vmem:[#allocation2 + $0x9e8] sm:$0xff]  ;;  %1646 = vmatpush.msra.mxu3 %v998_v53  ;;  %1619 = vmatmul.f32.vlgmr.msra.gmra.mxu2 %v4904_v11 }
  0xea   : > { %v1246_v48 = vld [vmem:[#allocation2 + $0xde8] sm:$0xff]  ;;  %1661 = vmatpush.msrb.mxu0 %v1118_v47 }
  0xeb   : > { %v866_v54 = vld [vmem:[#allocation2 + $0x208] sm:$0xff]  ;;  %1719 = vmatpush.msrb.mxu2 %v1246_v48 }
  0xec   : > { %v994_v58 = vld [vmem:[#allocation2 + $0x608] sm:$0xff]  ;;  %1589 = vmatpush.msra.mxu1 %v866_v54 }
  0xed   : > { %v1114_v43 = vld [vmem:[#allocation2 + $0x9c8] sm:$0xff]  ;;  %1647 = vmatpush.msra.mxu3 %v994_v58  ;;  %1590 = vmatmul.f32.vlgmr.msra.gmra.mxu1 %v4930_v23 }
  0xee   : > { %v1182_v44 = vld [vmem:[#allocation2 + $0xbe8] sm:$0xff]  ;;  %1662 = vmatpush.msrb.mxu0 %v1114_v43  ;;  %1648 = vmatmul.f32.vlgmr.msra.gmra.mxu3 %v4936_v24 }
  0xef   : > { %v1242_v56 = vld [vmem:[#allocation2 + $0xdc8] sm:$0xff]  ;;  %1690 = vmatpush.msrb.mxu1 %v1182_v44  ;;  %1564 = vmatmul.f32.gmra.mxu0 %v4959_v46 }
  0xf0   : > { %v1310_v0 = vld [vmem:[#allocation2 + $0xfe8] sm:$0xff]  ;;  %1720 = vmatpush.msrb.mxu2 %v1242_v56 }
  0xf1   : > { %v1110_v39 = vld [vmem:[#allocation2 + $0x9a8] sm:$0xff]  ;;  %1748 = vmatpush.msrb.mxu3 %v1310_v0  ;;  %1622 = vmatmul.f32.gmra.mxu2 %v4966_v49 }
  0xf2   : > { %v1178_v18 = vld [vmem:[#allocation2 + $0xbc8] sm:$0xff]  ;;  %1663 = vmatpush.msrb.mxu0 %v1110_v39 }
  0xf3   : > { %v1238_v12 = vld [vmem:[#allocation2 + $0xda8] sm:$0xff]  ;;  %1691 = vmatpush.msrb.mxu1 %v1178_v18 }
  0xf4   : > { %v1306_v37 = vld [vmem:[#allocation2 + $0xfc8] sm:$0xff]  ;;  %1721 = vmatpush.msrb.mxu2 %v1238_v12 }
  0xf5   : > { %v1106_v38 = vld [vmem:[#allocation2 + $0x988] sm:$0xff]  ;;  %1749 = vmatpush.msrb.mxu3 %v1306_v37  ;;  %1593 = vmatmul.f32.gmra.mxu1 %v4983_v60 }
  0xf6   : > { %v1174_v55 = vld [vmem:[#allocation2 + $0xba8] sm:$0xff]  ;;  %1664 = vmatpush.msrb.mxu0 %v1106_v38  ;;  %1651 = vmatmul.f32.gmra.mxu3 %v4988_v63 }
  0xf7   : > { %v1234_v61 = vld [vmem:[#allocation2 + $0xd88] sm:$0xff]  ;;  %1692 = vmatpush.msrb.mxu1 %v1174_v55  ;;  %1567 = vmatmul.f32.gmra.mxu0 %v5008_v22 }
  0xf8   : > { %v1302_v1 = vld [vmem:[#allocation2 + $0xfa8] sm:$0xff]  ;;  %1722 = vmatpush.msrb.mxu2 %v1234_v61 }
  0xf9   : > { %v1102_v3 = vld [vmem:[#allocation2 + $0x968] sm:$0xff]  ;;  %1750 = vmatpush.msrb.mxu3 %v1302_v1  ;;  %1625 = vmatmul.f32.gmra.mxu2 %v5014_v25 }
  0xfa   : > { %v1170_v59 = vld [vmem:[#allocation2 + $0xb88] sm:$0xff]  ;;  %1665 = vmatpush.msrb.mxu0 %v1102_v3 }
  0xfb   : > { %v1230_v52 = vld [vmem:[#allocation2 + $0xd68] sm:$0xff]  ;;  %1693 = vmatpush.msrb.mxu1 %v1170_v59 }
  0xfc   : > { %v1298_v13 = vld [vmem:[#allocation2 + $0xf88] sm:$0xff]  ;;  %1723 = vmatpush.msrb.mxu2 %v1230_v52 }
  0xfd   : > { %v1098_v51 = vld [vmem:[#allocation2 + $0x948] sm:$0xff]  ;;  %1751 = vmatpush.msrb.mxu3 %v1298_v13  ;;  %1596 = vmatmul.f32.gmra.mxu1 %v5022_v16 }
  0xfe   : > { %v1166_v2 = vld [vmem:[#allocation2 + $0xb68] sm:$0xff]  ;;  %1666 = vmatpush.msrb.mxu0 %v1098_v51  ;;  %1654 = vmatmul.f32.gmra.mxu3 %v5028_v20 }
  0xff   : > { %v1226_v27 = vld [vmem:[#allocation2 + $0xd48] sm:$0xff]  ;;  %1694 = vmatpush.msrb.mxu1 %v1166_v2  ;;  %1570 = vmatmul.f32.gmra.mxu0 %v4996_v8 }
 0x100   : > { %v1294_v28 = vld [vmem:[#allocation2 + $0xf68] sm:$0xff]  ;;  %1724 = vmatpush.msrb.mxu2 %v1226_v27 }
 0x101   : > { %v1094_v35 = vld [vmem:[#allocation2 + $0x928] sm:$0xff]  ;;  %1752 = vmatpush.msrb.mxu3 %v1294_v28  ;;  %1628 = vmatmul.f32.gmra.mxu2 %v4998_v9 }
 0x102   : > { %v1162_v6 = vld [vmem:[#allocation2 + $0xb48] sm:$0xff]  ;;  %1667 = vmatpush.msrb.mxu0 %v1094_v35 }
 0x103   : > { %v1222_v17 = vld [vmem:[#allocation2 + $0xd28] sm:$0xff]  ;;  %1695 = vmatpush.msrb.mxu1 %v1162_v6 }
 0x104   : > { %v1290_v7 = vld [vmem:[#allocation2 + $0xf48] sm:$0xff]  ;;  %1725 = vmatpush.msrb.mxu2 %v1222_v17 }
 0x105   : > { %v1090_v33 = vld [vmem:[#allocation2 + $0x908] sm:$0xff]  ;;  %1753 = vmatpush.msrb.mxu3 %v1290_v7  ;;  %1599 = vmatmul.f32.gmra.mxu1 %v5000_v19 }
 0x106   : > { %v1158_v40 = vld [vmem:[#allocation2 + $0xb28] sm:$0xff]  ;;  %1668 = vmatpush.msrb.mxu0 %v1090_v33  ;;  %1657 = vmatmul.f32.gmra.mxu3 %v5002_v21 }
 0x107   : > { %v1218_v53 = vld [vmem:[#allocation2 + $0xd08] sm:$0xff]  ;;  %1696 = vmatpush.msrb.mxu1 %v1158_v40 }
 0x108   : > { %v1286_v32 = vld [vmem:[#allocation2 + $0xf28] sm:$0xff]  ;;  %1726 = vmatpush.msrb.mxu2 %v1218_v53 }
 0x109   : > { %v1086_v47 = vld [vmem:[#allocation2 + $0x8e8] sm:$0xff]  ;;  %1754 = vmatpush.msrb.mxu3 %v1286_v32 }
 0x10a   : > { %v1154_v48 = vld [vmem:[#allocation2 + $0xb08] sm:$0xff]  ;;  %1669 = vmatpush.msrb.mxu0 %v1086_v47  ;;  %v863_v47 = vld [vmem:[#allocation2 + $0x1f0] sm:$0xff] }
 0x10b   : > { %v1214_v54 = vld [vmem:[#allocation2 + $0xce8] sm:$0xff]  ;;  %1697 = vmatpush.msrb.mxu1 %v1154_v48  ;;  %v991_v48 = vld [vmem:[#allocation2 + $0x5f0] sm:$0xff] }
 0x10c   : > { %v1282_v58 = vld [vmem:[#allocation2 + $0xf08] sm:$0xff]  ;;  %1727 = vmatpush.msrb.mxu2 %v1214_v54 }
 0x10d   : > { %v1082_v43 = vld [vmem:[#allocation2 + $0x8c8] sm:$0xff]  ;;  %1755 = vmatpush.msrb.mxu3 %v1282_v58 }
 0x10e   : > { %v1150_v44 = vld [vmem:[#allocation2 + $0xae8] sm:$0xff]  ;;  %1670 = vmatpush.msrb.mxu0 %v1082_v43  ;;  %v859_v43 = vld [vmem:[#allocation2 + $0x1d0] sm:$0xff] }
 0x10f   : > { %v1210_v56 = vld [vmem:[#allocation2 + $0xcc8] sm:$0xff]  ;;  %1698 = vmatpush.msrb.mxu1 %v1150_v44  ;;  %v927_v44 = vld [vmem:[#allocation2 + $0x3f0] sm:$0xff] }
 0x110   : > { %v1278_v0 = vld [vmem:[#allocation2 + $0xee8] sm:$0xff]  ;;  %1728 = vmatpush.msrb.mxu2 %v1210_v56  ;;  %v987_v56 = vld [vmem:[#allocation2 + $0x5d0] sm:$0xff] }
 0x111   : > { %v1078_v39 = vld [vmem:[#allocation2 + $0x8a8] sm:$0xff]  ;;  %1756 = vmatpush.msrb.mxu3 %v1278_v0  ;;  %v1055_v0 = vld [vmem:[#allocation2 + $0x7f0] sm:$0xff] }
 0x112   : > { %v1146_v18 = vld [vmem:[#allocation2 + $0xac8] sm:$0xff]  ;;  %1671 = vmatpush.msrb.mxu0 %v1078_v39  ;;  %v855_v39 = vld [vmem:[#allocation2 + $0x1b0] sm:$0xff] }
 0x113   : > { %v1206_v12 = vld [vmem:[#allocation2 + $0xca8] sm:$0xff]  ;;  %1699 = vmatpush.msrb.mxu1 %v1146_v18  ;;  %v923_v18 = vld [vmem:[#allocation2 + $0x3d0] sm:$0xff] }
 0x114   : > { %v1274_v37 = vld [vmem:[#allocation2 + $0xec8] sm:$0xff]  ;;  %1729 = vmatpush.msrb.mxu2 %v1206_v12  ;;  %v983_v12 = vld [vmem:[#allocation2 + $0x5b0] sm:$0xff] }
 0x115   : > { %v1074_v38 = vld [vmem:[#allocation2 + $0x888] sm:$0xff]  ;;  %1757 = vmatpush.msrb.mxu3 %v1274_v37  ;;  %v1051_v37 = vld [vmem:[#allocation2 + $0x7d0] sm:$0xff] }
 0x116   : > { %v1142_v55 = vld [vmem:[#allocation2 + $0xaa8] sm:$0xff]  ;;  %1672 = vmatpush.msrb.mxu0 %v1074_v38  ;;  %v851_v38 = vld [vmem:[#allocation2 + $0x190] sm:$0xff] }
 0x117   : > { %v1202_v61 = vld [vmem:[#allocation2 + $0xc88] sm:$0xff]  ;;  %1700 = vmatpush.msrb.mxu1 %v1142_v55  ;;  %v919_v55 = vld [vmem:[#allocation2 + $0x3b0] sm:$0xff] }
 0x118   : > { %v1270_v1 = vld [vmem:[#allocation2 + $0xea8] sm:$0xff]  ;;  %1730 = vmatpush.msrb.mxu2 %v1202_v61  ;;  %v979_v61 = vld [vmem:[#allocation2 + $0x590] sm:$0xff] }
 0x119   : > { %v1070_v3 = vld [vmem:[#allocation2 + $0x868] sm:$0xff]  ;;  %1758 = vmatpush.msrb.mxu3 %v1270_v1  ;;  %v1047_v1 = vld [vmem:[#allocation2 + $0x7b0] sm:$0xff] }
 0x11a   : > { %v1138_v59 = vld [vmem:[#allocation2 + $0xa88] sm:$0xff]  ;;  %1673 = vmatpush.msrb.mxu0 %v1070_v3  ;;  %v847_v3 = vld [vmem:[#allocation2 + $0x170] sm:$0xff] }
 0x11b   : > { %v1198_v52 = vld [vmem:[#allocation2 + $0xc68] sm:$0xff]  ;;  %1701 = vmatpush.msrb.mxu1 %v1138_v59  ;;  %v915_v59 = vld [vmem:[#allocation2 + $0x390] sm:$0xff] }
 0x11c   : > { %v1266_v13 = vld [vmem:[#allocation2 + $0xe88] sm:$0xff]  ;;  %1731 = vmatpush.msrb.mxu2 %v1198_v52  ;;  %v975_v52 = vld [vmem:[#allocation2 + $0x570] sm:$0xff] }
 0x11d   : > { %v1066_v51 = vld [vmem:[#allocation2 + $0x848] sm:$0xff]  ;;  %1759 = vmatpush.msrb.mxu3 %v1266_v13  ;;  %v1043_v13 = vld [vmem:[#allocation2 + $0x790] sm:$0xff] }
 0x11e   : > { %v1134_v2 = vld [vmem:[#allocation2 + $0xa68] sm:$0xff]  ;;  %1674 = vmatpush.msrb.mxu0 %v1066_v51  ;;  %v843_v51 = vld [vmem:[#allocation2 + $0x150] sm:$0xff] }
 0x11f   : > { %v1194_v27 = vld [vmem:[#allocation2 + $0xc48] sm:$0xff]  ;;  %1702 = vmatpush.msrb.mxu1 %v1134_v2  ;;  %v911_v2 = vld [vmem:[#allocation2 + $0x370] sm:$0xff] }
 0x120   : > { %v1262_v28 = vld [vmem:[#allocation2 + $0xe68] sm:$0xff]  ;;  %1732 = vmatpush.msrb.mxu2 %v1194_v27  ;;  %v971_v27 = vld [vmem:[#allocation2 + $0x550] sm:$0xff] }
 0x121   : > { %v1062_v35 = vld [vmem:[#allocation2 + $0x828] sm:$0xff]  ;;  %1760 = vmatpush.msrb.mxu3 %v1262_v28  ;;  %v1039_v28 = vld [vmem:[#allocation2 + $0x770] sm:$0xff] }
 0x122   : > { %v1130_v6 = vld [vmem:[#allocation2 + $0xa48] sm:$0xff]  ;;  %1675 = vmatpush.msrb.mxu0 %v1062_v35  ;;  %v839_v35 = vld [vmem:[#allocation2 + $0x130] sm:$0xff] }
 0x123   : > { %v1190_v17 = vld [vmem:[#allocation2 + $0xc28] sm:$0xff]  ;;  %1703 = vmatpush.msrb.mxu1 %v1130_v6  ;;  %v907_v6 = vld [vmem:[#allocation2 + $0x350] sm:$0xff] }
 0x124   : > { %v1258_v7 = vld [vmem:[#allocation2 + $0xe48] sm:$0xff]  ;;  %1733 = vmatpush.msrb.mxu2 %v1190_v17  ;;  %v967_v17 = vld [vmem:[#allocation2 + $0x530] sm:$0xff] }
 0x125   : > { %v1058_v33 = vld [vmem:[#allocation2 + $0x808] sm:$0xff]  ;;  %1761 = vmatpush.msrb.mxu3 %v1258_v7  ;;  %v1035_v7 = vld [vmem:[#allocation2 + $0x750] sm:$0xff] }
 0x126   : > { %v1126_v40 = vld [vmem:[#allocation2 + $0xa28] sm:$0xff]  ;;  %1676 = vmatpush.msrb.mxu0 %v1058_v33  ;;  %v5277_v33 = vpop.f32.mrf.mxu0 }
 0x127   : > { %v1186_v53 = vld [vmem:[#allocation2 + $0xc08] sm:$0xff]  ;;  %1704 = vmatpush.msrb.mxu1 %v1126_v40  ;;  %1677 = vmatmul.f32.vlgmr.msrb.gmra.mxu0 %v5079_v29  ;;  %v835_v40 = vld [vmem:[#allocation2 + $0x110] sm:$0xff] }
 0x128   : > { %v1254_v32 = vld [vmem:[#allocation2 + $0xe28] sm:$0xff]  ;;  %1734 = vmatpush.msrb.mxu2 %v1186_v53  ;;  %1777 = vmatpush.msra.mxu0 %v863_v47  ;;  %v903_v53 = vld [vmem:[#allocation2 + $0x330] sm:$0xff] }
 0x129   : > { %v1122_v54 = vld [vmem:[#allocation2 + $0xa08] sm:$0xff]  ;;  %1762 = vmatpush.msrb.mxu3 %v1254_v32  ;;  %1735 = vmatmul.f32.vlgmr.msrb.gmra.mxu2 %v5085_v30  ;;  %v5281_v32 = vpop.f32.mrf.mxu1  ;;  %v963_v47 = vld [vmem:[#allocation2 + $0x510] sm:$0xff] }
 0x12a   : > { %v1250_v58 = vld [vmem:[#allocation2 + $0xe08] sm:$0xff]  ;;  %1835 = vmatpush.msra.mxu2 %v991_v48  ;;  %1705 = vmatpush.msrb.mxu1 %v1122_v54  ;;  %v1031_v48 = vld [vmem:[#allocation2 + $0x730] sm:$0xff] }
 0x12b   : > { %1763 = vmatpush.msrb.mxu3 %v1250_v58  ;;  %1778 = vmatpush.msra.mxu0 %v859_v43  ;;  %v831_v54 = vld [vmem:[#allocation2 + $0xf0] sm:$0xff] }
 0x12c   : > { %1806 = vmatpush.msra.mxu1 %v927_v44  ;;  %1836 = vmatpush.msra.mxu2 %v987_v56  ;;  %v899_v58 = vld [vmem:[#allocation2 + $0x310] sm:$0xff] }
 0x12d   : > { %1864 = vmatpush.msra.mxu3 %v1055_v0  ;;  %1779 = vmatpush.msra.mxu0 %v855_v39  ;;  %v959_v43 = vld [vmem:[#allocation2 + $0x4f0] sm:$0xff] }
 0x12e   : > { %1807 = vmatpush.msra.mxu1 %v923_v18  ;;  %1837 = vmatpush.msra.mxu2 %v983_v12  ;;  %v1027_v44 = vld [vmem:[#allocation2 + $0x710] sm:$0xff]  ;;  %v5285_v12 = vpop.f32.mrf.mxu2 }
 0x12f   : > { %1865 = vmatpush.msra.mxu3 %v1051_v37  ;;  %1706 = vmatmul.f32.vlgmr.msrb.gmra.mxu1 %v5127_v5  ;;  %v827_v56 = vld [vmem:[#allocation2 + $0xd0] sm:$0xff] }
 0x130   : > { %1764 = vmatmul.f32.vlgmr.msrb.gmra.mxu3 %v5133_v15  ;;  %1780 = vmatpush.msra.mxu0 %v851_v38  ;;  %v895_v0 = vld [vmem:[#allocation2 + $0x2f0] sm:$0xff] }
 0x131   : > { %1808 = vmatpush.msra.mxu1 %v919_v55  ;;  %1838 = vmatpush.msra.mxu2 %v979_v61  ;;  %v955_v39 = vld [vmem:[#allocation2 + $0x4d0] sm:$0xff] }
 0x132   : > { %1866 = vmatpush.msra.mxu3 %v1047_v1  ;;  %1781 = vmatpush.msra.mxu0 %v847_v3  ;;  %v1023_v18 = vld [vmem:[#allocation2 + $0x6f0] sm:$0xff]  ;;  %v5287_v1 = vpop.f32.mrf.mxu0  ;;  %v5289_v3 = vpop.f32.mrf.mxu3 }
 0x133   : > { %1809 = vmatpush.msra.mxu1 %v915_v59  ;;  %1839 = vmatpush.msra.mxu2 %v975_v52  ;;  %v823_v37 = vld [vmem:[#allocation2 + $0xb0] sm:$0xff] }
 0x134   : > { %1867 = vmatpush.msra.mxu3 %v1043_v13  ;;  %1782 = vmatpush.msra.mxu0 %v843_v51  ;;  %v891_v38 = vld [vmem:[#allocation2 + $0x2d0] sm:$0xff]  ;;  %v5293_v13 = vpop.f32.mrf.mxu1 }
 0x135   : > { %1810 = vmatpush.msra.mxu1 %v911_v2  ;;  %1840 = vmatpush.msra.mxu2 %v971_v27  ;;  %v951_v55 = vld [vmem:[#allocation2 + $0x4b0] sm:$0xff] }
 0x136   : > { %1868 = vmatpush.msra.mxu3 %v1039_v28  ;;  %1680 = vmatmul.f32.gmra.mxu0 %v5169_v14  ;;  %v1019_v61 = vld [vmem:[#allocation2 + $0x6d0] sm:$0xff] }
 0x137   : > { %1738 = vmatmul.f32.gmra.mxu2 %v5174_v31  ;;  %1783 = vmatpush.msra.mxu0 %v839_v35  ;;  %v819_v59 = vld [vmem:[#allocation2 + $0x90] sm:$0xff] }
 0x138   : > { %1811 = vmatpush.msra.mxu1 %v907_v6  ;;  %1841 = vmatpush.msra.mxu2 %v967_v17  ;;  %v887_v52 = vld [vmem:[#allocation2 + $0x2b0] sm:$0xff] }
 0x139   : > { %1869 = vmatpush.msra.mxu3 %v1035_v7  ;;  %1709 = vmatmul.f32.gmra.mxu1 %v5179_v36  ;;  %v947_v51 = vld [vmem:[#allocation2 + $0x490] sm:$0xff] }
 0x13a   : > { %1767 = vmatmul.f32.gmra.mxu3 %v5184_v41  ;;  %1784 = vmatpush.msra.mxu0 %v835_v40  ;;  %v1015_v2 = vld [vmem:[#allocation2 + $0x6b0] sm:$0xff] }
 0x13b   : > { %1812 = vmatpush.msra.mxu1 %v903_v53  ;;  %1842 = vmatpush.msra.mxu2 %v963_v47  ;;  %v815_v27 = vld [vmem:[#allocation2 + $0x70] sm:$0xff]  ;;  %v5297_v47 = vpop.f32.mrf.mxu2 }
 0x13c   : > { %1870 = vmatpush.msra.mxu3 %v1031_v48  ;;  %1785 = vmatpush.msra.mxu0 %v831_v54  ;;  %v883_v28 = vld [vmem:[#allocation2 + $0x290] sm:$0xff] }
 0x13d   : > { %1813 = vmatpush.msra.mxu1 %v899_v58  ;;  %1843 = vmatpush.msra.mxu2 %v959_v43  ;;  %v943_v35 = vld [vmem:[#allocation2 + $0x470] sm:$0xff] }
 0x13e   : > { %1871 = vmatpush.msra.mxu3 %v1027_v44  ;;  %1786 = vmatpush.msra.mxu0 %v827_v56  ;;  %v1011_v6 = vld [vmem:[#allocation2 + $0x690] sm:$0xff]  ;;  %v5299_v44 = vpop.f32.mrf.mxu0  ;;  %v5301_v56 = vpop.f32.mrf.mxu3 }
 0x13f   : > { %1814 = vmatpush.msra.mxu1 %v895_v0  ;;  %1844 = vmatpush.msra.mxu2 %v955_v39  ;;  %v811_v17 = vld [vmem:[#allocation2 + $0x50] sm:$0xff] }
 0x140   : > { %1872 = vmatpush.msra.mxu3 %v1023_v18  ;;  %1683 = vmatmul.f32.gmra.mxu0 %v5226_v34  ;;  %v879_v7 = vld [vmem:[#allocation2 + $0x270] sm:$0xff]  ;;  %v5305_v18 = vpop.f32.mrf.mxu1 }
 0x141   : > { %1741 = vmatmul.f32.gmra.mxu2 %v5232_v50  ;;  %1787 = vmatpush.msra.mxu0 %v823_v37  ;;  %v939_v40 = vld [vmem:[#allocation2 + $0x450] sm:$0xff] }
 0x142   : > { %1815 = vmatpush.msra.mxu1 %v891_v38  ;;  %1845 = vmatpush.msra.mxu2 %v951_v55  ;;  %v1007_v53 = vld [vmem:[#allocation2 + $0x670] sm:$0xff] }
 0x143   : > { %1873 = vmatpush.msra.mxu3 %v1019_v61  ;;  %1712 = vmatmul.f32.gmra.mxu1 %v5240_v62  ;;  %v807_v48 = vld [vmem:[#allocation2 + $0x30] sm:$0xff] }
 0x144   : > { %1770 = vmatmul.f32.gmra.mxu3 %v5246_v26  ;;  %1788 = vmatpush.msra.mxu0 %v819_v59  ;;  %v875_v54 = vld [vmem:[#allocation2 + $0x250] sm:$0xff] }
 0x145   : > { %1816 = vmatpush.msra.mxu1 %v887_v52  ;;  %1846 = vmatpush.msra.mxu2 %v947_v51  ;;  %v935_v58 = vld [vmem:[#allocation2 + $0x430] sm:$0xff] }
 0x146   : > { %1874 = vmatpush.msra.mxu3 %v1015_v2  ;;  %1789 = vmatpush.msra.mxu0 %v815_v27  ;;  %v1003_v43 = vld [vmem:[#allocation2 + $0x650] sm:$0xff] }
 0x147   : > { %1817 = vmatpush.msra.mxu1 %v883_v28  ;;  %1847 = vmatpush.msra.mxu2 %v943_v35  ;;  %v803_v0 = vld [vmem:[#allocation2 + $0x10] sm:$0xff]  ;;  %v5309_v35 = vpop.f32.mrf.mxu2 }
 0x148   : > { %1875 = vmatpush.msra.mxu3 %v1011_v6  ;;  %1790 = vmatpush.msra.mxu0 %v811_v17  ;;  %v871_v39 = vld [vmem:[#allocation2 + $0x230] sm:$0xff]  ;;  %6097 = vst [vmem:[#allocation21_spill] sm:$0xff] %v5309_v35 }
 0x149   : > { %1818 = vmatpush.msra.mxu1 %v879_v7  ;;  %1848 = vmatpush.msra.mxu2 %v939_v40  ;;  %v931_v37 = vld [vmem:[#allocation2 + $0x410] sm:$0xff] }
 0x14a   : > { %1876 = vmatpush.msra.mxu3 %v1007_v53  ;;  %1686 = vmatmul.f32.gmra.mxu0 %v5214_v4  ;;  %v999_v38 = vld [vmem:[#allocation2 + $0x630] sm:$0xff]  ;;  %v5311_v53 = vpop.f32.mrf.mxu0 }
 0x14b   : > { %1744 = vmatmul.f32.gmra.mxu2 %v5216_v57  ;;  %1791 = vmatpush.msra.mxu0 %v807_v48  ;;  %v1119_v55 = vld [vmem:[#allocation2 + $0x9f0] sm:$0xff]  ;;  %6098 = vst [vmem:[#allocation22_spill] sm:$0xff] %v5311_v53  ;;  %v5313_v48 = vpop.f32.mrf.mxu3 }
 0x14c   : > { %1819 = vmatpush.msra.mxu1 %v875_v54  ;;  %1849 = vmatpush.msra.mxu2 %v935_v58  ;;  %v1247_v61 = vld [vmem:[#allocation2 + $0xdf0] sm:$0xff]  ;;  %6099 = vst [vmem:[#allocation23_spill] sm:$0xff] %v5313_v48 }
 0x14d   : > { %1877 = vmatpush.msra.mxu3 %v1003_v43  ;;  %1715 = vmatmul.f32.gmra.mxu1 %v5218_v45  ;;  %v867_v59 = vld [vmem:[#allocation2 + $0x210] sm:$0xff]  ;;  %v5317_v43 = vpop.f32.mrf.mxu1 }
 0x14e   : > { %1773 = vmatmul.f32.gmra.mxu3 %v5220_v42  ;;  %1792 = vmatpush.msra.mxu0 %v803_v0  ;;  %v995_v52 = vld [vmem:[#allocation2 + $0x610] sm:$0xff]  ;;  %6100 = vst [vmem:[#allocation24_spill] sm:$0xff] %v5317_v43 }
 0x14f   : > { %1820 = vmatpush.msra.mxu1 %v871_v39  ;;  %1850 = vmatpush.msra.mxu2 %v931_v37  ;;  %v1115_v51 = vld [vmem:[#allocation2 + $0x9d0] sm:$0xff] }
 0x150   : > { %1878 = vmatpush.msra.mxu3 %v999_v38  ;;  %v1183_v2 = vld [vmem:[#allocation2 + $0xbf0] sm:$0xff]  ;;  %1893 = vmatpush.msrb.mxu0 %v1119_v55 }
 0x151   : > { %1951 = vmatpush.msrb.mxu2 %v1247_v61  ;;  %v1243_v27 = vld [vmem:[#allocation2 + $0xdd0] sm:$0xff]  ;;  %1821 = vmatpush.msra.mxu1 %v867_v59 }
 0x152   : > { %v1311_v28 = vld [vmem:[#allocation2 + $0xff0] sm:$0xff]  ;;  %1879 = vmatpush.msra.mxu3 %v995_v52  ;;  %1894 = vmatpush.msrb.mxu0 %v1115_v51 }
 0x153   : > { %1922 = vmatpush.msrb.mxu1 %v1183_v2  ;;  %v1111_v6 = vld [vmem:[#allocation2 + $0x9b0] sm:$0xff]  ;;  %1952 = vmatpush.msrb.mxu2 %v1243_v27  ;;  %v5321_v27 = vpop.f32.mrf.mxu2 }
 0x154   : > { %v1179_v17 = vld [vmem:[#allocation2 + $0xbd0] sm:$0xff]  ;;  %1980 = vmatpush.msrb.mxu3 %v1311_v28  ;;  %1793 = vmatmul.f32.vlgmr.msra.gmra.mxu0 %v4898_v10  ;;  %6101 = vst [vmem:[#allocation25_spill] sm:$0xff] %v5321_v27 }
 0x155   : > { %v1239_v7 = vld [vmem:[#allocation2 + $0xdb0] sm:$0xff]  ;;  %1851 = vmatmul.f32.vlgmr.msra.gmra.mxu2 %v4904_v11  ;;  %1895 = vmatpush.msrb.mxu0 %v1111_v6 }
 0x156   : > { %v1307_v40 = vld [vmem:[#allocation2 + $0xfd0] sm:$0xff]  ;;  %1923 = vmatpush.msrb.mxu1 %v1179_v17  ;;  %1953 = vmatpush.msrb.mxu2 %v1239_v7 }
 0x157   : > { %v1107_v54 = vld [vmem:[#allocation2 + $0x990] sm:$0xff]  ;;  %1981 = vmatpush.msrb.mxu3 %v1307_v40  ;;  %1822 = vmatmul.f32.vlgmr.msra.gmra.mxu1 %v4930_v23  ;;  %v5323_v40 = vpop.f32.mrf.mxu3 }
 0x158   : > { %v1175_v58 = vld [vmem:[#allocation2 + $0xbb0] sm:$0xff]  ;;  %1880 = vmatmul.f32.vlgmr.msra.gmra.mxu3 %v4936_v24  ;;  %1896 = vmatpush.msrb.mxu0 %v1107_v54  ;;  %6102 = vst [vmem:[#allocation26_spill] sm:$0xff] %v5323_v40  ;;  %v5325_v54 = vpop.f32.mrf.mxu0 }
 0x159   : > { %v1235_v0 = vld [vmem:[#allocation2 + $0xd90] sm:$0xff]  ;;  %1924 = vmatpush.msrb.mxu1 %v1175_v58  ;;  %6103 = vst [vmem:[#allocation27_spill] sm:$0xff] %v5325_v54 }
 0x15a   : > { %v1303_v39 = vld [vmem:[#allocation2 + $0xfb0] sm:$0xff]  ;;  %1954 = vmatpush.msrb.mxu2 %v1235_v0 }
 0x15b   : > { %v1103_v37 = vld [vmem:[#allocation2 + $0x970] sm:$0xff]  ;;  %1982 = vmatpush.msrb.mxu3 %v1303_v39  ;;  %v5329_v39 = vpop.f32.mrf.mxu1 }
 0x15c   : > { %v1171_v38 = vld [vmem:[#allocation2 + $0xb90] sm:$0xff]  ;;  %1897 = vmatpush.msrb.mxu0 %v1103_v37  ;;  %6104 = vst [vmem:[#allocation28_spill] sm:$0xff] %v5329_v39 }
 0x15d   : > { %v1231_v55 = vld [vmem:[#allocation2 + $0xd70] sm:$0xff]  ;;  %1925 = vmatpush.msrb.mxu1 %v1171_v38  ;;  %1796 = vmatmul.f32.gmra.mxu0 %v4959_v46 }
 0x15e   : > { %v1299_v61 = vld [vmem:[#allocation2 + $0xf90] sm:$0xff]  ;;  %1955 = vmatpush.msrb.mxu2 %v1231_v55 }
 0x15f   : > { %v1099_v59 = vld [vmem:[#allocation2 + $0x950] sm:$0xff]  ;;  %1983 = vmatpush.msrb.mxu3 %v1299_v61  ;;  %1854 = vmatmul.f32.gmra.mxu2 %v4966_v49 }
 0x160   : > { %v1167_v52 = vld [vmem:[#allocation2 + $0xb70] sm:$0xff]  ;;  %1898 = vmatpush.msrb.mxu0 %v1099_v59  ;;  %1825 = vmatmul.f32.gmra.mxu1 %v4983_v60 }
 0x161   : > { %v1227_v51 = vld [vmem:[#allocation2 + $0xd50] sm:$0xff]  ;;  %1926 = vmatpush.msrb.mxu1 %v1167_v52  ;;  %1883 = vmatmul.f32.gmra.mxu3 %v4988_v63 }
 0x162   : > { %v1295_v2 = vld [vmem:[#allocation2 + $0xf70] sm:$0xff]  ;;  %1956 = vmatpush.msrb.mxu2 %v1227_v51 }
 0x163   : > { %v1095_v28 = vld [vmem:[#allocation2 + $0x930] sm:$0xff]  ;;  %1984 = vmatpush.msrb.mxu3 %v1295_v2 }
 0x164   : > { %v1163_v6 = vld [vmem:[#allocation2 + $0xb50] sm:$0xff]  ;;  %1899 = vmatpush.msrb.mxu0 %v1095_v28 }
 0x165   : > { %v1223_v17 = vld [vmem:[#allocation2 + $0xd30] sm:$0xff]  ;;  %1927 = vmatpush.msrb.mxu1 %v1163_v6  ;;  %1799 = vmatmul.f32.gmra.mxu0 %v5008_v22 }
 0x166   : > { %v1291_v7 = vld [vmem:[#allocation2 + $0xf50] sm:$0xff]  ;;  %1957 = vmatpush.msrb.mxu2 %v1223_v17  ;;  %v5333_v17 = vpop.f32.mrf.mxu2 }
 0x167   : > { %v1091_v58 = vld [vmem:[#allocation2 + $0x910] sm:$0xff]  ;;  %1985 = vmatpush.msrb.mxu3 %v1291_v7  ;;  %6105 = vst [vmem:[#allocation29_spill] sm:$0xff] %v5333_v17  ;;  %1857 = vmatmul.f32.gmra.mxu2 %v5014_v25 }
 0x168   : > { %v1159_v0 = vld [vmem:[#allocation2 + $0xb30] sm:$0xff]  ;;  %1900 = vmatpush.msrb.mxu0 %v1091_v58  ;;  %1828 = vmatmul.f32.gmra.mxu1 %v5022_v16 }
 0x169   : > { %v1219_v37 = vld [vmem:[#allocation2 + $0xd10] sm:$0xff]  ;;  %1928 = vmatpush.msrb.mxu1 %v1159_v0  ;;  %1886 = vmatmul.f32.gmra.mxu3 %v5028_v20 }
 0x16a   : > { %v1287_v38 = vld [vmem:[#allocation2 + $0xf30] sm:$0xff]  ;;  %1958 = vmatpush.msrb.mxu2 %v1219_v37  ;;  %v5335_v37 = vpop.f32.mrf.mxu0 }
 0x16b   : > { %v1087_v55 = vld [vmem:[#allocation2 + $0x8f0] sm:$0xff]  ;;  %1986 = vmatpush.msrb.mxu3 %v1287_v38  ;;  %6106 = vst [vmem:[#allocation30_spill] sm:$0xff] %v5335_v37  ;;  %v5337_v38 = vpop.f32.mrf.mxu3 }
 0x16c   : > { %v1155_v61 = vld [vmem:[#allocation2 + $0xb10] sm:$0xff]  ;;  %1901 = vmatpush.msrb.mxu0 %v1087_v55  ;;  %6107 = vst [vmem:[#allocation31_spill] sm:$0xff] %v5337_v38 }
 0x16d   : > { %v1215_v59 = vld [vmem:[#allocation2 + $0xcf0] sm:$0xff]  ;;  %1929 = vmatpush.msrb.mxu1 %v1155_v61  ;;  %1802 = vmatmul.f32.gmra.mxu0 %v4996_v8 }
 0x16e   : > { %v1283_v52 = vld [vmem:[#allocation2 + $0xf10] sm:$0xff]  ;;  %1959 = vmatpush.msrb.mxu2 %v1215_v59  ;;  %v5341_v59 = vpop.f32.mrf.mxu1  ;;  %v5345_v43 = vpop.f32.mrf.mxu2 }
 0x16f   : > { %v1083_v51 = vld [vmem:[#allocation2 + $0x8d0] sm:$0xff]  ;;  %1987 = vmatpush.msrb.mxu3 %v1283_v52  ;;  %6108 = vst [vmem:[#allocation32_spill] sm:$0xff] %v5341_v59  ;;  %1860 = vmatmul.f32.gmra.mxu2 %v4998_v9 }
 0x170   : > { %v1151_v2 = vld [vmem:[#allocation2 + $0xaf0] sm:$0xff]  ;;  %1902 = vmatpush.msrb.mxu0 %v1083_v51  ;;  %6109 = vst [vmem:[#allocation33_spill] sm:$0xff] %v5345_v43  ;;  %1831 = vmatmul.f32.gmra.mxu1 %v5000_v19 }
 0x171   : > { %v1211_v28 = vld [vmem:[#allocation2 + $0xcd0] sm:$0xff]  ;;  %1930 = vmatpush.msrb.mxu1 %v1151_v2  ;;  %1889 = vmatmul.f32.gmra.mxu3 %v5002_v21 }
 0x172   : > { %v1279_v6 = vld [vmem:[#allocation2 + $0xef0] sm:$0xff]  ;;  %1960 = vmatpush.msrb.mxu2 %v1211_v28 }
 0x173   : > { %v1079_v7 = vld [vmem:[#allocation2 + $0x8b0] sm:$0xff]  ;;  %1988 = vmatpush.msrb.mxu3 %v1279_v6 }
 0x174   : > { %v1147_v40 = vld [vmem:[#allocation2 + $0xad0] sm:$0xff]  ;;  %1903 = vmatpush.msrb.mxu0 %v1079_v7 }
 0x175   : > { %v1207_v58 = vld [vmem:[#allocation2 + $0xcb0] sm:$0xff]  ;;  %1931 = vmatpush.msrb.mxu1 %v1147_v40 }
 0x176   : > { %v1275_v0 = vld [vmem:[#allocation2 + $0xed0] sm:$0xff]  ;;  %1961 = vmatpush.msrb.mxu2 %v1207_v58  ;;  %v5357_v17 = vpop.f32.mrf.mxu2 }
 0x177   : > { %v1075_v55 = vld [vmem:[#allocation2 + $0x890] sm:$0xff]  ;;  %1989 = vmatpush.msrb.mxu3 %v1275_v0  ;;  %6113 = vst [vmem:[#allocation37_spill] sm:$0xff] %v5357_v17 }
 0x178   : > { %v1143_v61 = vld [vmem:[#allocation2 + $0xab0] sm:$0xff]  ;;  %1904 = vmatpush.msrb.mxu0 %v1075_v55 }
 0x179   : > { %v1203_v52 = vld [vmem:[#allocation2 + $0xc90] sm:$0xff]  ;;  %1932 = vmatpush.msrb.mxu1 %v1143_v61 }
 0x17a   : > { %v1271_v51 = vld [vmem:[#allocation2 + $0xeb0] sm:$0xff]  ;;  %1962 = vmatpush.msrb.mxu2 %v1203_v52  ;;  %v5347_v52 = vpop.f32.mrf.mxu0 }
 0x17b   : > { %v1071_v2 = vld [vmem:[#allocation2 + $0x870] sm:$0xff]  ;;  %1990 = vmatpush.msrb.mxu3 %v1271_v51  ;;  %6110 = vst [vmem:[#allocation34_spill] sm:$0xff] %v5347_v52  ;;  %v5349_v51 = vpop.f32.mrf.mxu3  ;;  %v924_v52 = vld [vmem:[#allocation2 + $0x3d8] sm:$0xff] }
 0x17c   : > { %v1139_v28 = vld [vmem:[#allocation2 + $0xa90] sm:$0xff]  ;;  %1905 = vmatpush.msrb.mxu0 %v1071_v2  ;;  %6111 = vst [vmem:[#allocation35_spill] sm:$0xff] %v5349_v51 }
 0x17d   : > { %v1199_v6 = vld [vmem:[#allocation2 + $0xc70] sm:$0xff]  ;;  %1933 = vmatpush.msrb.mxu1 %v1139_v28  ;;  %v5353_v28 = vpop.f32.mrf.mxu1 }
 0x17e   : > { %v1267_v27 = vld [vmem:[#allocation2 + $0xe90] sm:$0xff]  ;;  %1963 = vmatpush.msrb.mxu2 %v1199_v6  ;;  %6112 = vst [vmem:[#allocation36_spill] sm:$0xff] %v5353_v28  ;;  %v856_v28 = vld [vmem:[#allocation2 + $0x1b8] sm:$0xff] }
 0x17f   : > { %v1067_v40 = vld [vmem:[#allocation2 + $0x850] sm:$0xff]  ;;  %1991 = vmatpush.msrb.mxu3 %v1267_v27 }
 0x180   : > { %v1135_v7 = vld [vmem:[#allocation2 + $0xa70] sm:$0xff]  ;;  %1906 = vmatpush.msrb.mxu0 %v1067_v40 }
 0x181   : > { %v1195_v58 = vld [vmem:[#allocation2 + $0xc50] sm:$0xff]  ;;  %1934 = vmatpush.msrb.mxu1 %v1135_v7  ;;  %v864_v7 = vld [vmem:[#allocation2 + $0x1f8] sm:$0xff] }
 0x182   : > { %v1263_v0 = vld [vmem:[#allocation2 + $0xe70] sm:$0xff]  ;;  %1964 = vmatpush.msrb.mxu2 %v1195_v58  ;;  %v992_v58 = vld [vmem:[#allocation2 + $0x5f8] sm:$0xff] }
 0x183   : > { %v1063_v53 = vld [vmem:[#allocation2 + $0x830] sm:$0xff]  ;;  %1992 = vmatpush.msrb.mxu3 %v1263_v0 }
 0x184   : > { %v1131_v38 = vld [vmem:[#allocation2 + $0xa50] sm:$0xff]  ;;  %1907 = vmatpush.msrb.mxu0 %v1063_v53  ;;  %v860_v53 = vld [vmem:[#allocation2 + $0x1d8] sm:$0xff] }
 0x185   : > { %v1191_v55 = vld [vmem:[#allocation2 + $0xc30] sm:$0xff]  ;;  %1935 = vmatpush.msrb.mxu1 %v1131_v38  ;;  %v928_v38 = vld [vmem:[#allocation2 + $0x3f8] sm:$0xff]  ;;  %v5363_v43 = vpop.f32.mrf.mxu1 }
 0x186   : > { %v1259_v61 = vld [vmem:[#allocation2 + $0xe50] sm:$0xff]  ;;  %1965 = vmatpush.msrb.mxu2 %v1191_v55  ;;  %v988_v55 = vld [vmem:[#allocation2 + $0x5d8] sm:$0xff]  ;;  %6116 = vst [vmem:[#allocation40_spill] sm:$0xff] %v5363_v43  ;;  %v5369_v43 = vpop.f32.mrf.mxu2 }
 0x187   : > { %v1059_v27 = vld [vmem:[#allocation2 + $0x810] sm:$0xff]  ;;  %1993 = vmatpush.msrb.mxu3 %v1259_v61  ;;  %v1056_v61 = vld [vmem:[#allocation2 + $0x7f8] sm:$0xff]  ;;  %6117 = vst [vmem:[#allocation41_spill] sm:$0xff] %v5369_v43 }
 0x188   : > { %v1127_v2 = vld [vmem:[#allocation2 + $0xa30] sm:$0xff]  ;;  %1908 = vmatpush.msrb.mxu0 %v1059_v27  ;;  %v984_v27 = vld [vmem:[#allocation2 + $0x5b8] sm:$0xff] }
 0x189   : > { %v1187_v6 = vld [vmem:[#allocation2 + $0xc10] sm:$0xff]  ;;  %1936 = vmatpush.msrb.mxu1 %v1127_v2  ;;  %v1052_v2 = vld [vmem:[#allocation2 + $0x7d8] sm:$0xff]  ;;  %1909 = vmatmul.f32.vlgmr.msrb.gmra.mxu0 %v5079_v29 }
 0x18a   : > { %v1255_v40 = vld [vmem:[#allocation2 + $0xe30] sm:$0xff]  ;;  %1966 = vmatpush.msrb.mxu2 %v1187_v6  ;;  %2009 = vmatpush.msra.mxu0 %v864_v7  ;;  %v5359_v6 = vpop.f32.mrf.mxu0  ;;  %v852_v7 = vld [vmem:[#allocation2 + $0x198] sm:$0xff] }
 0x18b   : > { %v1123_v0 = vld [vmem:[#allocation2 + $0xa10] sm:$0xff]  ;;  %1994 = vmatpush.msrb.mxu3 %v1255_v40  ;;  %6114 = vst [vmem:[#allocation38_spill] sm:$0xff] %v5359_v6  ;;  %v5361_v40 = vpop.f32.mrf.mxu3  ;;  %1967 = vmatmul.f32.vlgmr.msrb.gmra.mxu2 %v5085_v30 }
 0x18c   : > { %v1251_v51 = vld [vmem:[#allocation2 + $0xe10] sm:$0xff]  ;;  %2067 = vmatpush.msra.mxu2 %v992_v58  ;;  %1937 = vmatpush.msrb.mxu1 %v1123_v0  ;;  %6115 = vst [vmem:[#allocation39_spill] sm:$0xff] %v5361_v40  ;;  %v920_v58 = vld [vmem:[#allocation2 + $0x3b8] sm:$0xff] }
 0x18d   : > { %1995 = vmatpush.msrb.mxu3 %v1251_v51  ;;  %2010 = vmatpush.msra.mxu0 %v860_v53  ;;  %v980_v51 = vld [vmem:[#allocation2 + $0x598] sm:$0xff]  ;;  %v5375_v17 = vpop.f32.mrf.mxu1 }
 0x18e   : > { %2038 = vmatpush.msra.mxu1 %v928_v38  ;;  %2068 = vmatpush.msra.mxu2 %v988_v55  ;;  %v1048_v0 = vld [vmem:[#allocation2 + $0x7b8] sm:$0xff] }
 0x18f   : > { %2096 = vmatpush.msra.mxu3 %v1056_v61  ;;  %2011 = vmatpush.msra.mxu0 %v856_v28  ;;  %v848_v53 = vld [vmem:[#allocation2 + $0x178] sm:$0xff] }
 0x190   : > { %2039 = vmatpush.msra.mxu1 %v924_v52  ;;  %2069 = vmatpush.msra.mxu2 %v984_v27  ;;  %v916_v38 = vld [vmem:[#allocation2 + $0x398] sm:$0xff] }
 0x191   : > { %2097 = vmatpush.msra.mxu3 %v1052_v2  ;;  %2012 = vmatpush.msra.mxu0 %v852_v7  ;;  %v976_v28 = vld [vmem:[#allocation2 + $0x578] sm:$0xff] }
 0x192   : > { %2040 = vmatpush.msra.mxu1 %v920_v58  ;;  %2070 = vmatpush.msra.mxu2 %v980_v51  ;;  %v1044_v52 = vld [vmem:[#allocation2 + $0x798] sm:$0xff]  ;;  %v5373_v40 = vpop.f32.mrf.mxu0 }
 0x193   : > { %2098 = vmatpush.msra.mxu3 %v1048_v0  ;;  %1938 = vmatmul.f32.vlgmr.msrb.gmra.mxu1 %v5127_v5  ;;  %v844_v55 = vld [vmem:[#allocation2 + $0x158] sm:$0xff]  ;;  %v5371_v6 = vpop.f32.mrf.mxu3 }
 0x194   : > { %1996 = vmatmul.f32.vlgmr.msrb.gmra.mxu3 %v5133_v15  ;;  %v912_v61 = vld [vmem:[#allocation2 + $0x378] sm:$0xff]  ;;  %2013 = vmatpush.msra.mxu0 %v848_v53  ;;  %6118 = vst [vmem:[#allocation42_spill] sm:$0xff] %v5371_v6  ;;  %v5381_v6 = vpop.f32.mrf.mxu2 }
 0x195   : > { %2041 = vmatpush.msra.mxu1 %v916_v38  ;;  %v972_v27 = vld [vmem:[#allocation2 + $0x558] sm:$0xff]  ;;  %2071 = vmatpush.msra.mxu2 %v976_v28  ;;  %v5387_v48 = vpop.f32.mrf.mxu1 }
 0x196   : > { %v1040_v2 = vld [vmem:[#allocation2 + $0x778] sm:$0xff]  ;;  %2099 = vmatpush.msra.mxu3 %v1044_v52  ;;  %2014 = vmatpush.msra.mxu0 %v844_v55 }
 0x197   : > { %v840_v7 = vld [vmem:[#allocation2 + $0x138] sm:$0xff]  ;;  %2042 = vmatpush.msra.mxu1 %v912_v61  ;;  %2072 = vmatpush.msra.mxu2 %v972_v27 }
 0x198   : > { %v908_v58 = vld [vmem:[#allocation2 + $0x358] sm:$0xff]  ;;  %2100 = vmatpush.msra.mxu3 %v1040_v2  ;;  %2015 = vmatpush.msra.mxu0 %v840_v7 }
 0x199   : > { %v968_v51 = vld [vmem:[#allocation2 + $0x538] sm:$0xff]  ;;  %2043 = vmatpush.msra.mxu1 %v908_v58  ;;  %1912 = vmatmul.f32.gmra.mxu0 %v5169_v14 }
 0x19a   : > { %v1036_v0 = vld [vmem:[#allocation2 + $0x758] sm:$0xff]  ;;  %2073 = vmatpush.msra.mxu2 %v968_v51  ;;  %v5383_v43 = vpop.f32.mrf.mxu0 }
 0x19b   : > { %v836_v53 = vld [vmem:[#allocation2 + $0x118] sm:$0xff]  ;;  %2101 = vmatpush.msra.mxu3 %v1036_v0  ;;  %1970 = vmatmul.f32.gmra.mxu2 %v5174_v31  ;;  %v5385_v39 = vpop.f32.mrf.mxu3 }
 0x19c   : > { %v904_v38 = vld [vmem:[#allocation2 + $0x338] sm:$0xff]  ;;  %2016 = vmatpush.msra.mxu0 %v836_v53  ;;  %1941 = vmatmul.f32.gmra.mxu1 %v5179_v36  ;;  %6119 = vst [vmem:[#allocation43_spill] sm:$0xff] %v5385_v39  ;;  %v5393_v59 = vpop.f32.mrf.mxu2 }
 0x19d   : > { %v964_v28 = vld [vmem:[#allocation2 + $0x518] sm:$0xff]  ;;  %2044 = vmatpush.msra.mxu1 %v904_v38  ;;  %1999 = vmatmul.f32.gmra.mxu3 %v5184_v41  ;;  %v5399_v35 = vpop.f32.mrf.mxu1 }
 0x19e   : > { %v1032_v52 = vld [vmem:[#allocation2 + $0x738] sm:$0xff]  ;;  %2074 = vmatpush.msra.mxu2 %v964_v28  ;;  %6122 = vst [vmem:[#allocation46_spill] sm:$0xff] %v5399_v35 }
 0x19f   : > { %v832_v55 = vld [vmem:[#allocation2 + $0xf8] sm:$0xff]  ;;  %2102 = vmatpush.msra.mxu3 %v1032_v52 }
 0x1a0   : > { %v900_v61 = vld [vmem:[#allocation2 + $0x318] sm:$0xff]  ;;  %2017 = vmatpush.msra.mxu0 %v832_v55 }
 0x1a1   : > { %v960_v27 = vld [vmem:[#allocation2 + $0x4f8] sm:$0xff]  ;;  %2045 = vmatpush.msra.mxu1 %v900_v61  ;;  %1915 = vmatmul.f32.gmra.mxu0 %v5226_v34 }
 0x1a2   : > { %v1028_v2 = vld [vmem:[#allocation2 + $0x718] sm:$0xff]  ;;  %2075 = vmatpush.msra.mxu2 %v960_v27  ;;  %v5395_v39 = vpop.f32.mrf.mxu0 }
 0x1a3   : > { %v828_v7 = vld [vmem:[#allocation2 + $0xd8] sm:$0xff]  ;;  %2103 = vmatpush.msra.mxu3 %v1028_v2  ;;  %1973 = vmatmul.f32.gmra.mxu2 %v5232_v50  ;;  %6120 = vst [vmem:[#allocation44_spill] sm:$0xff] %v5395_v39  ;;  %v5397_v54 = vpop.f32.mrf.mxu3 }
 0x1a4   : > { %v896_v58 = vld [vmem:[#allocation2 + $0x2f8] sm:$0xff]  ;;  %2018 = vmatpush.msra.mxu0 %v828_v7  ;;  %1944 = vmatmul.f32.gmra.mxu1 %v5240_v62  ;;  %6121 = vst [vmem:[#allocation45_spill] sm:$0xff] %v5397_v54  ;;  %v5405_v35 = vpop.f32.mrf.mxu2 }
 0x1a5   : > { %v956_v51 = vld [vmem:[#allocation2 + $0x4d8] sm:$0xff]  ;;  %2046 = vmatpush.msra.mxu1 %v896_v58  ;;  %2002 = vmatmul.f32.gmra.mxu3 %v5246_v26  ;;  %6123 = vst [vmem:[#allocation47_spill] sm:$0xff] %v5405_v35  ;;  %v5411_v37 = vpop.f32.mrf.mxu1 }
 0x1a6   : > { %v1024_v0 = vld [vmem:[#allocation2 + $0x6f8] sm:$0xff]  ;;  %2076 = vmatpush.msra.mxu2 %v956_v51  ;;  %6126 = vst [vmem:[#allocation50_spill] sm:$0xff] %v5411_v37 }
 0x1a7   : > { %v824_v53 = vld [vmem:[#allocation2 + $0xb8] sm:$0xff]  ;;  %2104 = vmatpush.msra.mxu3 %v1024_v0 }
 0x1a8   : > { %v892_v38 = vld [vmem:[#allocation2 + $0x2d8] sm:$0xff]  ;;  %2019 = vmatpush.msra.mxu0 %v824_v53 }
 0x1a9   : > { %v952_v28 = vld [vmem:[#allocation2 + $0x4b8] sm:$0xff]  ;;  %2047 = vmatpush.msra.mxu1 %v892_v38  ;;  %1918 = vmatmul.f32.gmra.mxu0 %v5214_v4 }
 0x1aa   : > { %v1020_v52 = vld [vmem:[#allocation2 + $0x6d8] sm:$0xff]  ;;  %2077 = vmatpush.msra.mxu2 %v952_v28  ;;  %v5407_v39 = vpop.f32.mrf.mxu0 }
 0x1ab   : > { %v820_v55 = vld [vmem:[#allocation2 + $0x98] sm:$0xff]  ;;  %2105 = vmatpush.msra.mxu3 %v1020_v52  ;;  %1976 = vmatmul.f32.gmra.mxu2 %v5216_v57  ;;  %6124 = vst [vmem:[#allocation48_spill] sm:$0xff] %v5407_v39  ;;  %v5409_v54 = vpop.f32.mrf.mxu3 }
 0x1ac   : > { %v888_v61 = vld [vmem:[#allocation2 + $0x2b8] sm:$0xff]  ;;  %2020 = vmatpush.msra.mxu0 %v820_v55  ;;  %1947 = vmatmul.f32.gmra.mxu1 %v5218_v45  ;;  %6125 = vst [vmem:[#allocation49_spill] sm:$0xff] %v5409_v54  ;;  %v5417_v37 = vpop.f32.mrf.mxu2 }
 0x1ad   : > { %v948_v27 = vld [vmem:[#allocation2 + $0x498] sm:$0xff]  ;;  %2048 = vmatpush.msra.mxu1 %v888_v61  ;;  %2005 = vmatmul.f32.gmra.mxu3 %v5220_v42  ;;  %6127 = vst [vmem:[#allocation51_spill] sm:$0xff] %v5417_v37  ;;  %v5423_v35 = vpop.f32.mrf.mxu1 }
 0x1ae   : > { %v1016_v2 = vld [vmem:[#allocation2 + $0x6b8] sm:$0xff]  ;;  %2078 = vmatpush.msra.mxu2 %v948_v27  ;;  %6130 = vst [vmem:[#allocation54_spill] sm:$0xff] %v5423_v35 }
 0x1af   : > { %v816_v7 = vld [vmem:[#allocation2 + $0x78] sm:$0xff]  ;;  %2106 = vmatpush.msra.mxu3 %v1016_v2 }
 0x1b0   : > { %v884_v58 = vld [vmem:[#allocation2 + $0x298] sm:$0xff]  ;;  %2021 = vmatpush.msra.mxu0 %v816_v7 }
 0x1b1   : > { %v944_v51 = vld [vmem:[#allocation2 + $0x478] sm:$0xff]  ;;  %2049 = vmatpush.msra.mxu1 %v884_v58 }
 0x1b2   : > { %v1012_v0 = vld [vmem:[#allocation2 + $0x698] sm:$0xff]  ;;  %2079 = vmatpush.msra.mxu2 %v944_v51  ;;  %v5421_v54 = vpop.f32.mrf.mxu0 }
 0x1b3   : > { %v812_v53 = vld [vmem:[#allocation2 + $0x58] sm:$0xff]  ;;  %2107 = vmatpush.msra.mxu3 %v1012_v0  ;;  %v5419_v39 = vpop.f32.mrf.mxu3  ;;  %6129 = vst [vmem:[#allocation53_spill] sm:$0xff] %v5421_v54 }
 0x1b4   : > { %v880_v38 = vld [vmem:[#allocation2 + $0x278] sm:$0xff]  ;;  %2022 = vmatpush.msra.mxu0 %v812_v53  ;;  %6128 = vst [vmem:[#allocation52_spill] sm:$0xff] %v5419_v39  ;;  %v5429_v39 = vpop.f32.mrf.mxu2 }
 0x1b5   : > { %v940_v28 = vld [vmem:[#allocation2 + $0x458] sm:$0xff]  ;;  %2050 = vmatpush.msra.mxu1 %v880_v38  ;;  %6131 = vst [vmem:[#allocation55_spill] sm:$0xff] %v5429_v39  ;;  %v2778_v39 = vld [vmem:[#allocation4 + $0x780] sm:$0xff] }
 0x1b6   : > { %v1008_v52 = vld [vmem:[#allocation2 + $0x678] sm:$0xff]  ;;  %2080 = vmatpush.msra.mxu2 %v940_v28  ;;  %v5435_v54 = vpop.f32.mrf.mxu1 }
 0x1b7   : > { %v808_v55 = vld [vmem:[#allocation2 + $0x38] sm:$0xff]  ;;  %2108 = vmatpush.msra.mxu3 %v1008_v52 }
 0x1b8   : > { %v876_v61 = vld [vmem:[#allocation2 + $0x258] sm:$0xff]  ;;  %2023 = vmatpush.msra.mxu0 %v808_v55 }
 0x1b9   : > { %v936_v27 = vld [vmem:[#allocation2 + $0x438] sm:$0xff]  ;;  %2051 = vmatpush.msra.mxu1 %v876_v61 }
 0x1ba   : > { %v1004_v2 = vld [vmem:[#allocation2 + $0x658] sm:$0xff]  ;;  %2081 = vmatpush.msra.mxu2 %v936_v27  ;;  %v5431_v37 = vpop.f32.mrf.mxu0 }
 0x1bb   : > { %v804_v7 = vld [vmem:[#allocation2 + $0x18] sm:$0xff]  ;;  %2109 = vmatpush.msra.mxu3 %v1004_v2  ;;  %v5433_v35 = vpop.f32.mrf.mxu3 }
 0x1bc   : > { %v872_v58 = vld [vmem:[#allocation2 + $0x238] sm:$0xff]  ;;  %2024 = vmatpush.msra.mxu0 %v804_v7  ;;  %6132 = vst [vmem:[#allocation56_spill] sm:$0xff] %v5433_v35 }
 0x1bd   : > { %v932_v51 = vld [vmem:[#allocation2 + $0x418] sm:$0xff]  ;;  %2052 = vmatpush.msra.mxu1 %v872_v58  ;;  %2025 = vmatmul.f32.vlgmr.msra.gmra.mxu0 %v4898_v10 }
 0x1be   : > { %v1000_v0 = vld [vmem:[#allocation2 + $0x638] sm:$0xff]  ;;  %2082 = vmatpush.msra.mxu2 %v932_v51 }
 0x1bf   : > { %v1120_v53 = vld [vmem:[#allocation2 + $0x9f8] sm:$0xff]  ;;  %2110 = vmatpush.msra.mxu3 %v1000_v0  ;;  %2083 = vmatmul.f32.vlgmr.msra.gmra.mxu2 %v4904_v11 }
 0x1c0   : > { %v1248_v38 = vld [vmem:[#allocation2 + $0xdf8] sm:$0xff]  ;;  %2125 = vmatpush.msrb.mxu0 %v1120_v53 }
 0x1c1   : > { %v868_v28 = vld [vmem:[#allocation2 + $0x218] sm:$0xff]  ;;  %2183 = vmatpush.msrb.mxu2 %v1248_v38 }
 0x1c2   : > { %v996_v52 = vld [vmem:[#allocation2 + $0x618] sm:$0xff]  ;;  %2053 = vmatpush.msra.mxu1 %v868_v28 }
 0x1c3   : > { %v1116_v55 = vld [vmem:[#allocation2 + $0x9d8] sm:$0xff]  ;;  %2111 = vmatpush.msra.mxu3 %v996_v52  ;;  %2054 = vmatmul.f32.vlgmr.msra.gmra.mxu1 %v4930_v23 }
 0x1c4   : > { %v1184_v61 = vld [vmem:[#allocation2 + $0xbf8] sm:$0xff]  ;;  %2126 = vmatpush.msrb.mxu0 %v1116_v55  ;;  %2112 = vmatmul.f32.vlgmr.msra.gmra.mxu3 %v4936_v24 }
 0x1c5   : > { %v1244_v27 = vld [vmem:[#allocation2 + $0xdd8] sm:$0xff]  ;;  %2154 = vmatpush.msrb.mxu1 %v1184_v61  ;;  %2028 = vmatmul.f32.gmra.mxu0 %v4959_v46 }
 0x1c6   : > { %v1312_v2 = vld [vmem:[#allocation2 + $0xff8] sm:$0xff]  ;;  %2184 = vmatpush.msrb.mxu2 %v1244_v27 }
 0x1c7   : > { %v1112_v7 = vld [vmem:[#allocation2 + $0x9b8] sm:$0xff]  ;;  %2212 = vmatpush.msrb.mxu3 %v1312_v2  ;;  %2086 = vmatmul.f32.gmra.mxu2 %v4966_v49 }
 0x1c8   : > { %v1180_v58 = vld [vmem:[#allocation2 + $0xbd8] sm:$0xff]  ;;  %2127 = vmatpush.msrb.mxu0 %v1112_v7 }
 0x1c9   : > { %v1240_v51 = vld [vmem:[#allocation2 + $0xdb8] sm:$0xff]  ;;  %2155 = vmatpush.msrb.mxu1 %v1180_v58 }
 0x1ca   : > { %v1308_v0 = vld [vmem:[#allocation2 + $0xfd8] sm:$0xff]  ;;  %2185 = vmatpush.msrb.mxu2 %v1240_v51 }
 0x1cb   : > { %v1108_v53 = vld [vmem:[#allocation2 + $0x998] sm:$0xff]  ;;  %2213 = vmatpush.msrb.mxu3 %v1308_v0  ;;  %2057 = vmatmul.f32.gmra.mxu1 %v4983_v60 }
 0x1cc   : > { %v1176_v38 = vld [vmem:[#allocation2 + $0xbb8] sm:$0xff]  ;;  %2128 = vmatpush.msrb.mxu0 %v1108_v53  ;;  %2115 = vmatmul.f32.gmra.mxu3 %v4988_v63 }
 0x1cd   : > { %v1236_v28 = vld [vmem:[#allocation2 + $0xd98] sm:$0xff]  ;;  %2156 = vmatpush.msrb.mxu1 %v1176_v38  ;;  %2031 = vmatmul.f32.gmra.mxu0 %v5008_v22 }
 0x1ce   : > { %v1304_v52 = vld [vmem:[#allocation2 + $0xfb8] sm:$0xff]  ;;  %2186 = vmatpush.msrb.mxu2 %v1236_v28 }
 0x1cf   : > { %v1104_v55 = vld [vmem:[#allocation2 + $0x978] sm:$0xff]  ;;  %2214 = vmatpush.msrb.mxu3 %v1304_v52  ;;  %2089 = vmatmul.f32.gmra.mxu2 %v5014_v25 }
 0x1d0   : > { %v1172_v61 = vld [vmem:[#allocation2 + $0xb98] sm:$0xff]  ;;  %2129 = vmatpush.msrb.mxu0 %v1104_v55 }
 0x1d1   : > { %v1232_v27 = vld [vmem:[#allocation2 + $0xd78] sm:$0xff]  ;;  %2157 = vmatpush.msrb.mxu1 %v1172_v61 }
 0x1d2   : > { %v1300_v2 = vld [vmem:[#allocation2 + $0xf98] sm:$0xff]  ;;  %2187 = vmatpush.msrb.mxu2 %v1232_v27 }
 0x1d3   : > { %v1100_v7 = vld [vmem:[#allocation2 + $0x958] sm:$0xff]  ;;  %2215 = vmatpush.msrb.mxu3 %v1300_v2  ;;  %2060 = vmatmul.f32.gmra.mxu1 %v5022_v16  ;;  %v5443_v16 = vpop.f32.mrf.mxu0 }
 0x1d4   : > { %v1168_v58 = vld [vmem:[#allocation2 + $0xb78] sm:$0xff]  ;;  %2130 = vmatpush.msrb.mxu0 %v1100_v7  ;;  %2118 = vmatmul.f32.gmra.mxu3 %v5028_v20  ;;  %6133 = vst [vmem:[#allocation57_spill] sm:$0xff] %v5443_v16  ;;  %v5445_v20 = vpop.f32.mrf.mxu3  ;;  %v2578_v16 = vld [vmem:[#allocation4 + $0x140] sm:$0xff] }
 0x1d5   : > { %v1228_v51 = vld [vmem:[#allocation2 + $0xd58] sm:$0xff]  ;;  %2158 = vmatpush.msrb.mxu1 %v1168_v58  ;;  %6134 = vst [vmem:[#allocation58_spill] sm:$0xff] %v5445_v20  ;;  %2034 = vmatmul.f32.gmra.mxu0 %v4996_v8  ;;  %v2664_v8 = vld [vmem:[#allocation4 + $0x3f0] sm:$0xff] }
 0x1d6   : > { %v1296_v0 = vld [vmem:[#allocation2 + $0xf78] sm:$0xff]  ;;  %2188 = vmatpush.msrb.mxu2 %v1228_v51  ;;  %v2544_v20 = vld [vmem:[#allocation4 + $0x30] sm:$0xff] }
 0x1d7   : > { %v1096_v53 = vld [vmem:[#allocation2 + $0x938] sm:$0xff]  ;;  %2216 = vmatpush.msrb.mxu3 %v1296_v0  ;;  %2092 = vmatmul.f32.gmra.mxu2 %v4998_v9  ;;  %v2564_v9 = vld [vmem:[#allocation4 + $0xd0] sm:$0xff] }
 0x1d8   : > { %v1164_v38 = vld [vmem:[#allocation2 + $0xb58] sm:$0xff]  ;;  %2131 = vmatpush.msrb.mxu0 %v1096_v53 }
 0x1d9   : > { %v1224_v28 = vld [vmem:[#allocation2 + $0xd38] sm:$0xff]  ;;  %2159 = vmatpush.msrb.mxu1 %v1164_v38 }
 0x1da   : > { %v1292_v52 = vld [vmem:[#allocation2 + $0xf58] sm:$0xff]  ;;  %2189 = vmatpush.msrb.mxu2 %v1224_v28 }
 0x1db   : > { %v1092_v55 = vld [vmem:[#allocation2 + $0x918] sm:$0xff]  ;;  %2217 = vmatpush.msrb.mxu3 %v1292_v52  ;;  %2063 = vmatmul.f32.gmra.mxu1 %v5000_v19 }
 0x1dc   : > { %v1160_v61 = vld [vmem:[#allocation2 + $0xb38] sm:$0xff]  ;;  %2132 = vmatpush.msrb.mxu0 %v1092_v55  ;;  %2121 = vmatmul.f32.gmra.mxu3 %v5002_v21  ;;  %v5457_v19 = vpop.f32.mrf.mxu3  ;;  %v2626_v21 = vld [vmem:[#allocation4 + $0x2c0] sm:$0xff] }
 0x1dd   : > { %v1220_v27 = vld [vmem:[#allocation2 + $0xd18] sm:$0xff]  ;;  %2160 = vmatpush.msrb.mxu1 %v1160_v61  ;;  %6138 = vst [vmem:[#allocation62_spill] sm:$0xff] %v5457_v19  ;;  %v2652_v19 = vld [vmem:[#allocation4 + $0x390] sm:$0xff] }
 0x1de   : > { %v1288_v2 = vld [vmem:[#allocation2 + $0xf38] sm:$0xff]  ;;  %2190 = vmatpush.msrb.mxu2 %v1220_v27 }
 0x1df   : > { %v1088_v7 = vld [vmem:[#allocation2 + $0x8f8] sm:$0xff]  ;;  %2218 = vmatpush.msrb.mxu3 %v1288_v2 }
 0x1e0   : > { %v1156_v58 = vld [vmem:[#allocation2 + $0xb18] sm:$0xff]  ;;  %2133 = vmatpush.msrb.mxu0 %v1088_v7 }
 0x1e1   : > { %v1216_v51 = vld [vmem:[#allocation2 + $0xcf8] sm:$0xff]  ;;  %2161 = vmatpush.msrb.mxu1 %v1156_v58 }
 0x1e2   : > { %v1284_v0 = vld [vmem:[#allocation2 + $0xf18] sm:$0xff]  ;;  %2191 = vmatpush.msrb.mxu2 %v1216_v51 }
 0x1e3   : > { %v1084_v53 = vld [vmem:[#allocation2 + $0x8d8] sm:$0xff]  ;;  %2219 = vmatpush.msrb.mxu3 %v1284_v0 }
 0x1e4   : > { %v1152_v38 = vld [vmem:[#allocation2 + $0xaf8] sm:$0xff]  ;;  %2134 = vmatpush.msrb.mxu0 %v1084_v53 }
 0x1e5   : > { %v1212_v28 = vld [vmem:[#allocation2 + $0xcd8] sm:$0xff]  ;;  %2162 = vmatpush.msrb.mxu1 %v1152_v38 }
 0x1e6   : > { %v1280_v52 = vld [vmem:[#allocation2 + $0xef8] sm:$0xff]  ;;  %2192 = vmatpush.msrb.mxu2 %v1212_v28 }
 0x1e7   : > { %v1080_v55 = vld [vmem:[#allocation2 + $0x8b8] sm:$0xff]  ;;  %2220 = vmatpush.msrb.mxu3 %v1280_v52 }
 0x1e8   : > { %v1148_v61 = vld [vmem:[#allocation2 + $0xad8] sm:$0xff]  ;;  %2135 = vmatpush.msrb.mxu0 %v1080_v55 }
 0x1e9   : > { %v1208_v27 = vld [vmem:[#allocation2 + $0xcb8] sm:$0xff]  ;;  %2163 = vmatpush.msrb.mxu1 %v1148_v61 }
 0x1ea   : > { %v1276_v2 = vld [vmem:[#allocation2 + $0xed8] sm:$0xff]  ;;  %2193 = vmatpush.msrb.mxu2 %v1208_v27 }
 0x1eb   : > { %v1076_v7 = vld [vmem:[#allocation2 + $0x898] sm:$0xff]  ;;  %2221 = vmatpush.msrb.mxu3 %v1276_v2 }
 0x1ec   : > { %v1144_v58 = vld [vmem:[#allocation2 + $0xab8] sm:$0xff]  ;;  %2136 = vmatpush.msrb.mxu0 %v1076_v7  ;;  %v5441_v7 = vpop.f32.mrf.mxu2 }
 0x1ed   : > { %v1204_v51 = vld [vmem:[#allocation2 + $0xc98] sm:$0xff]  ;;  %2164 = vmatpush.msrb.mxu1 %v1144_v58 }
 0x1ee   : > { %v1272_v0 = vld [vmem:[#allocation2 + $0xeb8] sm:$0xff]  ;;  %2194 = vmatpush.msrb.mxu2 %v1204_v51 }
 0x1ef   : > { %v1072_v53 = vld [vmem:[#allocation2 + $0x878] sm:$0xff]  ;;  %2222 = vmatpush.msrb.mxu3 %v1272_v0 }
 0x1f0   : > { %v1140_v38 = vld [vmem:[#allocation2 + $0xa98] sm:$0xff]  ;;  %2137 = vmatpush.msrb.mxu0 %v1072_v53 }
 0x1f1   : > { %v1200_v28 = vld [vmem:[#allocation2 + $0xc78] sm:$0xff]  ;;  %2165 = vmatpush.msrb.mxu1 %v1140_v38 }
 0x1f2   : > { %v1268_v52 = vld [vmem:[#allocation2 + $0xe98] sm:$0xff]  ;;  %2195 = vmatpush.msrb.mxu2 %v1200_v28 }
 0x1f3   : > { %v1068_v55 = vld [vmem:[#allocation2 + $0x858] sm:$0xff]  ;;  %2223 = vmatpush.msrb.mxu3 %v1268_v52  ;;  %v5447_v52 = vpop.f32.mrf.mxu1 }
 0x1f4   : > { %v1136_v61 = vld [vmem:[#allocation2 + $0xa78] sm:$0xff]  ;;  %2138 = vmatpush.msrb.mxu0 %v1068_v55  ;;  %6135 = vst [vmem:[#allocation59_spill] sm:$0xff] %v5447_v52  ;;  %v2568_v55 = vld [vmem:[#allocation4 + $0xf0] sm:$0xff] }
 0x1f5   : > { %v1196_v27 = vld [vmem:[#allocation2 + $0xc58] sm:$0xff]  ;;  %2166 = vmatpush.msrb.mxu1 %v1136_v61  ;;  %v2632_v61 = vld [vmem:[#allocation4 + $0x2f0] sm:$0xff] }
 0x1f6   : > { %v1264_v22 = vld [vmem:[#allocation2 + $0xe78] sm:$0xff]  ;;  %2196 = vmatpush.msrb.mxu2 %v1196_v27  ;;  %v2644_v52 = vld [vmem:[#allocation4 + $0x350] sm:$0xff] }
 0x1f7   : > { %v1064_v25 = vld [vmem:[#allocation2 + $0x838] sm:$0xff]  ;;  %2224 = vmatpush.msrb.mxu3 %v1264_v22 }
 0x1f8   : > { %v1132_v2 = vld [vmem:[#allocation2 + $0xa58] sm:$0xff]  ;;  %2139 = vmatpush.msrb.mxu0 %v1064_v25  ;;  %v2566_v25 = vld [vmem:[#allocation4 + $0xe0] sm:$0xff] }
 0x1f9   : > { %v1192_v58 = vld [vmem:[#allocation2 + $0xc38] sm:$0xff]  ;;  %2167 = vmatpush.msrb.mxu1 %v1132_v2  ;;  %v2600_v2 = vld [vmem:[#allocation4 + $0x1f0] sm:$0xff] }
 0x1fa   : > { %v1260_v51 = vld [vmem:[#allocation2 + $0xe58] sm:$0xff]  ;;  %2197 = vmatpush.msrb.mxu2 %v1192_v58  ;;  %v2630_v58 = vld [vmem:[#allocation4 + $0x2e0] sm:$0xff] }
 0x1fb   : > { %v1060_v0 = vld [vmem:[#allocation2 + $0x818] sm:$0xff]  ;;  %2225 = vmatpush.msrb.mxu3 %v1260_v51  ;;  %v2598_v51 = vld [vmem:[#allocation4 + $0x1e0] sm:$0xff] }
 0x1fc   : > { %v1128_v53 = vld [vmem:[#allocation2 + $0xa38] sm:$0xff]  ;;  %2140 = vmatpush.msrb.mxu0 %v1060_v0  ;;  %v5453_v0 = vpop.f32.mrf.mxu2 }
 0x1fd   : > { %v1188_v38 = vld [vmem:[#allocation2 + $0xc18] sm:$0xff]  ;;  %2168 = vmatpush.msrb.mxu1 %v1128_v53  ;;  %6136 = vst [vmem:[#allocation60_spill] sm:$0xff] %v5453_v0  ;;  %v2628_v53 = vld [vmem:[#allocation4 + $0x2d0] sm:$0xff]  ;;  %2141 = vmatmul.f32.vlgmr.msrb.gmra.mxu0 %v5079_v29 }
 0x1fe   : > { %v1256_v28 = vld [vmem:[#allocation2 + $0xe38] sm:$0xff]  ;;  %2198 = vmatpush.msrb.mxu2 %v1188_v38  ;;  %2794 = vmatpush.msra.mxu0 %v2568_v55  ;;  %v2662_v38 = vld [vmem:[#allocation4 + $0x3e0] sm:$0xff]  ;;  %v2596_v55 = vld [vmem:[#allocation4 + $0x1d0] sm:$0xff] }
 0x1ff   : > { %2226 = vmatpush.msrb.mxu3 %v1256_v28  ;;  %v1124_v27 = vld [vmem:[#allocation2 + $0xa18] sm:$0xff]  ;;  %v2562_v28 = vld [vmem:[#allocation4 + $0xc0] sm:$0xff]  ;;  %2199 = vmatmul.f32.vlgmr.msrb.gmra.mxu2 %v5085_v30 }
 0x200   : > { %v1252_v22 = vld [vmem:[#allocation2 + $0xe18] sm:$0xff]  ;;  %2840 = vmatpush.msra.mxu2 %v2632_v61  ;;  %2169 = vmatpush.msrb.mxu1 %v1124_v27  ;;  %v5455_v61 = vpop.f32.mrf.mxu0  ;;  %v2660_v27 = vld [vmem:[#allocation4 + $0x3d0] sm:$0xff] }
 0x201   : > { %2227 = vmatpush.msrb.mxu3 %v1252_v22  ;;  %2795 = vmatpush.msra.mxu0 %v2566_v25  ;;  %6137 = vst [vmem:[#allocation61_spill] sm:$0xff] %v5455_v61  ;;  %v5459_v22 = vpop.f32.mrf.mxu1  ;;  %v2560_v25 = vld [vmem:[#allocation4 + $0xb0] sm:$0xff]  ;;  %v2618_v61 = vld [vmem:[#allocation4 + $0x280] sm:$0xff] }
 0x202   : > { %2817 = vmatpush.msra.mxu1 %v2600_v2  ;;  %2841 = vmatpush.msra.mxu2 %v2630_v58  ;;  %6139 = vst [vmem:[#allocation63_spill] sm:$0xff] %v5459_v22  ;;  %v2594_v2 = vld [vmem:[#allocation4 + $0x1c0] sm:$0xff]  ;;  %v2624_v58 = vld [vmem:[#allocation4 + $0x2b0] sm:$0xff] }
 0x203   : > { %2863 = vmatpush.msra.mxu3 %v2664_v8  ;;  %2796 = vmatpush.msra.mxu0 %v2564_v9  ;;  %v2658_v8 = vld [vmem:[#allocation4 + $0x3c0] sm:$0xff] }
 0x204   : > { %2818 = vmatpush.msra.mxu1 %v2598_v51  ;;  %2842 = vmatpush.msra.mxu2 %v2628_v53  ;;  %v2558_v9 = vld [vmem:[#allocation4 + $0xa0] sm:$0xff]  ;;  %v2592_v51 = vld [vmem:[#allocation4 + $0x1b0] sm:$0xff] }
 0x205   : > { %2864 = vmatpush.msra.mxu3 %v2662_v38  ;;  %2797 = vmatpush.msra.mxu0 %v2562_v28  ;;  %v2622_v53 = vld [vmem:[#allocation4 + $0x2a0] sm:$0xff]  ;;  %v2656_v38 = vld [vmem:[#allocation4 + $0x3b0] sm:$0xff] }
 0x206   : > { %2819 = vmatpush.msra.mxu1 %v2596_v55  ;;  %2843 = vmatpush.msra.mxu2 %v2626_v21  ;;  %v2556_v28 = vld [vmem:[#allocation4 + $0x90] sm:$0xff]  ;;  %v2590_v55 = vld [vmem:[#allocation4 + $0x1a0] sm:$0xff]  ;;  %v5465_v21 = vpop.f32.mrf.mxu2 }
 0x207   : > { %2865 = vmatpush.msra.mxu3 %v2660_v27  ;;  %2798 = vmatpush.msra.mxu0 %v2560_v25  ;;  %6140 = vst [vmem:[#allocation64_spill] sm:$0xff] %v5465_v21  ;;  %v2620_v27 = vld [vmem:[#allocation4 + $0x290] sm:$0xff]  ;;  %v2654_v22 = vld [vmem:[#allocation4 + $0x3a0] sm:$0xff] }
 0x208   : > { %2820 = vmatpush.msra.mxu1 %v2594_v2  ;;  %2844 = vmatpush.msra.mxu2 %v2624_v58  ;;  %v2554_v25 = vld [vmem:[#allocation4 + $0x80] sm:$0xff]  ;;  %v2588_v2 = vld [vmem:[#allocation4 + $0x190] sm:$0xff]  ;;  %v5467_v58 = vpop.f32.mrf.mxu3 }
 0x209   : > { %2866 = vmatpush.msra.mxu3 %v2658_v8  ;;  %2170 = vmatmul.f32.vlgmr.msrb.gmra.mxu1 %v5127_v5  ;;  %6141 = vst [vmem:[#allocation65_spill] sm:$0xff] %v5467_v58  ;;  %v5469_v8 = vpop.f32.mrf.mxu0  ;;  %v5471_v0 = vpop.f32.mrf.mxu1  ;;  %v2610_v21 = vld [vmem:[#allocation4 + $0x240] sm:$0xff] }
 0x20a   : > { %2228 = vmatmul.f32.vlgmr.msrb.gmra.mxu3 %v5133_v15  ;;  %2799 = vmatpush.msra.mxu0 %v2558_v9  ;;  %v2552_v9 = vld [vmem:[#allocation4 + $0x70] sm:$0xff] }
 0x20b   : > { %2821 = vmatpush.msra.mxu1 %v2592_v51  ;;  %2845 = vmatpush.msra.mxu2 %v2622_v53  ;;  %v2586_v51 = vld [vmem:[#allocation4 + $0x180] sm:$0xff]  ;;  %v2616_v53 = vld [vmem:[#allocation4 + $0x270] sm:$0xff] }
 0x20c   : > { %2867 = vmatpush.msra.mxu3 %v2656_v38  ;;  %2800 = vmatpush.msra.mxu0 %v2556_v28  ;;  %v2650_v38 = vld [vmem:[#allocation4 + $0x380] sm:$0xff] }
 0x20d   : > { %2822 = vmatpush.msra.mxu1 %v2590_v55  ;;  %2846 = vmatpush.msra.mxu2 %v2620_v27  ;;  %v2550_v28 = vld [vmem:[#allocation4 + $0x60] sm:$0xff]  ;;  %v2584_v55 = vld [vmem:[#allocation4 + $0x170] sm:$0xff] }
 0x20e   : > { %2868 = vmatpush.msra.mxu3 %v2654_v22  ;;  %2801 = vmatpush.msra.mxu0 %v2554_v25  ;;  %v5475_v27 = vpop.f32.mrf.mxu2  ;;  %v2614_v22 = vld [vmem:[#allocation4 + $0x260] sm:$0xff]  ;;  %v2648_v25 = vld [vmem:[#allocation4 + $0x370] sm:$0xff] }
 0x20f   : > { %2823 = vmatpush.msra.mxu1 %v2588_v2  ;;  %2847 = vmatpush.msra.mxu2 %v2618_v61  ;;  %v2548_v61 = vld [vmem:[#allocation4 + $0x50] sm:$0xff] }
 0x210   : > { %2869 = vmatpush.msra.mxu3 %v2652_v19  ;;  %2144 = vmatmul.f32.gmra.mxu0 %v5169_v14  ;;  %v2582_v19 = vld [vmem:[#allocation4 + $0x160] sm:$0xff]  ;;  %v5481_v58 = vpop.f32.mrf.mxu3 }
 0x211   : > { %2202 = vmatmul.f32.gmra.mxu2 %v5174_v31  ;;  %2802 = vmatpush.msra.mxu0 %v2552_v9  ;;  %v5479_v2 = vpop.f32.mrf.mxu0  ;;  %v2612_v9 = vld [vmem:[#allocation4 + $0x250] sm:$0xff]  ;;  %v5483_v35 = vpop.f32.mrf.mxu1 }
 0x212   : > { %2824 = vmatpush.msra.mxu1 %v2586_v51  ;;  %2848 = vmatpush.msra.mxu2 %v2616_v53  ;;  %v2646_v51 = vld [vmem:[#allocation4 + $0x360] sm:$0xff] }
 0x213   : > { %2870 = vmatpush.msra.mxu3 %v2650_v38  ;;  %2173 = vmatmul.f32.gmra.mxu1 %v5179_v36  ;;  %v2546_v53 = vld [vmem:[#allocation4 + $0x40] sm:$0xff]  ;;  %v2580_v38 = vld [vmem:[#allocation4 + $0x150] sm:$0xff] }
 0x214   : > { %2231 = vmatmul.f32.gmra.mxu3 %v5184_v41  ;;  %2803 = vmatpush.msra.mxu0 %v2550_v28  ;;  %v2608_v28 = vld [vmem:[#allocation4 + $0x230] sm:$0xff] }
 0x215   : > { %2825 = vmatpush.msra.mxu1 %v2584_v55  ;;  %2849 = vmatpush.msra.mxu2 %v2614_v22  ;;  %v2642_v55 = vld [vmem:[#allocation4 + $0x340] sm:$0xff] }
 0x216   : > { %2871 = vmatpush.msra.mxu3 %v2648_v25  ;;  %2804 = vmatpush.msra.mxu0 %v2548_v61  ;;  %v2542_v22 = vld [vmem:[#allocation4 + $0x20] sm:$0xff]  ;;  %v2576_v25 = vld [vmem:[#allocation4 + $0x130] sm:$0xff]  ;;  %v5487_v61 = vpop.f32.mrf.mxu2 }
 0x217   : > { %2826 = vmatpush.msra.mxu1 %v2582_v19  ;;  %2850 = vmatpush.msra.mxu2 %v2612_v9  ;;  %v2606_v19 = vld [vmem:[#allocation4 + $0x220] sm:$0xff]  ;;  %v2640_v9 = vld [vmem:[#allocation4 + $0x330] sm:$0xff] }
 0x218   : > { %2872 = vmatpush.msra.mxu3 %v2646_v51  ;;  %2805 = vmatpush.msra.mxu0 %v2546_v53  ;;  %v2572_v53 = vld [vmem:[#allocation4 + $0x110] sm:$0xff] }
 0x219   : > { %2827 = vmatpush.msra.mxu1 %v2580_v38  ;;  %2851 = vmatpush.msra.mxu2 %v2610_v21  ;;  %v2574_v21 = vld [vmem:[#allocation4 + $0x120] sm:$0xff]  ;;  %v5491_v51 = vpop.f32.mrf.mxu0 }
 0x21a   : > { %2873 = vmatpush.msra.mxu3 %v2644_v52  ;;  %2147 = vmatmul.f32.gmra.mxu0 %v5226_v34  ;;  %v2540_v52 = vld [vmem:[#allocation4 + $0x10] sm:$0xff]  ;;  %v5493_v34 = vpop.f32.mrf.mxu3  ;;  %v2602_v38 = vld [vmem:[#allocation4 + $0x200] sm:$0xff] }
 0x21b   : > { %2205 = vmatmul.f32.gmra.mxu2 %v5232_v50  ;;  %2806 = vmatpush.msra.mxu0 %v2544_v20  ;;  %v2604_v50 = vld [vmem:[#allocation4 + $0x210] sm:$0xff]  ;;  %v2538_v20 = vld [vmem:[#allocation4] sm:$0xff] }
 0x21c   : > { %2828 = vmatpush.msra.mxu1 %v2578_v16  ;;  %2852 = vmatpush.msra.mxu2 %v2608_v28  ;;  %v2638_v16 = vld [vmem:[#allocation4 + $0x320] sm:$0xff]  ;;  %v5495_v28 = vpop.f32.mrf.mxu1 }
 0x21d   : > { %2874 = vmatpush.msra.mxu3 %v2642_v55  ;;  %2176 = vmatmul.f32.gmra.mxu1 %v5240_v62  ;;  %v2636_v62 = vld [vmem:[#allocation4 + $0x310] sm:$0xff] }
 0x21e   : > { %2234 = vmatmul.f32.gmra.mxu3 %v5246_v26  ;;  %2807 = vmatpush.msra.mxu0 %v2542_v22  ;;  %v2696_v26 = vld [vmem:[#allocation4 + $0x4f0] sm:$0xff]  ;;  %v2570_v22 = vld [vmem:[#allocation4 + $0x100] sm:$0xff] }
 0x21f   : > { %2829 = vmatpush.msra.mxu1 %v2576_v25  ;;  %2853 = vmatpush.msra.mxu2 %v2606_v19  ;;  %v2760_v55 = vld [vmem:[#allocation4 + $0x6f0] sm:$0xff]  ;;  %v2634_v25 = vld [vmem:[#allocation4 + $0x300] sm:$0xff] }
 0x220   : > { %2875 = vmatpush.msra.mxu3 %v2640_v9  ;;  %2808 = vmatpush.msra.mxu0 %v2540_v52  ;;  %v2694_v19 = vld [vmem:[#allocation4 + $0x4e0] sm:$0xff]  ;;  %v2728_v9 = vld [vmem:[#allocation4 + $0x5f0] sm:$0xff]  ;;  %v5499_v52 = vpop.f32.mrf.mxu2 }
 0x221   : > { %2830 = vmatpush.msra.mxu1 %v2574_v21  ;;  %2854 = vmatpush.msra.mxu2 %v2604_v50  ;;  %v2758_v21 = vld [vmem:[#allocation4 + $0x6e0] sm:$0xff]  ;;  %v2792_v50 = vld [vmem:[#allocation4 + $0x7f0] sm:$0xff] }
 0x222   : > { %2876 = vmatpush.msra.mxu3 %v2638_v16  ;;  %2809 = vmatpush.msra.mxu0 %v2538_v20  ;;  %v1824_v16 = vadd.f32 %v5471_v0, %v5469_v8  ;;  %v2726_v20 = vld [vmem:[#allocation4 + $0x5e0] sm:$0xff] }
 0x223   : > { %2831 = vmatpush.msra.mxu1 %v2572_v53  ;;  %2855 = vmatpush.msra.mxu2 %v2602_v38  ;;  %v5507_v53 = vpop.f32.mrf.mxu3  ;;  %v2756_v38 = vld [vmem:[#allocation4 + $0x6d0] sm:$0xff]  ;;  %v2754_v0 = vld [vmem:[#allocation4 + $0x6c0] sm:$0xff] }
 0x224   : > { %2877 = vmatpush.msra.mxu3 %v2636_v62  ;;  %2150 = vmatmul.f32.gmra.mxu0 %v5214_v4  ;;  %v2692_v4 = vld [vmem:[#allocation4 + $0x4d0] sm:$0xff]  ;;  %v2790_v62 = vld [vmem:[#allocation4 + $0x7e0] sm:$0xff]  ;;  %v5510_v8 = vpop.f32.mrf.mxu1 }
 0x225   : > { %2208 = vmatmul.f32.gmra.mxu2 %v5216_v57  ;;  %2886 = vmatpush.msrb.mxu0 %v2696_v26  ;;  %v5505_v57 = vpop.f32.mrf.mxu0  ;;  %v2690_v26 = vld [vmem:[#allocation4 + $0x4c0] sm:$0xff] }
 0x226   : > { %2932 = vmatpush.msrb.mxu2 %v2760_v55  ;;  %2832 = vmatpush.msra.mxu1 %v2570_v22  ;;  %v2724_v55 = vld [vmem:[#allocation4 + $0x5d0] sm:$0xff] }
 0x227   : > { %2878 = vmatpush.msra.mxu3 %v2634_v25  ;;  %2179 = vmatmul.f32.gmra.mxu1 %v5218_v45  ;;  %v2788_v45 = vld [vmem:[#allocation4 + $0x7d0] sm:$0xff]  ;;  %v2722_v25 = vld [vmem:[#allocation4 + $0x5c0] sm:$0xff] }
 0x228   : > { %2237 = vmatmul.f32.gmra.mxu3 %v5220_v42  ;;  %2887 = vmatpush.msrb.mxu0 %v2694_v19  ;;  %v1853_v42 = vadd.f32 %v5475_v27, %v1824_v16  ;;  %v2688_v22 = vld [vmem:[#allocation4 + $0x4b0] sm:$0xff] }
 0x229   : > { %2909 = vmatpush.msrb.mxu1 %v2728_v9  ;;  %2933 = vmatpush.msrb.mxu2 %v2758_v21  ;;  %v2752_v19 = vld [vmem:[#allocation4 + $0x6b0] sm:$0xff]  ;;  %v2786_v9 = vld [vmem:[#allocation4 + $0x7c0] sm:$0xff] }
 0x22a   : > { %2955 = vmatpush.msrb.mxu3 %v2792_v50  ;;  %2888 = vmatpush.msrb.mxu0 %v2692_v4  ;;  %v2686_v21 = vld [vmem:[#allocation4 + $0x4a0] sm:$0xff]  ;;  %v2720_v50 = vld [vmem:[#allocation4 + $0x5b0] sm:$0xff]  ;;  %v1882_v27 = vadd.f32 %v5481_v58, %v1853_v42 }
 0x22b   : > { %2910 = vmatpush.msrb.mxu1 %v2726_v20  ;;  %2934 = vmatpush.msrb.mxu2 %v2756_v38  ;;  %v2750_v4 = vld [vmem:[#allocation4 + $0x6a0] sm:$0xff]  ;;  %v2784_v20 = vld [vmem:[#allocation4 + $0x7b0] sm:$0xff] }
 0x22c   : > { %2956 = vmatpush.msrb.mxu3 %v2790_v62  ;;  %2889 = vmatpush.msrb.mxu0 %v2690_v26  ;;  %v2684_v16 = vld [vmem:[#allocation4 + $0x490] sm:$0xff]  ;;  %v2718_v38 = vld [vmem:[#allocation4 + $0x5a0] sm:$0xff]  ;;  %v5513_v62 = vpop.f32.mrf.mxu2 }
 0x22d   : > { %2911 = vmatpush.msrb.mxu1 %v2724_v55  ;;  %2935 = vmatpush.msrb.mxu2 %v2754_v0  ;;  %v2748_v26 = vld [vmem:[#allocation4 + $0x690] sm:$0xff]  ;;  %v2782_v55 = vld [vmem:[#allocation4 + $0x7a0] sm:$0xff]  ;;  %v1827_v0 = vadd.f32 %v5483_v35, %v5479_v2  ;;  %v1910_v58 = vpop.f32.mrf.mxu0 }
 0x22e   : > { %2957 = vmatpush.msrb.mxu3 %v2788_v45  ;;  %2890 = vmatpush.msrb.mxu0 %v2688_v22  ;;  %v2682_v45 = vld [vmem:[#allocation4 + $0x480] sm:$0xff]  ;;  %v2716_v22 = vld [vmem:[#allocation4 + $0x590] sm:$0xff] }
 0x22f   : > { %2912 = vmatpush.msrb.mxu1 %v2722_v25  ;;  %2936 = vmatpush.msrb.mxu2 %v2752_v19  ;;  %v5517_v25 = vpop.f32.mrf.mxu3  ;;  %v2746_v42 = vld [vmem:[#allocation4 + $0x680] sm:$0xff]  ;;  %v2780_v19 = vld [vmem:[#allocation4 + $0x790] sm:$0xff] }
 0x230   : > { %2958 = vmatpush.msrb.mxu3 %v2786_v9  ;;  %2891 = vmatpush.msrb.mxu0 %v2686_v21  ;;  %v1911_v9 = vadd.f32 %v1910_v58, %v1882_v27  ;;  %v2680_v21 = vld [vmem:[#allocation4 + $0x470] sm:$0xff]  ;;  %v2714_v35 = vld [vmem:[#allocation4 + $0x580] sm:$0xff] }
 0x231   : > { %2913 = vmatpush.msrb.mxu1 %v2720_v50  ;;  %2937 = vmatpush.msrb.mxu2 %v2750_v4  ;;  %v5519_v50 = vpop.xlane.xlu0 %618  ;;  %v2744_v2 = vld [vmem:[#allocation4 + $0x670] sm:$0xff]  ;;  %v1856_v4 = vadd.f32 %v5487_v61, %v1827_v0  ;;  %v2678_v27 = vld [vmem:[#allocation4 + $0x460] sm:$0xff] }
 0x232   : > { %2959 = vmatpush.msrb.mxu3 %v2784_v20  ;;  %2892 = vmatpush.msrb.mxu0 %v2684_v16  ;;  %v1939_v20 = vpop.f32.mrf.mxu1  ;;  %v2676_v61 = vld [vmem:[#allocation4 + $0x450] sm:$0xff]  ;;  %v2710_v0 = vld [vmem:[#allocation4 + $0x560] sm:$0xff]  ;;  %vm637_vm4 = vcmp.gt.f32.partialorder %v5519_v50, 128.0 }
 0x233   : > { %2914 = vmatpush.msrb.mxu1 %v2718_v38  ;;  %2938 = vmatpush.msrb.mxu2 %v2748_v26  ;;  %v1940_v16 = vadd.f32 %v1939_v20, %v1911_v9  ;;  %v2712_v38 = vld [vmem:[#allocation4 + $0x570] sm:$0xff]  ;;  %v2742_v26 = vld [vmem:[#allocation4 + $0x660] sm:$0xff] }
 0x234   : > { %2960 = vmatpush.msrb.mxu3 %v2782_v55  ;;  %2893 = vmatpush.msrb.mxu0 %v2682_v45  ;;  %v2776_v55 = vld [vmem:[#allocation4 + $0x770] sm:$0xff]  ;;  %v1885_v45 = vadd.f32 %v5493_v34, %v1856_v4 }
 0x235   : > { %2915 = vmatpush.msrb.mxu1 %v2716_v22  ;;  %2939 = vmatpush.msrb.mxu2 %v2746_v42  ;;  %v1968_v22 = vpop.f32.mrf.mxu2  ;;  %v2740_v58 = vld [vmem:[#allocation4 + $0x650] sm:$0xff]  ;;  %v2774_v42 = vld [vmem:[#allocation4 + $0x760] sm:$0xff]  ;;  %v1913_v34 = vpop.f32.mrf.mxu0 }
 0x236   : > { %2961 = vmatpush.msrb.mxu3 %v2780_v19  ;;  %2856 = vmatmul.f32.vlgmr.msra.gmra.mxu2 %v4904_v11  ;;  %v1830_v19 = vadd.f32 %v5495_v28, %v5491_v51  ;;  %v1969_v9 = vadd.f32 %v1968_v22, %v1940_v16  ;;  %v2772_v4 = vld [vmem:[#allocation4 + $0x750] sm:$0xff]  ;;  %v1914_v20 = vadd.f32 %v1913_v34, %v1885_v45  ;;  %v2706_v51 = vld [vmem:[#allocation4 + $0x540] sm:$0xff] }
 0x237   : > { %2894 = vmatpush.msrb.mxu0 %v2680_v21  ;;  %2916 = vmatpush.msrb.mxu1 %v2714_v35  ;;  %v2708_v21 = vld [vmem:[#allocation4 + $0x550] sm:$0xff]  ;;  %v1997_v35 = vpop.f32.mrf.mxu3  ;;  %v2670_v45 = vld [vmem:[#allocation4 + $0x420] sm:$0xff] }
 0x238   : > { %2940 = vmatpush.msrb.mxu2 %v2744_v2  ;;  %2962 = vmatpush.msrb.mxu3 %v2778_v39  ;;  %v2674_v39 = vld [vmem:[#allocation4 + $0x440] sm:$0xff]  ;;  %v2736_v28 = vld [vmem:[#allocation4 + $0x630] sm:$0xff]  ;;  %v1859_v16 = vadd.f32 %v5499_v52, %v1830_v19 }
 0x239   : > { %2810 = vmatmul.f32.vlgmr.msra.gmra.mxu0 %v4898_v10  ;;  %2879 = vmatmul.f32.vlgmr.msra.gmra.mxu3 %v4936_v24  ;;  %v2738_v2 = vld [vmem:[#allocation4 + $0x640] sm:$0xff]  ;;  %v2704_v22 = vld [vmem:[#allocation4 + $0x530] sm:$0xff] }
 0x23a   : > { %2895 = vmatpush.msrb.mxu0 %v2678_v27  ;;  %2917 = vmatpush.msrb.mxu1 %v2712_v38  ;;  %v5529_v27 = vadd.f32 %v1997_v35, %v1969_v9  ;;  %v2672_v38 = vld [vmem:[#allocation4 + $0x430] sm:$0xff]  ;;  %v1888_v9 = vadd.f32 %v5507_v53, %v1859_v16  ;;  %v2702_v34 = vld [vmem:[#allocation4 + $0x520] sm:$0xff]  ;;  %v4675_v35 = vmov 1.0   ;;  %v1833_v53 = vadd.f32 %v5510_v8, %v5505_v57  ;;  %v2569_v57 = vld [vmem:[#allocation4 + $0xf8] sm:$0xff] }
 0x23b   : > { %2941 = vmatpush.msrb.mxu2 %v2742_v26  ;;  %2963 = vmatpush.msrb.mxu3 %v2776_v55  ;;  %v636_v26 = vpop.xlane.xlu0 %635  ;;  %v1942_v55 = vpop.f32.mrf.mxu1  ;;  %v2768_v19 = vld [vmem:[#allocation4 + $0x730] sm:$0xff]  ;;  %v2666_v16 = vld [vmem:[#allocation4 + $0x400] sm:$0xff] }
 0x23c   : > { %2833 = vmatmul.f32.vlgmr.msra.gmra.mxu1 %v4930_v23  ;;  %2896 = vmatpush.msrb.mxu0 %v2676_v61  ;;  %v2770_v61 = vld [vmem:[#allocation4 + $0x740] sm:$0xff]  ;;  %vm639_vm5 = vcmp.lt.f32.partialorder %v636_v26, -0.5 }
 0x23d   : > { %2918 = vmatpush.msrb.mxu1 %v2710_v0  ;;  %2942 = vmatpush.msrb.mxu2 %v2740_v58  ;;  %v1943_v0 = vadd.f32 %v1942_v55, %v1914_v20  ;;  %v2734_v58 = vld [vmem:[#allocation4 + $0x620] sm:$0xff]  ;;  %v1971_v52 = vpop.f32.mrf.mxu2  ;;  %v2700_v55 = vld [vmem:[#allocation4 + $0x510] sm:$0xff] }
 0x23e   : > { %2964 = vmatpush.msrb.mxu3 %v2774_v42  ;;  %2897 = vmatpush.msrb.mxu0 %v2674_v39  ;;  %v5536_v42 = vmul.f32 %v5529_v27, %v5529_v27  ;;  %v2730_v26 = vld [vmem:[#allocation4 + $0x600] sm:$0xff] }
 0x23f   : > { %2919 = vmatpush.msrb.mxu1 %v2708_v21  ;;  %2943 = vmatpush.msrb.mxu2 %v2738_v2  ;;  %v1972_v39 = vadd.f32 %v1971_v52, %v1943_v0  ;;  %v2668_v21 = vld [vmem:[#allocation4 + $0x410] sm:$0xff]  ;;  %v638_v2 = vsel %vm637_vm4, 255.0, %v4675_v35  ;;  %vm3645_vm4 = vcmask 126976  }
 0x240   : > { %2965 = vmatpush.msrb.mxu3 %v2772_v4  ;;  %2859 = vmatmul.f32.gmra.mxu2 %v4966_v49  ;;  %v6088_v4 = vmov 0.0   ;;  %v2323_v0 = vrot.slane %v5536_v42, 6 }
 0x241   : > { %2898 = vmatpush.msrb.mxu0 %v2672_v38  ;;  %2920 = vmatpush.msrb.mxu1 %v2706_v51  ;;  %v640_v20 = vsel %vm639_vm5, -1.0, %v6088_v4  ;;  %v2732_v38 = vld [vmem:[#allocation4 + $0x610] sm:$0xff]  ;;  %v2766_v51 = vld [vmem:[#allocation4 + $0x720] sm:$0xff] }
 0x242   : > { %2944 = vmatpush.msrb.mxu2 %v2736_v28  ;;  %2966 = vmatpush.msrb.mxu3 %v2770_v61  ;;  %v2000_v28 = vpop.f32.mrf.mxu3  ;;  %v1916_v61 = vpop.f32.mrf.mxu0 }
 0x243   : > { %2813 = vmatmul.f32.gmra.mxu0 %v4959_v46  ;;  %2882 = vmatmul.f32.gmra.mxu3 %v4988_v63  ;;  %v2001_v50 = vadd.f32 %v2000_v28, %v1972_v39  ;;  %v2633_v39 = vld [vmem:[#allocation4 + $0x2f8] sm:$0xff]  ;;  %v2698_v28 = vld [vmem:[#allocation4 + $0x500] sm:$0xff]  ;;  %v1945_v4 = vpop.f32.mrf.mxu1 }
 0x244   : > { %2899 = vmatpush.msrb.mxu0 %v2670_v45  ;;  %2921 = vmatpush.msrb.mxu1 %v2704_v22  ;;  %v2764_v45 = vld [vmem:[#allocation4 + $0x710] sm:$0xff]  ;;  %v1917_v22 = vadd.f32 %v1916_v61, %v1888_v9  ;;  %v2762_v9 = vld [vmem:[#allocation4 + $0x700] sm:$0xff] }
 0x245   : > { %2945 = vmatpush.msrb.mxu2 %v2734_v58  ;;  %2967 = vmatpush.msrb.mxu3 %v2768_v19  ;;  %v5550_v58 = vsub.f32 %v638_v2, %v640_v20  ;;  %v2247_v8 = vmul.f32 %v2001_v50, %v2001_v50  ;;  %v2265_v52 = vrot.slane %v2001_v50, 5  ;;  %v5552_v19 = vsub.f32 %v2001_v50, %v2323_v0 }
 0x246   : > { %2836 = vmatmul.f32.gmra.mxu1 %v4983_v60  ;;  %2900 = vmatpush.msrb.mxu0 %v2668_v21  ;;  %v1862_v21 = vadd.f32 %v5513_v62, %v1833_v53  ;;  %v2437_v2 = vrot.slane %v5536_v42, 5  ;;  %v2601_v62 = vld [vmem:[#allocation4 + $0x1f8] sm:$0xff]  ;;  %v2631_v53 = vld [vmem:[#allocation4 + $0x2e8] sm:$0xff] }
 0x247   : > { %2922 = vmatpush.msrb.mxu1 %v2702_v34  ;;  %2946 = vmatpush.msrb.mxu2 %v2732_v38  ;;  %v2264_v34 = vrot.slane %v5529_v27, 5  ;;  %v2341_v20 = vrot.slane %v2247_v8, 6  ;;  %v2438_v38 = vrot.slane %v2247_v8, 5  ;;  %v642_v61 = vmul.f32 0.01, %v5550_v58 }
 0x248   : > { %2968 = vmatpush.msrb.mxu3 %v2766_v51  ;;  %2901 = vmatpush.msrb.mxu0 %v2666_v16  ;;  %v1946_v51 = vadd.f32 %v1945_v4, %v1917_v22  ;;  %v2567_v16 = vld [vmem:[#allocation4 + $0xe8] sm:$0xff]  ;;  %v2665_v22 = vld [vmem:[#allocation4 + $0x3f8] sm:$0xff] }
 0x249   : > { %2923 = vmatpush.msrb.mxu1 %v2700_v55  ;;  %2947 = vmatpush.msrb.mxu2 %v2730_v26  ;;  %v2266_v55 = vsel %vm2257_vm6, %v2264_v34, %v2265_v52  ;;  %v2439_v50 = vsel %vm2257_vm6, %v2437_v2, %v2438_v38  ;;  %v1974_v26 = vpop.f32.mrf.mxu2  ;;  %v2342_v4 = vsel %vm774_vm1, %v2323_v0, %v2341_v20  ;;  %v2663_v0 = vld [vmem:[#allocation4 + $0x3e8] sm:$0xff] }
 0x24a   : > { %2969 = vmatpush.msrb.mxu3 %v2764_v45  ;;  %2948 = vmatmul.f32.vlgmr.msrb.gmra.mxu2 %v5085_v30  ;;  %v5562_v45 = vmul.f32 %v2266_v55, %v5529_v27  ;;  %v2449_v8 = vadd.f32 %v2439_v50, %v5536_v42  ;;  %v1975_v52 = vadd.f32 %v1974_v26, %v1946_v51  ;;  %v2629_v27 = vld [vmem:[#allocation4 + $0x2d8] sm:$0xff]  ;;  %v2627_v38 = vld [vmem:[#allocation4 + $0x2c8] sm:$0xff]  ;;  %v644_v55 = vmul.f32 0.03, %v5550_v58 }
 0x24b   : > { %2978 = vmatpush.msra.mxu0 %v2569_v57  ;;  %3024 = vmatpush.msra.mxu2 %v2633_v39  ;;  %v1891_v57 = vadd.f32 %v5517_v25, %v1862_v21  ;;  %v2565_v39 = vld [vmem:[#allocation4 + $0xd8] sm:$0xff]  ;;  %v5570_v2 = vmul.f32 %v642_v61, %v642_v61  ;;  %v2563_v25 = vld [vmem:[#allocation4 + $0xc8] sm:$0xff]  ;;  %v1919_v21 = vpop.f32.mrf.mxu0  ;;  %v2367_v58 = vrot.slane %v5552_v19, 5 }
 0x24c   : > { %2924 = vmatpush.msrb.mxu1 %v2698_v28  ;;  %2970 = vmatpush.msrb.mxu3 %v2762_v9  ;;  %v2599_v28 = vld [vmem:[#allocation4 + $0x1e8] sm:$0xff]  ;;  %v2284_v34 = vrot.slane %v5562_v45, 4  ;;  %v2003_v9 = vpop.f32.mrf.mxu3  ;;  %v2597_v42 = vld [vmem:[#allocation4 + $0x1d8] sm:$0xff] }
 0x24d   : > { %2902 = vmatmul.f32.vlgmr.msrb.gmra.mxu0 %v5079_v29  ;;  %2971 = vmatmul.f32.vlgmr.msrb.gmra.mxu3 %v5133_v15  ;;  %v2004_v20 = vadd.f32 %v2003_v9, %v1975_v52  ;;  %v2661_v51 = vld [vmem:[#allocation4 + $0x3d8] sm:$0xff]  ;;  %v5575_v61 = vadd.f32 %v2449_v8, %v5570_v2  ;;  %v2595_v26 = vld [vmem:[#allocation4 + $0x1c8] sm:$0xff]  ;;  %v1948_v52 = vpop.f32.mrf.mxu1 }
 0x24e   : > { %2979 = vmatpush.msra.mxu0 %v2567_v16  ;;  %3001 = vmatpush.msra.mxu1 %v2601_v62  ;;  %v1920_v16 = vadd.f32 %v1919_v21, %v1891_v57  ;;  %v2561_v62 = vld [vmem:[#allocation4 + $0xb8] sm:$0xff]  ;;  %v2659_v57 = vld [vmem:[#allocation4 + $0x3c8] sm:$0xff] }
 0x24f   : > { %3025 = vmatpush.msra.mxu2 %v2631_v53  ;;  %3047 = vmatpush.msra.mxu3 %v2665_v22  ;;  %v5579_v53 = vsub.f32 %v2004_v20, %v2284_v34  ;;  %v2351_v50 = vsub.f32 %v2004_v20, %v2342_v4  ;;  %v2625_v22 = vld [vmem:[#allocation4 + $0x2b8] sm:$0xff]  ;;  %v2559_v8 = vld [vmem:[#allocation4 + $0xa8] sm:$0xff]  ;;  %4330 = vrcp.f32 %v5575_v61 }
 0x250   : > { %2925 = vmatmul.f32.vlgmr.msrb.gmra.mxu1 %v5127_v5  ;;  %2980 = vmatpush.msra.mxu0 %v2565_v39  ;;  %v2593_v4 = vld [vmem:[#allocation4 + $0x1b8] sm:$0xff] }
 0x251   : > { %3002 = vmatpush.msra.mxu1 %v2599_v28  ;;  %3026 = vmatpush.msra.mxu2 %v2629_v27  ;;  %v2368_v39 = vrot.slane %v2351_v50, 5  ;;  %v1949_v28 = vadd.f32 %v1948_v52, %v1920_v16  ;;  %v5583_v27 = vmul.f32 %v644_v55, %v644_v55  ;;  %v2591_v16 = vld [vmem:[#allocation4 + $0x1a8] sm:$0xff]  ;;  %v2621_v55 = vld [vmem:[#allocation4 + $0x298] sm:$0xff] }
 0x252   : > { %3048 = vmatpush.msra.mxu3 %v2663_v0  ;;  %2981 = vmatpush.msra.mxu0 %v2563_v25  ;;  %v2623_v0 = vld [vmem:[#allocation4 + $0x2a8] sm:$0xff]  ;;  %v1977_v25 = vpop.f32.mrf.mxu2 }
 0x253   : > { %3003 = vmatpush.msra.mxu1 %v2597_v42  ;;  %3027 = vmatpush.msra.mxu2 %v2627_v38  ;;  %v2369_v9 = vsel %vm2257_vm6, %v2367_v58, %v2368_v39  ;;  %v2657_v42 = vld [vmem:[#allocation4 + $0x3b8] sm:$0xff]  ;;  %v1978_v20 = vadd.f32 %v1977_v25, %v1949_v28  ;;  %v5590_v38 = vrot.slane %v5583_v27, 6  ;;  %v2619_v58 = vld [vmem:[#allocation4 + $0x288] sm:$0xff] }
 0x254   : > { %3049 = vmatpush.msra.mxu3 %v2661_v51  ;;  %2951 = vmatmul.f32.gmra.mxu2 %v5174_v31  ;;  %v2379_v21 = vadd.f32 %v2369_v9, %v5552_v19  ;;  %v2557_v51 = vld [vmem:[#allocation4 + $0x98] sm:$0xff]  ;;  %v2006_v50 = vpop.f32.mrf.mxu3  ;;  %v2555_v19 = vld [vmem:[#allocation4 + $0x88] sm:$0xff] }
 0x255   : > { %2982 = vmatpush.msra.mxu0 %v2561_v62  ;;  %3004 = vmatpush.msra.mxu1 %v2595_v26  ;;  %v2655_v62 = vld [vmem:[#allocation4 + $0x3a8] sm:$0xff]  ;;  %v1363_v26 = vadd.f32 %v5293_v13, %v5287_v1  ;;  %v2653_v39 = vld [vmem:[#allocation4 + $0x398] sm:$0xff]  ;;  %v4331_v28 = vpop.eup %4330 }
 0x256   : > { %3028 = vmatpush.msra.mxu2 %v2625_v22  ;;  %3050 = vmatpush.msra.mxu3 %v2659_v57  ;;  %v2589_v22 = vld [vmem:[#allocation4 + $0x198] sm:$0xff]  ;;  %v5597_v52 = vadd.f32 %v5590_v38, %v2379_v21  ;;  %v2007_v57 = vadd.f32 %v2006_v50, %v1978_v20  ;;  %v2587_v13 = vld [vmem:[#allocation4 + $0x188] sm:$0xff]  ;;  %v1595_v20 = vadd.f32 %v5387_v48, %v5383_v43 }
 0x257   : > { %2905 = vmatmul.f32.gmra.mxu0 %v5169_v14  ;;  %2974 = vmatmul.f32.gmra.mxu3 %v5184_v41  ;;  %v2553_v1 = vld [vmem:[#allocation4 + $0x78] sm:$0xff]  ;;  %v2651_v25 = vld [vmem:[#allocation4 + $0x388] sm:$0xff]  ;;  %v1392_v21 = vadd.f32 %v5297_v47, %v1363_v26  ;;  %v1592_v48 = vadd.f32 %v5375_v17, %v5373_v40  ;;  %v1366_v17 = vadd.f32 %v5305_v18, %v5299_v44 }
 0x258   : > { %2983 = vmatpush.msra.mxu0 %v2559_v8  ;;  %3005 = vmatpush.msra.mxu1 %v2593_v4  ;;  %v1360_v8 = vadd.f32 %v5281_v32, %v5277_v33  ;;  %v5603_v4 = vsub.f32 %v2007_v57, %v2284_v34  ;;  %v2617_v9 = vld [vmem:[#allocation4 + $0x278] sm:$0xff]  ;;  %v2551_v33 = vld [vmem:[#allocation4 + $0x68] sm:$0xff]  ;;  %4332 = vrcp.f32 %v5597_v52 }
 0x259   : > { %3029 = vmatpush.msra.mxu2 %v2623_v0  ;;  %3051 = vmatpush.msra.mxu3 %v2657_v42  ;;  %v2026_v0 = vpop.f32.mrf.mxu0  ;;  %v2055_v42 = vpop.f32.mrf.mxu1  ;;  %v2585_v32 = vld [vmem:[#allocation4 + $0x178] sm:$0xff]  ;;  %v2615_v34 = vld [vmem:[#allocation4 + $0x268] sm:$0xff] }
 0x25a   : > { %2928 = vmatmul.f32.gmra.mxu1 %v5179_v36  ;;  %2984 = vmatpush.msra.mxu0 %v2557_v51  ;;  %v2056_v51 = vadd.f32 %v2055_v42, %v2026_v0  ;;  %v1389_v47 = vadd.f32 %v5285_v12, %v1360_v8  ;;  %v2549_v43 = vld [vmem:[#allocation4 + $0x58] sm:$0xff]  ;;  %v2583_v50 = vld [vmem:[#allocation4 + $0x168] sm:$0xff]  ;;  %v2084_v26 = vpop.f32.mrf.mxu2 }
 0x25b   : > { %3006 = vmatpush.msra.mxu1 %v2591_v16  ;;  %3030 = vmatpush.msra.mxu2 %v2621_v55  ;;  %v2649_v16 = vld [vmem:[#allocation4 + $0x378] sm:$0xff]  ;;  %v2425_v55 = vmul.f32 2.0, %v5562_v45  ;;  %v1421_v45 = vadd.f32 %v5301_v56, %v1392_v21  ;;  %v2547_v12 = vld [vmem:[#allocation4 + $0x48] sm:$0xff] }
 0x25c   : > { %3052 = vmatpush.msra.mxu3 %v2655_v62  ;;  %2985 = vmatpush.msra.mxu0 %v2555_v19  ;;  %v2461_v62 = vmul.f32 %v4331_v28, %v5575_v61  ;;  %v2613_v19 = vld [vmem:[#allocation4 + $0x258] sm:$0xff]  ;;  %v2085_v57 = vadd.f32 %v2084_v26, %v2056_v51  ;;  %v1624_v61 = vadd.f32 %v5393_v59, %v1595_v20  ;;  %v2611_v40 = vld [vmem:[#allocation4 + $0x248] sm:$0xff] }
 0x25d   : > { %3007 = vmatpush.msra.mxu1 %v2589_v22  ;;  %3031 = vmatpush.msra.mxu2 %v2619_v58  ;;  %v2647_v22 = vld [vmem:[#allocation4 + $0x368] sm:$0xff]  ;;  %v2645_v8 = vld [vmem:[#allocation4 + $0x358] sm:$0xff]  ;;  %v1418_v56 = vadd.f32 %v5289_v3, %v1389_v47  ;;  %v1621_v59 = vadd.f32 %v5381_v6, %v1592_v48 }
 0x25e   : > { %3053 = vmatpush.msra.mxu3 %v2653_v39  ;;  %2986 = vmatpush.msra.mxu0 %v2553_v1  ;;  %v2465_v58 = vsub.f32 2.0, %v2461_v62  ;;  %v2581_v39 = vld [vmem:[#allocation4 + $0x158] sm:$0xff]  ;;  %v2113_v1 = vpop.f32.mrf.mxu3  ;;  %v2579_v42 = vld [vmem:[#allocation4 + $0x148] sm:$0xff] }
 0x25f   : > { %3008 = vmatpush.msra.mxu1 %v2587_v13  ;;  %3032 = vmatpush.msra.mxu2 %v2617_v9  ;;  %v2429_v13 = vadd.f32 %v2425_v55, %v5570_v2  ;;  %v4333_v9 = vpop.eup %4332  ;;  %v5621_v21 = vadd.f32 %v2113_v1, %v2085_v57  ;;  %v2609_v44 = vld [vmem:[#allocation4 + $0x238] sm:$0xff]  ;;  %v2643_v18 = vld [vmem:[#allocation4 + $0x348] sm:$0xff]  ;;  %v2304_v1 = vmul.f32 2.0, %v5603_v4 }
 0x260   : > { %3054 = vmatpush.msra.mxu3 %v2651_v25  ;;  %2987 = vmatpush.msra.mxu0 %v2551_v33  ;;  %v2469_v0 = vmul.f32 %v4331_v28, %v2465_v58  ;;  %v2545_v25 = vld [vmem:[#allocation4 + $0x38] sm:$0xff]  ;;  %v2543_v3 = vld [vmem:[#allocation4 + $0x28] sm:$0xff] }
 0x261   : > { %3009 = vmatpush.msra.mxu1 %v2585_v32  ;;  %3033 = vmatpush.msra.mxu2 %v2615_v34  ;;  %v6142_v33 = vld [vmem:[#allocation30_spill] sm:$0xff]  ;;  %v6143_v28 = vld [vmem:[#allocation45_spill] sm:$0xff]  ;;  %v2029_v34 = vpop.f32.mrf.mxu0  ;;  %v6145_v62 = vld [vmem:[#allocation44_spill] sm:$0xff]  ;;  %v2058_v26 = vpop.f32.mrf.mxu1 }
 0x262   : > { %3055 = vmatpush.msra.mxu3 %v2649_v16  ;;  %2988 = vmatpush.msra.mxu0 %v2549_v43  ;;  %v5623_v20 = vmul.f32 %v2469_v0, %v2429_v13  ;;  %v1450_v32 = vadd.f32 %v6142_v33, %v1421_v45  ;;  %v1653_v51 = vadd.f32 %v6143_v28, %v1624_v61  ;;  %v2577_v6 = vld [vmem:[#allocation4 + $0x138] sm:$0xff]  ;;  %v2607_v43 = vld [vmem:[#allocation4 + $0x228] sm:$0xff] }
 0x263   : > { %3010 = vmatpush.msra.mxu1 %v2583_v50  ;;  %3034 = vmatpush.msra.mxu2 %v2613_v19  ;;  %v6144_v16 = vld [vmem:[#allocation21_spill] sm:$0xff]  ;;  %v6146_v47 = vld [vmem:[#allocation46_spill] sm:$0xff]  ;;  %v2393_v19 = vmul.f32 %v4333_v9, %v5597_v52  ;;  %v6148_v58 = vld [vmem:[#allocation43_spill] sm:$0xff] }
 0x264   : > { %3056 = vmatpush.msra.mxu3 %v2647_v22  ;;  %2989 = vmatpush.msra.mxu0 %v2547_v12  ;;  %v1395_v55 = vadd.f32 %v6144_v16, %v1366_v17  ;;  %v1598_v48 = vadd.f32 %v6146_v47, %v6145_v62  ;;  %v2641_v50 = vld [vmem:[#allocation4 + $0x338] sm:$0xff]  ;;  %v6147_v22 = vld [vmem:[#allocation27_spill] sm:$0xff]  ;;  %v1650_v45 = vadd.f32 %v6148_v58, %v1621_v59  ;;  %v6149_v0 = vld [vmem:[#allocation32_spill] sm:$0xff] }
 0x265   : > { %3011 = vmatpush.msra.mxu1 %v2581_v39  ;;  %3035 = vmatpush.msra.mxu2 %v2611_v40  ;;  %v1447_v57 = vadd.f32 %v6147_v22, %v1418_v56  ;;  %v2541_v61 = vld [vmem:[#allocation4 + $0x18] sm:$0xff]  ;;  %v2575_v12 = vld [vmem:[#allocation4 + $0x128] sm:$0xff]  ;;  %v2059_v39 = vadd.f32 %v2058_v26, %v2029_v34  ;;  %v2397_v13 = vsub.f32 2.0, %v2393_v19  ;;  %v1479_v52 = vadd.f32 %v6149_v0, %v1450_v32 }
 0x266   : > { %3057 = vmatpush.msra.mxu3 %v2645_v8  ;;  %2990 = vmatpush.msra.mxu0 %v2545_v25  ;;  %v2605_v17 = vld [vmem:[#allocation4 + $0x218] sm:$0xff]  ;;  %v2639_v40 = vld [vmem:[#allocation4 + $0x328] sm:$0xff]  ;;  %v2300_v8 = vmul.f32 2.0, %v5579_v53  ;;  %v1682_v56 = vadd.f32 %v5431_v37, %v1653_v51  ;;  %v2116_v19 = vpop.f32.mrf.mxu3 }
 0x267   : > { %3012 = vmatpush.msra.mxu1 %v2579_v42  ;;  %3036 = vmatpush.msra.mxu2 %v2609_v44  ;;  %v2539_v59 = vld [vmem:[#allocation4 + $0x8] sm:$0xff]  ;;  %v2573_v25 = vld [vmem:[#allocation4 + $0x118] sm:$0xff]  ;;  %v2087_v42 = vpop.f32.mrf.mxu2  ;;  %v5638_v44 = vrot.slane %v5583_v27, 4 }
 0x268   : > { %3058 = vmatpush.msra.mxu3 %v2643_v18  ;;  %2991 = vmatpush.msra.mxu0 %v2543_v3  ;;  %v6150_v18 = vld [vmem:[#allocation47_spill] sm:$0xff]  ;;  %v2637_v28 = vld [vmem:[#allocation4 + $0x318] sm:$0xff]  ;;  %v2088_v4 = vadd.f32 %v2087_v42, %v2059_v39  ;;  %v2401_v3 = vmul.f32 %v4333_v9, %v2397_v13  ;;  %v6152_v34 = vld [vmem:[#allocation28_spill] sm:$0xff]  ;;  %v1711_v58 = vadd.f32 %v5435_v54, %v1682_v56 }
 0x269   : > { %3013 = vmatpush.msra.mxu1 %v2577_v6  ;;  %3037 = vmatpush.msra.mxu2 %v2607_v43  ;;  %v1627_v33 = vadd.f32 %v6150_v18, %v1598_v48  ;;  %v2603_v53 = vld [vmem:[#allocation4 + $0x208] sm:$0xff]  ;;  %v1476_v37 = vadd.f32 %v6152_v34, %v1447_v57  ;;  %v6153_v51 = vld [vmem:[#allocation53_spill] sm:$0xff]  ;;  %v2311_v48 = vadd.f32 %v5638_v44, %v2300_v8  ;;  %v6157_v0 = vld [vmem:[#allocation34_spill] sm:$0xff]  ;;  %v2032_v18 = vpop.f32.mrf.mxu0 }
 0x26a   : > { %3059 = vmatpush.msra.mxu3 %v2641_v50  ;;  %2992 = vmatpush.msra.mxu0 %v2541_v61  ;;  %v6151_v6 = vld [vmem:[#allocation23_spill] sm:$0xff]  ;;  %v1679_v16 = vadd.f32 %v6153_v51, %v1650_v45  ;;  %v2697_v62 = vld [vmem:[#allocation4 + $0x4f8] sm:$0xff]  ;;  %v2315_v9 = vadd.f32 %v5638_v44, %v2304_v1  ;;  %v1740_v56 = vadd.f32 %v5441_v7, %v1711_v58 }
 0x26b   : > { %3014 = vmatpush.msra.mxu1 %v2575_v12  ;;  %v1424_v32 = vadd.f32 %v6151_v6, %v1395_v55  ;;  %3038 = vmatpush.msra.mxu2 %v2605_v17  ;;  %v2761_v47 = vld [vmem:[#allocation4 + $0x6f8] sm:$0xff]  ;;  %v2571_v50 = vld [vmem:[#allocation4 + $0x108] sm:$0xff]  ;;  %v2409_v55 = vrot.slane %v2401_v3, 6  ;;  %v5649_v12 = vadd.f32 %v2116_v19, %v2088_v4  ;;  %v2061_v3 = vpop.f32.mrf.mxu1 }
 0x26c   : > { %3060 = vmatpush.msra.mxu3 %v2639_v40  ;;  %v6154_v27 = vld [vmem:[#allocation33_spill] sm:$0xff]  ;;  %2993 = vmatpush.msra.mxu0 %v2539_v59  ;;  %v2635_v26 = vld [vmem:[#allocation4 + $0x308] sm:$0xff]  ;;  %v6158_v59 = vld [vmem:[#allocation54_spill] sm:$0xff] }
 0x26d   : > { %v1508_v43 = vadd.f32 %v6154_v27, %v1479_v52  ;;  %3015 = vmatpush.msra.mxu1 %v2573_v25  ;;  %v6155_v22 = vld [vmem:[#allocation29_spill] sm:$0xff]  ;;  %3039 = vmatpush.msra.mxu2 %v2603_v53  ;;  %v2695_v45 = vld [vmem:[#allocation4 + $0x4e8] sm:$0xff]  ;;  %v5652_v13 = vmul.f32 %v2409_v55, %v2311_v48  ;;  %v5654_v1 = vmul.f32 %v2409_v55, %v2315_v9  ;;  %v6164_v55 = vld [vmem:[#allocation58_spill] sm:$0xff] }
 0x26e   : > { %v1505_v57 = vadd.f32 %v6155_v22, %v1476_v37  ;;  %3061 = vmatpush.msra.mxu3 %v2637_v28  ;;  %v2729_v61 = vld [vmem:[#allocation4 + $0x5f8] sm:$0xff]  ;;  %3070 = vmatpush.msrb.mxu0 %v2697_v62  ;;  %v2759_v40 = vld [vmem:[#allocation4 + $0x6e8] sm:$0xff]  ;;  %v1453_v52 = vadd.f32 %v6157_v0, %v1424_v32  ;;  %v1708_v54 = vadd.f32 %v6158_v59, %v1679_v16 }
 0x26f   : > { %v6156_v39 = vld [vmem:[#allocation49_spill] sm:$0xff]  ;;  %3116 = vmatpush.msrb.mxu2 %v2761_v47  ;;  %3016 = vmatpush.msra.mxu1 %v2571_v50  ;;  %v2727_v42 = vld [vmem:[#allocation4 + $0x5e8] sm:$0xff]  ;;  %v2489_v6 = vrot.slane %v5652_v13, 4  ;;  %v2490_v32 = vrot.slane %v5654_v1, 4  ;;  %v2062_v16 = vadd.f32 %v2061_v3, %v2032_v18  ;;  %v5672_v22 = vadd.f32 %v6164_v55, %v1740_v56 }
 0x270   : > { %v1656_v17 = vadd.f32 %v6156_v39, %v1627_v33  ;;  %v2793_v8 = vld [vmem:[#allocation4 + $0x7f8] sm:$0xff]  ;;  %3062 = vmatpush.msra.mxu3 %v2635_v26  ;;  %v6159_v33 = vld [vmem:[#allocation35_spill] sm:$0xff]  ;;  %3071 = vmatpush.msrb.mxu0 %v2695_v45  ;;  %v6163_v9 = vld [vmem:[#allocation36_spill] sm:$0xff] }
 0x271   : > { %v2693_v25 = vld [vmem:[#allocation4 + $0x4d8] sm:$0xff]  ;;  %v5660_v53 = vadd.f32 %v6159_v33, %v1508_v43  ;;  %3093 = vmatpush.msrb.mxu1 %v2729_v61  ;;  %v2791_v4 = vld [vmem:[#allocation4 + $0x7e8] sm:$0xff]  ;;  %3117 = vmatpush.msrb.mxu2 %v2759_v40  ;;  %v2491_v26 = vsel %vm792_vm3, %v2489_v6, %v2490_v32  ;;  %v1482_v19 = vadd.f32 %v6163_v9, %v1453_v52  ;;  %v2090_v61 = vpop.f32.mrf.mxu2 }
 0x272   : > { %v2757_v28 = vld [vmem:[#allocation4 + $0x6d8] sm:$0xff]  ;;  %v6160_v34 = vld [vmem:[#allocation55_spill] sm:$0xff]  ;;  %3139 = vmatpush.msrb.mxu3 %v2793_v8  ;;  %3072 = vmatpush.msrb.mxu0 %v2693_v25  ;;  %v2091_v8 = vadd.f32 %v2090_v61, %v2062_v16  ;;  %v6166_v59 = vld [vmem:[#allocation56_spill] sm:$0xff]  ;;  %v5692_v3 = vmul.f32 %v5672_v22, %v5672_v22 }
 0x273   : > { %v1737_v37 = vadd.f32 %v6160_v34, %v1708_v54  ;;  %v2691_v7 = vld [vmem:[#allocation4 + $0x4c8] sm:$0xff]  ;;  %v2725_v51 = vld [vmem:[#allocation4 + $0x5d8] sm:$0xff]  ;;  %3094 = vmatpush.msrb.mxu1 %v2727_v42  ;;  %3118 = vmatpush.msrb.mxu2 %v2757_v28  ;;  %v5679_v39 = vmul.f32 %v5660_v53, %v5660_v53  ;;  %v2064_v61 = vpop.f32.mrf.mxu1 }
 0x274   : > { %v6161_v62 = vld [vmem:[#allocation31_spill] sm:$0xff]  ;;  %v6162_v27 = vld [vmem:[#allocation57_spill] sm:$0xff]  ;;  %3140 = vmatpush.msrb.mxu3 %v2791_v4  ;;  %3073 = vmatpush.msrb.mxu0 %v2691_v7  ;;  %v2119_v4 = vpop.f32.mrf.mxu3  ;;  %v6168_v7 = vld [vmem:[#allocation60_spill] sm:$0xff] }
 0x275   : > { %v5666_v47 = vadd.f32 %v6161_v62, %v1505_v57  ;;  %v1685_v43 = vadd.f32 %v6162_v27, %v1656_v17  ;;  %v2755_v48 = vld [vmem:[#allocation4 + $0x6c8] sm:$0xff]  ;;  %v2789_v50 = vld [vmem:[#allocation4 + $0x7d8] sm:$0xff]  ;;  %v5675_v57 = vmul.f32 %v2491_v26, %v5623_v20  ;;  %3095 = vmatpush.msrb.mxu1 %v2725_v51  ;;  %v5683_v54 = vadd.f32 %v6166_v59, %v1737_v37  ;;  %v2035_v26 = vpop.f32.mrf.mxu0 }
 0x276   : > { %v2689_v58 = vld [vmem:[#allocation4 + $0x4b8] sm:$0xff]  ;;  %v2723_v45 = vld [vmem:[#allocation4 + $0x5c8] sm:$0xff]  ;;  %3119 = vmatpush.msrb.mxu2 %v2755_v48  ;;  %3141 = vmatpush.msrb.mxu3 %v2789_v50  ;;  %v5694_v34 = vadd.f32 %v2119_v4, %v2091_v8  ;;  %v2337_v37 = vrot.slane %v5679_v39, 6 }
 0x277   : > { %v2753_v17 = vld [vmem:[#allocation4 + $0x6b8] sm:$0xff]  ;;  %v2787_v40 = vld [vmem:[#allocation4 + $0x7c8] sm:$0xff]  ;;  %v5687_v20 = vmul.f32 %v5666_v47, %v5666_v47  ;;  %3074 = vmatpush.msrb.mxu0 %v2689_v58  ;;  %3096 = vmatpush.msrb.mxu1 %v2723_v45  ;;  %v5703_v48 = vmul.f32 %v5683_v54, %v5683_v54  ;;  %v2339_v58 = vrot.slane %v5692_v3, 6 }
 0x278   : > { %v6165_v0 = vld [vmem:[#allocation37_spill] sm:$0xff]  ;;  %v2687_v56 = vld [vmem:[#allocation4 + $0x4a8] sm:$0xff]  ;;  %3120 = vmatpush.msrb.mxu2 %v2753_v17  ;;  %3142 = vmatpush.msrb.mxu3 %v2787_v40  ;;  %v6170_v40 = vld [vmem:[#allocation62_spill] sm:$0xff] }
 0x279   : > { %v1511_v52 = vadd.f32 %v6165_v0, %v1482_v19  ;;  %v2721_v25 = vld [vmem:[#allocation4 + $0x5b8] sm:$0xff]  ;;  %v6167_v42 = vld [vmem:[#allocation59_spill] sm:$0xff]  ;;  %3075 = vmatpush.msrb.mxu0 %v2687_v56  ;;  %v2321_v9 = vrot.slane %v5687_v20, 6  ;;  %3040 = vmatmul.f32.vlgmr.msra.gmra.mxu2 %v4904_v11  ;;  %v2322_v56 = vrot.slane %v5703_v48, 6 }
 0x27a   : > { %v1714_v18 = vadd.f32 %v6167_v42, %v1685_v43  ;;  %v2751_v33 = vld [vmem:[#allocation4 + $0x6a8] sm:$0xff]  ;;  %v2785_v28 = vld [vmem:[#allocation4 + $0x7b8] sm:$0xff]  ;;  %3097 = vmatpush.msrb.mxu1 %v2721_v25  ;;  %2994 = vmatmul.f32.vlgmr.msra.gmra.mxu0 %v4898_v10 }
 0x27b   : > { %v2685_v6 = vld [vmem:[#allocation4 + $0x498] sm:$0xff]  ;;  %v2719_v32 = vld [vmem:[#allocation4 + $0x5a8] sm:$0xff]  ;;  %3121 = vmatpush.msrb.mxu2 %v2751_v33  ;;  %3143 = vmatpush.msrb.mxu3 %v2785_v28  ;;  %v2338_v17 = vsel %vm774_vm1, %v2321_v9, %v2337_v37  ;;  %v2329_v4 = vsub.f32 %v5660_v53, %v2321_v9  ;;  %v2340_v11 = vsel %vm774_vm1, %v2322_v56, %v2339_v58 }
 0x27c   : > { %v1743_v51 = vadd.f32 %v6168_v7, %v1714_v18  ;;  %v2749_v16 = vld [vmem:[#allocation4 + $0x698] sm:$0xff]  ;;  %v2783_v62 = vld [vmem:[#allocation4 + $0x7a8] sm:$0xff]  ;;  %3076 = vmatpush.msrb.mxu0 %v2685_v6  ;;  %3098 = vmatpush.msrb.mxu1 %v2719_v32  ;;  %v2093_v18 = vpop.f32.mrf.mxu2 }
 0x27d   : > { %v6169_v27 = vld [vmem:[#allocation39_spill] sm:$0xff]  ;;  %v2717_v19 = vld [vmem:[#allocation4 + $0x598] sm:$0xff]  ;;  %3122 = vmatpush.msrb.mxu2 %v2749_v16  ;;  %3144 = vmatpush.msrb.mxu3 %v2783_v62 }
 0x27e   : > { %v5699_v43 = vadd.f32 %v6169_v27, %v1511_v52  ;;  %v2683_v50 = vld [vmem:[#allocation4 + $0x488] sm:$0xff]  ;;  %v2781_v45 = vld [vmem:[#allocation4 + $0x798] sm:$0xff]  ;;  %v5709_v8 = vadd.f32 %v6170_v40, %v1743_v51  ;;  %v2065_v52 = vadd.f32 %v2064_v61, %v2035_v26  ;;  %3099 = vmatpush.msrb.mxu1 %v2717_v19  ;;  %3063 = vmatmul.f32.vlgmr.msra.gmra.mxu3 %v4936_v24  ;;  %v2122_v27 = vpop.f32.mrf.mxu3 }
 0x27f   : > { %v2747_v55 = vld [vmem:[#allocation4 + $0x688] sm:$0xff]  ;;  %3077 = vmatpush.msrb.mxu0 %v2683_v50  ;;  %v2681_v0 = vld [vmem:[#allocation4 + $0x478] sm:$0xff]  ;;  %3145 = vmatpush.msrb.mxu3 %v2781_v45  ;;  %v2330_v24 = vsub.f32 %v5672_v22, %v2322_v56  ;;  %v2361_v45 = vrot.slane %v2329_v4, 5 }
 0x280   : > { %v2349_v59 = vsub.f32 %v5699_v43, %v2338_v17  ;;  %3123 = vmatpush.msrb.mxu2 %v2747_v55  ;;  %v2715_v25 = vld [vmem:[#allocation4 + $0x588] sm:$0xff]  ;;  %v2745_v42 = vld [vmem:[#allocation4 + $0x678] sm:$0xff]  ;;  %v2094_v28 = vadd.f32 %v2093_v18, %v2065_v52  ;;  %v2350_v37 = vsub.f32 %v5709_v8, %v2340_v11  ;;  %3017 = vmatmul.f32.vlgmr.msra.gmra.mxu1 %v4930_v23  ;;  %v2142_v17 = vpop.f32.mrf.mxu0 }
 0x281   : > { %v2779_v33 = vld [vmem:[#allocation4 + $0x788] sm:$0xff]  ;;  %3078 = vmatpush.msrb.mxu0 %v2681_v0  ;;  %v2713_v32 = vld [vmem:[#allocation4 + $0x578] sm:$0xff]  ;;  %3100 = vmatpush.msrb.mxu1 %v2715_v25  ;;  %v2143_v52 = vadd.f32 %v2142_v17, %v5621_v21  ;;  %v2364_v18 = vrot.slane %v2330_v24, 5 }
 0x282   : > { %v2679_v6 = vld [vmem:[#allocation4 + $0x468] sm:$0xff]  ;;  %3124 = vmatpush.msrb.mxu2 %v2745_v42  ;;  %v2777_v51 = vld [vmem:[#allocation4 + $0x778] sm:$0xff]  ;;  %v2362_v16 = vrot.slane %v2349_v59, 5  ;;  %3146 = vmatpush.msrb.mxu3 %v2779_v33  ;;  %v5723_v58 = vadd.f32 %v2122_v27, %v2094_v28  ;;  %v2365_v23 = vrot.slane %v2350_v37, 5 }
 0x283   : > { %v2743_v7 = vld [vmem:[#allocation4 + $0x668] sm:$0xff]  ;;  %v2677_v10 = vld [vmem:[#allocation4 + $0x458] sm:$0xff]  ;;  %3079 = vmatpush.msrb.mxu0 %v2679_v6  ;;  %3101 = vmatpush.msrb.mxu1 %v2713_v32 }
 0x284   : > { %v2711_v62 = vld [vmem:[#allocation4 + $0x568] sm:$0xff]  ;;  %v6171_v50 = vld [vmem:[#allocation22_spill] sm:$0xff]  ;;  %3125 = vmatpush.msrb.mxu2 %v2743_v7  ;;  %3147 = vmatpush.msrb.mxu3 %v2777_v51  ;;  %v2363_v59 = vsel %vm2257_vm6, %v2361_v45, %v2362_v16  ;;  %v6173_v25 = vld [vmem:[#allocation25_spill] sm:$0xff]  ;;  %v2366_v16 = vsel %vm2257_vm6, %v2364_v18, %v2365_v23  ;;  %v2200_v27 = vpop.f32.mrf.mxu2 }
 0x285   : > { %v6172_v26 = vld [vmem:[#allocation24_spill] sm:$0xff]  ;;  %v2741_v19 = vld [vmem:[#allocation4 + $0x658] sm:$0xff]  ;;  %3080 = vmatpush.msrb.mxu0 %v2677_v10  ;;  %3102 = vmatpush.msrb.mxu1 %v2711_v62  ;;  %v2377_v37 = vadd.f32 %v2363_v59, %v2329_v4  ;;  %v2378_v45 = vadd.f32 %v2366_v16, %v2330_v24  ;;  %v6177_v17 = vld [vmem:[#allocation51_spill] sm:$0xff]  ;;  %v2258_v59 = vrot.slane %v5666_v47, 5 }
 0x286   : > { %v1369_v9 = vadd.f32 %v6172_v26, %v6171_v50  ;;  %v2775_v55 = vld [vmem:[#allocation4 + $0x768] sm:$0xff]  ;;  %v2709_v40 = vld [vmem:[#allocation4 + $0x558] sm:$0xff]  ;;  %3126 = vmatpush.msrb.mxu2 %v2741_v19  ;;  %v2171_v28 = vpop.f32.mrf.mxu1  ;;  %2997 = vmatmul.f32.gmra.mxu0 %v4959_v46 }
 0x287   : > { %v2675_v61 = vld [vmem:[#allocation4 + $0x448] sm:$0xff]  ;;  %3148 = vmatpush.msrb.mxu3 %v2775_v55  ;;  %v2773_v56 = vld [vmem:[#allocation4 + $0x758] sm:$0xff]  ;;  %3043 = vmatmul.f32.gmra.mxu2 %v4966_v49  ;;  %v2172_v32 = vadd.f32 %v2171_v28, %v2143_v52  ;;  %v2259_v55 = vrot.slane %v5660_v53, 5 }
 0x288   : > { %v2739_v0 = vld [vmem:[#allocation4 + $0x648] sm:$0xff]  ;;  %v1398_v42 = vadd.f32 %v6173_v25, %v1369_v9  ;;  %3081 = vmatpush.msrb.mxu0 %v2675_v61  ;;  %v2673_v33 = vld [vmem:[#allocation4 + $0x438] sm:$0xff]  ;;  %3103 = vmatpush.msrb.mxu1 %v2709_v40  ;;  %v2432_v25 = vrot.slane %v5679_v39, 5 }
 0x289   : > { %3127 = vmatpush.msrb.mxu2 %v2739_v0  ;;  %v2707_v11 = vld [vmem:[#allocation4 + $0x548] sm:$0xff]  ;;  %v2737_v6 = vld [vmem:[#allocation4 + $0x638] sm:$0xff]  ;;  %3149 = vmatpush.msrb.mxu3 %v2773_v56  ;;  %v2201_v19 = vadd.f32 %v2200_v27, %v2172_v32  ;;  %v5749_v32 = vadd.f32 %v5590_v38, %v2378_v45 }
 0x28a   : > { %v6174_v21 = vld [vmem:[#allocation48_spill] sm:$0xff]  ;;  %v6175_v7 = vld [vmem:[#allocation50_spill] sm:$0xff]  ;;  %3066 = vmatmul.f32.gmra.mxu3 %v4988_v63  ;;  %3082 = vmatpush.msrb.mxu0 %v2673_v33  ;;  %v5738_v63 = vadd.f32 %v5590_v38, %v2377_v37  ;;  %v2431_v37 = vrot.slane %v5687_v20, 5 }
 0x28b   : > { %v1601_v51 = vadd.f32 %v6175_v7, %v6174_v21  ;;  %v2771_v10 = vld [vmem:[#allocation4 + $0x748] sm:$0xff]  ;;  %v2705_v62 = vld [vmem:[#allocation4 + $0x538] sm:$0xff]  ;;  %3104 = vmatpush.msrb.mxu1 %v2707_v11  ;;  %3128 = vmatpush.msrb.mxu2 %v2737_v6  ;;  %v2260_v6 = vsel %vm2257_vm6, %v2258_v59, %v2259_v55 }
 0x28c   : > { %v2671_v49 = vld [vmem:[#allocation4 + $0x428] sm:$0xff]  ;;  %v6176_v50 = vld [vmem:[#allocation26_spill] sm:$0xff]  ;;  %3150 = vmatpush.msrb.mxu3 %v2771_v10  ;;  %3020 = vmatmul.f32.gmra.mxu1 %v4983_v60  ;;  %4334 = vrcp.f32 %v5738_v63  ;;  %v6181_v55 = vld [vmem:[#allocation41_spill] sm:$0xff] }
 0x28d   : > { %v1427_v26 = vadd.f32 %v6176_v50, %v1398_v42  ;;  %v2735_v4 = vld [vmem:[#allocation4 + $0x628] sm:$0xff]  ;;  %v2769_v9 = vld [vmem:[#allocation4 + $0x738] sm:$0xff]  ;;  %v1630_v23 = vadd.f32 %v6177_v17, %v1601_v51  ;;  %3083 = vmatpush.msrb.mxu0 %v2671_v49  ;;  %3105 = vmatpush.msrb.mxu1 %v2705_v62  ;;  %v2229_v52 = vpop.f32.mrf.mxu3  ;;  %v2145_v56 = vpop.f32.mrf.mxu0  ;;  %v2433_v49 = vsel %vm2257_vm6, %v2431_v37, %v2432_v25  ;;  %4336 = vrcp.f32 %v5749_v32 }
 0x28e   : > { %v2669_v46 = vld [vmem:[#allocation4 + $0x418] sm:$0xff]  ;;  %v2703_v61 = vld [vmem:[#allocation4 + $0x528] sm:$0xff]  ;;  %3129 = vmatpush.msrb.mxu2 %v2735_v4  ;;  %3151 = vmatpush.msrb.mxu3 %v2769_v9  ;;  %v5742_v60 = vadd.f32 %v2229_v52, %v2201_v19  ;;  %v2146_v11 = vadd.f32 %v2145_v56, %v5649_v12  ;;  %v2435_v12 = vrot.slane %v5692_v3, 5  ;;  %v5757_v62 = vmul.f32 %v2260_v6, %v5666_v47 }
 0x28f   : > { %v2733_v40 = vld [vmem:[#allocation4 + $0x618] sm:$0xff]  ;;  %v2767_v0 = vld [vmem:[#allocation4 + $0x728] sm:$0xff]  ;;  %3084 = vmatpush.msrb.mxu0 %v2669_v46  ;;  %3106 = vmatpush.msrb.mxu1 %v2703_v61  ;;  %v2434_v9 = vrot.slane %v5703_v48, 5  ;;  %v2262_v3 = vrot.slane %v5672_v22, 5  ;;  %v3239_v61 = vld [vmem:[#allocation6 + $0x70] sm:$0xff]  ;;  %v2261_v17 = vrot.slane %v5683_v54, 5 }
 0x290   : > { %v2667_v53 = vld [vmem:[#allocation4 + $0x408] sm:$0xff]  ;;  %v2701_v24 = vld [vmem:[#allocation4 + $0x518] sm:$0xff]  ;;  %3130 = vmatpush.msrb.mxu2 %v2733_v40  ;;  %3152 = vmatpush.msrb.mxu3 %v2767_v0  ;;  %v2174_v16 = vpop.f32.mrf.mxu1  ;;  %v5767_v47 = vmul.f32 %v5742_v60, %v5742_v60  ;;  %v3413_v22 = vld [vmem:[#allocation7 + $0x70] sm:$0xff]  ;;  %v2447_v0 = vadd.f32 %v2433_v49, %v5687_v20 }
 0x291   : > { %v6178_v42 = vld [vmem:[#allocation38_spill] sm:$0xff]  ;;  %v2731_v33 = vld [vmem:[#allocation4 + $0x608] sm:$0xff]  ;;  %3085 = vmatpush.msrb.mxu0 %v2667_v53  ;;  %3107 = vmatpush.msrb.mxu1 %v2701_v24  ;;  %v2175_v10 = vadd.f32 %v2174_v16, %v2146_v11 }
 0x292   : > { %v1456_v18 = vadd.f32 %v6178_v42, %v1427_v26  ;;  %v2765_v28 = vld [vmem:[#allocation4 + $0x718] sm:$0xff]  ;;  %v6179_v39 = vld [vmem:[#allocation52_spill] sm:$0xff]  ;;  %3131 = vmatpush.msrb.mxu2 %v2731_v33  ;;  %3086 = vmatmul.f32.vlgmr.msrb.gmra.mxu0 %v5079_v29  ;;  %v5775_v40 = vpop.eup %4334  ;;  %v2324_v25 = vrot.slane %v5767_v47, 6  ;;  %v3411_v16 = vld [vmem:[#allocation7 + $0x60] sm:$0xff]  ;;  %v5801_v49 = vadd.f32 %v2447_v0, %v5570_v2 }
 0x293   : > { %v1659_v21 = vadd.f32 %v6179_v39, %v1630_v23  ;;  %v2699_v7 = vld [vmem:[#allocation4 + $0x508] sm:$0xff]  ;;  %3153 = vmatpush.msrb.mxu3 %v2765_v28  ;;  %3132 = vmatmul.f32.vlgmr.msrb.gmra.mxu2 %v5085_v30  ;;  %v3240_v26 = vld [vmem:[#allocation6 + $0x78] sm:$0xff]  ;;  %v2436_v23 = vsel %vm2257_vm6, %v2434_v9, %v2435_v12  ;;  %v5785_v6 = vpop.eup %4336  ;;  %v5789_v37 = vmul.f32 %v5775_v40, %v5738_v63 }
 0x294   : > { %v2763_v51 = vld [vmem:[#allocation4 + $0x708] sm:$0xff]  ;;  %v3414_v4 = vld [vmem:[#allocation7 + $0x78] sm:$0xff]  ;;  %3108 = vmatpush.msrb.mxu1 %v2699_v7  ;;  %v2203_v19 = vpop.f32.mrf.mxu2  ;;  %3257 = vmatpush.msra.mxu0 %v3240_v26  ;;  %v2448_v33 = vadd.f32 %v2436_v23, %v5703_v48  ;;  %4338 = vrcp.f32 %v5801_v49 }
 0x295   : > { %v6180_v27 = vld [vmem:[#allocation40_spill] sm:$0xff]  ;;  %3154 = vmatpush.msrb.mxu3 %v2763_v51  ;;  %v6182_v29 = vld [vmem:[#allocation61_spill] sm:$0xff]  ;;  %3109 = vmatmul.f32.vlgmr.msrb.gmra.mxu1 %v5127_v5  ;;  %v2204_v30 = vadd.f32 %v2203_v19, %v2175_v10  ;;  %v2282_v5 = vrot.slane %v5757_v62, 4  ;;  %v6183_v42 = vld [vmem:[#allocation42_spill] sm:$0xff] }
 0x296   : > { %v1485_v50 = vadd.f32 %v6180_v27, %v1456_v18  ;;  %v1688_v46 = vadd.f32 %v6182_v29, %v1659_v21  ;;  %3155 = vmatmul.f32.vlgmr.msrb.gmra.mxu3 %v5133_v15  ;;  %3431 = vmatpush.msra.mxu2 %v3414_v4  ;;  %v3238_v59 = vld [vmem:[#allocation6 + $0x68] sm:$0xff]  ;;  %v2263_v15 = vsel %vm2257_vm6, %v2261_v17, %v2262_v3  ;;  %v3237_v51 = vld [vmem:[#allocation6 + $0x60] sm:$0xff]  ;;  %v2440_v27 = vrot.slane %v5767_v47, 5  ;;  %v3410_v9 = vld [vmem:[#allocation7 + $0x58] sm:$0xff] }
 0x297   : > { %v2232_v52 = vpop.f32.mrf.mxu3  ;;  %v3412_v53 = vld [vmem:[#allocation7 + $0x68] sm:$0xff]  ;;  %v2148_v24 = vpop.f32.mrf.mxu0  ;;  %3258 = vmatpush.msra.mxu0 %v3239_v61  ;;  %v5794_v48 = vmul.f32 %v2263_v15, %v5683_v54  ;;  %v3236_v54 = vld [vmem:[#allocation6 + $0x58] sm:$0xff]  ;;  %v5805_v3 = vadd.f32 %v2448_v33, %v5570_v2 }
 0x298   : > { %v1514_v45 = vadd.f32 %v6181_v55, %v1485_v50  ;;  %v2233_v56 = vadd.f32 %v2232_v52, %v2204_v30  ;;  %3432 = vmatpush.msra.mxu2 %v3413_v22  ;;  %v6184_v28 = vld [vmem:[#allocation63_spill] sm:$0xff]  ;;  %v2149_v20 = vadd.f32 %v2148_v24, %v5694_v34  ;;  %v6185_v12 = vld [vmem:[#allocation64_spill] sm:$0xff]  ;;  %v2267_v34 = vrot.slane %v5742_v60, 5  ;;  %v6186_v22 = vld [vmem:[#allocation65_spill] sm:$0xff] }
 0x299   : > { %v1717_v11 = vadd.f32 %v6184_v28, %v1688_v46  ;;  %3259 = vmatpush.msra.mxu0 %v3238_v59  ;;  %v3235_v46 = vld [vmem:[#allocation6 + $0x50] sm:$0xff]  ;;  %v3234_v23 = vld [vmem:[#allocation6 + $0x48] sm:$0xff]  ;;  %v2395_v52 = vsub.f32 2.0, %v5789_v37  ;;  %4340 = vrcp.f32 %v5805_v3 }
 0x29a   : > { %v1543_v18 = vadd.f32 %v6183_v42, %v1514_v45  ;;  %v2248_v39 = vmul.f32 %v2233_v56, %v2233_v56  ;;  %v2268_v21 = vrot.slane %v2233_v56, 5  ;;  %v5791_v7 = vsub.f32 %v2233_v56, %v2324_v25  ;;  %3433 = vmatpush.msra.mxu2 %v3412_v53  ;;  %3089 = vmatmul.f32.gmra.mxu0 %v5169_v14  ;;  %v2177_v63 = vpop.f32.mrf.mxu1  ;;  %v3409_v30 = vld [vmem:[#allocation7 + $0x50] sm:$0xff]  ;;  %v3408_v0 = vld [vmem:[#allocation7 + $0x48] sm:$0xff] }
 0x29b   : > { %v1746_v10 = vadd.f32 %v6185_v12, %v1717_v11  ;;  %3135 = vmatmul.f32.gmra.mxu2 %v5174_v31  ;;  %v2178_v4 = vadd.f32 %v2177_v63, %v2149_v20  ;;  %3260 = vmatpush.msra.mxu0 %v3237_v51  ;;  %v2392_v14 = vmul.f32 %v5785_v6, %v5749_v32  ;;  %v2283_v32 = vrot.slane %v5794_v48, 4  ;;  %v3233_v11 = vld [vmem:[#allocation6 + $0x40] sm:$0xff]  ;;  %v3406_v12 = vld [vmem:[#allocation7 + $0x38] sm:$0xff] }
 0x29c   : > { %v2343_v50 = vrot.slane %v2248_v39, 6  ;;  %v2441_v26 = vrot.slane %v2248_v39, 5  ;;  %3434 = vmatpush.msra.mxu2 %v3411_v16  ;;  %v2269_v31 = vsel %vm2257_vm6, %v2267_v34, %v2268_v21  ;;  %v3407_v20 = vld [vmem:[#allocation7 + $0x40] sm:$0xff]  ;;  %v3232_v16 = vld [vmem:[#allocation6 + $0x38] sm:$0xff] }
 0x29d   : > { %3112 = vmatmul.f32.gmra.mxu1 %v5179_v36  ;;  %v5814_v45 = vmul.f32 %v2269_v31, %v5742_v60  ;;  %3261 = vmatpush.msra.mxu0 %v3236_v54  ;;  %v1775_v17 = vadd.f32 %v6186_v22, %v1746_v10  ;;  %v2396_v59 = vsub.f32 2.0, %v2392_v14  ;;  %v2291_v56 = vsub.f32 %v5709_v8, %v2283_v32  ;;  %v5839_v10 = vpop.eup %4338 }
 0x29e   : > { %3158 = vmatmul.f32.gmra.mxu3 %v5184_v41  ;;  %v2442_v19 = vsel %vm2257_vm6, %v2440_v27, %v2441_v26  ;;  %v2206_v55 = vpop.f32.mrf.mxu2  ;;  %v2344_v29 = vsel %vm774_vm1, %v2324_v25, %v2343_v50  ;;  %3435 = vmatpush.msra.mxu2 %v3410_v9  ;;  %v2290_v41 = vsub.f32 %v5699_v43, %v2282_v5  ;;  %v3231_v50 = vld [vmem:[#allocation6 + $0x30] sm:$0xff] }
 0x29f   : > { %v2450_v36 = vadd.f32 %v2442_v19, %v5767_v47  ;;  %v2207_v61 = vadd.f32 %v2206_v55, %v2178_v4  ;;  %v2285_v60 = vrot.slane %v5814_v45, 4  ;;  %3262 = vmatpush.msra.mxu0 %v3235_v46  ;;  %v2294_v47 = vsub.f32 %v1543_v18, %v2282_v5  ;;  %v4341_v63 = vpop.eup %4340  ;;  %v3405_v26 = vld [vmem:[#allocation7 + $0x30] sm:$0xff] }
 0x2a0   : > { %3436 = vmatpush.msra.mxu2 %v3409_v30  ;;  %v2295_v42 = vsub.f32 %v1775_v17, %v2283_v32  ;;  %v2298_v5 = vmul.f32 2.0, %v2290_v41  ;;  %v2399_v18 = vmul.f32 %v5775_v40, %v2395_v52  ;;  %v2400_v37 = vmul.f32 %v5785_v6, %v2396_v59  ;;  %v3404_v41 = vld [vmem:[#allocation7 + $0x28] sm:$0xff] }
 0x2a1   : > { %v2235_v53 = vpop.f32.mrf.mxu3  ;;  %v2454_v15 = vadd.f32 %v2450_v36, %v5570_v2  ;;  %v2151_v43 = vpop.f32.mrf.mxu0  ;;  %3263 = vmatpush.msra.mxu0 %v3234_v23  ;;  %v2302_v8 = vmul.f32 2.0, %v2294_v47  ;;  %v2299_v34 = vmul.f32 2.0, %v2291_v56  ;;  %v2460_v22 = vmul.f32 %v4341_v63, %v5805_v3  ;;  %v3229_v47 = vld [vmem:[#allocation6 + $0x20] sm:$0xff] }
 0x2a2   : > { %v2236_v24 = vadd.f32 %v2235_v53, %v2207_v61  ;;  %3437 = vmatpush.msra.mxu2 %v3408_v0  ;;  %v2152_v25 = vadd.f32 %v2151_v43, %v5723_v58  ;;  %v2370_v58 = vrot.slane %v5791_v7, 5  ;;  %v2303_v27 = vmul.f32 2.0, %v2295_v42  ;;  %v3230_v61 = vld [vmem:[#allocation6 + $0x28] sm:$0xff]  ;;  %v3403_v43 = vld [vmem:[#allocation7 + $0x20] sm:$0xff]  ;;  %v3402_v42 = vld [vmem:[#allocation7 + $0x18] sm:$0xff] }
 0x2a3   : > { %4342 = vrcp.f32 %v2454_v15  ;;  %3264 = vmatpush.msra.mxu0 %v3233_v11  ;;  %v2407_v54 = vrot.slane %v2399_v18, 6  ;;  %v2408_v9 = vrot.slane %v2400_v37, 6  ;;  %v2309_v19 = vadd.f32 %v5638_v44, %v2298_v5  ;;  %v3227_v37 = vld [vmem:[#allocation6 + $0x10] sm:$0xff] }
 0x2a4   : > { %v5834_v33 = vsub.f32 %v2236_v24, %v2285_v60  ;;  %v2352_v28 = vsub.f32 %v2236_v24, %v2344_v29  ;;  %v2180_v39 = vpop.f32.mrf.mxu1  ;;  %3438 = vmatpush.msra.mxu2 %v3407_v20  ;;  %v2313_v55 = vadd.f32 %v5638_v44, %v2302_v8  ;;  %v2426_v29 = vmul.f32 2.0, %v5814_v45 }
 0x2a5   : > { %v2181_v51 = vadd.f32 %v2180_v39, %v2152_v25  ;;  %3265 = vmatpush.msra.mxu0 %v3232_v16  ;;  %v2310_v30 = vadd.f32 %v5638_v44, %v2299_v34  ;;  %v2314_v17 = vadd.f32 %v5638_v44, %v2303_v27  ;;  %v2415_v52 = vmul.f32 %v2407_v54, %v2309_v19  ;;  %v3228_v25 = vld [vmem:[#allocation6 + $0x18] sm:$0xff]  ;;  %v3401_v39 = vld [vmem:[#allocation7 + $0x10] sm:$0xff]  ;;  %v3400_v34 = vld [vmem:[#allocation7 + $0x8] sm:$0xff] }
 0x2a6   : > { %v2371_v21 = vrot.slane %v2352_v28, 5  ;;  %3439 = vmatpush.msra.mxu2 %v3406_v12  ;;  %v5852_v59 = vmul.f32 %v2407_v54, %v2313_v55  ;;  %v2464_v56 = vsub.f32 2.0, %v2460_v22  ;;  %v2423_v11 = vmul.f32 2.0, %v5757_v62  ;;  %v3226_v12 = vld [vmem:[#allocation6 + $0x8] sm:$0xff]  ;;  %v3399_v54 = vld [vmem:[#allocation7] sm:$0xff] }
 0x2a7   : > { %3266 = vmatpush.msra.mxu0 %v3231_v50  ;;  %v2416_v53 = vmul.f32 %v2408_v9, %v2310_v30  ;;  %v2483_v20 = vrot.slane %v2415_v52, 4  ;;  %v2424_v45 = vmul.f32 2.0, %v5794_v48  ;;  %v2301_v27 = vmul.f32 2.0, %v5834_v33 }
 0x2a8   : > { %v2372_v40 = vsel %vm2257_vm6, %v2370_v58, %v2371_v21  ;;  %v2209_v6 = vpop.f32.mrf.mxu2  ;;  %3440 = vmatpush.msra.mxu2 %v3405_v26  ;;  %v2484_v5 = vrot.slane %v5852_v59, 4  ;;  %v2468_v21 = vmul.f32 %v4341_v63, %v2464_v56  ;;  %v2427_v62 = vadd.f32 %v2423_v11, %v5570_v2 }
 0x2a9   : > { %v4343_v4 = vpop.eup %4342  ;;  %v2380_v14 = vadd.f32 %v2372_v40, %v5791_v7  ;;  %v2210_v31 = vadd.f32 %v2209_v6, %v2181_v51  ;;  %v2459_v7 = vmul.f32 %v5839_v10, %v5801_v49  ;;  %3267 = vmatpush.msra.mxu0 %v3230_v61  ;;  %v2430_v49 = vadd.f32 %v2426_v29, %v5570_v2 }
 0x2aa   : > { %v2462_v46 = vmul.f32 %v4343_v4, %v2454_v15  ;;  %3441 = vmatpush.msra.mxu2 %v3404_v41  ;;  %v2428_v16 = vadd.f32 %v2424_v45, %v5570_v2  ;;  %v2485_v48 = vsel %vm792_vm3, %v2483_v20, %v2484_v5  ;;  %v2505_v2 = vsel %vm2503_vm7, %v2416_v53, 0.0 }
 0x2ab   : > { %v2386_v32 = vadd.f32 %v5590_v38, %v2380_v14  ;;  %v2238_v36 = vpop.f32.mrf.mxu3  ;;  %v2420_v38 = vmul.f32 %v2408_v9, %v2314_v17  ;;  %3268 = vmatpush.msra.mxu0 %v3229_v47  ;;  %v2463_v24 = vsub.f32 2.0, %v2459_v7  ;;  %v2504_v33 = vsel %vm2503_vm7, %v2415_v52, 0.0 }
 0x2ac   : > { %v2239_v23 = vadd.f32 %v2238_v36, %v2210_v31  ;;  %v2466_v0 = vsub.f32 2.0, %v2462_v46  ;;  %3442 = vmatpush.msra.mxu2 %v3403_v43  ;;  %v2472_v26 = vmul.f32 %v2468_v21, %v2428_v16  ;;  %v2312_v29 = vadd.f32 %v5638_v44, %v2301_v27 }
 0x2ad   : > { %4344 = vrcp.f32 %v2386_v32  ;;  %3269 = vmatpush.msra.mxu0 %v3228_v25  ;;  %v2487_v18 = vrot.slane %v2420_v38, 4  ;;  %v2467_v58 = vmul.f32 %v5839_v10, %v2463_v24  ;;  %v2516_v31 = vsel %vm2514_vm8, %v2420_v38, 0.0 }
 0x2ae   : > { %v2297_v15 = vsub.f32 %v2239_v23, %v2285_v60  ;;  %v2470_v3 = vmul.f32 %v4343_v4, %v2466_v0  ;;  %3443 = vmatpush.msra.mxu2 %v3402_v42  ;;  %v2486_v60 = vrot.slane %v2416_v53, 4  ;;  %v3225_v4 = vld [vmem:[#allocation6] sm:$0xff]  ;;  %v2507_v36 = vsel %vm2503_vm7, %v5652_v13, 0.0 }
 0x2af   : > { %3270 = vmatpush.msra.mxu0 %v3227_v37  ;;  %v2471_v63 = vmul.f32 %v2467_v58, %v2427_v62  ;;  %v2506_v61 = vadd.f32 %v2505_v2, %v2504_v33  ;;  %v2515_v41 = vsel %vm2514_vm8, %v5852_v59, 0.0  ;;  %v2518_v7 = vsel %vm2514_vm8, %v5654_v1, 0.0 }
 0x2b0   : > { %v5857_v28 = vmul.f32 %v2470_v3, %v2430_v49  ;;  %3444 = vmatpush.msra.mxu2 %v3401_v39  ;;  %v2305_v40 = vmul.f32 2.0, %v2297_v15  ;;  %v2488_v10 = vsel %vm792_vm3, %v2486_v60, %v2487_v18  ;;  %v2517_v23 = vadd.f32 %v2516_v31, %v2515_v41  ;;  %v3253_v41 = vld [vmem:[#allocation6 + $0xe0] sm:$0xff] }
 0x2b1   : > { %3271 = vmatpush.msra.mxu0 %v3226_v12  ;;  %v2499_v19 = vmul.f32 %v2485_v48, %v2471_v63  ;;  %v2500_v55 = vmul.f32 %v2488_v10, %v2472_v26  ;;  %v2508_v52 = vadd.f32 %v2507_v36, %v2506_v61  ;;  %v2530_v1 = vsel %vm602_vm0, %v5675_v57, 0.0  ;;  %v3430_v48 = vld [vmem:[#allocation7 + $0xf8] sm:$0xff] }
 0x2b2   : > { %3445 = vmatpush.msra.mxu2 %v3400_v34  ;;  %v2316_v46 = vadd.f32 %v5638_v44, %v2305_v40  ;;  %v2519_v47 = vadd.f32 %v2518_v7, %v2517_v23  ;;  %v3256_v34 = vld [vmem:[#allocation6 + $0xf8] sm:$0xff]  ;;  %3454 = vmatpush.msra.mxu3 %v3430_v48  ;;  %v3427_v7 = vld [vmem:[#allocation7 + $0xe0] sm:$0xff]  ;;  %vm3807_vm8 = vcmask 28672  }
 0x2b3   : > { %v4345_v8 = vpop.eup %4344  ;;  %3272 = vmatpush.msra.mxu0 %v3225_v4  ;;  %v2527_v44 = vsel %vm602_vm0, %v2499_v19, 0.0  ;;  %v2528_v53 = vsel %vm602_vm0, %v2500_v55, 0.0  ;;  %3286 = vmatpush.msra.mxu1 %v3256_v34  ;;  %v3254_v19 = vld [vmem:[#allocation6 + $0xe8] sm:$0xff]  ;;  %v3252_v23 = vld [vmem:[#allocation6 + $0xd8] sm:$0xff] }
 0x2b4   : > { %v2394_v51 = vmul.f32 %v4345_v8, %v2386_v32  ;;  %3446 = vmatpush.msra.mxu2 %v3399_v54  ;;  %v2529_v25 = vadd.f32 %v2528_v53, %v2527_v44  ;;  %v3428_v55 = vld [vmem:[#allocation7 + $0xe8] sm:$0xff]  ;;  %v3251_v44 = vld [vmem:[#allocation6 + $0xd0] sm:$0xff] }
 0x2b5   : > { %v3425_v53 = vld [vmem:[#allocation7 + $0xd0] sm:$0xff] }
 0x2b6   : > { %v2811_v6 = vpop.f32.mrf.mxu0  ;;  %v2398_v50 = vsub.f32 2.0, %v2394_v51  ;;  %v2531_v11 = vadd.f32 %v2530_v1, %v2529_v25  ;;  %v3248_v1 = vld [vmem:[#allocation6 + $0xb8] sm:$0xff]  ;;  %v3421_v25 = vld [vmem:[#allocation7 + $0xb0] sm:$0xff] }
 0x2b8   : > { %v2402_v9 = vmul.f32 %v4345_v8, %v2398_v50 }
 0x2b9   : > { %v2834_v14 = vpop.f32.mrf.mxu1  ;;  %v2857_v30 = vpop.f32.mrf.mxu2 }
 0x2ba   : > { %v2410_v32 = vrot.slane %v2402_v9, 6  ;;  %v2835_v43 = vadd.f32 %v2834_v14, %v2811_v6  ;;  %v3429_v6 = vld [vmem:[#allocation7 + $0xf0] sm:$0xff] }
 0x2bb   : > { %3455 = vmatpush.msra.mxu3 %v3429_v6 }
 0x2bc   : > { %v2418_v22 = vmul.f32 %v2410_v32, %v2312_v29  ;;  %v2422_v17 = vmul.f32 %v2410_v32, %v2316_v46  ;;  %v2880_v0 = vpop.f32.mrf.mxu3  ;;  %v2858_v20 = vadd.f32 %v2857_v30, %v2835_v43  ;;  %v3249_v43 = vld [vmem:[#allocation6 + $0xc0] sm:$0xff] }
 0x2bd   : > { %3456 = vmatpush.msra.mxu3 %v3428_v55 }
 0x2be   : > { %v2492_v38 = vrot.slane %v2418_v22, 4  ;;  %v2510_v13 = vsel %vm2509_vm9, %v2418_v22, 0.0  ;;  %v2493_v15 = vrot.slane %v2422_v17, 4  ;;  %v2521_v59 = vsel %vm2520_vm10, %v2422_v17, 0.0 }
 0x2bf   : > { %v5881_v49 = vadd.f32 %v2510_v13, %v2508_v52  ;;  %v5885_v24 = vadd.f32 %v2521_v59, %v2519_v47  ;;  %v2881_v37 = vadd.f32 %v2880_v0, %v2858_v20  ;;  %3457 = vmatpush.msra.mxu3 %v3427_v7  ;;  %v3426_v0 = vld [vmem:[#allocation7 + $0xd8] sm:$0xff]  ;;  %v3250_v13 = vld [vmem:[#allocation6 + $0xc8] sm:$0xff]  ;;  %v3423_v59 = vld [vmem:[#allocation7 + $0xc0] sm:$0xff]  ;;  %vm3853_vm9 = vcmask 31744  }
 0x2c0   : > { %v2814_v3 = vpop.f32.mrf.mxu0  ;;  %v2494_v56 = vsel %vm792_vm3, %v2492_v38, %v2493_v15  ;;  %v3424_v15 = vld [vmem:[#allocation7 + $0xc8] sm:$0xff]  ;;  %v3245_v20 = vld [vmem:[#allocation6 + $0xa0] sm:$0xff]  ;;  %vm3533_vm10 = vcmask 516096  }
 0x2c1   : > { %v2502_v42 = vmul.f32 %v2494_v56, %v5857_v28  ;;  %v3255_v28 = vld [vmem:[#allocation6 + $0xf0] sm:$0xff]  ;;  %3458 = vmatpush.msra.mxu3 %v3426_v0 }
 0x2c2   : > { %3287 = vmatpush.msra.mxu1 %v3255_v28  ;;  %v3247_v56 = vld [vmem:[#allocation6 + $0xb0] sm:$0xff] }
 0x2c3   : > { %v2837_v5 = vpop.f32.mrf.mxu1  ;;  %v2533_v45 = vsel %vm2532_vm11, %v2502_v42, 0.0  ;;  %v2860_v60 = vpop.f32.mrf.mxu2  ;;  %3459 = vmatpush.msra.mxu3 %v3425_v53  ;;  %v3246_v42 = vld [vmem:[#allocation6 + $0xa8] sm:$0xff]  ;;  %vm3384_vm11 = vcmask 293892  }
 0x2c4   : > { %v5889_v18 = vadd.f32 %v2533_v45, %v2531_v11  ;;  %v2838_v8 = vadd.f32 %v2837_v5, %v2814_v3  ;;  %3288 = vmatpush.msra.mxu1 %v3254_v19  ;;  %v3422_v3 = vld [vmem:[#allocation7 + $0xb8] sm:$0xff]  ;;  %v3420_v11 = vld [vmem:[#allocation7 + $0xa8] sm:$0xff]  ;;  %v3419_v5 = vld [vmem:[#allocation7 + $0xa0] sm:$0xff] }
 0x2c5   : > { %3460 = vmatpush.msra.mxu3 %v3424_v15  ;;  %v3244_v45 = vld [vmem:[#allocation6 + $0x98] sm:$0xff] }
 0x2c6   : > { %v2883_v39 = vpop.f32.mrf.mxu3  ;;  %v2861_v21 = vadd.f32 %v2860_v60, %v2838_v8  ;;  %3289 = vmatpush.msra.mxu1 %v3253_v41  ;;  %v3418_v60 = vld [vmem:[#allocation7 + $0x98] sm:$0xff]  ;;  %v3242_v8 = vld [vmem:[#allocation6 + $0x88] sm:$0xff] }
 0x2c7   : > { %3461 = vmatpush.msra.mxu3 %v3423_v59 }
 0x2c8   : > { %v2884_v27 = vadd.f32 %v2883_v39, %v2861_v21  ;;  %3290 = vmatpush.msra.mxu1 %v3252_v23  ;;  %v3417_v39 = vld [vmem:[#allocation7 + $0x90] sm:$0xff]  ;;  %v3415_v21 = vld [vmem:[#allocation7 + $0x80] sm:$0xff] }
 0x2c9   : > { %3462 = vmatpush.msra.mxu3 %v3422_v3 }
 0x2ca   : > { %v2903_v57 = vpop.f32.mrf.mxu0  ;;  %3291 = vmatpush.msra.mxu1 %v3251_v44 }
 0x2cb   : > { %v2904_v58 = vadd.f32 %v2903_v57, %v2881_v37  ;;  %3463 = vmatpush.msra.mxu3 %v3421_v25  ;;  %v3243_v37 = vld [vmem:[#allocation6 + $0x90] sm:$0xff]  ;;  %v3416_v57 = vld [vmem:[#allocation7 + $0x88] sm:$0xff] }
 0x2cc   : > { %3292 = vmatpush.msra.mxu1 %v3250_v13 }
 0x2cd   : > { %v2926_v51 = vpop.f32.mrf.mxu1  ;;  %v2949_v16 = vpop.f32.mrf.mxu2  ;;  %3464 = vmatpush.msra.mxu3 %v3420_v11  ;;  %v3616_v11 = vld [vmem:[#allocation10 + $0x38] sm:$0xff] }
 0x2ce   : > { %v2927_v62 = vadd.f32 %v2926_v51, %v2904_v58  ;;  %3293 = vmatpush.msra.mxu1 %v3249_v43  ;;  %v3241_v58 = vld [vmem:[#allocation6 + $0x80] sm:$0xff]  ;;  %3630 = vmatpush.msrb.mxu2 %v3616_v11 }
 0x2cf   : > { %3465 = vmatpush.msra.mxu3 %v3419_v5  ;;  %v3614_v5 = vld [vmem:[#allocation10 + $0x28] sm:$0xff] }
 0x2d0   : > { %v2950_v12 = vadd.f32 %v2949_v16, %v2927_v62  ;;  %v2972_v40 = vpop.f32.mrf.mxu3  ;;  %3294 = vmatpush.msra.mxu1 %v3248_v1 }
 0x2d1   : > { %3466 = vmatpush.msra.mxu3 %v3418_v60  ;;  %v3612_v60 = vld [vmem:[#allocation10 + $0x18] sm:$0xff] }
 0x2d2   : > { %v5891_v50 = vadd.f32 %v2972_v40, %v2950_v12  ;;  %3295 = vmatpush.msra.mxu1 %v3247_v56 }
 0x2d3   : > { %3467 = vmatpush.msra.mxu3 %v3417_v39  ;;  %v3610_v39 = vld [vmem:[#allocation10 + $0x8] sm:$0xff] }
 0x2d4   : > { %v2906_v10 = vpop.f32.mrf.mxu0  ;;  %3273 = vmatmul.f32.vlgmr.msra.gmra.mxu0 %v5891_v50  ;;  %3447 = vmatmul.f32.vlgmr.msra.gmra.mxu2 %v5891_v50  ;;  %v3181_v26 = vmul.f32 %v5891_v50, %v5891_v50  ;;  %v3189_v32 = vrot.slane %v5891_v50, 5  ;;  %v3167_v53 = vsel %vm602_vm0, %v5891_v50, inf }
 0x2d5   : > { %v2907_v63 = vadd.f32 %v2906_v10, %v2884_v27  ;;  %3296 = vmatpush.msra.mxu1 %v3246_v42  ;;  %3468 = vmatpush.msra.mxu3 %v3416_v57 }
 0x2d6   : > { %v3201_v14 = vrot.slane %v3181_v26, 6 }
 0x2d7   : > { %v2929_v4 = vpop.f32.mrf.mxu1  ;;  %v2952_v9 = vpop.f32.mrf.mxu2  ;;  %3297 = vmatpush.msra.mxu1 %v3245_v20  ;;  %3469 = vmatpush.msra.mxu3 %v3415_v21  ;;  %v3615_v20 = vld [vmem:[#allocation10 + $0x30] sm:$0xff] }
 0x2d8   : > { %v2930_v54 = vadd.f32 %v2929_v4, %v2907_v63  ;;  %3631 = vmatpush.msrb.mxu2 %v3615_v20 }
 0x2d9   : > { %3298 = vmatpush.msra.mxu1 %v3244_v45  ;;  %v3613_v45 = vld [vmem:[#allocation10 + $0x20] sm:$0xff] }
 0x2da   : > { %v2953_v2 = vadd.f32 %v2952_v9, %v2930_v54  ;;  %v2975_v33 = vpop.f32.mrf.mxu3  ;;  %3632 = vmatpush.msrb.mxu2 %v3614_v5 }
 0x2db   : > { %3299 = vmatpush.msra.mxu1 %v3243_v37  ;;  %v3611_v37 = vld [vmem:[#allocation10 + $0x10] sm:$0xff] }
 0x2dc   : > { %v2976_v31 = vadd.f32 %v2975_v33, %v2953_v2  ;;  %3633 = vmatpush.msrb.mxu2 %v3613_v45 }
 0x2dd   : > { %3300 = vmatpush.msra.mxu1 %v3242_v8  ;;  %v3609_v8 = vld [vmem:[#allocation10] sm:$0xff] }
 0x2de   : > { %v3183_v29 = vmul.f32 %v2976_v31, %v2976_v31  ;;  %v3190_v46 = vrot.slane %v2976_v31, 5  ;;  %v3219_v30 = vsel %vm774_vm1, %v2976_v31, %v3201_v14  ;;  %3634 = vmatpush.msrb.mxu2 %v3612_v60 }
 0x2df   : > { %v3221_v36 = vsel %vm783_vm2, %v3219_v30, %v3201_v14  ;;  %3301 = vmatpush.msra.mxu1 %v3241_v58 }
 0x2e0   : > { %3276 = vmatmul.f32.gmra.mxu0 %v3221_v36  ;;  %3450 = vmatmul.f32.gmra.mxu2 %v3221_v36  ;;  %v3191_v61 = vsel %vm2257_vm6, %v3189_v32, %v3190_v46  ;;  %v3207_v17 = vrot.slane %v3183_v29, 6  ;;  %v3162_v32 = vsel %vm602_vm0, %v5891_v50, -inf }
 0x2e1   : > { %v3197_v22 = vmul.f32 %v3191_v61, %v5891_v50  ;;  %3635 = vmatpush.msrb.mxu2 %v3611_v37 }
 0x2e2   : > { %v3208_v38 = vsel %vm774_vm1, %v3201_v14, %v3207_v17 }
 0x2e3   : > { %v3215_v52 = vrot.slane %v3197_v22, 4  ;;  %3636 = vmatpush.msrb.mxu2 %v3610_v39 }
 0x2e5   : > { %v3223_v47 = vsel %vm792_vm3, %v3208_v38, %v3215_v52  ;;  %3637 = vmatpush.msrb.mxu2 %v3609_v8 }
 0x2e8   : > { %3279 = vmatmul.f32.gmra.mxu0 %v3223_v47 }
 0x2f0   : > { %3282 = vmatmul.f32.gmra.mxu0 %v3215_v52 }
 0x2f7   : > { %v2995_v51 = vpop.f32.mrf.mxu0 }
 0x2fc   : > { %v3041_v16 = vpop.f32.mrf.mxu2 }
 0x2fd   : > { %v3018_v62 = vpop.f32.mrf.mxu1 }
 0x2fe   : > { %v3019_v48 = vadd.f32 %v3018_v62, %v2995_v51 }
 0x300   : > { %v3042_v27 = vadd.f32 %v3041_v16, %v3019_v48  ;;  %v4327_v16 = vld [vmem:[#allocation9] ss:$0 sm:$0xff] }
 0x301   : > { %v3064_v12 = vpop.f32.mrf.mxu3 }
 0x302   : > { %v3065_v6 = vadd.f32 %v3064_v12, %v3042_v27 }
 0x303   : > { %v2998_v34 = vpop.f32.mrf.mxu0 }
 0x309   : > { %v3021_v28 = vpop.f32.mrf.mxu1 }
 0x30a   : > { %v3044_v40 = vpop.f32.mrf.mxu2  ;;  %v3022_v10 = vadd.f32 %v3021_v28, %v2998_v34 }
 0x30c   : > { %v3045_v9 = vadd.f32 %v3044_v40, %v3022_v10 }
 0x30d   : > { %v3067_v63 = vpop.f32.mrf.mxu3 }
 0x30e   : > { %v3068_v33 = vadd.f32 %v3067_v63, %v3045_v9 }
 0x30f   : > { %v3087_v26 = vpop.f32.mrf.mxu0 }
 0x310   : > { %v3088_v4 = vadd.f32 %v3087_v26, %v3065_v6 }
 0x312   : > { %v3110_v54 = vpop.f32.mrf.mxu1 }
 0x313   : > { %v3111_v2 = vadd.f32 %v3110_v54, %v3088_v4 }
 0x316   : > { %v3133_v14 = vpop.f32.mrf.mxu2 }
 0x317   : > { %v3134_v31 = vadd.f32 %v3133_v14, %v3111_v2  ;;  %v3090_v19 = vpop.f32.mrf.mxu0 }
 0x318   : > { %v3091_v29 = vadd.f32 %v3090_v19, %v3068_v33 }
 0x319   : > { %v3156_v55 = vpop.f32.mrf.mxu3 }
 0x31a   : > { %v3157_v46 = vadd.f32 %v3156_v55, %v3134_v31  ;;  %v3113_v30 = vpop.f32.mrf.mxu1 }
 0x31b   : > { %v3114_v41 = vadd.f32 %v3113_v30, %v3091_v29 }
 0x31c   : > { %3302 = vmatmul.f32.vlgmr.msra.gmra.mxu1 %v3157_v46  ;;  %3470 = vmatmul.f32.vlgmr.msra.gmra.mxu3 %v3157_v46  ;;  %v3163_v36 = vsel %vm602_vm0, %v3157_v46, -inf  ;;  %v3182_v7 = vmul.f32 %v3157_v46, %v3157_v46  ;;  %v3168_v44 = vsel %vm602_vm0, %v3157_v46, inf  ;;  %v3192_v47 = vrot.slane %v3157_v46, 5 }
 0x31d   : > { %v3164_v61 = vmax.f32 %v3162_v32, %v3163_v36  ;;  %v3169_v59 = vmin.f32 %v3167_v53, %v3168_v44  ;;  %v3778_v36 = vld [vmem:[#allocation13 + $0x8] sm:$0xff]  ;;  %vm3691_vm0 = vcmask 130048  }
 0x31e   : > { %v3136_v22 = vpop.f32.mrf.mxu2  ;;  %v3202_v52 = vrot.slane %v3182_v7, 6  ;;  %3798 = vmatpush.msrb.mxu3 %v3778_v36 }
 0x31f   : > { %3165 = vmax.xlane.f32.xlu1 %v3164_v61  ;;  %v3137_v17 = vadd.f32 %v3136_v22, %v3114_v41  ;;  %v3777_v61 = vld [vmem:[#allocation13] sm:$0xff] }
 0x320   : > { %3799 = vmatpush.msrb.mxu3 %v3777_v61 }
 0x321   : > { %v3159_v23 = vpop.f32.mrf.mxu3 }
 0x322   : > { %v3160_v0 = vadd.f32 %v3159_v23, %v3137_v17  ;;  %v6187_v23 = vmov 0.0  }
 0x324   : > { %v3184_v38 = vmul.f32 %v3160_v0, %v3160_v0  ;;  %v3193_v13 = vrot.slane %v3160_v0, 5  ;;  %v3220_v15 = vsel %vm774_vm1, %v3160_v0, %v3202_v52 }
 0x325   : > { %v3222_v43 = vsel %vm783_vm2, %v3220_v15, %v3202_v52 }
 0x326   : > { %3305 = vmatmul.f32.gmra.mxu1 %v3222_v43  ;;  %3473 = vmatmul.f32.gmra.mxu3 %v3222_v43  ;;  %v3194_v1 = vsel %vm2257_vm6, %v3192_v47, %v3193_v13  ;;  %v3209_v56 = vrot.slane %v3184_v38, 6  ;;  %v4328_v47 = vld [vmem:[#allocation12] ss:$0 sm:$0xff] }
 0x327   : > { %3170 = vmin.xlane.f32.xlu1 %v3169_v59  ;;  %v3198_v3 = vmul.f32 %v3194_v1, %v3157_v46 }
 0x328   : > { %v3210_v42 = vsel %vm774_vm1, %v3202_v52, %v3209_v56 }
 0x329   : > { %v3216_v25 = vrot.slane %v3198_v3, 4 }
 0x32b   : > { %v3224_v50 = vsel %vm792_vm3, %v3210_v42, %v3216_v25 }
 0x32e   : > { %3308 = vmatmul.f32.gmra.mxu1 %v3224_v50 }
 0x336   : > { %3311 = vmatmul.f32.gmra.mxu1 %v3216_v25 }
 0x357   : > { %v3448_v57 = vpop.f32.mrf.mxu2 }
 0x363   : > { %v3451_v48 = vpop.f32.mrf.mxu2 }
 0x39f   : > { %v3471_v58 = vpop.f32.mrf.mxu3 }
 0x3a0   : > { %v3472_v21 = vadd.f32 %v3471_v58, %v3448_v57 }
 0x3a2   : > { %4209 = vmatmul.msk.f32.vlgmr.msrb.gmra.mxu2 %vm3523_vm12, %v3472_v21  ;;  %v3478_v51 = vsel %vm3477_vm13, %v3472_v21, -inf  ;;  %v3481_v62 = vsel %vm3477_vm13, %v3472_v21, inf  ;;  %v3493_v12 = vmul.f32 %v3472_v21, %v3472_v21  ;;  %v3519_v34 = vmul.f32 %v4327_v16, %v3472_v21 }
 0x3a3   : > { %3479 = vmax.xlane.f32.xlu2 %v3478_v51  ;;  %3482 = vmin.xlane.f32.xlu0 %v3481_v62  ;;  %v3497_v54 = vrot.slane %v3472_v21, 5  ;;  %vm3388_vm13 = vcmask 286720  }
 0x3a4   : > { %v3503_v40 = vrot.slane %v3493_v12, 6  ;;  %v3524_v6 = vsel %vm3523_vm12, %v3519_v34, 0.0 }
 0x3a9   : > { %v3474_v28 = vpop.f32.mrf.mxu3 }
 0x3aa   : > { %v3475_v27 = vadd.f32 %v3474_v28, %v3451_v48 }
 0x3ab   : > { %3525 = vadd.xlane.f32.xlu2 %v3524_v6 }
 0x3ac   : > { %v3494_v10 = vmul.f32 %v3475_v27, %v3475_v27  ;;  %v3498_v63 = vrot.slane %v3475_v27, 5  ;;  %v3512_v26 = vsel %vm774_vm1, %v3475_v27, %v3503_v40 }
 0x3ad   : > { %v3513_v4 = vsel %vm783_vm2, %v3512_v26, %v3503_v40 }
 0x3ae   : > { %4210 = vmatmul.msk.f32.gmra.mxu2 %vm3523_vm12, %v3513_v4  ;;  %v3520_v9 = vmul.f32 %v4327_v16, %v3513_v4  ;;  %v3506_v2 = vrot.slane %v3494_v10, 6  ;;  %v3499_v14 = vsel %vm2257_vm6, %v3497_v54, %v3498_v63 }
 0x3af   : > { %v3501_v33 = vmul.f32 %v3499_v14, %v3472_v21 }
 0x3b0   : > { %v3527_v31 = vsel %vm3523_vm12, %v3520_v9, 0.0  ;;  %v3507_v55 = vsel %vm774_vm1, %v3503_v40, %v3506_v2 }
 0x3b1   : > { %v3510_v19 = vrot.slane %v3501_v33, 4 }
 0x3b3   : > { %3528 = vadd.xlane.f32.xlu2 %v3527_v31  ;;  %v3514_v29 = vsel %vm792_vm3, %v3507_v55, %v3510_v19  ;;  %v5924_v46 = vmul.f32 %v4327_v16, %v3510_v19  ;;  %v3274_v55 = vpop.f32.mrf.mxu0 }
 0x3b4   : > { %v3521_v30 = vmul.f32 %v4327_v16, %v3514_v29  ;;  %v3303_v29 = vpop.f32.mrf.mxu1 }
 0x3b6   : > { %v3530_v32 = vsel %vm3523_vm12, %v3521_v30, 0.0  ;;  %v3166_v30 = vpop.xlane.xlu1 %3165  ;;  %vm3701_vm12 = vcmask 122880  }
 0x3b7   : > { %3531 = vadd.xlane.f32.xlu1 %v3530_v32  ;;  %vm3172_vm7 = vcmp.gt.f32.partialorder %v3166_v30, 128.0 }
 0x3bb   : > { %v3277_v36 = vpop.f32.mrf.mxu0 }
 0x3bc   : > { %v3306_v32 = vpop.f32.mrf.mxu1 }
 0x3bd   : > { %v3307_v61 = vadd.f32 %v3306_v32, %v3277_v36 }
 0x416   : > { %v3480_v41 = vpop.xlane.xlu2 %3479  ;;  %v3483_v7 = vpop.xlane.xlu0 %3482 }
 0x417   : > { %vm3484_vm14 = vcmp.gt.f32.partialorder %v3480_v41, 128.0  ;;  %vm3486_vm15 = vcmp.lt.f32.partialorder %v3483_v7, -0.5  ;;  %v3304_v41 = vadd.f32 %v3303_v29, %v3274_v55  ;;  %v3316_v7 = vmul.f32 %v3307_v61, %v3307_v61 }
 0x418   : > { %v3485_v17 = vsel %vm3484_vm14, 255.0, %v4675_v35  ;;  %v3487_v0 = vsel %vm3486_vm15, -1.0, %v6187_v23  ;;  %vm3394_vm14 = vcmask 290816  }
 0x419   : > { %v5929_v52 = vsub.f32 %v3485_v17, %v3487_v0  ;;  %v3315_v17 = vmul.f32 %v3304_v41, %v3304_v41  ;;  %v3309_v0 = vpop.f32.mrf.mxu1 }
 0x41b   : > { %v3489_v3 = vmul.f32 0.01, %v5929_v52 }
 0x41d   : > { %v3490_v5 = vmul.f32 %v3489_v3, %v3489_v3  ;;  %v3173_v3 = vsel %vm3172_vm7, 255.0, %v4675_v35  ;;  %vm3958_vm7 = vcmask 36864  }
 0x41e   : > { %v3526_v22 = vpop.xlane.xlu2 %3525 }
 0x41f   : > { %v5931_v44 = vmul.f32 %v3526_v22, %v3526_v22  ;;  %v3541_v43 = vrot.slane %v3526_v22, 5 }
 0x421   : > { %v3588_v56 = vrot.slane %v5931_v44, 5 }
 0x425   : > { %v3639_v53 = vpop.f32.mrf.mxu2 }
 0x426   : > { %4211 = vmatmul.msk.f32.vlgmr.msrb.gmra.mxu3 %vm3691_vm0, %v3639_v53  ;;  %v5934_v38 = vpop.xlane.xlu2 %3528  ;;  %v3649_v13 = vsel %vm3645_vm4, %v3639_v53, inf  ;;  %v3646_v15 = vsel %vm3645_vm4, %v3639_v53, -inf  ;;  %v3687_v11 = vmul.f32 %v4328_v47, %v3639_v53  ;;  %v3661_v37 = vmul.f32 %v3639_v53, %v3639_v53 }
 0x427   : > { %v5938_v59 = vmul.f32 %v5934_v38, %v5934_v38  ;;  %v3542_v1 = vrot.slane %v5934_v38, 5  ;;  %3650 = vmin.xlane.f32.xlu1 %v3649_v13  ;;  %3647 = vmax.xlane.f32.xlu0 %v3646_v15  ;;  %v3665_v62 = vrot.slane %v3639_v53, 5  ;;  %v3341_v13 = vrot.slane %v3316_v7, 6 }
 0x428   : > { %v3692_v39 = vsel %vm3691_vm0, %v3687_v11, 0.0  ;;  %v3671_v58 = vrot.slane %v3661_v37, 6 }
 0x429   : > { %v3589_v25 = vrot.slane %v5938_v59, 5  ;;  %v3543_v42 = vsel %vm2257_vm6, %v3541_v43, %v3542_v1  ;;  %v3563_v36 = vrot.slane %v5938_v59, 6 }
 0x42a   : > { %v5945_v50 = vmul.f32 %v3543_v42, %v3526_v22  ;;  %v3171_v22 = vpop.xlane.xlu1 %3170 }
 0x42b   : > { %v3590_v20 = vsel %vm2257_vm6, %v3588_v56, %v3589_v25  ;;  %vm3174_vm5 = vcmp.lt.f32.partialorder %v3171_v22, -0.5  ;;  %v3312_v22 = vpop.f32.mrf.mxu1 }
 0x42c   : > { %v3592_v45 = vadd.f32 %v3590_v20, %v5931_v44  ;;  %v3586_v60 = vmul.f32 2.0, %v5945_v50  ;;  %v3175_v43 = vsel %vm3174_vm5, -1.0, %v6187_v23 }
 0x42d   : > { %v3176_v25 = vsub.f32 %v3173_v3, %v3175_v43 }
 0x42e   : > { %v3587_v8 = vadd.f32 %v3586_v60, %v3490_v5  ;;  %v3593_v57 = vadd.f32 %v3592_v45, %v3490_v5 }
 0x42f   : > { %3693 = vadd.xlane.f32.xlu0 %v3692_v39  ;;  %v3179_v20 = vmul.f32 0.03, %v3176_v25 }
 0x430   : > { %4346 = vrcp.f32 %v3593_v57 }
 0x431   : > { %v3642_v21 = vpop.f32.mrf.mxu2  ;;  %v5967_v60 = vmul.f32 %v3179_v20, %v3179_v20 }
 0x432   : > { %v3662_v51 = vmul.f32 %v3642_v21, %v3642_v21  ;;  %v3666_v16 = vrot.slane %v3642_v21, 5  ;;  %v3680_v12 = vsel %vm774_vm1, %v3642_v21, %v3671_v58  ;;  %v3319_v21 = vrot.slane %v3304_v41, 5 }
 0x433   : > { %v3681_v34 = vsel %vm783_vm2, %v3680_v12, %v3671_v58  ;;  %v3352_v39 = vrot.slane %v5967_v60, 6  ;;  %v3332_v59 = vrot.slane %v5967_v60, 4 }
 0x434   : > { %v3667_v48 = vsel %vm2257_vm6, %v3665_v62, %v3666_v16  ;;  %v3674_v28 = vrot.slane %v3662_v51, 6  ;;  %4212 = vmatmul.msk.f32.gmra.mxu3 %vm3691_vm0, %v3681_v34  ;;  %v3688_v27 = vmul.f32 %v4328_v47, %v3681_v34 }
 0x435   : > { %v3669_v40 = vmul.f32 %v3667_v48, %v3639_v53  ;;  %v3280_v53 = vpop.f32.mrf.mxu0 }
 0x436   : > { %v4347_v6 = vpop.eup %4346  ;;  %v3695_v10 = vsel %vm3691_vm0, %v3688_v27, 0.0  ;;  %v3675_v4 = vsel %vm774_vm1, %v3671_v58, %v3674_v28  ;;  %v3310_v15 = vadd.f32 %v3309_v0, %v3280_v53  ;;  %v3320_v58 = vrot.slane %v3307_v61, 5 }
 0x437   : > { %v3678_v63 = vrot.slane %v3669_v40, 4  ;;  %3696 = vadd.xlane.f32.xlu1 %v3695_v10  ;;  %v3595_v26 = vmul.f32 %v4347_v6, %v3593_v57  ;;  %v5970_v57 = vld [vmem:[#allocation15] ss:$0 sm:$0xff]  ;;  %v3367_v27 = vrot.slane %v3316_v7, 5  ;;  %v3366_v10 = vrot.slane %v3315_v17, 5 }
 0x438   : > { %v3321_v34 = vsel %vm2257_vm6, %v3319_v21, %v3320_v58 }
 0x439   : > { %v3682_v54 = vsel %vm792_vm3, %v3675_v4, %v3678_v63  ;;  %v5958_v9 = vmul.f32 %v4328_v47, %v3678_v63  ;;  %v3596_v2 = vsub.f32 2.0, %v3595_v26  ;;  %v5975_v40 = vmul.f32 %v3321_v34, %v3304_v41 }
 0x43a   : > { %v3689_v14 = vmul.f32 %v4328_v47, %v3682_v54  ;;  %v3337_v47 = vrot.slane %v3315_v17, 6  ;;  %v3368_v63 = vsel %vm2257_vm6, %v3366_v10, %v3367_v27  ;;  %v3177_v54 = vmul.f32 0.01, %v3176_v25  ;;  %v5991_v25 = vpop.xlane.xlu1 %3531 }
 0x43b   : > { %v3597_v33 = vmul.f32 %v4347_v6, %v3596_v2  ;;  %v3325_v26 = vrot.slane %v5975_v40, 4  ;;  %v3702_v34 = vsel %vm3701_vm12, %v5958_v9, 0.0 }
 0x43c   : > { %v3698_v31 = vsel %vm3691_vm0, %v3689_v14, 0.0  ;;  %v3342_v1 = vsel %vm774_vm1, %v3337_v47, %v3341_v13  ;;  %v3339_v42 = vsub.f32 %v3307_v61, %v3337_v47  ;;  %v3534_v14 = vsel %vm3533_vm10, %v5924_v46, 0.0 }
 0x43d   : > { %3699 = vadd.xlane.f32.xlu2 %v3698_v31  ;;  %v5961_v19 = vmul.f32 %v3597_v33, %v3587_v8  ;;  %v3344_v56 = vsub.f32 %v3310_v15, %v3342_v1  ;;  %v3370_v33 = vadd.f32 %v3368_v63, %v3315_v17  ;;  %v3327_v31 = vsub.f32 %v3310_v15, %v3325_v26  ;;  %v3283_v43 = vpop.f32.mrf.mxu0 }
 0x43e   : > { %v3347_v5 = vrot.slane %v3339_v42, 5  ;;  %v5980_v29 = vmul.f32 %v3177_v54, %v3177_v54  ;;  %v3559_v13 = vrot.slane %v5931_v44, 6  ;;  %v3313_v3 = vadd.f32 %v3312_v22, %v3283_v43 }
 0x43f   : > { %v3348_v11 = vrot.slane %v3344_v56, 5  ;;  %v3329_v17 = vmul.f32 2.0, %v3327_v31  ;;  %vm3994_vm10 = vcmask 32768  }
 0x440   : > { %v3371_v46 = vadd.f32 %v3370_v33, %v5980_v29  ;;  %v3564_v56 = vsel %vm774_vm1, %v3559_v13, %v3563_v36 }
 0x441   : > { %v3349_v45 = vsel %vm2257_vm6, %v3347_v5, %v3348_v11  ;;  %v3334_v5 = vadd.f32 %v3332_v59, %v3329_v17 }
 0x442   : > { %v3351_v37 = vadd.f32 %v3349_v45, %v3339_v42  ;;  %v3566_v45 = vsub.f32 %v5991_v25, %v3564_v56 }
 0x444   : > { %v3354_v8 = vadd.f32 %v3352_v39, %v3351_v37  ;;  %v3328_v37 = vsub.f32 %v3313_v3, %v3325_v26 }
 0x446   : > { %4348 = vrcp.f32 %v3354_v8 }
 0x447   : > { %4350 = vrcp.f32 %v3371_v46 }
 0x44c   : > { %v4349_v48 = vpop.eup %4348 }
 0x44d   : > { %v3356_v6 = vmul.f32 %v4349_v48, %v3354_v8  ;;  %v3561_v8 = vsub.f32 %v5934_v38, %v3559_v13 }
 0x44f   : > { %v3357_v2 = vsub.f32 2.0, %v3356_v6 }
 0x451   : > { %v3358_v32 = vmul.f32 %v4349_v48, %v3357_v2  ;;  %v3364_v2 = vmul.f32 2.0, %v5975_v40 }
 0x453   : > { %v3360_v11 = vrot.slane %v3358_v32, 6 }
 0x455   : > { %v3362_v39 = vmul.f32 %v3360_v11, %v3334_v5 }
 0x457   : > { %v3385_v48 = vsel %vm3384_vm11, %v3362_v39, 0.0 }
 0x4a9   : > { %v3801_v51 = vpop.f32.mrf.mxu3 }
 0x4aa   : > { %v3808_v62 = vsel %vm3807_vm8, %v3801_v51, -inf  ;;  %v3811_v16 = vsel %vm3807_vm8, %v3801_v51, inf  ;;  %v3849_v12 = vmul.f32 %v5970_v57, %v3801_v51  ;;  %v3823_v4 = vmul.f32 %v3801_v51, %v3801_v51 }
 0x4ab   : > { %3809 = vmax.xlane.f32.xlu2 %v3808_v62  ;;  %3812 = vmin.xlane.f32.xlu0 %v3811_v16  ;;  %v3827_v7 = vrot.slane %v3801_v51, 5  ;;  %v4351_v62 = vpop.eup %4350  ;;  %v3330_v16 = vmul.f32 2.0, %v3328_v37  ;;  %vm3992_vm8 = vcmask 39940  }
 0x4ac   : > { %v3854_v28 = vsel %vm3853_vm9, %v3849_v12, 0.0  ;;  %v3833_v55 = vrot.slane %v3823_v4, 6  ;;  %v3491_v12 = vmul.f32 0.03, %v5929_v52  ;;  %v3373_v6 = vmul.f32 %v4351_v62, %v3371_v46 }
 0x4ad   : > { %3855 = vadd.xlane.f32.xlu1 %v3854_v28  ;;  %v3569_v28 = vrot.slane %v3561_v8, 5  ;;  %v3335_v63 = vadd.f32 %v3332_v59, %v3330_v16 }
 0x4ae   : > { %v6004_v10 = vmul.f32 %v3491_v12, %v3491_v12  ;;  %v3374_v52 = vsub.f32 2.0, %v3373_v6 }
 0x4af   : > { %v3363_v54 = vmul.f32 %v3360_v11, %v3335_v63 }
 0x4b0   : > { %v3574_v9 = vrot.slane %v6004_v10, 6  ;;  %v3375_v31 = vmul.f32 %v4351_v62, %v3374_v52 }
 0x4b1   : > { %v3380_v33 = vrot.slane %v3363_v54, 4  ;;  %v3389_v36 = vsel %vm3388_vm13, %v3363_v54, 0.0 }
 0x4b5   : > { %3535 = vadd.xlane.f32.xlu1 %v3534_v14 }
 0x4b7   : > { %v3804_v30 = vpop.f32.mrf.mxu3 }
 0x4b8   : > { %v3828_v61 = vrot.slane %v3804_v30, 5  ;;  %v3842_v41 = vsel %vm774_vm1, %v3804_v30, %v3833_v55  ;;  %v3824_v0 = vmul.f32 %v3804_v30, %v3804_v30 }
 0x4b9   : > { %v3843_v53 = vsel %vm783_vm2, %v3842_v41, %v3833_v55  ;;  %vm3863_vm2 = vcmask 24576  }
 0x4ba   : > { %v3850_v15 = vmul.f32 %v5970_v57, %v3843_v53  ;;  %v3829_v47 = vsel %vm2257_vm6, %v3827_v7, %v3828_v61  ;;  %v3836_v20 = vrot.slane %v3824_v0, 6  ;;  %v3547_v7 = vrot.slane %v5945_v50, 4 }
 0x4bb   : > { %v3831_v1 = vmul.f32 %v3829_v47, %v3801_v51  ;;  %v3570_v51 = vrot.slane %v3566_v45, 5  ;;  %v3648_v47 = vpop.xlane.xlu0 %3647 }
 0x4bc   : > { %v3857_v42 = vsel %vm3853_vm9, %v3850_v15, 0.0  ;;  %v3837_v21 = vsel %vm774_vm1, %v3833_v55, %v3836_v20  ;;  %v3365_v55 = vadd.f32 %v3364_v2, %v5980_v29  ;;  %v3549_v0 = vsub.f32 %v5991_v25, %v3547_v7  ;;  %v3651_v15 = vpop.xlane.xlu1 %3650  ;;  %v3700_v25 = vpop.xlane.xlu2 %3699 }
 0x4bd   : > { %3858 = vadd.xlane.f32.xlu2 %v3857_v42  ;;  %2512 = vadd.xlane.f32.xlu1 %v5881_v49  ;;  %v3840_v44 = vrot.slane %v3831_v1, 4  ;;  %v3571_v27 = vsel %vm2257_vm6, %v3569_v28, %v3570_v51  ;;  %vm3654_vm15 = vcmp.lt.f32.partialorder %v3651_v15, -0.5  ;;  %vm3652_vm0 = vcmp.gt.f32.partialorder %v3648_v47, 128.0 }
 0x4be   : > { %v3573_v4 = vadd.f32 %v3571_v27, %v3561_v8  ;;  %v3376_v32 = vmul.f32 %v3375_v31, %v3365_v55  ;;  %v3551_v53 = vmul.f32 2.0, %v3549_v0  ;;  %v3655_v11 = vsel %vm3654_vm15, -1.0, %v6187_v23 }
 0x4bf   : > { %v3852_v60 = vmul.f32 %v5970_v57, %v3840_v44  ;;  %v3844_v49 = vsel %vm792_vm3, %v3837_v21, %v3840_v44  ;;  %v3653_v20 = vsel %vm3652_vm0, 255.0, %v4675_v35 }
 0x4c0   : > { %v3851_v38 = vmul.f32 %v5970_v57, %v3844_v49  ;;  %v3576_v14 = vadd.f32 %v3574_v9, %v3573_v4  ;;  %v3379_v57 = vrot.slane %v3362_v39, 4  ;;  %v3656_v5 = vsub.f32 %v3653_v20, %v3655_v11 }
 0x4c1   : > { %v3864_v58 = vsel %vm3863_vm2, %v3852_v60, 0.0 }
 0x4c2   : > { %3865 = vadd.xlane.f32.xlu0 %v3864_v58  ;;  %v3860_v26 = vsel %vm3853_vm9, %v3851_v38, 0.0  ;;  %4352 = vrcp.f32 %v3576_v14  ;;  %v3381_v30 = vsel %vm792_vm3, %v3379_v57, %v3380_v33  ;;  %v3659_v37 = vmul.f32 0.03, %v3656_v5 }
 0x4c3   : > { %v3383_v61 = vmul.f32 %v3381_v30, %v3376_v32  ;;  %v3694_v1 = vpop.xlane.xlu0 %3693 }
 0x4c4   : > { %v3697_v43 = vpop.xlane.xlu1 %3696  ;;  %v3705_v59 = vmul.f32 %v3694_v1, %v3694_v1  ;;  %v6024_v58 = vmul.f32 %v3659_v37, %v3659_v37  ;;  %v3709_v27 = vrot.slane %v3694_v1, 5 }
 0x4c5   : > { %3703 = vadd.xlane.f32.xlu2 %v3702_v34  ;;  %3386 = vadd.xlane.f32.xlu1 %v3385_v48  ;;  %v3395_v41 = vsel %vm3394_vm14, %v3383_v61, 0.0  ;;  %v3706_v50 = vmul.f32 %v3697_v43, %v3697_v43  ;;  %v3657_v48 = vmul.f32 0.01, %v3656_v5  ;;  %v3710_v28 = vrot.slane %v3697_v43, 5 }
 0x4c6   : > { %v3727_v56 = vrot.slane %v3705_v59, 6  ;;  %v3742_v49 = vrot.slane %v6024_v58, 6  ;;  %v3756_v62 = vrot.slane %v3705_v59, 5 }
 0x4c7   : > { %v3731_v3 = vrot.slane %v3706_v50, 6  ;;  %v3757_v51 = vrot.slane %v3706_v50, 5  ;;  %v6030_v6 = vmul.f32 %v3657_v48, %v3657_v48 }
 0x4c8   : > { %v3729_v45 = vsub.f32 %v3697_v43, %v3727_v56 }
 0x4c9   : > { %v3732_v42 = vsel %vm774_vm1, %v3727_v56, %v3731_v3  ;;  %v3758_v34 = vsel %vm2257_vm6, %v3756_v62, %v3757_v51 }
 0x4ca   : > { %3861 = vadd.xlane.f32.xlu0 %v3860_v26  ;;  %v3734_v44 = vsub.f32 %v3700_v25, %v3732_v42  ;;  %v3737_v39 = vrot.slane %v3729_v45, 5  ;;  %v3760_v38 = vadd.f32 %v3758_v34, %v3705_v59 }
 0x4cc   : > { %v3738_v60 = vrot.slane %v3734_v44, 5  ;;  %v3761_v54 = vadd.f32 %v3760_v38, %v6030_v6 }
 0x4cd   : > { %2523 = vadd.xlane.f32.xlu2 %v5885_v24  ;;  %v4353_v24 = vpop.eup %4352 }
 0x4ce   : > { %v3578_v40 = vmul.f32 %v4353_v24, %v3576_v14  ;;  %v3739_v8 = vsel %vm2257_vm6, %v3737_v39, %v3738_v60 }
 0x4cf   : > { %v3741_v21 = vadd.f32 %v3739_v8, %v3729_v45 }
 0x4d0   : > { %v3579_v22 = vsub.f32 2.0, %v3578_v40 }
 0x4d1   : > { %v3744_v16 = vadd.f32 %v3742_v49, %v3741_v21 }
 0x4d2   : > { %2535 = vadd.xlane.f32.xlu0 %v5889_v18  ;;  %v3580_v29 = vmul.f32 %v4353_v24, %v3579_v22  ;;  %v3554_v18 = vrot.slane %v6004_v10, 4  ;;  %v3711_v10 = vsel %vm2257_vm6, %v3709_v27, %v3710_v28 }
 0x4d3   : > { %4354 = vrcp.f32 %v3744_v16  ;;  %v3713_v9 = vmul.f32 %v3711_v10, %v3694_v1 }
 0x4d4   : > { %v3582_v46 = vrot.slane %v3580_v29, 6  ;;  %v3556_v17 = vadd.f32 %v3554_v18, %v3551_v53  ;;  %4356 = vrcp.f32 %v3761_v54 }
 0x4d5   : > { %3390 = vadd.xlane.f32.xlu2 %v3389_v36  ;;  %v3715_v31 = vrot.slane %v3713_v9, 4  ;;  %v3754_v44 = vmul.f32 2.0, %v3713_v9 }
 0x4d6   : > { %v6016_v13 = vmul.f32 %v3582_v46, %v3556_v17 }
 0x4d7   : > { %v3717_v40 = vsub.f32 %v3700_v25, %v3715_v31  ;;  %v3755_v38 = vadd.f32 %v3754_v44, %v6030_v6 }
 0x4d8   : > { %v3601_v61 = vrot.slane %v6016_v13, 4 }
 0x4d9   : > { %v4355_v52 = vpop.eup %4354 }
 0x4da   : > { %3396 = vadd.xlane.f32.xlu0 %v3395_v41  ;;  %v3746_v33 = vmul.f32 %v4355_v52, %v3744_v16  ;;  %v4357_v41 = vpop.eup %4356 }
 0x4db   : > { %v3763_v47 = vmul.f32 %v4357_v41, %v3761_v54 }
 0x4dc   : > { %v3747_v36 = vsub.f32 2.0, %v3746_v33 }
 0x4dd   : > { %v3764_v42 = vsub.f32 2.0, %v3763_v47 }
 0x4de   : > { %v3748_v17 = vmul.f32 %v4355_v52, %v3747_v36 }
 0x4df   : > { %v3765_v51 = vmul.f32 %v4357_v41, %v3764_v42 }
 0x4e0   : > { %v3750_v3 = vrot.slane %v3748_v17, 6 }
 0x4e1   : > { %v3766_v54 = vmul.f32 %v3765_v51, %v3755_v38 }
 0x4ed   : > { %3962 = vrot.lane.b32.xlu2 %v6016_v13, %s4677_s16  ;;  %v3719_v13 = vmul.f32 2.0, %v3717_v40 }
 0x51e   : > { %v3810_v63 = vpop.xlane.xlu2 %3809  ;;  %v3813_v14 = vpop.xlane.xlu0 %3812 }
 0x51f   : > { %vm3814_vm4 = vcmp.gt.f32.partialorder %v3810_v63, 128.0  ;;  %vm3816_vm5 = vcmp.lt.f32.partialorder %v3813_v14, -0.5 }
 0x520   : > { %v6027_v12 = vpop.xlane.xlu1 %3855  ;;  %v3817_v22 = vsel %vm3816_vm5, -1.0, %v6187_v23 }
 0x521   : > { %v3867_v0 = vmul.f32 %v6027_v12, %v6027_v12  ;;  %v3871_v16 = vrot.slane %v6027_v12, 5 }
 0x523   : > { %v3918_v43 = vrot.slane %v3867_v0, 5  ;;  %v3889_v25 = vrot.slane %v3867_v0, 6 }
 0x528   : > { %v3536_v26 = vpop.xlane.xlu1 %3535 }
 0x529   : > { %v3550_v4 = vsub.f32 %v3536_v26, %v3547_v7  ;;  %v3815_v7 = vsel %vm3814_vm4, 255.0, %v4675_v35  ;;  %v3722_v35 = vrot.slane %v6024_v58, 4 }
 0x52a   : > { %v3818_v15 = vsub.f32 %v3815_v7, %v3817_v22 }
 0x52b   : > { %v3552_v2 = vmul.f32 2.0, %v3550_v4  ;;  %v3724_v11 = vadd.f32 %v3722_v35, %v3719_v13 }
 0x52c   : > { %v3819_v56 = vmul.f32 0.01, %v3818_v15 }
 0x52d   : > { %v3557_v57 = vadd.f32 %v3554_v18, %v3552_v2  ;;  %v3752_v58 = vmul.f32 %v3750_v3, %v3724_v11 }
 0x52e   : > { %v3820_v21 = vmul.f32 %v3819_v56, %v3819_v56 }
 0x52f   : > { %v3585_v55 = vmul.f32 %v3582_v46, %v3557_v57  ;;  %v3769_v63 = vrot.slane %v3752_v58, 4 }
 0x530   : > { %v3859_v30 = vpop.xlane.xlu2 %3858 }
 0x531   : > { %v3868_v32 = vmul.f32 %v3859_v30, %v3859_v30  ;;  %3964 = vrot.lane.b32.xlu0 %v3585_v55, %s4677_s16  ;;  %v3602_v24 = vrot.slane %v3585_v55, 4  ;;  %v3891_v5 = vsub.f32 %v3859_v30, %v3889_v25  ;;  %v3872_v60 = vrot.slane %v3859_v30, 5 }
 0x533   : > { %v3603_v29 = vsel %vm792_vm3, %v3601_v61, %v3602_v24  ;;  %v3919_v53 = vrot.slane %v3868_v32, 5  ;;  %v3893_v23 = vrot.slane %v3868_v32, 6  ;;  %v3899_v48 = vrot.slane %v3891_v5, 5 }
 0x534   : > { %v3605_v46 = vmul.f32 %v3603_v29, %v5961_v19  ;;  %v3821_v19 = vmul.f32 0.03, %v3818_v15  ;;  %v3873_v10 = vsel %vm2257_vm6, %v3871_v16, %v3872_v60 }
 0x535   : > { %v3866_v18 = vpop.xlane.xlu0 %3865  ;;  %v3920_v50 = vsel %vm2257_vm6, %v3918_v43, %v3919_v53  ;;  %v3894_v39 = vsel %vm774_vm1, %v3889_v25, %v3893_v23  ;;  %v3875_v14 = vmul.f32 %v3873_v10, %v6027_v12  ;;  %vm3951_vm1 = vcmask 7168  }
 0x536   : > { %3940 = vrot.lane.b32.xlu1 %v3605_v46, %s4677_s16  ;;  %v3922_v45 = vadd.f32 %v3920_v50, %v3867_v0  ;;  %v3822_v62 = vmul.f32 %v3821_v19, %v3821_v19 }
 0x537   : > { %v3877_v6 = vrot.slane %v3875_v14, 4  ;;  %v3916_v29 = vmul.f32 2.0, %v3875_v14 }
 0x538   : > { %v3704_v1 = vpop.xlane.xlu2 %3703  ;;  %v3923_v27 = vadd.f32 %v3922_v45, %v3820_v21  ;;  %v3904_v52 = vrot.slane %v3822_v62, 6  ;;  %v3884_v22 = vrot.slane %v3822_v62, 4 }
 0x539   : > { %v3718_v59 = vsub.f32 %v3704_v1, %v3715_v31  ;;  %v3880_v55 = vsub.f32 %v3866_v18, %v3877_v6  ;;  %v3917_v13 = vadd.f32 %v3916_v29, %v3820_v21 }
 0x53a   : > { %4358 = vrcp.f32 %v3923_v27 }
 0x53b   : > { %v3720_v20 = vmul.f32 2.0, %v3718_v59  ;;  %v3882_v24 = vmul.f32 2.0, %v3880_v55 }
 0x53d   : > { %v3725_v37 = vadd.f32 %v3722_v35, %v3720_v20  ;;  %v3862_v8 = vpop.xlane.xlu0 %3861  ;;  %v3887_v12 = vadd.f32 %v3884_v22, %v3882_v24 }
 0x53e   : > { %v3896_v49 = vsub.f32 %v3862_v8, %v3894_v39  ;;  %3970 = vrot.lane.b32.xlu1 %v3752_v58, %s4678_s3  ;;  %v3879_v30 = vsub.f32 %v3862_v8, %v3877_v6 }
 0x53f   : > { %v3753_v34 = vmul.f32 %v3750_v3, %v3725_v37  ;;  %v2513_v3 = vpop.xlane.xlu1 %2512 }
 0x540   : > { %v3900_v28 = vrot.slane %v3896_v49, 5  ;;  %v4359_v31 = vpop.eup %4358  ;;  %v3881_v41 = vmul.f32 2.0, %v3879_v30  ;;  %v2524_v50 = vpop.xlane.xlu2 %2523  ;;  %v2525_v16 = vmul.f32 0.0020661156, %v2513_v3 }
 0x541   : > { %3972 = vrot.lane.b32.xlu0 %v3753_v34, %s4678_s3  ;;  %v3770_v26 = vrot.slane %v3753_v34, 4  ;;  %v3925_v36 = vmul.f32 %v4359_v31, %v3923_v27  ;;  %v2526_v34 = vmul.f32 0.0020661156, %v2524_v50 }
 0x542   : > { %v3901_v4 = vsel %vm2257_vm6, %v3899_v48, %v3900_v28  ;;  %v3886_v53 = vadd.f32 %v3884_v22, %v3881_v41  ;;  %vm3953_vm6 = vcmask 15360  }
 0x543   : > { %v3903_v9 = vadd.f32 %v3901_v4, %v3891_v5  ;;  %v3771_v2 = vsel %vm792_vm3, %v3769_v63, %v3770_v26  ;;  %v3926_v7 = vsub.f32 2.0, %v3925_v36 }
 0x544   : > { %v3773_v57 = vmul.f32 %v3771_v2, %v3766_v54 }
 0x545   : > { %v3906_v33 = vadd.f32 %v3904_v52, %v3903_v9  ;;  %v3927_v17 = vmul.f32 %v4359_v31, %v3926_v7  ;;  %v2536_v56 = vpop.xlane.xlu0 %2535 }
 0x546   : > { %3944 = vrot.lane.b32.xlu2 %v3773_v57, %s4678_s3  ;;  %v2537_v44 = vmul.f32 0.0020661156, %v2536_v56 }
 0x547   : > { %4360 = vrcp.f32 %v3906_v33  ;;  %v3928_v35 = vmul.f32 %v3927_v17, %v3917_v13  ;;  %v3387_v42 = vpop.xlane.xlu1 %3386 }
 0x548   : > { %v3391_v59 = vpop.xlane.xlu2 %3390  ;;  %v3392_v51 = vmul.f32 0.027777778, %v3387_v42 }
 0x549   : > { %v3393_v62 = vmul.f32 0.027777778, %v3391_v59 }
 0x54a   : > { %v3984_v48 = vsel %vm3951_vm1, %v2525_v16, %v3392_v51 }
 0x54b   : > { %v3985_v28 = vsel %vm3951_vm1, %v2526_v34, %v3393_v62 }
 0x54d   : > { %v4361_v32 = vpop.eup %4360  ;;  %v3397_v11 = vpop.xlane.xlu0 %3396 }
 0x54e   : > { %v3908_v61 = vmul.f32 %v4361_v32, %v3906_v33  ;;  %v3398_v19 = vmul.f32 0.027777778, %v3397_v11 }
 0x550   : > { %v3909_v40 = vsub.f32 2.0, %v3908_v61  ;;  %v3963_v25 = vpop.permute.xlu2 %3962  ;;  %v3952_v45 = vsel %vm3951_vm1, %v2537_v44, %v3398_v19 }
 0x551   : > { %v3986_v38 = vsel %vm3953_vm6, %v3984_v48, %v3963_v25 }
 0x552   : > { %v3910_v0 = vmul.f32 %v4361_v32, %v3909_v40 }
 0x554   : > { %v3912_v46 = vrot.slane %v3910_v0, 6 }
 0x556   : > { %v3915_v15 = vmul.f32 %v3912_v46, %v3887_v12  ;;  %v3914_v47 = vmul.f32 %v3912_v46, %v3886_v53 }
 0x558   : > { %3980 = vrot.lane.b32.xlu0 %v3915_v15, %s4679_s19  ;;  %v3932_v18 = vrot.slane %v3915_v15, 4  ;;  %3978 = vrot.lane.b32.xlu1 %v3914_v47, %s4679_s19  ;;  %v3931_v43 = vrot.slane %v3914_v47, 4 }
 0x55a   : > { %v3933_v1 = vsel %vm792_vm3, %v3931_v43, %v3932_v18  ;;  %vm3955_vm3 = vcmask 23552  }
 0x55b   : > { %v3935_v23 = vmul.f32 %v3933_v1, %v3928_v35 }
 0x55d   : > { %3948 = vrot.lane.b32.xlu2 %v3935_v23, %s4679_s19 }
 0x5a0   : > { %v3945_v20 = vpop.permute.xlu2 %3944 }
 0x5a3   : > { %v3965_v58 = vpop.permute.xlu0 %3964 }
 0x5a4   : > { %v3987_v27 = vsel %vm3953_vm6, %v3985_v28, %v3965_v58 }
 0x5a8   : > { %v3941_v5 = vpop.permute.xlu1 %3940 }
 0x5a9   : > { %v3954_v60 = vsel %vm3953_vm6, %v3952_v45, %v3941_v5 }
 0x5aa   : > { %v3956_v39 = vsel %vm3955_vm3, %v3954_v60, %v3945_v20 }
 0x5b0   : > { %v3971_v21 = vpop.permute.xlu1 %3970 }
 0x5b1   : > { %v3988_v10 = vsel %vm3955_vm3, %v3986_v38, %v3971_v21 }
 0x5b3   : > { %v3973_v49 = vpop.permute.xlu0 %3972 }
 0x5b4   : > { %v3989_v63 = vsel %vm3955_vm3, %v3987_v27, %v3973_v49 }
 0x5b7   : > { %v3949_v37 = vpop.permute.xlu2 %3948 }
 0x5b8   : > { %v3957_v8 = vsel %vm3853_vm9, %v3956_v39, %v3949_v37 }
 0x5b9   : > { %3959 = vst.msk [vmem:[%s581_s30] sm:$0x1f] %vm3958_vm7, %v3957_v8 }
 0x5ca   : > { %v3979_v26 = vpop.permute.xlu1 %3978  ;;  %v3981_v4 = vpop.permute.xlu0 %3980 }
 0x5cb   : > { %v3990_v54 = vsel %vm3853_vm9, %v3988_v10, %v3979_v26  ;;  %v3991_v52 = vsel %vm3853_vm9, %v3989_v63, %v3981_v4 }
 0x5cc   : > { %3993 = vst.msk [vmem:[%s585_s28 - $0x4] sm:$0xf0] %vm3992_vm8, %v3990_v54 }
 0x5cd   : > { %3995 = vst.msk [vmem:[%s585_s28 + $0x4] sm:$0x1] %vm3994_vm10, %v3991_v52 }
 0x5ce PF: > { %s28_s21 = sadd.s32 1, %s4658_s21  }
 0x5cf   : > { %p25_p7 = scmp.ge.s32.totalorder %s28_s21, 4  }
 0x5d1   :  { %27 = sbr.rel (!%p25_p7) target bundleno = 8 (0x8), region = 146 }
 0x5d6   :  { %4029 = vsyncpa [#allocation3], 1 }
 0x5d7   :  { %4031 = vsyncpa [#allocation3 + $0x1], 1 }
 0x5d8   :  { %4032 = vsyncpa [#allocation5], 1 }
 0x5d9   :  { %4033 = vsyncpa [#allocation8], 1 }
 0x5da   :  { %4034 = vsyncpa [#allocation11], 1 }
 0x5db   :  { %4035 = vsyncpa [#allocation14], 1 }

</bundles_post_ra>
